<compile_context>
chip_gen: v6e
topology: v6e:2x2x1
jax: 0.10.0
libtpu: 0.0.40
codegen_flags: <defaults>
</compile_context>

<pallas_src>
import jax
import jax.numpy as jnp
from jax.experimental import pallas as pl
from jax.experimental.pallas import tpu as pltpu


def reggnn_kernel(xw1_ref, adj_ref, dinv_ref, vrow_ref, b1_ref, w2_ref, b2lin_ref,
                  out_ref):
    adj = adj_ref[...]              # [Bt, N, N]  bf16
    dinv = dinv_ref[...]            # [Bt, N, 1]  f32   D^-1/2 per node (column orientation)

    # ---- GCN layer 1: h1 = relu(D^-1/2 A D^-1/2 (x W1) + b1) ----
    z1 = (dinv * xw1_ref[...]).astype(jnp.bfloat16)                       # [Bt, N, H]
    a1 = jnp.einsum("bnm,bmh->bnh", adj, z1,
                    preferred_element_type=jnp.float32)                   # [Bt, N, H] f32
    h1 = jnp.maximum(dinv * a1 + b1_ref[...], 0.0)                        # [Bt, N, H] f32
    # TODO(synk): F.dropout(training=self.training) treated as identity (inference mode).

    # ---- GCN layer 2 folded with LinearLayer (see header derivation) ----
    # u = (Wlin*dinv) @ A          -> [Bt, 1, N]
    u = jnp.einsum("bsn,bnm->bsm", vrow_ref[...], adj,
                   preferred_element_type=jnp.float32)
    # t = u @ (dinv * h1)          -> [Bt, 1, H]
    t = jnp.einsum("bsn,bnh->bsh", u, dinv * h1,
                   preferred_element_type=jnp.float32)
    # y = t @ W2 + (sum(Wlin)*b2 + blin)
    w2b = jnp.broadcast_to(w2_ref[...][None],
                           (t.shape[0], w2_ref.shape[0], w2_ref.shape[1]))
    y = jnp.einsum("bsh,bho->bso", t, w2b,
                   preferred_element_type=jnp.float32)                    # [Bt, 1, O]
    out_ref[...] = (y + b2lin_ref[...]).astype(out_ref.dtype)


def reggnn_forward(x, adj, params, *, batch_tile=4):
    B, N, F = x.shape
    H = params["w1"].shape[1]
    O = params["w2"].shape[1]

    # f32 preprocessing in XLA (fuses with the bf16 cast's read of adj):
    deg = jnp.maximum(jnp.sum(adj, axis=-1), 1.0)                      # [B, N]
    dinv = jax.lax.rsqrt(deg)                                          # [B, N]
    dinv_c = dinv[:, :, None]                                          # [B, N, 1] f32
    vrow = (params["wlin"][0][None, :] * dinv)[:, None, :]             # [B, 1, N]
    xw1 = jnp.einsum("bnf,fh->bnh", x, params["w1"])                   # [B, N, H]
    b2lin = jnp.sum(params["wlin"]) * params["b2"] + params["blin"]    # [1, O]

    # bf16 for the HBM-dominant operands.
    adj_bf = adj.astype(jnp.bfloat16)
    xw1_bf = xw1.astype(jnp.bfloat16)
    vrow_bf = vrow.astype(jnp.bfloat16)

    # Batch tile: pad B up to a multiple of bt (zero graphs are harmless: deg clamps to 1).
    bt = max(1, min(batch_tile, B))
    b_pad = pl.cdiv(B, bt) * bt
    if b_pad != B:
        pad = b_pad - B
        adj_bf = jnp.pad(adj_bf, ((0, pad), (0, 0), (0, 0)))
        xw1_bf = jnp.pad(xw1_bf, ((0, pad), (0, 0), (0, 0)))
        dinv_c = jnp.pad(dinv_c, ((0, pad), (0, 0), (0, 0)), constant_values=1.0)
        vrow_bf = jnp.pad(vrow_bf, ((0, pad), (0, 0), (0, 0)))

    out = pl.pallas_call(
        reggnn_kernel,
        out_shape=jax.ShapeDtypeStruct((b_pad, 1, O), jnp.float32),
        grid_spec=pltpu.PrefetchScalarGridSpec(
            num_scalar_prefetch=0,
            grid=(b_pad // bt,),
            in_specs=[
                pl.BlockSpec((bt, N, H), lambda b: (b, 0, 0)),   # x @ W1      (bf16)
                pl.BlockSpec((bt, N, N), lambda b: (b, 0, 0)),   # adj         (bf16)
                pl.BlockSpec((bt, N, 1), lambda b: (b, 0, 0)),   # D^-1/2      (f32)
                pl.BlockSpec((bt, 1, N), lambda b: (b, 0, 0)),   # Wlin*D^-1/2 (bf16)
                pl.BlockSpec((1, H), lambda b: (0, 0)),          # b1
                pl.BlockSpec((H, O), lambda b: (0, 0)),          # W2
                pl.BlockSpec((1, O), lambda b: (0, 0)),          # sum(Wlin)*b2 + blin
            ],
            out_specs=pl.BlockSpec((bt, 1, O), lambda b: (b, 0, 0)),
        ),
        compiler_params=pltpu.CompilerParams(
            dimension_semantics=("parallel",),
            vmem_limit_bytes=32 * 1024 * 1024,
        ),
    )(xw1_bf, adj_bf, dinv_c, vrow_bf, params["b1"], params["w2"], b2lin)
    return out.reshape(b_pad, O)[:B]


def reggnn_reference(x, adj, p):
    """Plain-JAX f32 reference mirroring the PyTorch forward (eval mode)."""
    deg = jnp.maximum(adj.sum(-1), 1.0)
    dinv = deg ** -0.5
    adj_n = dinv[:, :, None] * adj * dinv[:, None, :]
    h1 = jax.nn.relu(adj_n @ (x @ p["w1"]) + p["b1"])
    h2 = adj_n @ (h1 @ p["w2"]) + p["b2"]
    y = jnp.einsum("bno,n->bo", h2, p["wlin"][0]) + p["blin"][0, 0]
    return y


if __name__ == "__main__":
    # N is pinned to 400 by nn.Linear(400, 1); B=8 with batch_tile=4 gives a 2-step
    # parallel grid (both v7x cores busy).
    B, N, NFEAT, NHID, NOUT = 8, 400, 16, 32, 8

    key = jax.random.PRNGKey(0)
    kx, ka, k1, k2, k3, k4, k5, k6 = jax.random.split(key, 8)

    x = jax.random.normal(kx, (B, N, NFEAT), dtype=jnp.float32)
    # Symmetric, non-negative adjacency (typical connectome-style input).
    a = jax.random.uniform(ka, (B, N, N), dtype=jnp.float32)
    adj = 0.5 * (a + jnp.transpose(a, (0, 2, 1)))

    params = {
        "w1": 0.1 * jax.random.normal(k1, (NFEAT, NHID), dtype=jnp.float32),
        "b1": 0.1 * jax.random.normal(k2, (1, NHID), dtype=jnp.float32),
        "w2": 0.1 * jax.random.normal(k3, (NHID, NOUT), dtype=jnp.float32),
        "b2": 0.1 * jax.random.normal(k4, (1, NOUT), dtype=jnp.float32),
        "wlin": 0.05 * jax.random.normal(k5, (1, N), dtype=jnp.float32),
        "blin": 0.1 * jax.random.normal(k6, (1, 1), dtype=jnp.float32),
    }

    out = jax.block_until_ready(reggnn_forward(x, adj, params, batch_tile=4))
    ref = jax.block_until_ready(reggnn_reference(x, adj, params))

    assert out.shape == (B, NOUT), out.shape
    # bf16 adjacency/activations in the kernel vs. full-f32 reference -> loosened tolerance.
    assert jnp.allclose(out, ref, rtol=2e-2, atol=2e-2), (out, ref)
    print("KERNEL_OK")
</pallas_src>

<mosaic_0001>
module attributes {stable_mosaic.version = 11 : i64} {
  func.func @reggnn_kernel(%arg0: i32, %arg1: memref<4x400x32xbf16, #tpu.memory_space<vmem>>, %arg2: memref<4x400x400xbf16, #tpu.memory_space<vmem>>, %arg3: memref<4x400x1xf32, #tpu.memory_space<vmem>>, %arg4: memref<4x1x400xbf16, #tpu.memory_space<vmem>>, %arg5: memref<1x32xf32, #tpu.memory_space<vmem>>, %arg6: memref<32x8xf32, #tpu.memory_space<vmem>>, %arg7: memref<1x8xf32, #tpu.memory_space<vmem>>, %arg8: memref<4x1x8xf32, #tpu.memory_space<vmem>>) attributes {dimension_semantics = [#tpu.dimension_semantics<parallel>], iteration_bounds = array<i64: 2>, scalar_prefetch = 0 : i64, scratch_operands = 0 : i64, tpu.core_type = #tpu.core_type<tc>, window_params = [{transform_indices = @transform_0, window_bounds = array<i64: 4, 400, 32>}, {transform_indices = @transform_1, window_bounds = array<i64: 4, 400, 400>}, {transform_indices = @transform_2, window_bounds = array<i64: 4, 400, 1>}, {transform_indices = @transform_3, window_bounds = array<i64: 4, 1, 400>}, {pipeline_mode = #tpu.pipeline_mode<synchronous>, transform_indices = @transform_4, window_bounds = array<i64: 1, 32>}, {pipeline_mode = #tpu.pipeline_mode<synchronous>, transform_indices = @transform_5, window_bounds = array<i64: 32, 8>}, {pipeline_mode = #tpu.pipeline_mode<synchronous>, transform_indices = @transform_6, window_bounds = array<i64: 1, 8>}, {transform_indices = @transform_7, window_bounds = array<i64: 4, 1, 8>}]} {
    %c0 = arith.constant 0 : index
    %c0_0 = arith.constant 0 : index
    %c0_1 = arith.constant 0 : index
    %0 = vector.load %arg2[%c0, %c0_0, %c0_1] : memref<4x400x400xbf16, #tpu.memory_space<vmem>>, vector<4x400x400xbf16>
    %c0_2 = arith.constant 0 : index
    %c0_3 = arith.constant 0 : index
    %c0_4 = arith.constant 0 : index
    %1 = vector.load %arg3[%c0_2, %c0_3, %c0_4] : memref<4x400x1xf32, #tpu.memory_space<vmem>>, vector<4x400x1xf32>
    %c0_5 = arith.constant 0 : index
    %c0_6 = arith.constant 0 : index
    %c0_7 = arith.constant 0 : index
    %2 = vector.load %arg1[%c0_5, %c0_6, %c0_7] : memref<4x400x32xbf16, #tpu.memory_space<vmem>>, vector<4x400x32xbf16>
    %3 = arith.extf %2 : vector<4x400x32xbf16> to vector<4x400x32xf32>
    %4 = vector.broadcast %1 : vector<4x400x1xf32> to vector<4x400x32xf32>
    %5 = arith.mulf %4, %3 : vector<4x400x32xf32>
    %6 = arith.truncf %5 : vector<4x400x32xf32> to vector<4x400x32xbf16>
    "tpu.trace_start"() <{level = 10 : i32, message = "bnm,bmh->bnh"}> : () -> ()
    %cst = arith.constant dense<0.000000e+00> : vector<4x400x32xf32>
    %7 = tpu.matmul %0, %6, %cst {dimension_numbers = #tpu.dot_dimension_numbers<[2], [1], [1], [2], [0, 0, 0, 1, 1, 2], [0], [0]>} : vector<4x400x400xbf16>, vector<4x400x32xbf16>, vector<4x400x32xf32> -> vector<4x400x32xf32>
    "tpu.trace_stop"() : () -> ()
    %8 = vector.broadcast %1 : vector<4x400x1xf32> to vector<4x400x32xf32>
    %9 = arith.mulf %8, %7 : vector<4x400x32xf32>
    %c0_8 = arith.constant 0 : index
    %c0_9 = arith.constant 0 : index
    %10 = vector.load %arg5[%c0_8, %c0_9] : memref<1x32xf32, #tpu.memory_space<vmem>>, vector<1x32xf32>
    %11 = vector.shape_cast %10 : vector<1x32xf32> to vector<1x1x32xf32>
    %12 = vector.broadcast %11 : vector<1x1x32xf32> to vector<4x400x32xf32>
    %13 = arith.addf %9, %12 : vector<4x400x32xf32>
    %cst_10 = arith.constant 0.000000e+00 : f32
    %14 = vector.broadcast %cst_10 : f32 to vector<4x400x32xf32>
    %15 = arith.maximumf %13, %14 : vector<4x400x32xf32>
    %c0_11 = arith.constant 0 : index
    %c0_12 = arith.constant 0 : index
    %c0_13 = arith.constant 0 : index
    %16 = vector.load %arg4[%c0_11, %c0_12, %c0_13] : memref<4x1x400xbf16, #tpu.memory_space<vmem>>, vector<4x1x400xbf16>
    "tpu.trace_start"() <{level = 10 : i32, message = "bsn,bnm->bsm"}> : () -> ()
    %cst_14 = arith.constant dense<0.000000e+00> : vector<4x1x400xf32>
    %17 = tpu.matmul %16, %0, %cst_14 {dimension_numbers = #tpu.dot_dimension_numbers<[2], [1], [1], [2], [0, 0, 0, 1, 1, 2], [0], [0]>} : vector<4x1x400xbf16>, vector<4x400x400xbf16>, vector<4x1x400xf32> -> vector<4x1x400xf32>
    "tpu.trace_stop"() : () -> ()
    %18 = vector.broadcast %1 : vector<4x400x1xf32> to vector<4x400x32xf32>
    %19 = arith.mulf %18, %15 : vector<4x400x32xf32>
    "tpu.trace_start"() <{level = 10 : i32, message = "bsn,bnh->bsh"}> : () -> ()
    %cst_15 = arith.constant dense<0.000000e+00> : vector<4x1x32xf32>
    %20 = tpu.matmul %17, %19, %cst_15 {dimension_numbers = #tpu.dot_dimension_numbers<[2], [1], [1], [2], [0, 0, 0, 1, 1, 2], [0], [0]>} : vector<4x1x400xf32>, vector<4x400x32xf32>, vector<4x1x32xf32> -> vector<4x1x32xf32>
    "tpu.trace_stop"() : () -> ()
    %c0_16 = arith.constant 0 : index
    %c0_17 = arith.constant 0 : index
    %21 = vector.load %arg6[%c0_16, %c0_17] : memref<32x8xf32, #tpu.memory_space<vmem>>, vector<32x8xf32>
    %22 = vector.shape_cast %21 : vector<32x8xf32> to vector<1x32x8xf32>
    %23 = vector.shape_cast %22 : vector<1x32x8xf32> to vector<1x32x8xf32>
    %24 = vector.broadcast %23 : vector<1x32x8xf32> to vector<4x32x8xf32>
    "tpu.trace_start"() <{level = 10 : i32, message = "bsh,bho->bso"}> : () -> ()
    %cst_18 = arith.constant dense<0.000000e+00> : vector<4x1x8xf32>
    %25 = tpu.matmul %20, %24, %cst_18 {dimension_numbers = #tpu.dot_dimension_numbers<[2], [1], [1], [2], [0, 0, 0, 1, 1, 2], [0], [0]>} : vector<4x1x32xf32>, vector<4x32x8xf32>, vector<4x1x8xf32> -> vector<4x1x8xf32>
    "tpu.trace_stop"() : () -> ()
    %c0_19 = arith.constant 0 : index
    %c0_20 = arith.constant 0 : index
    %26 = vector.load %arg7[%c0_19, %c0_20] : memref<1x8xf32, #tpu.memory_space<vmem>>, vector<1x8xf32>
    %27 = vector.shape_cast %26 : vector<1x8xf32> to vector<1x1x8xf32>
    %28 = vector.broadcast %27 : vector<1x1x8xf32> to vector<4x1x8xf32>
    %29 = arith.addf %25, %28 : vector<4x1x8xf32>
    %c0_21 = arith.constant 0 : index
    %c0_22 = arith.constant 0 : index
    %c0_23 = arith.constant 0 : index
    %30 = vector.load %arg8[%c0_21, %c0_22, %c0_23] : memref<4x1x8xf32, #tpu.memory_space<vmem>>, vector<4x1x8xf32>
    tpu.vector_store %arg8[%c0_21, %c0_22, %c0_23], %29 {strides = array<i32>} : memref<4x1x8xf32, #tpu.memory_space<vmem>>, vector<4x1x8xf32>,
    return
  }
  func.func @transform_0(%arg0: i32) -> (i32, i32, i32) {
    %c0_i32 = arith.constant 0 : i32
    %c0_i32_0 = arith.constant 0 : i32
    %c0_i32_1 = arith.constant 0 : i32
    return %arg0, %c0_i32, %c0_i32_0 : i32, i32, i32
  }
  func.func @transform_1(%arg0: i32) -> (i32, i32, i32) {
    %c0_i32 = arith.constant 0 : i32
    %c0_i32_0 = arith.constant 0 : i32
    %c0_i32_1 = arith.constant 0 : i32
    return %arg0, %c0_i32, %c0_i32_0 : i32, i32, i32
  }
  func.func @transform_2(%arg0: i32) -> (i32, i32, i32) {
    %c0_i32 = arith.constant 0 : i32
    %c0_i32_0 = arith.constant 0 : i32
    %c0_i32_1 = arith.constant 0 : i32
    return %arg0, %c0_i32, %c0_i32_0 : i32, i32, i32
  }
  func.func @transform_3(%arg0: i32) -> (i32, i32, i32) {
    %c0_i32 = arith.constant 0 : i32
    %c0_i32_0 = arith.constant 0 : i32
    %c0_i32_1 = arith.constant 0 : i32
    return %arg0, %c0_i32, %c0_i32_0 : i32, i32, i32
  }
  func.func @transform_4(%arg0: i32) -> (i32, i32) {
    %c0_i32 = arith.constant 0 : i32
    %c0_i32_0 = arith.constant 0 : i32
    %c0_i32_1 = arith.constant 0 : i32
    return %c0_i32, %c0_i32_0 : i32, i32
  }
  func.func @transform_5(%arg0: i32) -> (i32, i32) {
    %c0_i32 = arith.constant 0 : i32
    %c0_i32_0 = arith.constant 0 : i32
    %c0_i32_1 = arith.constant 0 : i32
    return %c0_i32, %c0_i32_0 : i32, i32
  }
  func.func @transform_6(%arg0: i32) -> (i32, i32) {
    %c0_i32 = arith.constant 0 : i32
    %c0_i32_0 = arith.constant 0 : i32
    %c0_i32_1 = arith.constant 0 : i32
    return %c0_i32, %c0_i32_0 : i32, i32
  }
  func.func @transform_7(%arg0: i32) -> (i32, i32, i32) {
    %c0_i32 = arith.constant 0 : i32
    %c0_i32_0 = arith.constant 0 : i32
    %c0_i32_1 = arith.constant 0 : i32
    return %arg0, %c0_i32, %c0_i32_0 : i32, i32, i32
  }
}

</mosaic_0001>

<bundles_post_ra>
// kernel: tpu_custom_call.1
= control target key start
LH: loop header
LB: loop body
LE: loop exit
PB: predicated region body
PF: predicated region fallthrough
CT: control target
= control target key end

     0   :  { %s16704_s0 = inlined_call_operand.vmem [shape: bf16[8,400,32], index: 0, kind: input, shape index: {}]   ;;  %s16705_s1 = inlined_call_operand.hbm [shape: bf16[8,400,400], index: 1, kind: input, shape index: {}]   ;;  %s16706_s2 = inlined_call_operand.vmem [shape: f32[8,400,1], index: 2, kind: input, shape index: {}]   ;;  %s16707_s3 = inlined_call_operand.vmem [shape: bf16[8,1,400], index: 3, kind: input, shape index: {}]   ;;  %s16708_s4 = inlined_call_operand.hbm [shape: f32[1,32], index: 4, kind: input, shape index: {}]   ;;  %s16709_s5 = inlined_call_operand.vmem [shape: f32[32,8], index: 5, kind: input, shape index: {}]   ;;  %s16710_s6 = inlined_call_operand.hbm [shape: f32[1,8], index: 6, kind: input, shape index: {}]   ;;  %s16711_s7 = inlined_call_operand.hbm [shape: f32[8,1,8], index: 7, kind: output, shape index: {}]  }
   0x1   :  { %17116 = sst [smem:[#allocation397_spill]] %s16708_s4 }
   0x2   :  { %12 = vsyncpa [#allocation3], 0 }
   0x3   :  { %14 = vsyncpa [#allocation3 + $0x1], 0 }
   0x4   :  { %15 = vsyncpa [#allocation6], 0 }
   0x5   :  { %16 = vsyncpa [#allocation4], 0 }
   0x6   :  { %18 = vsyncpa [#allocation4 + $0x1], 0  ;;  %s12005_s24 = smov 0   ;;  %s12007_s25 = smov 0  }
   0x7   :  { %s12009_s26 = smov 0   ;;  %s12011_s27 = smov 0  }
   0x8 LB: > { %s12026_s28 = sadd.s32 4294967295, %s11951_s27   ;;  %s9471_s29 = sadd.s32 4294967294, %s11951_s27   ;;  %s11951_s27 = sphi %s12011_s27, %s18080_s27   ;;  %s11947_s26 = sphi %s12009_s26, %s18079_s26   ;;  %s11943_s25 = sphi %s12007_s25, %s18078_s25   ;;  %s11939_s24 = sphi %s12005_s24, %s18077_s24  }
   0x9   : > { %s12030_s30 = sadd.s32 1, %s11951_s27   ;;  %s57_s8 = sadd.s32 1, %s11947_s26 }
   0xa   : > { %s54_s9 = ssub.s32 %s11951_s27, %s12030_s30  ;;  %p64_p0 = scmp.ne.s32.totalorder %s11947_s26, %s11943_s25 }
   0xb   : > { %p55_p1 = scmp.eq.s32.totalorder %s54_s9, 0  ;;  %p65_p2 = scmp.eq.s32.totalorder %s11951_s27, 0 }
   0xc   : > { %p70_p3 = scmp.ne.s32.totalorder %s11943_s25, %s11939_s24  ;;  %p16712_p4 = scmp.eq.s32.totalorder %s12026_s28, 0 }
   0xd   : > { %s12042_s10 = scalar_select %p55_p1, %s11947_s26, %s57_s8  }
   0xe   : > { %p12044_p5 = por %p65_p2, %p64_p0  ;;  %p12050_p6 = por %p16712_p4, %p70_p3 }
   0xf   : > { %p209_p7 = scmp.eq.s32.totalorder %s12026_s28, 1  ;;  %p215_p8 = scmp.eq.s32.totalorder %s9471_s29, 1 }
  0x10   : > { %s17118_s12 = scalar_select %p12050_p6, 1, 0 }
  0x11   : > { %p9472_p9 = scmp.ge.s32.totalorder %s11951_s27, 1  ;;  %p222_p10 = scmp.lt.s32.totalorder %s11951_s27, 3 }
  0x12   : > { %p12057_p11 = por %p209_p7, %p64_p0  ;;  %p12061_p12 = por %p215_p8, %p70_p3 }
  0x13   : > { %p12065_p13 = pnand %p9472_p9, %p222_p10  ;;  %s11953_s16 = smov [#allocation5]  }
  0x14   : > { %s17119_s13 = scalar_select %p12057_p11, 1, 0 }
  0x15   : > { %s17120_s14 = scalar_select %p12061_p12, 1, 0 }
  0x16   : > { %s17121_s15 = scalar_select %p12065_p13, 1, 0 }
  0x17   : > { %p10736_p2 = pneg %p12065_p13  ;;  %s235_s17 = sshll.u32 %s11953_s16, 4  ;;  %s236_s17 = int_to_ptr.vmem [resolvable:$true] %s235_s17 }
  0x18   : > { %p10753_p4 = scmp.lt.s32.totalorder %s11951_s27, 2  ;;  %p17122_p0 = scmp.eq.s32.totalorder %s12026_s28, 0 }
  0x19   : > { %s11954_s20 = smov [#allocation7]   ;;  %s11814_s22 = scalar_lea.vmem %s236_s17, 16 }
  0x1a   : > { %p12075_p7 = pnand %p10736_p2, %p17122_p0  ;;  %p12081_p3 = pnand %p10753_p4, %p12044_p5 }
  0x1b   : > { %s249_s21 = sshll.u32 %s11954_s20, 4  ;;  %p11815_p9 = scmp.ne.s32.totalorder %s236_s17, %s11814_s22  ;;  %s250_s21 = int_to_ptr.vmem [resolvable:$true] %s249_s21 }
  0x1c   : > { %p11805_p8 = pneg %p12075_p7  ;;  %s11821_s23 = scalar_lea.vmem %s236_s17, 32 }
  0x1d   : > { %p11822_p0 = scmp.lt.s32.totalorder %s236_s17, %s236_s17  ;;  %p11823_p1 = scmp.lt.s32.totalorder %s11821_s23, %s11814_s22 }
  0x1e   : > { %p11817_p10 = pnand %p11815_p9, %p11805_p8 }
  0x1f   : > { %p11824_p12 = por %p11823_p1, %p11822_p0 }
  0x20   : > { %p11818_p2 = pneg %p11817_p10 }
  0x22   : > { %p11825_p11 = pnand %p11824_p12, %p11818_p2 }
  0x24   : > { %11828 = shalt.err (!%p11825_p11)
}
  0x25   : > { %s17125_s4 = sld [smem:[#allocation397_spill]]  ;;  %s270_s9 = sand.u32 1, %s11947_s26  }
  0x26   : > { %s11840_s11 = scalar_lea.vmem %s250_s21, 16  ;;  %s11847_s16 = scalar_lea.vmem %s250_s21, 32 }
  0x27   : > { %p11841_p4 = scmp.ne.s32.totalorder %s250_s21, %s11840_s11  ;;  %p11848_p10 = scmp.lt.s32.totalorder %s250_s21, %s250_s21 }
  0x28   : > { %p11849_p1 = scmp.lt.s32.totalorder %s11847_s16, %s11840_s11 }
  0x29   : > { %p11843_p5 = pnand %p11841_p4, %p11805_p8 }
  0x2a   : > { %p11850_p12 = por %p11849_p1, %p11848_p10 }
  0x2b   : > { %10739 = dma.hbm_to_vmem [thread:$0]  (!%p12075_p7), %s17125_s4, 16, %s236_s17, [#allocation6]  }
  0x2c   : > { %p11844_p9 = pneg %p11843_p5 }
  0x2e   : > { %p11851_p11 = pnand %p11850_p12, %p11844_p9 }
  0x30   : > { %11854 = shalt.err (!%p11851_p11)
}
  0x31   : > { %10742 = dma.hbm_to_vmem [thread:$0]  (!%p12075_p7), %s16710_s6, 16, %s250_s21, [#allocation6]  }
  0x32   : > { %s10719_s17 = smul.u32 3200, %s270_s9  ;;  %s12112_s18 = scalar_lea.sflag [#allocation3], %s270_s9 }
  0x33   : > { %s10720_s23 = smul.u32 51200, %s11951_s27  ;;  %p11857_p7 = pneg %p12081_p3 }
  0x34   : > { %s274_s11 = scalar_lea.vmem [#allocation2], %s10719_s17 }
  0x35   : > { %s12108_s4 = scalar_lea.hbm %s16705_s1, %s10720_s23  ;;  %s282_s16 = sshll.u32 %s274_s11, 4  ;;  %s12110_s16 = int_to_ptr.vmem [resolvable:$true] %s282_s16 }
  0x36   : > { %s11855_s20 = scalar_lea.hbm %s12108_s4, 51200  ;;  %s11860_s23 = scalar_lea.hbm %s16705_s1, 102400 }
  0x37   : > { %p11856_p8 = scmp.ne.s32.totalorder %s12108_s4, %s11855_s20  ;;  %p11861_p4 = scmp.lt.s32.totalorder %s12108_s4, %s16705_s1 }
  0x38   : > { %p11862_p5 = scmp.lt.s32.totalorder %s11860_s23, %s11855_s20 }
  0x39   : > { %p11858_p2 = pnand %p11857_p7, %p11856_p8 }
  0x3a   : > { %p11863_p9 = por %p11862_p5, %p11861_p4 }
  0x3b   : > { %p11859_p0 = pneg %p11858_p2 }
  0x3d   : > { %p11864_p10 = pnand %p11863_p9, %p11859_p0 }
  0x3f   : > { %11867 = shalt.err (!%p11864_p10)
}
  0x40   : > { %s11868_s9 = scalar_lea.vmem %s12110_s16, 51200  ;;  %s11955_s17 = smov [#allocation2]  }
  0x41   : > { %p11869_p1 = scmp.ne.s32.totalorder %s12110_s16, %s11868_s9  ;;  %s11873_s11 = sshll.u32 %s11955_s17, 4  ;;  %s11874_s11 = int_to_ptr.vmem [resolvable:$false] %s11873_s11 }
  0x42   : > { %s11875_s21 = scalar_lea.vmem %s11874_s11, 102400  ;;  %p11876_p8 = scmp.lt.s32.totalorder %s12110_s16, %s11874_s11 }
  0x43   : > { %p11871_p12 = pnand %p11869_p1, %p11857_p7  ;;  %p11877_p2 = scmp.lt.s32.totalorder %s11875_s21, %s11868_s9 }
  0x45   : > { %p11872_p11 = pneg %p11871_p12  ;;  %p11878_p6 = por %p11877_p2, %p11876_p8 }
  0x47   : > { %p11879_p13 = pnand %p11878_p6, %p11872_p11 }
  0x49   : > { %11882 = shalt.err (!%p11879_p13)
}
  0x4a   : > { %s11956_s20 = smov 256   ;;  %s11957_s22 = smov 16  }
  0x4b   : > { %10746 = dma.hbm_to_vmem [thread:$0]  (!%p12081_p3), %s12108_s4, 51200, %s12110_s16, %s12112_s18, %s11956_s20, %s11956_s20, %s11957_s22  }
  0x4c   : > { %p17126_p7 = scmp.ne.s32.totalorder %s17121_s15, 0 }
  0x4e   : > { %313 = sbr.rel (%p17126_p7) target bundleno = 2073 (0x819), region = 48 }
  0x53   : > { %s12136_s23 = sand.u32 1, %s11943_s25   ;;  %p17127_p6 = scmp.ne.s32.totalorder %s17118_s12, 0 }
  0x54   : > { %s10721_s29 = smul.u32 3200, %s12136_s23  ;;  %s316_s8 = scalar_lea.sflag [#allocation3], %s12136_s23 }
  0x56   : > { %s12140_s9 = scalar_lea.vmem [#allocation2], %s10721_s29 }
  0x57   : > { %11926 = dma.done.wait (%p17127_p6), %s316_s8, 51200  }
  0x58   : > { %11928 = vsyncadd (%p17127_p6), %s316_s8, 4294916096  ;;  %p17128_p13 = scmp.eq.s32.totalorder %s12026_s28, 0 }
  0x5a   : > { %11930 = dma.done.wait (%p17128_p13), [#allocation6], 32   ;;  %p17129_p3 = pmov %p17128_p13 }
  0x5b   : > { %s9483_s4 = sshll.u32 %s12026_s28, 2  ;;  %v16718_v0 = vmov 0   ;;  %v10803_v39 = vld [vmem:[%s12140_s9 + $0xc] ss:$16 sps:$4 sm:$0xff]   ;;  %vm3173_vm0 = vcmask 130048   ;;  %vm11961_vm1 = vmmov 0  }
  0x5c   : > { %11932 = vsyncadd (%p17129_p3), [#allocation6], 4294967264  ;;  %10800 = vset.pattern.permute.xlu1 %v16718_v0  ;;  %10799 = vset.pattern.permute.xlu0 %v16718_v0  ;;  %p376_p0 = scmp.lt.s32.totalorder %s9483_s4, 7  ;;  %v10815_v54 = vld [vmem:[%s12140_s9 + $0x4] ss:$16 sps:$4 sm:$0xff]   ;;  %vm9031_vm2 = vcmask 261120  }
  0x5d   : > { %3249 = vmatprep.subr.bf16.mxu0 %v16718_v0  ;;  %3482 = vmatprep.subr.bf16.mxu1 %v16718_v0  ;;  %s9482_s11 = sshll.u32 %s12136_s23, 2  ;;  %vm9324_vm3 = vcmask 57344   ;;  %s10015_s22 = sshll.u32 %s12026_s28, 6 }
  0x5e   : > { %s18082_s4 = smov (!%p376_p0, %s9483_s4), 7  ;;  %9589 = vmatprep.mubr.msk.bf16.mxu1 %vm3173_vm0, %v10803_v39  ;;  %3281 = vmatprep.mubr.bf16.mxu0 %v10815_v54  ;;  %p18074_p5 = scmp.ne.s32.totalorder %s17119_s13, 0 }
  0x5f   : > { %s10723_s12 = smul.u32 400, %s18082_s4  ;;  %s9488_s20 = sshll.u32 %s18082_s4, 2 }
  0x60   : > { %s10722_s18 = smul.u32 200, %s18082_s4  ;;  %s14420_s8 = scalar_lea.vmem %s16707_s3, %s9488_s20 }
  0x61   : > { %s12161_s16 = scalar_lea.vmem %s16706_s2, %s10723_s12  ;;  %s9330_s4 = scalar_lea.sflag [#allocation4], %s12136_s23 }
  0x62   : > { %v844_v1 = vld [vmem:[%s12161_s16 + $0x170] sm:$0xff]  ;;  %v845_v3 = vld [vmem:[%s12161_s16 + $0x178] sm:$0xff]  ;;  %v811_v5 = vld [vmem:[%s12161_s16 + $0x68] sm:$0xff]  ;;  %s12232_s21 = scalar_lea.vmem %s16704_s0, %s10722_s18  ;;  %s11962_s28 = smov [#allocation8]  }
  0x63   : > { %v812_v2 = vld [vmem:[%s12161_s16 + $0x70] sm:$0xff]  ;;  %1630 = vperm.xlu1 %10800, %v844_v1   ;;  %v813_v4 = vld [vmem:[%s12161_s16 + $0x78] sm:$0xff]  ;;  %v810_v6 = vld [vmem:[%s12161_s16 + $0x60] sm:$0xff]  ;;  %s11887_s15 = sshll.u32 %s11962_s28, 4  ;;  %s11888_s15 = int_to_ptr.vmem [resolvable:$false] %s11887_s15 }
  0x64   : > { %1470 = vperm.xlu0 %10799, %v812_v2   ;;  %v843_v7 = vld [vmem:[%s12161_s16 + $0x168] sm:$0xff]  ;;  %v842_v8 = vld [vmem:[%s12161_s16 + $0x160] sm:$0xff]  ;;  %v809_v9 = vld [vmem:[%s12161_s16 + $0x58] sm:$0xff]  ;;  %s11889_s19 = scalar_lea.vmem %s11888_s15, 128 }
  0x65   : > { %v808_v10 = vld [vmem:[%s12161_s16 + $0x50] sm:$0xff]  ;;  %v841_v11 = vld [vmem:[%s12161_s16 + $0x158] sm:$0xff]  ;;  %v807_v13 = vld [vmem:[%s12161_s16 + $0x48] sm:$0xff] }
  0x66   : > { %v840_v12 = vld [vmem:[%s12161_s16 + $0x150] sm:$0xff]  ;;  %v806_v14 = vld [vmem:[%s12161_s16 + $0x40] sm:$0xff]  ;;  %v839_v15 = vld [vmem:[%s12161_s16 + $0x148] sm:$0xff] }
  0x67   : > { %1635 = vperm.xlu1 %10800, %v845_v3   ;;  %v838_v16 = vld [vmem:[%s12161_s16 + $0x140] sm:$0xff]  ;;  %v805_v17 = vld [vmem:[%s12161_s16 + $0x38] sm:$0xff]  ;;  %v804_v18 = vld [vmem:[%s12161_s16 + $0x30] sm:$0xff] }
  0x68   : > { %1475 = vperm.xlu0 %10799, %v813_v4   ;;  %v837_v19 = vld [vmem:[%s12161_s16 + $0x138] sm:$0xff]  ;;  %v836_v20 = vld [vmem:[%s12161_s16 + $0x130] sm:$0xff]  ;;  %v803_v21 = vld [vmem:[%s12161_s16 + $0x28] sm:$0xff] }
  0x69   : > { %v802_v22 = vld [vmem:[%s12161_s16 + $0x20] sm:$0xff]  ;;  %v835_v23 = vld [vmem:[%s12161_s16 + $0x128] sm:$0xff]  ;;  %v801_v25 = vld [vmem:[%s12161_s16 + $0x18] sm:$0xff] }
  0x6a   : > { %v834_v24 = vld [vmem:[%s12161_s16 + $0x120] sm:$0xff]  ;;  %v800_v26 = vld [vmem:[%s12161_s16 + $0x10] sm:$0xff]  ;;  %v833_v27 = vld [vmem:[%s12161_s16 + $0x118] sm:$0xff] }
  0x6b   : > { %1465 = vperm.xlu1 %10800, %v811_v5   ;;  %v832_v28 = vld [vmem:[%s12161_s16 + $0x110] sm:$0xff]  ;;  %v799_v29 = vld [vmem:[%s12161_s16 + $0x8] sm:$0xff]  ;;  %v798_v30 = vld [vmem:[%s12161_s16] sm:$0xff] }
  0x6c   : > { %1460 = vperm.xlu0 %10799, %v810_v6   ;;  %v831_v31 = vld [vmem:[%s12161_s16 + $0x108] sm:$0xff]  ;;  %v830_v32 = vld [vmem:[%s12161_s16 + $0x100] sm:$0xff]  ;;  %v829_v33 = vld [vmem:[%s12161_s16 + $0xf8] sm:$0xff] }
  0x6d   : > { %v828_v34 = vld [vmem:[%s12161_s16 + $0xf0] sm:$0xff]  ;;  %v847_v35 = vld [vmem:[%s12161_s16 + $0x188] sm:$0xff]  ;;  %v846_v36 = vld [vmem:[%s12161_s16 + $0x180] sm:$0xff] }
  0x6e   : > { %v827_v37 = vld [vmem:[%s12161_s16 + $0xe8] sm:$0xff]  ;;  %v826_v38 = vld [vmem:[%s12161_s16 + $0xe0] sm:$0xff]  ;;  %v825_v40 = vld [vmem:[%s12161_s16 + $0xd8] sm:$0xff] }
  0x6f   : > { %1625 = vperm.xlu1 %10800, %v843_v7   ;;  %v824_v41 = vld [vmem:[%s12161_s16 + $0xd0] sm:$0xff]  ;;  %v823_v42 = vld [vmem:[%s12161_s16 + $0xc8] sm:$0xff]  ;;  %v822_v43 = vld [vmem:[%s12161_s16 + $0xc0] sm:$0xff] }
  0x70   : > { %1620 = vperm.xlu0 %10799, %v842_v8   ;;  %v821_v44 = vld [vmem:[%s12161_s16 + $0xb8] sm:$0xff]  ;;  %v820_v45 = vld [vmem:[%s12161_s16 + $0xb0] sm:$0xff]  ;;  %v819_v46 = vld [vmem:[%s12161_s16 + $0xa8] sm:$0xff] }
  0x71   : > { %v818_v47 = vld [vmem:[%s12161_s16 + $0xa0] sm:$0xff]  ;;  %v817_v48 = vld [vmem:[%s12161_s16 + $0x98] sm:$0xff]  ;;  %v816_v49 = vld [vmem:[%s12161_s16 + $0x90] sm:$0xff] }
  0x72   : > { %v815_v50 = vld [vmem:[%s12161_s16 + $0x88] sm:$0xff]  ;;  %v814_v51 = vld [vmem:[%s12161_s16 + $0x80] sm:$0xff]  ;;  %v861_v55 = vld [vmem:[%s12161_s16 + $0x1f8] sm:$0xff] }
  0x73   : > { %1455 = vperm.xlu1 %10800, %v809_v9   ;;  %v863_v52 = vld [vmem:[%s12161_s16 + $0x208] sm:$0xff]  ;;  %v862_v53 = vld [vmem:[%s12161_s16 + $0x200] sm:$0xff]  ;;  %v860_v56 = vld [vmem:[%s12161_s16 + $0x1f0] sm:$0xff] }
  0x74   : > { %1450 = vperm.xlu0 %10799, %v808_v10   ;;  %v859_v57 = vld [vmem:[%s12161_s16 + $0x1e8] sm:$0xff]  ;;  %v858_v58 = vld [vmem:[%s12161_s16 + $0x1e0] sm:$0xff]  ;;  %v857_v59 = vld [vmem:[%s12161_s16 + $0x1d8] sm:$0xff] }
  0x75   : > { %v856_v60 = vld [vmem:[%s12161_s16 + $0x1d0] sm:$0xff]  ;;  %v855_v61 = vld [vmem:[%s12161_s16 + $0x1c8] sm:$0xff]  ;;  %v854_v62 = vld [vmem:[%s12161_s16 + $0x1c0] sm:$0xff] }
  0x76   : > { %v853_v63 = vld [vmem:[%s12161_s16 + $0x1b8] sm:$0xff]  ;;  %v852_v1 = vld [vmem:[%s12161_s16 + $0x1b0] sm:$0xff]  ;;  %v851_v2 = vld [vmem:[%s12161_s16 + $0x1a8] sm:$0xff] }
  0x77   : > { %1615 = vperm.xlu1 %10800, %v841_v11   ;;  %v10422_v3 = vld [vmem:[%s12232_s21 + $0x38] sm:$0xff]   ;;  %v850_v4 = vld [vmem:[%s12161_s16 + $0x1a0] sm:$0xff]  ;;  %v10421_v9 = vld [vmem:[%s12232_s21 + $0x30] sm:$0xff]  }
  0x78   : > { %1610 = vperm.xlu0 %10799, %v840_v12   ;;  %v10438_v5 = vld [vmem:[%s12232_s21 + $0xb8] sm:$0xff]   ;;  %v10046_v8 = vunpack.c.l.bf16 %v10422_v3  ;;  %v10047_v10 = vunpack.c.h.bf16 %v10422_v3  ;;  %v10419_v54 = vld [vmem:[%s12232_s21 + $0x20] sm:$0xff]   ;;  %v871_v3 = vld [vmem:[%s12161_s16 + $0x248] sm:$0xff] }
  0x79   : > { %v10110_v11 = vunpack.c.l.bf16 %v10438_v5  ;;  %v10111_v12 = vunpack.c.h.bf16 %v10438_v5 }
  0x7b   : > { %1445 = vperm.xlu1 %10800, %v807_v13   ;;  %v849_v13 = vld [vmem:[%s12161_s16 + $0x198] sm:$0xff] }
  0x7c   : > { %1440 = vperm.xlu0 %10799, %v806_v14   ;;  %v848_v14 = vld [vmem:[%s12161_s16 + $0x190] sm:$0xff] }
  0x7f   : > { %1605 = vperm.xlu1 %10800, %v839_v15  }
  0x80   : > { %1600 = vperm.xlu0 %10799, %v838_v16  }
  0x83   : > { %1435 = vperm.xlu1 %10800, %v805_v17   ;;  %v10043_v17 = vunpack.c.h.bf16 %v10421_v9 }
  0x84   : > { %1430 = vperm.xlu0 %10799, %v804_v18  }
  0x87   : > { %1595 = vperm.xlu1 %10800, %v837_v19   ;;  %v10042_v19 = vunpack.c.l.bf16 %v10421_v9 }
  0x88   : > { %1590 = vperm.xlu0 %10799, %v836_v20  }
  0x8b   : > { %1425 = vperm.xlu1 %10800, %v803_v21  }
  0x8c   : > { %1420 = vperm.xlu0 %10799, %v802_v22  }
  0x8f   : > { %1585 = vperm.xlu1 %10800, %v835_v23   ;;  %v879_v23 = vld [vmem:[%s12161_s16 + $0x288] sm:$0xff] }
  0x90   : > { %1580 = vperm.xlu0 %10799, %v834_v24   ;;  %v10437_v24 = vld [vmem:[%s12232_s21 + $0xb0] sm:$0xff]  }
  0x93   : > { %1415 = vperm.xlu1 %10800, %v801_v25  }
  0x94   : > { %1410 = vperm.xlu0 %10799, %v800_v26  }
  0x97   : > { %1575 = vperm.xlu1 %10800, %v833_v27   ;;  %v878_v27 = vld [vmem:[%s12161_s16 + $0x280] sm:$0xff] }
  0x98   : > { %1570 = vperm.xlu0 %10799, %v832_v28  }
  0x9b   : > { %1405 = vperm.xlu1 %10800, %v799_v29  }
  0x9c   : > { %1400 = vperm.xlu0 %10799, %v798_v30  }
  0x9f   : > { %1565 = vperm.xlu1 %10800, %v831_v31  }
  0xa0   : > { %1560 = vperm.xlu0 %10799, %v830_v32   ;;  %v10107_v32 = vunpack.c.h.bf16 %v10437_v24 }
  0xa3   : > { %1555 = vperm.xlu1 %10800, %v829_v33   ;;  %v10106_v33 = vunpack.c.l.bf16 %v10437_v24 }
  0xa4   : > { %1550 = vperm.xlu0 %10799, %v828_v34   ;;  %v10420_v34 = vld [vmem:[%s12232_s21 + $0x28] sm:$0xff]  }
  0xa7   : > { %1645 = vperm.xlu1 %10800, %v847_v35  }
  0xa8   : > { %1640 = vperm.xlu0 %10799, %v846_v36   ;;  %v877_v36 = vld [vmem:[%s12161_s16 + $0x278] sm:$0xff] }
  0xab   : > { %1545 = vperm.xlu1 %10800, %v827_v37   ;;  %v876_v37 = vld [vmem:[%s12161_s16 + $0x270] sm:$0xff] }
  0xac   : > { %1540 = vperm.xlu0 %10799, %v826_v38  }
  0xaf   : > { %1535 = vperm.xlu1 %10800, %v825_v40  }
  0xb0   : > { %1530 = vperm.xlu0 %10799, %v824_v41  }
  0xb3   : > { %1525 = vperm.xlu1 %10800, %v823_v42   ;;  %v10039_v42 = vunpack.c.h.bf16 %v10420_v34 }
  0xb4   : > { %1520 = vperm.xlu0 %10799, %v822_v43   ;;  %v10038_v43 = vunpack.c.l.bf16 %v10420_v34 }
  0xb7   : > { %1515 = vperm.xlu1 %10800, %v821_v44   ;;  %v10436_v44 = vld [vmem:[%s12232_s21 + $0xa8] sm:$0xff]  }
  0xb8   : > { %1510 = vperm.xlu0 %10799, %v820_v45  }
  0xbb   : > { %1505 = vperm.xlu1 %10800, %v819_v46   ;;  %v875_v46 = vld [vmem:[%s12161_s16 + $0x268] sm:$0xff] }
  0xbc   : > { %1500 = vperm.xlu0 %10799, %v818_v47   ;;  %v874_v47 = vld [vmem:[%s12161_s16 + $0x260] sm:$0xff] }
  0xbf   : > { %1495 = vperm.xlu1 %10800, %v817_v48  }
  0xc0   : > { %1490 = vperm.xlu0 %10799, %v816_v49  }
  0xc3   : > { %1485 = vperm.xlu1 %10800, %v815_v50  }
  0xc4   : > { %1480 = vperm.xlu0 %10799, %v814_v51  }
  0xc7   : > { %1725 = vperm.xlu1 %10800, %v863_v52   ;;  %v10103_v52 = vunpack.c.h.bf16 %v10436_v44 }
  0xc8   : > { %1720 = vperm.xlu0 %10799, %v862_v53   ;;  %v10102_v53 = vunpack.c.l.bf16 %v10436_v44 }
  0xcb   : > { %1715 = vperm.xlu1 %10800, %v861_v55  }
  0xcc   : > { %1710 = vperm.xlu0 %10799, %v860_v56   ;;  %v873_v56 = vld [vmem:[%s12161_s16 + $0x258] sm:$0xff] }
  0xcf   : > { %1705 = vperm.xlu1 %10800, %v859_v57   ;;  %v872_v57 = vld [vmem:[%s12161_s16 + $0x250] sm:$0xff] }
  0xd0   : > { %1700 = vperm.xlu0 %10799, %v858_v58  }
  0xd3   : > { %1695 = vperm.xlu1 %10800, %v857_v59  }
  0xd4   : > { %1690 = vperm.xlu0 %10799, %v856_v60  }
  0xd7   : > { %1685 = vperm.xlu1 %10800, %v855_v61  }
  0xd8   : > { %1680 = vperm.xlu0 %10799, %v854_v62   ;;  %v10035_v62 = vunpack.c.h.bf16 %v10419_v54 }
  0xdb   : > { %1675 = vperm.xlu1 %10800, %v853_v63   ;;  %v10034_v63 = vunpack.c.l.bf16 %v10419_v54  ;;  %v864_v54 = vld [vmem:[%s12161_s16 + $0x210] sm:$0xff] }
  0xdc   : > { %1670 = vperm.xlu0 %10799, %v852_v1   ;;  %v10435_v1 = vld [vmem:[%s12232_s21 + $0xa0] sm:$0xff]  }
  0xde   : > { %v12238_v6 = vpop.permute.xlu1 %1630 }
  0xdf   : > { %17130 = vst [vmem:[#allocation12_spill] sm:$0xff] %v12238_v6  ;;  %v12240_v7 = vpop.permute.xlu0 %1470  ;;  %1665 = vperm.xlu1 %10800, %v851_v2   ;;  %v2444_v21 = vmul.f32 %v10110_v11, %v12238_v6  ;;  %v10099_v11 = vunpack.c.h.bf16 %v10435_v1 }
  0xe0   : > { %17131 = vst [vmem:[#allocation13_spill] sm:$0xff] %v12240_v7  ;;  %1660 = vperm.xlu0 %10799, %v850_v4   ;;  %v2412_v18 = vmul.f32 %v10046_v8, %v12240_v7  ;;  %v870_v4 = vld [vmem:[%s12161_s16 + $0x240] sm:$0xff] }
  0xe2   : > { %v12245_v15 = vpop.permute.xlu1 %1635 }
  0xe3   : > { %17132 = vst [vmem:[#allocation14_spill] sm:$0xff] %v12245_v15  ;;  %v12247_v16 = vpop.permute.xlu0 %1475  ;;  %1655 = vperm.xlu1 %10800, %v849_v13   ;;  %v2445_v22 = vmul.f32 %v10111_v12, %v12245_v15  ;;  %v10098_v12 = vunpack.c.l.bf16 %v10435_v1  ;;  %v10418_v13 = vld [vmem:[%s12232_s21 + $0x18] sm:$0xff]  }
  0xe4   : > { %17133 = vst [vmem:[#allocation15_spill] sm:$0xff] %v12247_v16  ;;  %1650 = vperm.xlu0 %10799, %v848_v14   ;;  %v2413_v20 = vmul.f32 %v10047_v10, %v12247_v16  ;;  %v10030_v24 = vunpack.c.l.bf16 %v10418_v13  ;;  %v10942_v16 = vld [vmem:[%s12140_s9 + $0x320] ss:$16 sps:$4 sm:$0xff]  }
  0xe5   : > { %v2621_v26 = vpack.c.bf16 %v2445_v22, %v2444_v21 }
  0xe6   : > { %v2605_v25 = vpack.c.bf16 %v2413_v20, %v2412_v18  ;;  %v12256_v28 = vpop.permute.xlu1 %1465  ;;  %v868_v18 = vld [vmem:[%s12161_s16 + $0x230] sm:$0xff] }
  0xe7   : > { %17134 = vst [vmem:[#allocation16_spill] sm:$0xff] %v12256_v28  ;;  %v12258_v29 = vpop.permute.xlu0 %1460  ;;  %v2411_v30 = vmul.f32 %v10043_v17, %v12256_v28  ;;  %3483 = vmatpush1.bf16.msra.mxu1 %v2621_v26  ;;  %1805 = vperm.xlu1 %10800, %v879_v23   ;;  %v869_v17 = vld [vmem:[%s12161_s16 + $0x238] sm:$0xff]  ;;  %v10031_v23 = vunpack.c.h.bf16 %v10418_v13  ;;  %v10947_v28 = vld [vmem:[%s12140_s9 + $0x2c0] ss:$16 sps:$4 sm:$0xff]  }
  0xe8   : > { %17135 = vst [vmem:[#allocation17_spill] sm:$0xff] %v12258_v29  ;;  %v2410_v31 = vmul.f32 %v10042_v19, %v12258_v29  ;;  %3250 = vmatpush1.bf16.msra.mxu0 %v2605_v25  ;;  %1800 = vperm.xlu0 %10799, %v878_v27   ;;  %v10434_v25 = vld [vmem:[%s12232_s21 + $0x98] sm:$0xff]   ;;  %v867_v27 = vld [vmem:[%s12161_s16 + $0x228] sm:$0xff] }
  0xe9   : > { %3251 = vmatprep.subr.bf16.mxu0 %v16718_v0  ;;  %3484 = vmatprep.subr.bf16.mxu1 %v16718_v0 }
  0xea   : > { %v2604_v35 = vpack.c.bf16 %v2411_v30, %v2410_v31  ;;  %v12267_v38 = vpop.permute.xlu1 %1625  ;;  %v866_v30 = vld [vmem:[%s12161_s16 + $0x220] sm:$0xff] }
  0xeb   : > { %17136 = vst [vmem:[#allocation18_spill] sm:$0xff] %v12267_v38  ;;  %v12269_v39 = vpop.permute.xlu0 %1620  ;;  %v2443_v40 = vmul.f32 %v10107_v32, %v12267_v38  ;;  %1795 = vperm.xlu1 %10800, %v877_v36   ;;  %v10094_v36 = vunpack.c.l.bf16 %v10434_v25 }
  0xec   : > { %17137 = vst [vmem:[#allocation19_spill] sm:$0xff] %v12269_v39  ;;  %v2442_v41 = vmul.f32 %v10106_v33, %v12269_v39  ;;  %3252 = vmatpush1.bf16.msra.mxu0 %v2604_v35  ;;  %1790 = vperm.xlu0 %10799, %v876_v37   ;;  %v10095_v35 = vunpack.c.h.bf16 %v10434_v25  ;;  %v10417_v37 = vld [vmem:[%s12232_s21 + $0x10] sm:$0xff]   ;;  %v898_v39 = vld [vmem:[%s12161_s16 + $0x320] sm:$0xff] }
  0xed   : > { %3253 = vmatprep.subr.bf16.mxu0 %v16718_v0 }
  0xee   : > { %v2620_v45 = vpack.c.bf16 %v2443_v40, %v2442_v41  ;;  %v12277_v48 = vpop.permute.xlu1 %1455  ;;  %v895_v41 = vld [vmem:[%s12161_s16 + $0x308] sm:$0xff] }
  0xef   : > { %17138 = vst [vmem:[#allocation20_spill] sm:$0xff] %v12277_v48  ;;  %v12279_v49 = vpop.permute.xlu0 %1450  ;;  %v2409_v50 = vmul.f32 %v10039_v42, %v12277_v48  ;;  %1785 = vperm.xlu1 %10800, %v875_v46   ;;  %v894_v42 = vld [vmem:[%s12161_s16 + $0x300] sm:$0xff] }
  0xf0   : > { %17139 = vst [vmem:[#allocation21_spill] sm:$0xff] %v12279_v49  ;;  %v2408_v51 = vmul.f32 %v10038_v43, %v12279_v49  ;;  %3485 = vmatpush1.bf16.msra.mxu1 %v2620_v45  ;;  %1780 = vperm.xlu0 %10799, %v874_v47   ;;  %v10027_v47 = vunpack.c.h.bf16 %v10417_v37  ;;  %v10487_v49 = vld [vmem:[%s12232_s21 + $0x240] sm:$0xff]  }
  0xf1   : > { %3486 = vmatprep.subr.bf16.mxu1 %v16718_v0 }
  0xf2   : > { %v2603_v55 = vpack.c.bf16 %v2409_v50, %v2408_v51  ;;  %v12287_v58 = vpop.permute.xlu1 %1615  ;;  %v10026_v50 = vunpack.c.l.bf16 %v10417_v37  ;;  %v10433_v51 = vld [vmem:[%s12232_s21 + $0x90] sm:$0xff]  }
  0xf3   : > { %17140 = vst [vmem:[#allocation22_spill] sm:$0xff] %v12287_v58  ;;  %v12289_v59 = vpop.permute.xlu0 %1610  ;;  %v2441_v60 = vmul.f32 %v10103_v52, %v12287_v58  ;;  %1775 = vperm.xlu1 %10800, %v873_v56  }
  0xf4   : > { %17141 = vst [vmem:[#allocation23_spill] sm:$0xff] %v12289_v59  ;;  %v2440_v61 = vmul.f32 %v10102_v53, %v12289_v59  ;;  %3254 = vmatpush1.bf16.msra.mxu0 %v2603_v55  ;;  %1770 = vperm.xlu0 %10799, %v872_v57   ;;  %v865_v53 = vld [vmem:[%s12161_s16 + $0x218] sm:$0xff]  ;;  %v10909_v59 = vld [vmem:[%s12140_s9 + $0x204] ss:$16 sps:$4 sm:$0xff]  }
  0xf5   : > { %3255 = vmatprep.subr.bf16.mxu0 %v16718_v0 }
  0xf6   : > { %v2619_v2 = vpack.c.bf16 %v2441_v60, %v2440_v61  ;;  %v12297_v5 = vpop.permute.xlu1 %1445  ;;  %v10091_v61 = vunpack.c.h.bf16 %v10433_v51 }
  0xf7   : > { %17142 = vst [vmem:[#allocation24_spill] sm:$0xff] %v12297_v5  ;;  %v12299_v8 = vpop.permute.xlu0 %1440  ;;  %v2407_v9 = vmul.f32 %v10035_v62, %v12297_v5  ;;  %1765 = vperm.xlu1 %10800, %v871_v3   ;;  %v10090_v62 = vunpack.c.l.bf16 %v10433_v51  ;;  %v892_v3 = vld [vmem:[%s12161_s16 + $0x2f0] sm:$0xff]  ;;  %v886_v51 = vld [vmem:[%s12161_s16 + $0x2c0] sm:$0xff] }
  0xf8   : > { %17143 = vst [vmem:[#allocation25_spill] sm:$0xff] %v12299_v8  ;;  %v2406_v10 = vmul.f32 %v10034_v63, %v12299_v8  ;;  %3487 = vmatpush1.bf16.msra.mxu1 %v2619_v2  ;;  %1760 = vperm.xlu0 %10799, %v870_v4   ;;  %v10416_v63 = vld [vmem:[%s12232_s21 + $0x8] sm:$0xff]   ;;  %v893_v2 = vld [vmem:[%s12161_s16 + $0x2f8] sm:$0xff] }
  0xf9   : > { %3488 = vmatprep.subr.bf16.mxu1 %v16718_v0  ;;  %v10022_v13 = vunpack.c.l.bf16 %v10416_v63 }
  0xfa   : > { %v2602_v14 = vpack.c.bf16 %v2407_v9, %v2406_v10  ;;  %v12307_v19 = vpop.permute.xlu1 %1605 }
  0xfb   : > { %17144 = vst [vmem:[#allocation26_spill] sm:$0xff] %v12307_v19  ;;  %v12309_v20 = vpop.permute.xlu0 %1600  ;;  %v2439_v21 = vmul.f32 %v10099_v11, %v12307_v19  ;;  %1755 = vperm.xlu1 %10800, %v869_v17  }
  0xfc   : > { %17145 = vst [vmem:[#allocation27_spill] sm:$0xff] %v12309_v20  ;;  %v2438_v22 = vmul.f32 %v10098_v12, %v12309_v20  ;;  %3256 = vmatpush1.bf16.msra.mxu0 %v2602_v14  ;;  %1750 = vperm.xlu0 %10799, %v868_v18   ;;  %v10023_v12 = vunpack.c.h.bf16 %v10416_v63  ;;  %v10432_v14 = vld [vmem:[%s12232_s21 + $0x88] sm:$0xff]   ;;  %v885_v63 = vld [vmem:[%s12161_s16 + $0x2b8] sm:$0xff] }
  0xfd   : > { %3257 = vmatprep.subr.bf16.mxu0 %v16718_v0  ;;  %v891_v18 = vld [vmem:[%s12161_s16 + $0x2e8] sm:$0xff] }
  0xfe   : > { %v2618_v26 = vpack.c.bf16 %v2439_v21, %v2438_v22  ;;  %v12317_v31 = vpop.permute.xlu1 %1435  ;;  %v890_v21 = vld [vmem:[%s12161_s16 + $0x2e0] sm:$0xff]  ;;  %v10912_v20 = vld [vmem:[%s12140_s9 + $0x28c] ss:$16 sps:$4 sm:$0xff]  }
  0xff   : > { %17146 = vst [vmem:[#allocation28_spill] sm:$0xff] %v12317_v31  ;;  %v12319_v32 = vpop.permute.xlu0 %1430  ;;  %v2405_v33 = vmul.f32 %v10031_v23, %v12317_v31  ;;  %1745 = vperm.xlu1 %10800, %v867_v27   ;;  %v10086_v27 = vunpack.c.l.bf16 %v10432_v14 }
 0x100   : > { %17147 = vst [vmem:[#allocation29_spill] sm:$0xff] %v12319_v32  ;;  %v2404_v34 = vmul.f32 %v10030_v24, %v12319_v32  ;;  %3489 = vmatpush1.bf16.msra.mxu1 %v2618_v26  ;;  %1740 = vperm.xlu0 %10799, %v866_v30   ;;  %v10087_v26 = vunpack.c.h.bf16 %v10432_v14  ;;  %v10017_v30 = vld [vmem:[%s12232_s21] sm:$0xff]  }
 0x101   : > { %3490 = vmatprep.subr.bf16.mxu1 %v16718_v0 }
 0x102   : > { %v2601_v40 = vpack.c.bf16 %v2405_v33, %v2404_v34  ;;  %v12327_v43 = vpop.permute.xlu1 %1595  ;;  %v889_v34 = vld [vmem:[%s12161_s16 + $0x2d8] sm:$0xff] }
 0x103   : > { %17148 = vst [vmem:[#allocation30_spill] sm:$0xff] %v12327_v43  ;;  %v12329_v44 = vpop.permute.xlu0 %1590  ;;  %v2437_v45 = vmul.f32 %v10095_v35, %v12327_v43  ;;  %1885 = vperm.xlu1 %10800, %v895_v41   ;;  %v888_v35 = vld [vmem:[%s12161_s16 + $0x2d0] sm:$0xff] }
 0x104   : > { %17149 = vst [vmem:[#allocation31_spill] sm:$0xff] %v12329_v44  ;;  %v2436_v46 = vmul.f32 %v10094_v36, %v12329_v44  ;;  %3258 = vmatpush1.bf16.msra.mxu0 %v2601_v40  ;;  %1880 = vperm.xlu0 %10799, %v894_v42   ;;  %v10019_v42 = vunpack.c.h.bf16 %v10017_v30  ;;  %v968_v43 = vld [vmem:[%s12161_s16 + $0x550] sm:$0xff] }
 0x105   : > { %3259 = vmatprep.subr.bf16.mxu0 %v16718_v0  ;;  %v10915_v44 = vld [vmem:[%s12140_s9 + $0x224] ss:$16 sps:$4 sm:$0xff]  }
 0x106   : > { %v2617_v52 = vpack.c.bf16 %v2437_v45, %v2436_v46  ;;  %v12337_v55 = vpop.permute.xlu1 %1425  ;;  %v10018_v45 = vunpack.c.l.bf16 %v10017_v30  ;;  %v10431_v46 = vld [vmem:[%s12232_s21 + $0x80] sm:$0xff]  }
 0x107   : > { %17150 = vst [vmem:[#allocation32_spill] sm:$0xff] %v12337_v55  ;;  %v12339_v56 = vpop.permute.xlu0 %1420  ;;  %v2403_v57 = vmul.f32 %v10027_v47, %v12337_v55  ;;  %1735 = vperm.xlu1 %10800, %v865_v53  }
 0x108   : > { %17151 = vst [vmem:[#allocation33_spill] sm:$0xff] %v12339_v56  ;;  %v2402_v60 = vmul.f32 %v10026_v50, %v12339_v56  ;;  %3491 = vmatpush1.bf16.msra.mxu1 %v2617_v52  ;;  %1730 = vperm.xlu0 %10799, %v864_v54   ;;  %v887_v50 = vld [vmem:[%s12161_s16 + $0x2c8] sm:$0xff] }
 0x109   : > { %3492 = vmatprep.subr.bf16.mxu1 %v16718_v0 }
 0x10a   : > { %v2600_v1 = vpack.c.bf16 %v2403_v57, %v2402_v60  ;;  %v12347_v4 = vpop.permute.xlu1 %1585  ;;  %v10083_v60 = vunpack.c.h.bf16 %v10431_v46 }
 0x10b   : > { %17152 = vst [vmem:[#allocation34_spill] sm:$0xff] %v12347_v4  ;;  %v12349_v9 = vpop.permute.xlu0 %1580  ;;  %v2435_v10 = vmul.f32 %v10091_v61, %v12347_v4  ;;  %1875 = vperm.xlu1 %10800, %v893_v2   ;;  %v10082_v61 = vunpack.c.l.bf16 %v10431_v46 }
 0x10c   : > { %17153 = vst [vmem:[#allocation35_spill] sm:$0xff] %v12349_v9  ;;  %v2434_v11 = vmul.f32 %v10090_v62, %v12349_v9  ;;  %3260 = vmatpush1.bf16.msra.mxu0 %v2600_v1  ;;  %1870 = vperm.xlu0 %10799, %v892_v3   ;;  %v10430_v62 = vld [vmem:[%s12232_s21 + $0x78] sm:$0xff]   ;;  %v884_v1 = vld [vmem:[%s12161_s16 + $0x2b0] sm:$0xff] }
 0x10d   : > { %3261 = vmatprep.subr.bf16.mxu0 %v16718_v0  ;;  %v10078_v14 = vunpack.c.l.bf16 %v10430_v62  ;;  %v10918_v9 = vld [vmem:[%s12140_s9 + $0x2ac] ss:$16 sps:$4 sm:$0xff]  }
 0x10e   : > { %v2616_v17 = vpack.c.bf16 %v2435_v10, %v2434_v11  ;;  %v12357_v22 = vpop.permute.xlu1 %1415 }
 0x10f   : > { %17154 = vst [vmem:[#allocation36_spill] sm:$0xff] %v12357_v22  ;;  %v12359_v23 = vpop.permute.xlu0 %1410  ;;  %v2401_v24 = vmul.f32 %v10023_v12, %v12357_v22  ;;  %1865 = vperm.xlu1 %10800, %v891_v18   ;;  %v883_v18 = vld [vmem:[%s12161_s16 + $0x2a8] sm:$0xff] }
 0x110   : > { %v2400_v25 = vmul.f32 %v10022_v13, %v12359_v23  ;;  %3493 = vmatpush1.bf16.msra.mxu1 %v2616_v17  ;;  %1860 = vperm.xlu0 %10799, %v890_v21   ;;  %v10079_v13 = vunpack.c.h.bf16 %v10430_v62  ;;  %v10439_v17 = vld [vmem:[%s12232_s21 + $0xc0] sm:$0xff]  }
 0x111   : > { %3494 = vmatprep.subr.bf16.mxu1 %v16718_v0  ;;  %v882_v21 = vld [vmem:[%s12161_s16 + $0x2a0] sm:$0xff] }
 0x112   : > { %v2599_v33 = vpack.c.bf16 %v2401_v24, %v2400_v25  ;;  %v12367_v36 = vpop.permute.xlu1 %1575 }
 0x113   : > { %17155 = vst [vmem:[#allocation37_spill] sm:$0xff] %v12367_v36  ;;  %v12369_v37 = vpop.permute.xlu0 %1570  ;;  %v2433_v40 = vmul.f32 %v10087_v26, %v12367_v36  ;;  %1855 = vperm.xlu1 %10800, %v889_v34   ;;  %v10114_v34 = vunpack.c.l.bf16 %v10439_v17 }
 0x114   : > { %17156 = vst [vmem:[#allocation38_spill] sm:$0xff] %v12369_v37  ;;  %v2432_v41 = vmul.f32 %v10086_v27, %v12369_v37  ;;  %3262 = vmatpush1.bf16.msra.mxu0 %v2599_v33  ;;  %1850 = vperm.xlu0 %10799, %v888_v35   ;;  %v10115_v33 = vunpack.c.h.bf16 %v10439_v17  ;;  %v10429_v35 = vld [vmem:[%s12232_s21 + $0x70] sm:$0xff]  }
 0x115   : > { %3263 = vmatprep.subr.bf16.mxu0 %v16718_v0  ;;  %v10921_v37 = vld [vmem:[%s12140_s9 + $0x244] ss:$16 sps:$4 sm:$0xff]  }
 0x116   : > { %v2615_v47 = vpack.c.bf16 %v2433_v40, %v2432_v41  ;;  %v12377_v52 = vpop.permute.xlu1 %1405  ;;  %v881_v40 = vld [vmem:[%s12161_s16 + $0x298] sm:$0xff]  ;;  %v880_v41 = vld [vmem:[%s12161_s16 + $0x290] sm:$0xff] }
 0x117   : > { %v12379_v53 = vpop.permute.xlu0 %1400  ;;  %v2399_v54 = vmul.f32 %v10019_v42, %v12377_v52  ;;  %1845 = vperm.xlu1 %10800, %v887_v50  }
 0x118   : > { %v2398_v57 = vmul.f32 %v10018_v45, %v12379_v53  ;;  %3495 = vmatpush1.bf16.msra.mxu1 %v2615_v47  ;;  %1840 = vperm.xlu0 %10799, %v886_v51   ;;  %v10075_v51 = vunpack.c.h.bf16 %v10429_v35 }
 0x119   : > { %3496 = vmatprep.subr.bf16.mxu1 %v16718_v0 }
 0x11a   : > { %v2598_v2 = vpack.c.bf16 %v2399_v54, %v2398_v57  ;;  %v12387_v3 = vpop.permute.xlu1 %1565  ;;  %v10074_v54 = vunpack.c.l.bf16 %v10429_v35  ;;  %v897_v57 = vld [vmem:[%s12161_s16 + $0x318] sm:$0xff] }
 0x11b   : > { %17157 = vst [vmem:[#allocation39_spill] sm:$0xff] %v12387_v3  ;;  %v12389_v10 = vpop.permute.xlu0 %1560  ;;  %v2431_v11 = vmul.f32 %v10083_v60, %v12387_v3  ;;  %1835 = vperm.xlu1 %10800, %v885_v63   ;;  %v10428_v60 = vld [vmem:[%s12232_s21 + $0x68] sm:$0xff]  }
 0x11c   : > { %17158 = vst [vmem:[#allocation40_spill] sm:$0xff] %v12389_v10  ;;  %v2430_v12 = vmul.f32 %v10082_v61, %v12389_v10  ;;  %3264 = vmatpush1.bf16.msra.mxu0 %v2598_v2  ;;  %1830 = vperm.xlu0 %10799, %v884_v1   ;;  %v896_v61 = vld [vmem:[%s12161_s16 + $0x310] sm:$0xff]  ;;  %v10801_v63 = vld [vmem:[%s12140_s9 + $0x8] ss:$16 sps:$4 sm:$0xff]   ;;  %v10070_v17 = vunpack.c.l.bf16 %v10428_v60 }
 0x11d   : > { %3265 = vmatprep.subr.bf16.mxu0 %v16718_v0 }
 0x11e   : > { %v2614_v24 = vpack.c.bf16 %v2431_v11, %v2430_v12  ;;  %v12397_v25 = vpop.permute.xlu1 %1555  ;;  %v10804_v11 = vld [vmem:[%s12140_s9 + $0x2c] ss:$16 sps:$4 sm:$0xff]  }
 0x11f   : > { %17159 = vst [vmem:[#allocation41_spill] sm:$0xff] %v12397_v25  ;;  %v12399_v26 = vpop.permute.xlu0 %1550  ;;  %v2429_v27 = vmul.f32 %v10079_v13, %v12397_v25  ;;  %1825 = vperm.xlu1 %10800, %v883_v18   ;;  %v10427_v18 = vld [vmem:[%s12232_s21 + $0x60] sm:$0xff]  }
 0x120   : > { %17160 = vst [vmem:[#allocation42_spill] sm:$0xff] %v12399_v26  ;;  %v2428_v30 = vmul.f32 %v10078_v14, %v12399_v26  ;;  %3497 = vmatpush1.bf16.msra.mxu1 %v2614_v24  ;;  %1820 = vperm.xlu0 %10799, %v882_v21   ;;  %v10071_v14 = vunpack.c.h.bf16 %v10428_v60  ;;  %v913_v21 = vld [vmem:[%s12161_s16 + $0x398] sm:$0xff]  ;;  %v912_v24 = vld [vmem:[%s12161_s16 + $0x390] sm:$0xff] }
 0x121   : > { %3512 = vmatprep.subr.bf16.mxu1 %v16718_v0  ;;  %v10806_v60 = vld [vmem:[%s12140_s9 + $0x28] ss:$16 sps:$4 sm:$0xff]  }
 0x122   : > { %v2613_v42 = vpack.c.bf16 %v2429_v27, %v2428_v30  ;;  %v12407_v45 = vpop.permute.xlu1 %1645 }
 0x123   : > { %17161 = vst [vmem:[#allocation43_spill] sm:$0xff] %v12407_v45  ;;  %v12409_v46 = vpop.permute.xlu0 %1640  ;;  %v2447_v47 = vmul.f32 %v10115_v33, %v12407_v45  ;;  %1815 = vperm.xlu1 %10800, %v881_v40   ;;  %v10067_v40 = vunpack.c.h.bf16 %v10427_v18 }
 0x124   : > { %17162 = vst [vmem:[#allocation44_spill] sm:$0xff] %v12409_v46  ;;  %v2446_v50 = vmul.f32 %v10114_v34, %v12409_v46  ;;  %3266 = vmatpush2.bf16.msra.mxu0 %v2613_v42  ;;  %1810 = vperm.xlu0 %10799, %v880_v41   ;;  %v10066_v41 = vunpack.c.l.bf16 %v10427_v18  ;;  %v911_v42 = vld [vmem:[%s12161_s16 + $0x388] sm:$0xff]  ;;  %v10446_v46 = vld [vmem:[%s12232_s21 + $0xf8] sm:$0xff]  }
 0x125   : > { %3267 = vmatprep.subr.bf16.mxu0 %v16718_v0  ;;  %v10142_v38 = vunpack.c.l.bf16 %v10446_v46 }
 0x126   : > { %v2622_v62 = vpack.c.bf16 %v2447_v47, %v2446_v50  ;;  %v12418_v1 = vpop.permute.xlu1 %1545  ;;  %v10426_v47 = vld [vmem:[%s12232_s21 + $0x58] sm:$0xff]   ;;  %v910_v50 = vld [vmem:[%s12161_s16 + $0x380] sm:$0xff] }
 0x127   : > { %17163 = vst [vmem:[#allocation45_spill] sm:$0xff] %v12418_v1  ;;  %v12420_v2 = vpop.permute.xlu0 %1540  ;;  %v2427_v12 = vmul.f32 %v10075_v51, %v12418_v1  ;;  %1895 = vperm.xlu1 %10800, %v897_v57  }
 0x128   : > { %17164 = vst [vmem:[#allocation46_spill] sm:$0xff] %v12420_v2  ;;  %v2426_v13 = vmul.f32 %v10074_v54, %v12420_v2  ;;  %3513 = vmatpush2.bf16.msra.mxu1 %v2622_v62  ;;  %1890 = vperm.xlu0 %10799, %v896_v61   ;;  %v10807_v61 = vld [vmem:[%s12140_s9 + $0x4c] ss:$16 sps:$4 sm:$0xff]   ;;  %v10932_v2 = vld [vmem:[%s12140_s9 + $0x2e8] ss:$16 sps:$4 sm:$0xff]  }
 0x129   : > { %4265 = vmatprep.subr.bf16.mxu1 %v16718_v0 }
 0x12a   : > { %v2612_v27 = vpack.c.bf16 %v2427_v12, %v2426_v13  ;;  %v12429_v30 = vpop.permute.xlu1 %1535  ;;  %v10062_v12 = vunpack.c.l.bf16 %v10426_v47  ;;  %v909_v13 = vld [vmem:[%s12161_s16 + $0x378] sm:$0xff] }
 0x12b   : > { %17165 = vst [vmem:[#allocation47_spill] sm:$0xff] %v12429_v30  ;;  %v12431_v33 = vpop.permute.xlu0 %1530  ;;  %3515 = vmatmul.mubr.bf16.vlgmr.msra.gmra.mxu1 %v10801_v63  ;;  %v2425_v34 = vmul.f32 %v10071_v14, %v12429_v30  ;;  %1975 = vperm.xlu1 %10800, %v913_v21   ;;  %v10425_v14 = vld [vmem:[%s12232_s21 + $0x50] sm:$0xff]  }
 0x12c   : > { %17166 = vst [vmem:[#allocation48_spill] sm:$0xff] %v12431_v33  ;;  %v2424_v35 = vmul.f32 %v10070_v17, %v12431_v33  ;;  %3268 = vmatpush2.bf16.msra.mxu0 %v2612_v27  ;;  %9590 = vmatprep.mubr.msk.bf16.mxu1 %vm3173_vm0, %v10804_v11  ;;  %v10063_v11 = vunpack.c.h.bf16 %v10426_v47  ;;  %v908_v17 = vld [vmem:[%s12161_s16 + $0x370] sm:$0xff]  ;;  %v906_v47 = vld [vmem:[%s12161_s16 + $0x360] sm:$0xff] }
 0x12d   : > { %1970 = vperm.xlu0 %10799, %v912_v24   ;;  %3269 = vmatprep.subr.bf16.mxu0 %v16718_v0 }
 0x12e   : > { %v2611_v51 = vpack.c.bf16 %v2425_v34, %v2424_v35  ;;  %v12440_v54 = vpop.permute.xlu1 %1525  ;;  %v10059_v35 = vunpack.c.h.bf16 %v10425_v14 }
 0x12f   : > { %17167 = vst [vmem:[#allocation49_spill] sm:$0xff] %v12440_v54  ;;  %v12442_v57 = vpop.permute.xlu0 %1520  ;;  %v2423_v62 = vmul.f32 %v10067_v40, %v12440_v54  ;;  %1965 = vperm.xlu1 %10800, %v911_v42   ;;  %v10058_v40 = vunpack.c.l.bf16 %v10425_v14  ;;  %v10424_v42 = vld [vmem:[%s12232_s21 + $0x48] sm:$0xff]   ;;  %v905_v14 = vld [vmem:[%s12161_s16 + $0x358] sm:$0xff] }
 0x130   : > { %17168 = vst [vmem:[#allocation50_spill] sm:$0xff] %v12442_v57  ;;  %v2422_v63 = vmul.f32 %v10066_v41, %v12442_v57  ;;  %3270 = vmatpush2.bf16.msra.mxu0 %v2611_v51  ;;  %v907_v41 = vld [vmem:[%s12161_s16 + $0x368] sm:$0xff] }
 0x131   : > { %1960 = vperm.xlu0 %10799, %v910_v50   ;;  %3271 = vmatprep.subr.bf16.mxu0 %v16718_v0  ;;  %v10938_v54 = vld [vmem:[%s12140_s9 + $0x308] ss:$16 sps:$4 sm:$0xff]  }
 0x132   : > { %v2610_v18 = vpack.c.bf16 %v2423_v62, %v2422_v63  ;;  %v12452_v21 = vpop.permute.xlu1 %1515  ;;  %v10809_v62 = vld [vmem:[%s12140_s9 + $0x48] ss:$16 sps:$4 sm:$0xff]   ;;  %v10810_v63 = vld [vmem:[%s12140_s9 + $0x6c] ss:$16 sps:$4 sm:$0xff]  }
 0x133   : > { %17169 = vst [vmem:[#allocation51_spill] sm:$0xff] %v12452_v21  ;;  %v12454_v24 = vpop.permute.xlu0 %1510  ;;  %3523 = vmatmul.mubr.bf16.gmra.mxu1 %v10806_v60  ;;  %v2421_v27 = vmul.f32 %v10063_v11, %v12452_v21  ;;  %1955 = vperm.xlu1 %10800, %v909_v13   ;;  %v10054_v13 = vunpack.c.l.bf16 %v10424_v42 }
 0x134   : > { %17170 = vst [vmem:[#allocation52_spill] sm:$0xff] %v12454_v24  ;;  %v2420_v34 = vmul.f32 %v10062_v12, %v12454_v24  ;;  %3272 = vmatpush2.bf16.msra.mxu0 %v2610_v18  ;;  %9591 = vmatprep.mubr.msk.bf16.mxu1 %vm3173_vm0, %v10807_v61  ;;  %v10055_v12 = vunpack.c.h.bf16 %v10424_v42  ;;  %v904_v18 = vld [vmem:[%s12161_s16 + $0x350] sm:$0xff] }
 0x135   : > { %1950 = vperm.xlu0 %10799, %v908_v17   ;;  %3273 = vmatprep.subr.bf16.mxu0 %v16718_v0  ;;  %v10423_v17 = vld [vmem:[%s12232_s21 + $0x40] sm:$0xff]  }
 0x136   : > { %v2609_v50 = vpack.c.bf16 %v2421_v27, %v2420_v34  ;;  %v12463_v51 = vpop.permute.xlu1 %1505  ;;  %v10050_v42 = vunpack.c.l.bf16 %v10423_v17 }
 0x137   : > { %17171 = vst [vmem:[#allocation53_spill] sm:$0xff] %v12463_v51  ;;  %v12465_v60 = vpop.permute.xlu0 %1500  ;;  %v2419_v11 = vmul.f32 %v10059_v35, %v12463_v51  ;;  %1945 = vperm.xlu1 %10800, %v907_v41   ;;  %v10051_v41 = vunpack.c.h.bf16 %v10423_v17  ;;  %v10471_v51 = vld [vmem:[%s12232_s21 + $0x1c0] sm:$0xff]  }
 0x138   : > { %17172 = vst [vmem:[#allocation54_spill] sm:$0xff] %v12465_v60  ;;  %v2418_v61 = vmul.f32 %v10058_v40, %v12465_v60  ;;  %3274 = vmatpush2.bf16.msra.mxu0 %v2609_v50  ;;  %v10447_v50 = vld [vmem:[%s12232_s21 + $0x100] sm:$0xff]  }
 0x139   : > { %1940 = vperm.xlu0 %10799, %v906_v47   ;;  %3275 = vmatprep.subr.bf16.mxu0 %v16718_v0  ;;  %v903_v47 = vld [vmem:[%s12161_s16 + $0x348] sm:$0xff]  ;;  %v10147_v17 = vunpack.c.h.bf16 %v10447_v50 }
 0x13a   : > { %v2608_v27 = vpack.c.bf16 %v2419_v11, %v2418_v61  ;;  %v12475_v34 = vpop.permute.xlu1 %1495 }
 0x13b   : > { %17173 = vst [vmem:[#allocation55_spill] sm:$0xff] %v12475_v34  ;;  %v12477_v45 = vpop.permute.xlu0 %1490  ;;  %3531 = vmatmul.mubr.bf16.gmra.mxu1 %v10809_v62  ;;  %v2417_v35 = vmul.f32 %v10055_v12, %v12475_v34  ;;  %1935 = vperm.xlu1 %10800, %v905_v14   ;;  %v902_v62 = vld [vmem:[%s12161_s16 + $0x340] sm:$0xff]  ;;  %v10243_v34 = vunpack.c.h.bf16 %v10471_v51 }
 0x13c   : > { %17174 = vst [vmem:[#allocation56_spill] sm:$0xff] %v12477_v45  ;;  %v2416_v40 = vmul.f32 %v10054_v13, %v12477_v45  ;;  %3276 = vmatpush2.bf16.msra.mxu0 %v2608_v27  ;;  %9592 = vmatprep.mubr.msk.bf16.mxu1 %vm3173_vm0, %v10810_v63  ;;  %v10812_v13 = vld [vmem:[%s12140_s9 + $0x68] ss:$16 sps:$4 sm:$0xff]   ;;  %v10816_v27 = vld [vmem:[%s12140_s9 + $0x8c] ss:$16 sps:$4 sm:$0xff]   ;;  %v10242_v45 = vunpack.c.l.bf16 %v10471_v51 }
 0x13d   : > { %1930 = vperm.xlu0 %10799, %v904_v18   ;;  %3277 = vmatprep.subr.bf16.mxu0 %v16718_v0  ;;  %v10146_v18 = vunpack.c.l.bf16 %v10447_v50  ;;  %v901_v0 = vld [vmem:[%s12161_s16 + $0x338] sm:$0xff] }
 0x13e   : > { %v2607_v11 = vpack.c.bf16 %v2417_v35, %v2416_v40  ;;  %v12486_v61 = vpop.permute.xlu1 %1485  ;;  %v17177_v35 = vmov 0   ;;  %v900_v40 = vld [vmem:[%s12161_s16 + $0x330] sm:$0xff] }
 0x13f   : > { %17175 = vst [vmem:[#allocation57_spill] sm:$0xff] %v12486_v61  ;;  %v12488_v12 = vpop.permute.xlu0 %1480  ;;  %v2415_v63 = vmul.f32 %v10051_v41, %v12486_v61  ;;  %1925 = vperm.xlu1 %10800, %v903_v47   ;;  %v10470_v61 = vld [vmem:[%s12232_s21 + $0x1b8] sm:$0xff]  }
 0x140   : > { %17176 = vst [vmem:[#allocation58_spill] sm:$0xff] %v12488_v12  ;;  %v2414_v14 = vmul.f32 %v10050_v42, %v12488_v12  ;;  %3278 = vmatpush2.bf16.msra.mxu0 %v2607_v11  ;;  %v10813_v42 = vld [vmem:[%s12140_s9] ss:$16 sps:$4 sm:$0xff]   ;;  %v10819_v11 = vld [vmem:[%s12140_s9 + $0x24] ss:$16 sps:$4 sm:$0xff]   ;;  %v997_v12 = vld [vmem:[%s12161_s16 + $0x638] sm:$0xff] }
 0x141   : > { %1920 = vperm.xlu0 %10799, %v902_v62   ;;  %3279 = vmatprep.subr.bf16.mxu0 %v17177_v35  ;;  %v10143_v62 = vunpack.c.h.bf16 %v10446_v46  ;;  %v10822_v46 = vld [vmem:[%s12140_s9 + $0xac] ss:$16 sps:$4 sm:$0xff]  }
 0x142   : > { %v2606_v15 = vpack.c.bf16 %v2415_v63, %v2414_v14  ;;  %v12498_v6 = vpop.permute.xlu1 %1725  ;;  %v899_v63 = vld [vmem:[%s12161_s16 + $0x328] sm:$0xff]  ;;  %v10445_v14 = vld [vmem:[%s12232_s21 + $0xf0] sm:$0xff]  }
 0x143   : > { %17178 = vst [vmem:[#allocation59_spill] sm:$0xff] %v12498_v6  ;;  %v12500_v41 = vpop.permute.xlu0 %1720  ;;  %3539 = vmatmul.mubr.bf16.gmra.mxu1 %v10812_v13  ;;  %v2463_v50 = vmul.f32 %v10147_v17, %v12498_v6  ;;  %1915 = vperm.xlu1 %10800, %v901_v0   ;;  %v10444_v6 = vld [vmem:[%s12232_s21 + $0xe8] sm:$0xff]  }
 0x144   : > { %17179 = vst [vmem:[#allocation60_spill] sm:$0xff] %v12500_v41  ;;  %v2462_v47 = vmul.f32 %v10146_v18, %v12500_v41  ;;  %3280 = vmatpush2.bf16.msra.mxu0 %v2606_v15  ;;  %9593 = vmatprep.mubr.msk.bf16.mxu1 %vm3173_vm0, %v10816_v27  ;;  %v10818_v15 = vld [vmem:[%s12140_s9 + $0x88] ss:$16 sps:$4 sm:$0xff]  }
 0x145   : > { %1910 = vperm.xlu0 %10799, %v900_v40   ;;  %4498 = vmatprep.subr.bf16.mxu0 %v17177_v35  ;;  %v10139_v40 = vunpack.c.h.bf16 %v10445_v14 }
 0x146   : > { %v2630_v13 = vpack.c.bf16 %v2463_v50, %v2462_v47  ;;  %v12511_v17 = vpop.permute.xlu1 %1715  ;;  %v10138_v50 = vunpack.c.l.bf16 %v10445_v14  ;;  %v929_v47 = vld [vmem:[%s12161_s16 + $0x418] sm:$0xff]  ;;  %v10134_v14 = vunpack.c.l.bf16 %v10444_v6 }
 0x147   : > { %17180 = vst [vmem:[#allocation61_spill] sm:$0xff] %v12511_v17  ;;  %v12513_v18 = vpop.permute.xlu0 %1710  ;;  %3282 = vmatmul.mubr.bf16.vlgmr.msra.gmra.mxu0 %v10813_v42  ;;  %v2461_v27 = vmul.f32 %v10143_v62, %v12511_v17  ;;  %1905 = vperm.xlu1 %10800, %v899_v63   ;;  %v928_v42 = vld [vmem:[%s12161_s16 + $0x410] sm:$0xff]  ;;  %v10135_v63 = vunpack.c.h.bf16 %v10444_v6  ;;  %v10828_v6 = vld [vmem:[%s12140_s9 + $0xcc] ss:$16 sps:$4 sm:$0xff]  }
 0x148   : > { %17181 = vst [vmem:[#allocation62_spill] sm:$0xff] %v12513_v18  ;;  %v2460_v0 = vmul.f32 %v10142_v38, %v12513_v18  ;;  %4266 = vmatpush1.bf16.msra.mxu1 %v2630_v13  ;;  %3289 = vmatprep.mubr.bf16.mxu0 %v10819_v11  ;;  %v10821_v38 = vld [vmem:[%s12140_s9 + $0x20] ss:$16 sps:$4 sm:$0xff]   ;;  %v10825_v13 = vld [vmem:[%s12140_s9 + $0x44] ss:$16 sps:$4 sm:$0xff]  }
 0x149   : > { %1900 = vperm.xlu0 %10799, %v898_v39   ;;  %4267 = vmatprep.subr.bf16.mxu1 %v17177_v35 }
 0x14a   : > { %v2629_v41 = vpack.c.bf16 %v2461_v27, %v2460_v0  ;;  %v12523_v58 = vpop.permute.xlu1 %1705  ;;  %v927_v27 = vld [vmem:[%s12161_s16 + $0x408] sm:$0xff]  ;;  %v10443_v0 = vld [vmem:[%s12232_s21 + $0xe0] sm:$0xff]  }
 0x14b   : > { %17182 = vst [vmem:[#allocation63_spill] sm:$0xff] %v12523_v58  ;;  %v12525_v62 = vpop.permute.xlu0 %1700  ;;  %3547 = vmatmul.mubr.bf16.gmra.mxu1 %v10818_v15  ;;  %v2459_v11 = vmul.f32 %v10139_v40, %v12523_v58  ;;  %2055 = vperm.xlu1 %10800, %v929_v47   ;;  %v926_v15 = vld [vmem:[%s12161_s16 + $0x400] sm:$0xff]  ;;  %v10130_v18 = vunpack.c.l.bf16 %v10443_v0 }
 0x14c   : > { %17183 = vst [vmem:[#allocation64_spill] sm:$0xff] %v12525_v62  ;;  %v2458_v39 = vmul.f32 %v10138_v50, %v12525_v62  ;;  %4268 = vmatpush1.bf16.msra.mxu1 %v2629_v41  ;;  %9594 = vmatprep.mubr.msk.bf16.mxu1 %vm3173_vm0, %v10822_v46  ;;  %v10824_v41 = vld [vmem:[%s12140_s9 + $0xa8] ss:$16 sps:$4 sm:$0xff]  }
 0x14d   : > { %2050 = vperm.xlu0 %10799, %v928_v42   ;;  %4269 = vmatprep.subr.bf16.mxu1 %v17177_v35  ;;  %v10131_v42 = vunpack.c.h.bf16 %v10443_v0 }
 0x14e   : > { %v2628_v17 = vpack.c.bf16 %v2459_v11, %v2458_v39  ;;  %v12536_v40 = vpop.permute.xlu1 %1695  ;;  %v925_v11 = vld [vmem:[%s12161_s16 + $0x3f8] sm:$0xff] }
 0x14f   : > { %17184 = vst [vmem:[#allocation65_spill] sm:$0xff] %v12536_v40  ;;  %v12538_v50 = vpop.permute.xlu0 %1690  ;;  %3290 = vmatmul.mubr.bf16.gmra.mxu0 %v10821_v38  ;;  %v2457_v46 = vmul.f32 %v10135_v63, %v12536_v40  ;;  %2045 = vperm.xlu1 %10800, %v927_v27   ;;  %v10442_v39 = vld [vmem:[%s12232_s21 + $0xd8] sm:$0xff]   ;;  %v924_v38 = vld [vmem:[%s12161_s16 + $0x3f0] sm:$0xff] }
 0x150   : > { %17185 = vst [vmem:[#allocation66_spill] sm:$0xff] %v12538_v50  ;;  %v2456_v47 = vmul.f32 %v10134_v14, %v12538_v50  ;;  %4270 = vmatpush1.bf16.msra.mxu1 %v2628_v17  ;;  %3297 = vmatprep.mubr.bf16.mxu0 %v10825_v13  ;;  %v10827_v17 = vld [vmem:[%s12140_s9 + $0x40] ss:$16 sps:$4 sm:$0xff]   ;;  %v10127_v27 = vunpack.c.h.bf16 %v10442_v39  ;;  %v10126_v0 = vunpack.c.l.bf16 %v10442_v39  ;;  %v10834_v50 = vld [vmem:[%s12140_s9 + $0xec] ss:$16 sps:$4 sm:$0xff]  }
 0x151   : > { %2040 = vperm.xlu0 %10799, %v926_v15   ;;  %4271 = vmatprep.subr.bf16.mxu1 %v17177_v35  ;;  %v10831_v15 = vld [vmem:[%s12140_s9 + $0x64] ss:$16 sps:$4 sm:$0xff]  }
 0x152   : > { %v2627_v58 = vpack.c.bf16 %v2457_v46, %v2456_v47  ;;  %v12548_v62 = vpop.permute.xlu1 %1685  ;;  %v10441_v46 = vld [vmem:[%s12232_s21 + $0xd0] sm:$0xff]   ;;  %v923_v47 = vld [vmem:[%s12161_s16 + $0x3e8] sm:$0xff] }
 0x153   : > { %17186 = vst [vmem:[#allocation67_spill] sm:$0xff] %v12548_v62  ;;  %v12550_v63 = vpop.permute.xlu0 %1680  ;;  %3555 = vmatmul.mubr.bf16.gmra.mxu1 %v10824_v41  ;;  %v2455_v13 = vmul.f32 %v10131_v42, %v12548_v62  ;;  %2035 = vperm.xlu1 %10800, %v925_v11   ;;  %v922_v41 = vld [vmem:[%s12161_s16 + $0x3e0] sm:$0xff]  ;;  %v10123_v39 = vunpack.c.h.bf16 %v10441_v46  ;;  %v920_v62 = vld [vmem:[%s12161_s16 + $0x3d0] sm:$0xff] }
 0x154   : > { %17187 = vst [vmem:[#allocation68_spill] sm:$0xff] %v12550_v63  ;;  %v2454_v14 = vmul.f32 %v10130_v18, %v12550_v63  ;;  %4272 = vmatpush1.bf16.msra.mxu1 %v2627_v58  ;;  %9595 = vmatprep.mubr.msk.bf16.mxu1 %vm3173_vm0, %v10828_v6  ;;  %v10830_v18 = vld [vmem:[%s12140_s9 + $0xc8] ss:$16 sps:$4 sm:$0xff]   ;;  %v10837_v63 = vld [vmem:[%s12140_s9 + $0x84] ss:$16 sps:$4 sm:$0xff]  }
 0x155   : > { %2030 = vperm.xlu0 %10799, %v924_v38   ;;  %4273 = vmatprep.subr.bf16.mxu1 %v17177_v35  ;;  %v10122_v38 = vunpack.c.l.bf16 %v10441_v46 }
 0x156   : > { %v2626_v40 = vpack.c.bf16 %v2455_v13, %v2454_v14  ;;  %v12561_v42 = vpop.permute.xlu1 %1675  ;;  %v10440_v13 = vld [vmem:[%s12232_s21 + $0xc8] sm:$0xff]   ;;  %v921_v14 = vld [vmem:[%s12161_s16 + $0x3d8] sm:$0xff] }
 0x157   : > { %17188 = vst [vmem:[#allocation69_spill] sm:$0xff] %v12561_v42  ;;  %v12563_v58 = vpop.permute.xlu0 %1670  ;;  %3298 = vmatmul.mubr.bf16.gmra.mxu0 %v10827_v17  ;;  %v2453_v6 = vmul.f32 %v10127_v27, %v12561_v42  ;;  %2025 = vperm.xlu1 %10800, %v923_v47   ;;  %v10119_v47 = vunpack.c.h.bf16 %v10440_v13  ;;  %v10455_v42 = vld [vmem:[%s12232_s21 + $0x140] sm:$0xff]  }
 0x158   : > { %17189 = vst [vmem:[#allocation70_spill] sm:$0xff] %v12563_v58  ;;  %v2452_v11 = vmul.f32 %v10126_v0, %v12563_v58  ;;  %4274 = vmatpush1.bf16.msra.mxu1 %v2626_v40  ;;  %3305 = vmatprep.mubr.bf16.mxu0 %v10831_v15  ;;  %v10833_v40 = vld [vmem:[%s12140_s9 + $0x60] ss:$16 sps:$4 sm:$0xff]  }
 0x159   : > { %2020 = vperm.xlu0 %10799, %v922_v41   ;;  %4275 = vmatprep.subr.bf16.mxu1 %v17177_v35  ;;  %v10118_v41 = vunpack.c.l.bf16 %v10440_v13  ;;  %v10836_v13 = vld [vmem:[%s12140_s9 + $0xe8] ss:$16 sps:$4 sm:$0xff]   ;;  %v916_v58 = vld [vmem:[%s12161_s16 + $0x3b0] sm:$0xff] }
 0x15a   : > { %v2625_v17 = vpack.c.bf16 %v2453_v6, %v2452_v11  ;;  %v12573_v27 = vpop.permute.xlu1 %1665  ;;  %v919_v6 = vld [vmem:[%s12161_s16 + $0x3c8] sm:$0xff]  ;;  %v918_v11 = vld [vmem:[%s12161_s16 + $0x3c0] sm:$0xff] }
 0x15b   : > { %17190 = vst [vmem:[#allocation71_spill] sm:$0xff] %v12573_v27  ;;  %v12575_v0 = vpop.permute.xlu0 %1660  ;;  %3563 = vmatmul.mubr.bf16.gmra.mxu1 %v10830_v18  ;;  %v2451_v15 = vmul.f32 %v10123_v39, %v12573_v27  ;;  %2015 = vperm.xlu1 %10800, %v921_v14   ;;  %v10840_v14 = vld [vmem:[%s12140_s9 + $0x10c] ss:$16 sps:$4 sm:$0xff]  }
 0x15c   : > { %17191 = vst [vmem:[#allocation72_spill] sm:$0xff] %v12575_v0  ;;  %v2450_v46 = vmul.f32 %v10122_v38, %v12575_v0  ;;  %4276 = vmatpush1.bf16.msra.mxu1 %v2625_v17  ;;  %9596 = vmatprep.mubr.msk.bf16.mxu1 %vm3173_vm0, %v10834_v50  ;;  %v10179_v17 = vunpack.c.h.bf16 %v10455_v42  ;;  %v10453_v0 = vld [vmem:[%s12232_s21 + $0x130] sm:$0xff]  }
 0x15d   : > { %2010 = vperm.xlu0 %10799, %v920_v62   ;;  %4277 = vmatprep.subr.bf16.mxu1 %v17177_v35 }
 0x15e   : > { %v2624_v18 = vpack.c.bf16 %v2451_v15, %v2450_v46  ;;  %v12586_v39 = vpop.permute.xlu1 %1655  ;;  %v10178_v15 = vunpack.c.l.bf16 %v10455_v42  ;;  %v917_v46 = vld [vmem:[%s12161_s16 + $0x3b8] sm:$0xff]  ;;  %v10843_v42 = vld [vmem:[%s12140_s9 + $0xa4] ss:$16 sps:$4 sm:$0xff]  }
 0x15f   : > { %17192 = vst [vmem:[#allocation73_spill] sm:$0xff] %v12586_v39  ;;  %v12588_v38 = vpop.permute.xlu0 %1650  ;;  %3306 = vmatmul.mubr.bf16.gmra.mxu0 %v10833_v40  ;;  %v2449_v50 = vmul.f32 %v10119_v47, %v12586_v39  ;;  %2005 = vperm.xlu1 %10800, %v919_v6   ;;  %v10454_v40 = vld [vmem:[%s12232_s21 + $0x138] sm:$0xff]   ;;  %v10839_v47 = vld [vmem:[%s12140_s9 + $0x80] ss:$16 sps:$4 sm:$0xff]  }
 0x160   : > { %17193 = vst [vmem:[#allocation74_spill] sm:$0xff] %v12588_v38  ;;  %v2448_v62 = vmul.f32 %v10118_v41, %v12588_v38  ;;  %4278 = vmatpush1.bf16.msra.mxu1 %v2624_v18  ;;  %3313 = vmatprep.mubr.bf16.mxu0 %v10837_v63  ;;  %v10175_v18 = vunpack.c.h.bf16 %v10454_v40 }
 0x161   : > { %2000 = vperm.xlu0 %10799, %v918_v11   ;;  %4279 = vmatprep.subr.bf16.mxu1 %v17177_v35 }
 0x162   : > { %v2623_v27 = vpack.c.bf16 %v2449_v50, %v2448_v62  ;;  %v12599_v41 = vpop.permute.xlu1 %1805  ;;  %v945_v50 = vld [vmem:[%s12161_s16 + $0x498] sm:$0xff]  ;;  %v944_v62 = vld [vmem:[%s12161_s16 + $0x490] sm:$0xff] }
 0x163   : > { %3571 = vmatmul.mubr.bf16.gmra.mxu1 %v10836_v13  ;;  %17194 = vst [vmem:[#allocation75_spill] sm:$0xff] %v12599_v41  ;;  %v12601_v63 = vpop.permute.xlu0 %1800  ;;  %v2479_v6 = vmul.f32 %v10179_v17, %v12599_v41  ;;  %1995 = vperm.xlu1 %10800, %v917_v46   ;;  %v10174_v13 = vunpack.c.l.bf16 %v10454_v40  ;;  %v10171_v40 = vunpack.c.h.bf16 %v10453_v0  ;;  %v10170_v41 = vunpack.c.l.bf16 %v10453_v0  ;;  %v10849_v0 = vld [vmem:[%s12140_s9 + $0xc4] ss:$16 sps:$4 sm:$0xff]  }
 0x164   : > { %17195 = vst [vmem:[#allocation76_spill] sm:$0xff] %v12601_v63  ;;  %4280 = vmatpush1.bf16.msra.mxu1 %v2623_v27  ;;  %9597 = vmatprep.mubr.msk.bf16.mxu1 %vm3173_vm0, %v10840_v14  ;;  %v2478_v11 = vmul.f32 %v10178_v15, %v12601_v63  ;;  %v10842_v14 = vld [vmem:[%s12140_s9 + $0x108] ss:$16 sps:$4 sm:$0xff]   ;;  %v10845_v63 = vld [vmem:[%s12140_s9 + $0xa0] ss:$16 sps:$4 sm:$0xff]  }
 0x165   : > { %1990 = vperm.xlu0 %10799, %v916_v58   ;;  %4281 = vmatprep.subr.bf16.mxu1 %v17177_v35  ;;  %v10846_v58 = vld [vmem:[%s12140_s9 + $0x12c] ss:$16 sps:$4 sm:$0xff]  }
 0x166   : > { %v2638_v27 = vpack.c.bf16 %v2479_v6, %v2478_v11  ;;  %v12612_v39 = vpop.permute.xlu1 %1795  ;;  %v914_v6 = vld [vmem:[%s12161_s16 + $0x3a0] sm:$0xff]  ;;  %v10452_v11 = vld [vmem:[%s12232_s21 + $0x128] sm:$0xff]  }
 0x167   : > { %3314 = vmatmul.mubr.bf16.gmra.mxu0 %v10839_v47  ;;  %17196 = vst [vmem:[#allocation77_spill] sm:$0xff] %v12612_v39  ;;  %v12614_v17 = vpop.permute.xlu0 %1790  ;;  %v2477_v15 = vmul.f32 %v10175_v18, %v12612_v39  ;;  %2135 = vperm.xlu1 %10800, %v945_v50   ;;  %v915_v47 = vld [vmem:[%s12161_s16 + $0x3a8] sm:$0xff]  ;;  %v10451_v39 = vld [vmem:[%s12232_s21 + $0x120] sm:$0xff]  }
 0x168   : > { %17197 = vst [vmem:[#allocation78_spill] sm:$0xff] %v12614_v17  ;;  %3321 = vmatprep.mubr.bf16.mxu0 %v10843_v42  ;;  %v2476_v46 = vmul.f32 %v10174_v13, %v12614_v17  ;;  %4282 = vmatpush2.bf16.msra.mxu1 %v2638_v27  ;;  %v10167_v27 = vunpack.c.h.bf16 %v10452_v11  ;;  %v10848_v17 = vld [vmem:[%s12140_s9 + $0x128] ss:$16 sps:$4 sm:$0xff]  }
 0x169   : > { %2130 = vperm.xlu0 %10799, %v944_v62   ;;  %4283 = vmatprep.subr.bf16.mxu1 %v17177_v35 }
 0x16a   : > { %v2637_v42 = vpack.c.bf16 %v2477_v15, %v2476_v46  ;;  %v12624_v18 = vpop.permute.xlu1 %1785  ;;  %v943_v15 = vld [vmem:[%s12161_s16 + $0x488] sm:$0xff]  ;;  %v942_v46 = vld [vmem:[%s12161_s16 + $0x480] sm:$0xff] }
 0x16b   : > { %3579 = vmatmul.mubr.bf16.gmra.mxu1 %v10842_v14  ;;  %17198 = vst [vmem:[#allocation79_spill] sm:$0xff] %v12624_v18  ;;  %v12626_v13 = vpop.permute.xlu0 %1780  ;;  %v2475_v50 = vmul.f32 %v10171_v40, %v12624_v18  ;;  %1985 = vperm.xlu1 %10800, %v915_v47   ;;  %v10166_v14 = vunpack.c.l.bf16 %v10452_v11  ;;  %v10852_v47 = vld [vmem:[%s12140_s9 + $0x14c] ss:$16 sps:$4 sm:$0xff]  }
 0x16c   : > { %17199 = vst [vmem:[#allocation80_spill] sm:$0xff] %v12626_v13  ;;  %9598 = vmatprep.mubr.msk.bf16.mxu1 %vm3173_vm0, %v10846_v58  ;;  %v2474_v62 = vmul.f32 %v10170_v41, %v12626_v13  ;;  %4284 = vmatpush2.bf16.msra.mxu1 %v2637_v42  ;;  %v10162_v42 = vunpack.c.l.bf16 %v10451_v39  ;;  %v941_v18 = vld [vmem:[%s12161_s16 + $0x478] sm:$0xff]  ;;  %v10851_v13 = vld [vmem:[%s12140_s9 + $0xc0] ss:$16 sps:$4 sm:$0xff]  }
 0x16d   : > { %1980 = vperm.xlu0 %10799, %v914_v6   ;;  %4285 = vmatprep.subr.bf16.mxu1 %v17177_v35 }
 0x16e   : > { %v2636_v58 = vpack.c.bf16 %v2475_v50, %v2474_v62  ;;  %v12637_v40 = vpop.permute.xlu1 %1775  ;;  %v940_v50 = vld [vmem:[%s12161_s16 + $0x470] sm:$0xff]  ;;  %v10450_v62 = vld [vmem:[%s12232_s21 + $0x118] sm:$0xff]  }
 0x16f   : > { %3322 = vmatmul.mubr.bf16.gmra.mxu0 %v10845_v63  ;;  %17200 = vst [vmem:[#allocation81_spill] sm:$0xff] %v12637_v40  ;;  %v12639_v41 = vpop.permute.xlu0 %1770  ;;  %v2473_v6 = vmul.f32 %v10167_v27, %v12637_v40  ;;  %2125 = vperm.xlu1 %10800, %v943_v15   ;;  %v10163_v63 = vunpack.c.h.bf16 %v10451_v39  ;;  %v10855_v39 = vld [vmem:[%s12140_s9 + $0xe4] ss:$16 sps:$4 sm:$0xff]  }
 0x170   : > { %17201 = vst [vmem:[#allocation82_spill] sm:$0xff] %v12639_v41  ;;  %3329 = vmatprep.mubr.bf16.mxu0 %v10849_v0  ;;  %v2472_v11 = vmul.f32 %v10166_v14, %v12639_v41  ;;  %4286 = vmatpush2.bf16.msra.mxu1 %v2636_v58  ;;  %v10158_v58 = vunpack.c.l.bf16 %v10450_v62  ;;  %v10449_v40 = vld [vmem:[%s12232_s21 + $0x110] sm:$0xff]   ;;  %v10854_v41 = vld [vmem:[%s12140_s9 + $0x148] ss:$16 sps:$4 sm:$0xff]  }
 0x171   : > { %2120 = vperm.xlu0 %10799, %v942_v46   ;;  %4287 = vmatprep.subr.bf16.mxu1 %v17177_v35 }
 0x172   : > { %v2635_v0 = vpack.c.bf16 %v2473_v6, %v2472_v11  ;;  %v12649_v27 = vpop.permute.xlu1 %1765  ;;  %v939_v6 = vld [vmem:[%s12161_s16 + $0x468] sm:$0xff]  ;;  %v938_v11 = vld [vmem:[%s12161_s16 + $0x460] sm:$0xff] }
 0x173   : > { %3587 = vmatmul.mubr.bf16.gmra.mxu1 %v10848_v17  ;;  %17202 = vst [vmem:[#allocation83_spill] sm:$0xff] %v12649_v27  ;;  %v12651_v14 = vpop.permute.xlu0 %1760  ;;  %v2471_v15 = vmul.f32 %v10163_v63, %v12649_v27  ;;  %2115 = vperm.xlu1 %10800, %v941_v18   ;;  %v10159_v17 = vunpack.c.h.bf16 %v10450_v62  ;;  %v10858_v18 = vld [vmem:[%s12140_s9 + $0x16c] ss:$16 sps:$4 sm:$0xff]  }
 0x174   : > { %17203 = vst [vmem:[#allocation84_spill] sm:$0xff] %v12651_v14  ;;  %9599 = vmatprep.mubr.msk.bf16.mxu1 %vm3173_vm0, %v10852_v47  ;;  %v2470_v46 = vmul.f32 %v10162_v42, %v12651_v14  ;;  %4288 = vmatpush2.bf16.msra.mxu1 %v2635_v0  ;;  %v10154_v0 = vunpack.c.l.bf16 %v10449_v40  ;;  %v937_v27 = vld [vmem:[%s12161_s16 + $0x458] sm:$0xff]  ;;  %v10857_v14 = vld [vmem:[%s12140_s9 + $0xe0] ss:$16 sps:$4 sm:$0xff]  }
 0x175   : > { %2110 = vperm.xlu0 %10799, %v940_v50   ;;  %4289 = vmatprep.subr.bf16.mxu1 %v17177_v35 }
 0x176   : > { %v2634_v47 = vpack.c.bf16 %v2471_v15, %v2470_v46  ;;  %v12662_v63 = vpop.permute.xlu1 %1755  ;;  %v936_v15 = vld [vmem:[%s12161_s16 + $0x450] sm:$0xff]  ;;  %v10463_v46 = vld [vmem:[%s12232_s21 + $0x180] sm:$0xff]  }
 0x177   : > { %3330 = vmatmul.mubr.bf16.gmra.mxu0 %v10851_v13  ;;  %17204 = vst [vmem:[#allocation85_spill] sm:$0xff] %v12662_v63  ;;  %v12664_v42 = vpop.permute.xlu0 %1750  ;;  %v2469_v50 = vmul.f32 %v10159_v17, %v12662_v63  ;;  %2105 = vperm.xlu1 %10800, %v939_v6   ;;  %v10155_v13 = vunpack.c.h.bf16 %v10449_v40  ;;  %v10861_v40 = vld [vmem:[%s12140_s9 + $0x104] ss:$16 sps:$4 sm:$0xff]   ;;  %v10448_v63 = vld [vmem:[%s12232_s21 + $0x108] sm:$0xff]  }
 0x178   : > { %17205 = vst [vmem:[#allocation86_spill] sm:$0xff] %v12664_v42  ;;  %3337 = vmatprep.mubr.bf16.mxu0 %v10855_v39  ;;  %v2468_v62 = vmul.f32 %v10158_v58, %v12664_v42  ;;  %4290 = vmatpush2.bf16.msra.mxu1 %v2634_v47  ;;  %v10210_v47 = vunpack.c.l.bf16 %v10463_v46  ;;  %v10860_v42 = vld [vmem:[%s12140_s9 + $0x168] ss:$16 sps:$4 sm:$0xff]  }
 0x179   : > { %2100 = vperm.xlu0 %10799, %v938_v11   ;;  %4291 = vmatprep.subr.bf16.mxu1 %v17177_v35 }
 0x17a   : > { %v2633_v39 = vpack.c.bf16 %v2469_v50, %v2468_v62  ;;  %v12674_v17 = vpop.permute.xlu1 %1745  ;;  %v935_v50 = vld [vmem:[%s12161_s16 + $0x448] sm:$0xff]  ;;  %v934_v62 = vld [vmem:[%s12161_s16 + $0x440] sm:$0xff] }
 0x17b   : > { %3595 = vmatmul.mubr.bf16.gmra.mxu1 %v10854_v41  ;;  %17206 = vst [vmem:[#allocation87_spill] sm:$0xff] %v12674_v17  ;;  %v12676_v58 = vpop.permute.xlu0 %1740  ;;  %v2467_v6 = vmul.f32 %v10155_v13, %v12674_v17  ;;  %2095 = vperm.xlu1 %10800, %v937_v27   ;;  %v10211_v41 = vunpack.c.h.bf16 %v10463_v46  ;;  %v10864_v27 = vld [vmem:[%s12140_s9 + $0x18c] ss:$16 sps:$4 sm:$0xff]  }
 0x17c   : > { %17207 = vst [vmem:[#allocation88_spill] sm:$0xff] %v12676_v58  ;;  %9600 = vmatprep.mubr.msk.bf16.mxu1 %vm3173_vm0, %v10858_v18  ;;  %v2466_v11 = vmul.f32 %v10154_v0, %v12676_v58  ;;  %4292 = vmatpush2.bf16.msra.mxu1 %v2633_v39  ;;  %v10150_v39 = vunpack.c.l.bf16 %v10448_v63  ;;  %v933_v17 = vld [vmem:[%s12161_s16 + $0x438] sm:$0xff] }
 0x17d   : > { %2090 = vperm.xlu0 %10799, %v936_v15   ;;  %4293 = vmatprep.subr.bf16.mxu1 %v17177_v35 }
 0x17e   : > { %v2632_v18 = vpack.c.bf16 %v2467_v6, %v2466_v11  ;;  %v12687_v13 = vpop.permute.xlu1 %1885  ;;  %v932_v6 = vld [vmem:[%s12161_s16 + $0x430] sm:$0xff]  ;;  %v10462_v11 = vld [vmem:[%s12232_s21 + $0x178] sm:$0xff]  }
 0x17f   : > { %3338 = vmatmul.mubr.bf16.gmra.mxu0 %v10857_v14  ;;  %17208 = vst [vmem:[#allocation89_spill] sm:$0xff] %v12687_v13  ;;  %v12689_v0 = vpop.permute.xlu0 %1880  ;;  %v2495_v15 = vmul.f32 %v10211_v41, %v12687_v13  ;;  %2085 = vperm.xlu1 %10800, %v935_v50   ;;  %v10151_v14 = vunpack.c.h.bf16 %v10448_v63  ;;  %v10867_v63 = vld [vmem:[%s12140_s9 + $0x124] ss:$16 sps:$4 sm:$0xff]  }
 0x180   : > { %17209 = vst [vmem:[#allocation90_spill] sm:$0xff] %v12689_v0  ;;  %3345 = vmatprep.mubr.bf16.mxu0 %v10861_v40  ;;  %v2494_v46 = vmul.f32 %v10210_v47, %v12689_v0  ;;  %4294 = vmatpush2.bf16.msra.mxu1 %v2632_v18  ;;  %v10863_v40 = vld [vmem:[%s12140_s9 + $0x100] ss:$16 sps:$4 sm:$0xff]   ;;  %v10206_v18 = vunpack.c.l.bf16 %v10462_v11 }
 0x181   : > { %2080 = vperm.xlu0 %10799, %v934_v62   ;;  %4295 = vmatprep.subr.bf16.mxu1 %v17177_v35  ;;  %v10461_v13 = vld [vmem:[%s12232_s21 + $0x170] sm:$0xff]  }
 0x182   : > { %v2646_v58 = vpack.c.bf16 %v2495_v15, %v2494_v46  ;;  %v12699_v41 = vpop.permute.xlu1 %1735  ;;  %v931_v15 = vld [vmem:[%s12161_s16 + $0x428] sm:$0xff]  ;;  %v930_v46 = vld [vmem:[%s12161_s16 + $0x420] sm:$0xff] }
 0x183   : > { %3603 = vmatmul.mubr.bf16.gmra.mxu1 %v10860_v42  ;;  %17210 = vst [vmem:[#allocation91_spill] sm:$0xff] %v12699_v41  ;;  %v12701_v47 = vpop.permute.xlu0 %1730  ;;  %v2465_v50 = vmul.f32 %v10151_v14, %v12699_v41  ;;  %2075 = vperm.xlu1 %10800, %v933_v17   ;;  %v10207_v42 = vunpack.c.h.bf16 %v10462_v11  ;;  %v10870_v17 = vld [vmem:[%s12140_s9 + $0x1ac] ss:$16 sps:$4 sm:$0xff]   ;;  %v10203_v11 = vunpack.c.h.bf16 %v10461_v13 }
 0x184   : > { %17211 = vst [vmem:[#allocation92_spill] sm:$0xff] %v12701_v47  ;;  %9601 = vmatprep.mubr.msk.bf16.mxu1 %vm3173_vm0, %v10864_v27  ;;  %v2464_v62 = vmul.f32 %v10150_v39, %v12701_v47  ;;  %4499 = vmatpush1.bf16.msra.mxu0 %v2646_v58  ;;  %v10866_v27 = vld [vmem:[%s12140_s9 + $0x188] ss:$16 sps:$4 sm:$0xff]  }
 0x185   : > { %2070 = vperm.xlu0 %10799, %v932_v6   ;;  %4500 = vmatprep.subr.bf16.mxu0 %v17177_v35  ;;  %v10460_v41 = vld [vmem:[%s12232_s21 + $0x168] sm:$0xff]  }
 0x186   : > { %v2631_v0 = vpack.c.bf16 %v2465_v50, %v2464_v62  ;;  %v12712_v14 = vpop.permute.xlu1 %1875  ;;  %v947_v50 = vld [vmem:[%s12161_s16 + $0x4a8] sm:$0xff]  ;;  %v946_v62 = vld [vmem:[%s12161_s16 + $0x4a0] sm:$0xff] }
 0x187   : > { %3346 = vmatmul.mubr.bf16.gmra.mxu0 %v10863_v40  ;;  %17212 = vst [vmem:[#allocation93_spill] sm:$0xff] %v12712_v14  ;;  %v12714_v39 = vpop.permute.xlu0 %1870  ;;  %v2493_v58 = vmul.f32 %v10207_v42, %v12712_v14  ;;  %2065 = vperm.xlu1 %10800, %v931_v15   ;;  %v10202_v40 = vunpack.c.l.bf16 %v10461_v13  ;;  %v10873_v13 = vld [vmem:[%s12140_s9 + $0x144] ss:$16 sps:$4 sm:$0xff]  }
 0x188   : > { %17213 = vst [vmem:[#allocation94_spill] sm:$0xff] %v12714_v39  ;;  %3353 = vmatprep.mubr.bf16.mxu0 %v10867_v63  ;;  %v2492_v6 = vmul.f32 %v10206_v18, %v12714_v39  ;;  %4296 = vmatpush2.bf16.msra.mxu1 %v2631_v0  ;;  %v10869_v63 = vld [vmem:[%s12140_s9 + $0x120] ss:$16 sps:$4 sm:$0xff]   ;;  %v10872_v39 = vld [vmem:[%s12140_s9 + $0x1a8] ss:$16 sps:$4 sm:$0xff]  }
 0x189   : > { %2060 = vperm.xlu0 %10799, %v930_v46   ;;  %5281 = vmatprep.subr.bf16.mxu1 %v17177_v35  ;;  %v10199_v46 = vunpack.c.h.bf16 %v10460_v41  ;;  %v10459_v14 = vld [vmem:[%s12232_s21 + $0x160] sm:$0xff]  }
 0x18a   : > { %v2645_v47 = vpack.c.bf16 %v2493_v58, %v2492_v6  ;;  %v12724_v42 = vpop.permute.xlu1 %1865  ;;  %v963_v58 = vld [vmem:[%s12161_s16 + $0x528] sm:$0xff]  ;;  %v962_v6 = vld [vmem:[%s12161_s16 + $0x520] sm:$0xff] }
 0x18b   : > { %3611 = vmatmul.mubr.bf16.gmra.mxu1 %v10866_v27  ;;  %17214 = vst [vmem:[#allocation95_spill] sm:$0xff] %v12724_v42  ;;  %v12726_v18 = vpop.permute.xlu0 %1860  ;;  %v2491_v0 = vmul.f32 %v10203_v11, %v12724_v42  ;;  %2145 = vperm.xlu1 %10800, %v947_v50   ;;  %v10198_v27 = vunpack.c.l.bf16 %v10460_v41  ;;  %v10876_v50 = vld [vmem:[%s12140_s9 + $0x1cc] ss:$16 sps:$4 sm:$0xff]  }
 0x18c   : > { %17215 = vst [vmem:[#allocation96_spill] sm:$0xff] %v12726_v18  ;;  %9602 = vmatprep.mubr.msk.bf16.mxu1 %vm3173_vm0, %v10870_v17  ;;  %v2490_v15 = vmul.f32 %v10202_v40, %v12726_v18  ;;  %4501 = vmatpush1.bf16.msra.mxu0 %v2645_v47  ;;  %v961_v42 = vld [vmem:[%s12161_s16 + $0x518] sm:$0xff]  ;;  %v10875_v18 = vld [vmem:[%s12140_s9 + $0x140] ss:$16 sps:$4 sm:$0xff]  }
 0x18d   : > { %2140 = vperm.xlu0 %10799, %v946_v62   ;;  %4502 = vmatprep.subr.bf16.mxu0 %v17177_v35  ;;  %v10195_v62 = vunpack.c.h.bf16 %v10459_v14 }
 0x18e   : > { %v2644_v17 = vpack.c.bf16 %v2491_v0, %v2490_v15  ;;  %v12737_v11 = vpop.permute.xlu1 %1855  ;;  %v960_v0 = vld [vmem:[%s12161_s16 + $0x510] sm:$0xff]  ;;  %v10458_v15 = vld [vmem:[%s12232_s21 + $0x158] sm:$0xff]  }
 0x18f   : > { %3354 = vmatmul.mubr.bf16.gmra.mxu0 %v10869_v63  ;;  %17216 = vst [vmem:[#allocation97_spill] sm:$0xff] %v12737_v11  ;;  %v12739_v40 = vpop.permute.xlu0 %1850  ;;  %v2489_v41 = vmul.f32 %v10199_v46, %v12737_v11  ;;  %2225 = vperm.xlu1 %10800, %v963_v58   ;;  %v10194_v63 = vunpack.c.l.bf16 %v10459_v14  ;;  %v10879_v14 = vld [vmem:[%s12140_s9 + $0x164] ss:$16 sps:$4 sm:$0xff]  }
 0x190   : > { %17217 = vst [vmem:[#allocation98_spill] sm:$0xff] %v12739_v40  ;;  %3361 = vmatprep.mubr.bf16.mxu0 %v10873_v13  ;;  %v2488_v47 = vmul.f32 %v10198_v27, %v12739_v40  ;;  %4503 = vmatpush1.bf16.msra.mxu0 %v2644_v17  ;;  %v10190_v17 = vunpack.c.l.bf16 %v10458_v15  ;;  %v10457_v11 = vld [vmem:[%s12232_s21 + $0x150] sm:$0xff]   ;;  %v10878_v40 = vld [vmem:[%s12140_s9 + $0x1c8] ss:$16 sps:$4 sm:$0xff]  }
 0x191   : > { %2220 = vperm.xlu0 %10799, %v962_v6   ;;  %4504 = vmatprep.subr.bf16.mxu0 %v17177_v35 }
 0x192   : > { %v2643_v13 = vpack.c.bf16 %v2489_v41, %v2488_v47  ;;  %v12749_v46 = vpop.permute.xlu1 %1845  ;;  %v959_v41 = vld [vmem:[%s12161_s16 + $0x508] sm:$0xff]  ;;  %v958_v47 = vld [vmem:[%s12161_s16 + $0x500] sm:$0xff] }
 0x193   : > { %3619 = vmatmul.mubr.bf16.gmra.mxu1 %v10872_v39  ;;  %17218 = vst [vmem:[#allocation99_spill] sm:$0xff] %v12749_v46  ;;  %v12751_v27 = vpop.permute.xlu0 %1840  ;;  %v2487_v58 = vmul.f32 %v10195_v62, %v12749_v46  ;;  %2215 = vperm.xlu1 %10800, %v961_v42   ;;  %v10191_v39 = vunpack.c.h.bf16 %v10458_v15  ;;  %v10882_v42 = vld [vmem:[%s12140_s9 + $0x1ec] ss:$16 sps:$4 sm:$0xff]  }
 0x194   : > { %17219 = vst [vmem:[#allocation100_spill] sm:$0xff] %v12751_v27  ;;  %9603 = vmatprep.mubr.msk.bf16.mxu1 %vm3173_vm0, %v10876_v50  ;;  %v2486_v6 = vmul.f32 %v10194_v63, %v12751_v27  ;;  %4505 = vmatpush1.bf16.msra.mxu0 %v2643_v13  ;;  %v10186_v13 = vunpack.c.l.bf16 %v10457_v11  ;;  %v957_v46 = vld [vmem:[%s12161_s16 + $0x4f8] sm:$0xff]  ;;  %v10881_v27 = vld [vmem:[%s12140_s9 + $0x160] ss:$16 sps:$4 sm:$0xff]  }
 0x195   : > { %2210 = vperm.xlu0 %10799, %v960_v0   ;;  %4506 = vmatprep.subr.bf16.mxu0 %v17177_v35 }
 0x196   : > { %v2642_v50 = vpack.c.bf16 %v2487_v58, %v2486_v6  ;;  %v12762_v62 = vpop.permute.xlu1 %1835  ;;  %v956_v58 = vld [vmem:[%s12161_s16 + $0x4f0] sm:$0xff]  ;;  %v10456_v6 = vld [vmem:[%s12232_s21 + $0x148] sm:$0xff]  }
 0x197   : > { %3362 = vmatmul.mubr.bf16.gmra.mxu0 %v10875_v18  ;;  %17220 = vst [vmem:[#allocation101_spill] sm:$0xff] %v12762_v62  ;;  %v12764_v63 = vpop.permute.xlu0 %1830  ;;  %v2485_v0 = vmul.f32 %v10191_v39, %v12762_v62  ;;  %2205 = vperm.xlu1 %10800, %v959_v41   ;;  %v10187_v18 = vunpack.c.h.bf16 %v10457_v11  ;;  %v10885_v11 = vld [vmem:[%s12140_s9 + $0x184] ss:$16 sps:$4 sm:$0xff]   ;;  %v10464_v62 = vld [vmem:[%s12232_s21 + $0x188] sm:$0xff]  }
 0x198   : > { %17221 = vst [vmem:[#allocation102_spill] sm:$0xff] %v12764_v63  ;;  %3369 = vmatprep.mubr.bf16.mxu0 %v10879_v14  ;;  %v2484_v15 = vmul.f32 %v10190_v17, %v12764_v63  ;;  %4507 = vmatpush1.bf16.msra.mxu0 %v2642_v50  ;;  %v10182_v50 = vunpack.c.l.bf16 %v10456_v6  ;;  %v10884_v63 = vld [vmem:[%s12140_s9 + $0x1e8] ss:$16 sps:$4 sm:$0xff]  }
 0x199   : > { %2200 = vperm.xlu0 %10799, %v958_v47   ;;  %4508 = vmatprep.subr.bf16.mxu0 %v17177_v35 }
 0x19a   : > { %v2641_v14 = vpack.c.bf16 %v2485_v0, %v2484_v15  ;;  %v12774_v39 = vpop.permute.xlu1 %1825  ;;  %v955_v0 = vld [vmem:[%s12161_s16 + $0x4e8] sm:$0xff]  ;;  %v954_v15 = vld [vmem:[%s12161_s16 + $0x4e0] sm:$0xff] }
 0x19b   : > { %3627 = vmatmul.mubr.bf16.gmra.mxu1 %v10878_v40  ;;  %17222 = vst [vmem:[#allocation103_spill] sm:$0xff] %v12774_v39  ;;  %v12776_v17 = vpop.permute.xlu0 %1820  ;;  %v2483_v41 = vmul.f32 %v10187_v18, %v12774_v39  ;;  %2195 = vperm.xlu1 %10800, %v957_v46   ;;  %v10183_v40 = vunpack.c.h.bf16 %v10456_v6  ;;  %v10888_v46 = vld [vmem:[%s12140_s9 + $0x20c] ss:$16 sps:$4 sm:$0xff]   ;;  %v10214_v6 = vunpack.c.l.bf16 %v10464_v62 }
 0x19c   : > { %17223 = vst [vmem:[#allocation104_spill] sm:$0xff] %v12776_v17  ;;  %9604 = vmatprep.mubr.msk.bf16.mxu1 %vm3173_vm0, %v10882_v42  ;;  %v2482_v47 = vmul.f32 %v10186_v13, %v12776_v17  ;;  %4509 = vmatpush1.bf16.msra.mxu0 %v2641_v14  ;;  %v953_v14 = vld [vmem:[%s12161_s16 + $0x4d8] sm:$0xff] }
 0x19d   : > { %2190 = vperm.xlu0 %10799, %v956_v58   ;;  %4510 = vmatprep.subr.bf16.mxu0 %v17177_v35 }
 0x19e   : > { %v2640_v42 = vpack.c.bf16 %v2483_v41, %v2482_v47  ;;  %v12787_v38 = vpop.permute.xlu1 %1815  ;;  %v952_v41 = vld [vmem:[%s12161_s16 + $0x4d0] sm:$0xff] }
 0x19f   : > { %3370 = vmatmul.mubr.bf16.gmra.mxu0 %v10881_v27  ;;  %17224 = vst [vmem:[#allocation105_spill] sm:$0xff] %v12787_v38  ;;  %v12789_v18 = vpop.permute.xlu0 %1810  ;;  %v2481_v13 = vmul.f32 %v10183_v40, %v12787_v38  ;;  %2185 = vperm.xlu1 %10800, %v955_v0   ;;  %v10215_v27 = vunpack.c.h.bf16 %v10464_v62  ;;  %v10906_v38 = vld [vmem:[%s12140_s9 + $0x26c] ss:$16 sps:$4 sm:$0xff]  }
 0x1a0   : > { %17225 = vst [vmem:[#allocation106_spill] sm:$0xff] %v12789_v18  ;;  %3377 = vmatprep.mubr.bf16.mxu0 %v10885_v11  ;;  %v2480_v58 = vmul.f32 %v10182_v50, %v12789_v18  ;;  %4511 = vmatpush1.bf16.msra.mxu0 %v2640_v42  ;;  %v10887_v11 = vld [vmem:[%s12140_s9 + $0x180] ss:$16 sps:$4 sm:$0xff]   ;;  %v10891_v50 = vld [vmem:[%s12140_s9 + $0x1a4] ss:$16 sps:$4 sm:$0xff]  }
 0x1a1   : > { %2180 = vperm.xlu0 %10799, %v954_v15   ;;  %4512 = vmatprep.subr.bf16.mxu0 %v17177_v35  ;;  %v950_v15 = vld [vmem:[%s12161_s16 + $0x4c0] sm:$0xff]  ;;  %v972_v18 = vld [vmem:[%s12161_s16 + $0x570] sm:$0xff] }
 0x1a2   : > { %v2639_v47 = vpack.c.bf16 %v2481_v13, %v2480_v58  ;;  %v12798_v39 = vpop.permute.xlu1 %1895  ;;  %v10890_v13 = vld [vmem:[%s12140_s9 + $0x208] ss:$16 sps:$4 sm:$0xff]  }
 0x1a3   : > { %3635 = vmatmul.mubr.bf16.gmra.mxu1 %v10884_v63  ;;  %17226 = vst [vmem:[#allocation107_spill] sm:$0xff] %v12798_v39  ;;  %v12800_v40 = vpop.permute.xlu0 %1890  ;;  %v2497_v62 = vmul.f32 %v10215_v27, %v12798_v39  ;;  %2175 = vperm.xlu1 %10800, %v953_v14   ;;  %v951_v63 = vld [vmem:[%s12161_s16 + $0x4c8] sm:$0xff]  ;;  %v948_v14 = vld [vmem:[%s12161_s16 + $0x4b0] sm:$0xff] }
 0x1a4   : > { %17227 = vst [vmem:[#allocation108_spill] sm:$0xff] %v12800_v40  ;;  %9605 = vmatprep.mubr.msk.bf16.mxu1 %vm3173_vm0, %v10888_v46  ;;  %v2496_v0 = vmul.f32 %v10214_v6, %v12800_v40  ;;  %4513 = vmatpush1.bf16.msra.mxu0 %v2639_v47  ;;  %v10894_v27 = vld [vmem:[%s12140_s9 + $0x22c] ss:$16 sps:$4 sm:$0xff]   ;;  %v976_v39 = vld [vmem:[%s12161_s16 + $0x590] sm:$0xff] }
 0x1a5   : > { %2170 = vperm.xlu0 %10799, %v952_v41   ;;  %4528 = vmatprep.subr.bf16.mxu0 %v17177_v35  ;;  %v949_v6 = vld [vmem:[%s12161_s16 + $0x4b8] sm:$0xff]  ;;  %v10893_v41 = vld [vmem:[%s12140_s9 + $0x1a0] ss:$16 sps:$4 sm:$0xff]   ;;  %v10903_v40 = vld [vmem:[%s12140_s9 + $0x1e4] ss:$16 sps:$4 sm:$0xff]  }
 0x1a6   : > { %v2647_v42 = vpack.c.bf16 %v2497_v62, %v2496_v0  ;;  %v12810_v46 = vpop.permute.xlu1 %1975  ;;  %v979_v62 = vld [vmem:[%s12161_s16 + $0x5a8] sm:$0xff]  ;;  %v978_v0 = vld [vmem:[%s12161_s16 + $0x5a0] sm:$0xff] }
 0x1a7   : > { %3378 = vmatmul.mubr.bf16.gmra.mxu0 %v10887_v11  ;;  %17228 = vst [vmem:[#allocation109_spill] sm:$0xff] %v12810_v46  ;;  %2165 = vperm.xlu1 %10800, %v951_v63   ;;  %v10896_v63 = vld [vmem:[%s12140_s9 + $0x228] ss:$16 sps:$4 sm:$0xff]  }
 0x1a8   : > { %v12812_v58 = vpop.permute.xlu0 %1970  ;;  %3385 = vmatprep.mubr.bf16.mxu0 %v10891_v50  ;;  %4529 = vmatpush2.bf16.msra.mxu0 %v2647_v42  ;;  %v10897_v50 = vld [vmem:[%s12140_s9 + $0x1c4] ss:$16 sps:$4 sm:$0xff]  }
 0x1a9   : > { %17229 = vst [vmem:[#allocation110_spill] sm:$0xff] %v12812_v58  ;;  %2160 = vperm.xlu0 %10799, %v950_v15   ;;  %5514 = vmatprep.subr.bf16.mxu0 %v17177_v35 }
 0x1aa   : > { %v12819_v47 = vpop.permute.xlu1 %1965 }
 0x1ab   : > { %3643 = vmatmul.mubr.bf16.gmra.mxu1 %v10890_v13  ;;  %17230 = vst [vmem:[#allocation111_spill] sm:$0xff] %v12819_v47  ;;  %2155 = vperm.xlu1 %10800, %v949_v6   ;;  %v10900_v13 = vld [vmem:[%s12140_s9 + $0x24c] ss:$16 sps:$4 sm:$0xff]   ;;  %v10899_v6 = vld [vmem:[%s12140_s9 + $0x1c0] ss:$16 sps:$4 sm:$0xff]   ;;  %v2511_v51 = vmul.f32 %v10243_v34, %v12819_v47 }
 0x1ac   : > { %v12821_v11 = vpop.permute.xlu0 %1960  ;;  %9606 = vmatprep.mubr.msk.bf16.mxu1 %vm3173_vm0, %v10894_v27  ;;  %v977_v27 = vld [vmem:[%s12161_s16 + $0x598] sm:$0xff] }
 0x1ad   : > { %17231 = vst [vmem:[#allocation112_spill] sm:$0xff] %v12821_v11  ;;  %2150 = vperm.xlu0 %10799, %v948_v14  }
 0x1ae   : > { %v12828_v15 = vpop.permute.xlu1 %1955 }
 0x1af   : > { %3386 = vmatmul.mubr.bf16.gmra.mxu0 %v10893_v41  ;;  %17232 = vst [vmem:[#allocation113_spill] sm:$0xff] %v12828_v15  ;;  %2305 = vperm.xlu1 %10800, %v979_v62   ;;  %v974_v62 = vld [vmem:[%s12161_s16 + $0x580] sm:$0xff] }
 0x1b0   : > { %v12830_v42 = vpop.permute.xlu0 %1950  ;;  %3393 = vmatprep.mubr.bf16.mxu0 %v10897_v50  ;;  %v975_v50 = vld [vmem:[%s12161_s16 + $0x588] sm:$0xff] }
 0x1b1   : > { %17233 = vst [vmem:[#allocation114_spill] sm:$0xff] %v12830_v42  ;;  %2300 = vperm.xlu0 %10799, %v978_v0   ;;  %v10902_v0 = vld [vmem:[%s12140_s9 + $0x248] ss:$16 sps:$4 sm:$0xff]  }
 0x1b2   : > { %v12836_v14 = vpop.permute.xlu1 %1945 }
 0x1b3   : > { %3651 = vmatmul.mubr.bf16.gmra.mxu1 %v10896_v63  ;;  %17234 = vst [vmem:[#allocation115_spill] sm:$0xff] %v12836_v14  ;;  %2295 = vperm.xlu1 %10800, %v977_v27  }
 0x1b4   : > { %v12838_v41 = vpop.permute.xlu0 %1940  ;;  %9607 = vmatprep.mubr.msk.bf16.mxu1 %vm3173_vm0, %v10900_v13  ;;  %v973_v13 = vld [vmem:[%s12161_s16 + $0x578] sm:$0xff] }
 0x1b5   : > { %17235 = vst [vmem:[#allocation116_spill] sm:$0xff] %v12838_v41  ;;  %2290 = vperm.xlu0 %10799, %v976_v39   ;;  %v10905_v39 = vld [vmem:[%s12140_s9 + $0x1e0] ss:$16 sps:$4 sm:$0xff]  }
 0x1b6   : > { %v12845_v17 = vpop.permute.xlu1 %1935 }
 0x1b7   : > { %3394 = vmatmul.mubr.bf16.gmra.mxu0 %v10899_v6  ;;  %17236 = vst [vmem:[#allocation117_spill] sm:$0xff] %v12845_v17  ;;  %2285 = vperm.xlu1 %10800, %v975_v50   ;;  %v970_v50 = vld [vmem:[%s12161_s16 + $0x560] sm:$0xff] }
 0x1b8   : > { %v12847_v63 = vpop.permute.xlu0 %1930  ;;  %3401 = vmatprep.mubr.bf16.mxu0 %v10903_v40  ;;  %v971_v40 = vld [vmem:[%s12161_s16 + $0x568] sm:$0xff] }
 0x1b9   : > { %17237 = vst [vmem:[#allocation118_spill] sm:$0xff] %v12847_v63  ;;  %2280 = vperm.xlu0 %10799, %v974_v62   ;;  %v10908_v62 = vld [vmem:[%s12140_s9 + $0x268] ss:$16 sps:$4 sm:$0xff]  }
 0x1ba   : > { %v12853_v27 = vpop.permute.xlu1 %1925 }
 0x1bb   : > { %3659 = vmatmul.mubr.bf16.gmra.mxu1 %v10902_v0  ;;  %17238 = vst [vmem:[#allocation119_spill] sm:$0xff] %v12853_v27  ;;  %2275 = vperm.xlu1 %10800, %v973_v13  }
 0x1bc   : > { %v12855_v6 = vpop.permute.xlu0 %1920  ;;  %9608 = vmatprep.mubr.msk.bf16.mxu1 %vm3173_vm0, %v10906_v38  ;;  %v969_v38 = vld [vmem:[%s12161_s16 + $0x558] sm:$0xff] }
 0x1bd   : > { %17239 = vst [vmem:[#allocation120_spill] sm:$0xff] %v12855_v6  ;;  %2270 = vperm.xlu0 %10799, %v972_v18   ;;  %v10911_v18 = vld [vmem:[%s12140_s9 + $0x200] ss:$16 sps:$4 sm:$0xff]  }
 0x1be   : > { %v12862_v19 = vpop.permute.xlu1 %1915 }
 0x1bf   : > { %3402 = vmatmul.mubr.bf16.gmra.mxu0 %v10905_v39  ;;  %17240 = vst [vmem:[#allocation121_spill] sm:$0xff] %v12862_v19  ;;  %2265 = vperm.xlu1 %10800, %v971_v40   ;;  %v966_v40 = vld [vmem:[%s12161_s16 + $0x540] sm:$0xff] }
 0x1c0   : > { %v12864_v0 = vpop.permute.xlu0 %1910  ;;  %3409 = vmatprep.mubr.bf16.mxu0 %v10909_v59  ;;  %v967_v59 = vld [vmem:[%s12161_s16 + $0x548] sm:$0xff] }
 0x1c1   : > { %17241 = vst [vmem:[#allocation122_spill] sm:$0xff] %v12864_v0  ;;  %2260 = vperm.xlu0 %10799, %v970_v50   ;;  %v10914_v50 = vld [vmem:[%s12140_s9 + $0x288] ss:$16 sps:$4 sm:$0xff]  }
 0x1c2   : > { %v12870_v13 = vpop.permute.xlu1 %1905 }
 0x1c3   : > { %3667 = vmatmul.mubr.bf16.gmra.mxu1 %v10908_v62  ;;  %17242 = vst [vmem:[#allocation123_spill] sm:$0xff] %v12870_v13  ;;  %2255 = vperm.xlu1 %10800, %v969_v38   ;;  %v994_v38 = vld [vmem:[%s12161_s16 + $0x620] sm:$0xff] }
 0x1c4   : > { %v12872_v39 = vpop.permute.xlu0 %1900  ;;  %9609 = vmatprep.mubr.msk.bf16.mxu1 %vm3173_vm0, %v10912_v20  ;;  %v995_v20 = vld [vmem:[%s12161_s16 + $0x628] sm:$0xff] }
 0x1c5   : > { %17243 = vst [vmem:[#allocation124_spill] sm:$0xff] %v12872_v39  ;;  %2250 = vperm.xlu0 %10799, %v968_v43   ;;  %v10917_v43 = vld [vmem:[%s12140_s9 + $0x220] ss:$16 sps:$4 sm:$0xff]  }
 0x1c6   : > { %v12879_v4 = vpop.permute.xlu1 %2055 }
 0x1c7   : > { %3410 = vmatmul.mubr.bf16.gmra.mxu0 %v10911_v18  ;;  %17244 = vst [vmem:[#allocation125_spill] sm:$0xff] %v12879_v4  ;;  %2245 = vperm.xlu1 %10800, %v967_v59   ;;  %v964_v59 = vld [vmem:[%s12161_s16 + $0x530] sm:$0xff] }
 0x1c8   : > { %v12881_v62 = vpop.permute.xlu0 %2050  ;;  %3417 = vmatprep.mubr.bf16.mxu0 %v10915_v44  ;;  %v965_v44 = vld [vmem:[%s12161_s16 + $0x538] sm:$0xff] }
 0x1c9   : > { %17245 = vst [vmem:[#allocation126_spill] sm:$0xff] %v12881_v62  ;;  %2240 = vperm.xlu0 %10799, %v966_v40   ;;  %v10920_v40 = vld [vmem:[%s12140_s9 + $0x2a8] ss:$16 sps:$4 sm:$0xff]  }
 0x1ca   : > { %v12887_v36 = vpop.permute.xlu1 %2045 }
 0x1cb   : > { %3675 = vmatmul.mubr.bf16.gmra.mxu1 %v10914_v50  ;;  %17246 = vst [vmem:[#allocation127_spill] sm:$0xff] %v12887_v36  ;;  %2385 = vperm.xlu1 %10800, %v995_v20   ;;  %v10924_v50 = vld [vmem:[%s12140_s9 + $0x2cc] ss:$16 sps:$4 sm:$0xff]   ;;  %v992_v20 = vld [vmem:[%s12161_s16 + $0x610] sm:$0xff] }
 0x1cc   : > { %v12889_v18 = vpop.permute.xlu0 %2040  ;;  %9610 = vmatprep.mubr.msk.bf16.mxu1 %vm3173_vm0, %v10918_v9  ;;  %v993_v9 = vld [vmem:[%s12161_s16 + $0x618] sm:$0xff] }
 0x1cd   : > { %17247 = vst [vmem:[#allocation128_spill] sm:$0xff] %v12889_v18  ;;  %2380 = vperm.xlu0 %10799, %v994_v38   ;;  %v10923_v38 = vld [vmem:[%s12140_s9 + $0x240] ss:$16 sps:$4 sm:$0xff]  }
 0x1ce   : > { %v12897_v3 = vpop.permute.xlu1 %2035 }
 0x1cf   : > { %3418 = vmatmul.mubr.bf16.gmra.mxu0 %v10917_v43  ;;  %2235 = vperm.xlu1 %10800, %v965_v44   ;;  %17248 = vst [vmem:[#allocation129_spill] sm:$0xff] %v12897_v3  ;;  %v10927_v43 = vld [vmem:[%s12140_s9 + $0x264] ss:$16 sps:$4 sm:$0xff]  }
 0x1d0   : > { %3425 = vmatprep.mubr.bf16.mxu0 %v10921_v37  ;;  %v12899_v10 = vpop.permute.xlu0 %2030  ;;  %v991_v37 = vld [vmem:[%s12161_s16 + $0x608] sm:$0xff]  ;;  %v990_v44 = vld [vmem:[%s12161_s16 + $0x600] sm:$0xff] }
 0x1d1   : > { %2230 = vperm.xlu0 %10799, %v964_v59   ;;  %17249 = vst [vmem:[#allocation130_spill] sm:$0xff] %v12899_v10  ;;  %v10926_v59 = vld [vmem:[%s12140_s9 + $0x2c8] ss:$16 sps:$4 sm:$0xff]  }
 0x1d2   : > { %v12909_v25 = vpop.permute.xlu1 %2025 }
 0x1d3   : > { %3683 = vmatmul.mubr.bf16.gmra.mxu1 %v10920_v40  ;;  %2375 = vperm.xlu1 %10800, %v993_v9   ;;  %17250 = vst [vmem:[#allocation131_spill] sm:$0xff] %v12909_v25  ;;  %v10930_v40 = vld [vmem:[%s12140_s9 + $0x2ec] ss:$16 sps:$4 sm:$0xff]   ;;  %v988_v9 = vld [vmem:[%s12161_s16 + $0x5f0] sm:$0xff] }
 0x1d4   : > { %9611 = vmatprep.mubr.msk.bf16.mxu1 %vm3173_vm0, %v10924_v50  ;;  %v12911_v26 = vpop.permute.xlu0 %2020  ;;  %v989_v50 = vld [vmem:[%s12161_s16 + $0x5f8] sm:$0xff] }
 0x1d5   : > { %2370 = vperm.xlu0 %10799, %v992_v20   ;;  %17251 = vst [vmem:[#allocation132_spill] sm:$0xff] %v12911_v26  ;;  %v10929_v20 = vld [vmem:[%s12140_s9 + $0x260] ss:$16 sps:$4 sm:$0xff]  }
 0x1d6   : > { %v12919_v1 = vpop.permute.xlu1 %2015 }
 0x1d7   : > { %3426 = vmatmul.mubr.bf16.gmra.mxu0 %v10923_v38  ;;  %2365 = vperm.xlu1 %10800, %v991_v37   ;;  %v10933_v38 = vld [vmem:[%s12140_s9 + $0x284] ss:$16 sps:$4 sm:$0xff]   ;;  %17252 = vst [vmem:[#allocation133_spill] sm:$0xff] %v12919_v1  ;;  %v987_v37 = vld [vmem:[%s12161_s16 + $0x5e8] sm:$0xff] }
 0x1d8   : > { %3433 = vmatprep.mubr.bf16.mxu0 %v10927_v43  ;;  %v12921_v43 = vpop.permute.xlu0 %2010 }
 0x1d9   : > { %2360 = vperm.xlu0 %10799, %v990_v44   ;;  %17253 = vst [vmem:[#allocation134_spill] sm:$0xff] %v12921_v43  ;;  %v986_v44 = vld [vmem:[%s12161_s16 + $0x5e0] sm:$0xff] }
 0x1da   : > { %v12930_v30 = vpop.permute.xlu1 %2005 }
 0x1db   : > { %3691 = vmatmul.mubr.bf16.gmra.mxu1 %v10926_v59  ;;  %2355 = vperm.xlu1 %10800, %v989_v50   ;;  %v10936_v59 = vld [vmem:[%s12140_s9 + $0x30c] ss:$16 sps:$4 sm:$0xff]   ;;  %v984_v50 = vld [vmem:[%s12161_s16 + $0x5d0] sm:$0xff]  ;;  %17254 = vst [vmem:[#allocation135_spill] sm:$0xff] %v12930_v30 }
 0x1dc   : > { %9612 = vmatprep.mubr.msk.bf16.mxu1 %vm3173_vm0, %v10930_v40  ;;  %v985_v40 = vld [vmem:[%s12161_s16 + $0x5d8] sm:$0xff]  ;;  %v12932_v33 = vpop.permute.xlu0 %2000 }
 0x1dd   : > { %2350 = vperm.xlu0 %10799, %v988_v9   ;;  %v10935_v9 = vld [vmem:[%s12140_s9 + $0x280] ss:$16 sps:$4 sm:$0xff]   ;;  %17255 = vst [vmem:[#allocation136_spill] sm:$0xff] %v12932_v33 }
 0x1df   : > { %3434 = vmatmul.mubr.bf16.gmra.mxu0 %v10929_v20  ;;  %2345 = vperm.xlu1 %10800, %v987_v37   ;;  %v10939_v20 = vld [vmem:[%s12140_s9 + $0x2a4] ss:$16 sps:$4 sm:$0xff]  }
 0x1e0   : > { %3441 = vmatprep.mubr.bf16.mxu0 %v10933_v38  ;;  %v983_v38 = vld [vmem:[%s12161_s16 + $0x5c8] sm:$0xff]  ;;  %v982_v37 = vld [vmem:[%s12161_s16 + $0x5c0] sm:$0xff]  ;;  %v12943_v24 = vpop.permute.xlu0 %1990 }
 0x1e1   : > { %2340 = vperm.xlu0 %10799, %v986_v44   ;;  %v10472_v44 = vld [vmem:[%s12232_s21 + $0x1c8] sm:$0xff]   ;;  %17257 = vst [vmem:[#allocation138_spill] sm:$0xff] %v12943_v24 }
 0x1e2   : > { %v10247_v57 = vunpack.c.h.bf16 %v10472_v44  ;;  %v10246_v21 = vunpack.c.l.bf16 %v10472_v44 }
 0x1e3   : > { %3699 = vmatmul.mubr.bf16.gmra.mxu1 %v10932_v2  ;;  %2335 = vperm.xlu1 %10800, %v985_v40   ;;  %v10944_v2 = vld [vmem:[%s12140_s9 + $0x324] ss:$16 sps:$4 sm:$0xff]   ;;  %v981_v40 = vld [vmem:[%s12161_s16 + $0x5b8] sm:$0xff] }
 0x1e4   : > { %9613 = vmatprep.mubr.msk.bf16.mxu1 %vm3173_vm0, %v10936_v59  ;;  %v12941_v59 = vpop.permute.xlu1 %1995  ;;  %v2512_v44 = vmul.f32 %v10246_v21, %v12812_v58 }
 0x1e5   : > { %2330 = vperm.xlu0 %10799, %v984_v50   ;;  %17256 = vst [vmem:[#allocation137_spill] sm:$0xff] %v12941_v59  ;;  %v980_v50 = vld [vmem:[%s12161_s16 + $0x5b0] sm:$0xff] }
 0x1e7   : > { %3442 = vmatmul.mubr.bf16.gmra.mxu0 %v10935_v9  ;;  %2325 = vperm.xlu1 %10800, %v983_v38   ;;  %v10941_v9 = vld [vmem:[%s12140_s9 + $0x2a0] ss:$16 sps:$4 sm:$0xff]  }
 0x1e8   : > { %3449 = vmatprep.mubr.bf16.mxu0 %v10939_v20  ;;  %v10945_v20 = vld [vmem:[%s12140_s9 + $0x2c4] ss:$16 sps:$4 sm:$0xff]  }
 0x1e9   : > { %2320 = vperm.xlu0 %10799, %v982_v37   ;;  %v2513_v37 = vmul.f32 %v10247_v57, %v12810_v46  ;;  %v10948_v57 = vld [vmem:[%s12140_s9 + $0x344] ss:$16 sps:$4 sm:$0xff]  }
 0x1ea   : > { %v10469_v46 = vld [vmem:[%s12232_s21 + $0x1b0] sm:$0xff]  }
 0x1eb   : > { %3707 = vmatmul.mubr.bf16.gmra.mxu1 %v10938_v54  ;;  %v12949_v60 = vpop.f32.mrf.mxu1  ;;  %2315 = vperm.xlu1 %10800, %v981_v40   ;;  %v996_v54 = vld [vmem:[%s12161_s16 + $0x630] sm:$0xff]  ;;  %v12962_v40 = vpop.permute.xlu0 %2130  ;;  %v2655_v58 = vpack.c.bf16 %v2513_v37, %v2512_v44  ;;  %v10468_v37 = vld [vmem:[%s12232_s21 + $0x1a8] sm:$0xff]  }
 0x1ec   : > { %4297 = vmatprep.mubr.bf16.mxu1 %v10944_v2  ;;  %v12960_v2 = vpop.permute.xlu1 %2135  ;;  %17259 = vst [vmem:[#allocation140_spill] sm:$0xff] %v12962_v40  ;;  %v10230_v47 = vunpack.c.l.bf16 %v10468_v37 }
 0x1ed   : > { %2310 = vperm.xlu0 %10799, %v980_v50   ;;  %v3518_v38 = vpop.f32.mrf.mxu1  ;;  %17258 = vst [vmem:[#allocation139_spill] sm:$0xff] %v12960_v2  ;;  %v10239_v50 = vunpack.c.h.bf16 %v10470_v61 }
 0x1ee   : > { %v2510_v38 = vmul.f32 %v10242_v45, %v12821_v11  ;;  %v10467_v11 = vld [vmem:[%s12232_s21 + $0x1a0] sm:$0xff]  }
 0x1ef   : > { %3450 = vmatmul.mubr.bf16.gmra.mxu0 %v10941_v9  ;;  %v12958_v7 = vpop.f32.mrf.mxu1  ;;  %2395 = vperm.xlu1 %10800, %v997_v12   ;;  %v10238_v9 = vunpack.c.l.bf16 %v10470_v61  ;;  %v10235_v12 = vunpack.c.h.bf16 %v10469_v46  ;;  %v2509_v45 = vmul.f32 %v10239_v50, %v12828_v15  ;;  %v12978_v44 = vpop.permute.xlu0 %1980 }
 0x1f0   : > { %3457 = vmatprep.mubr.bf16.mxu0 %v10945_v20  ;;  %v10951_v20 = vld [vmem:[%s12140_s9 + $0x2e4] ss:$16 sps:$4 sm:$0xff]   ;;  %v2654_v34 = vpack.c.bf16 %v2511_v51, %v2510_v38  ;;  %17261 = vst [vmem:[#allocation142_spill] sm:$0xff] %v12978_v44  ;;  %v10231_v51 = vunpack.c.h.bf16 %v10468_v37 }
 0x1f1   : > { %2390 = vperm.xlu0 %10799, %v996_v54   ;;  %v3521_v21 = vpop.f32.mrf.mxu1  ;;  %v2508_v61 = vmul.f32 %v10238_v9, %v12830_v42  ;;  %v2507_v38 = vmul.f32 %v10235_v12, %v12836_v14  ;;  %v10466_v42 = vld [vmem:[%s12232_s21 + $0x198] sm:$0xff]   ;;  %v10956_v14 = vld [vmem:[%s12140_s9 + $0x360] ss:$16 sps:$4 sm:$0xff]  }
 0x1f2   : > { %v10234_v21 = vunpack.c.l.bf16 %v10469_v46  ;;  %v2505_v37 = vmul.f32 %v10231_v51, %v12845_v17 }
 0x1f3   : > { %4298 = vmatmul.mubr.bf16.vlgmr.msra.gmra.mxu1 %v10942_v16  ;;  %v12969_v29 = vpop.f32.mrf.mxu1  ;;  %v12976_v16 = vpop.permute.xlu1 %1985  ;;  %v2653_v46 = vpack.c.bf16 %v2509_v45, %v2508_v61  ;;  %v10957_v45 = vld [vmem:[%s12140_s9 + $0x304] ss:$16 sps:$4 sm:$0xff]   ;;  %v10227_v61 = vunpack.c.h.bf16 %v10467_v11 }
 0x1f4   : > { %5282 = vmatpush1.bf16.msra.mxu1 %v2655_v58  ;;  %4305 = vmatprep.mubr.bf16.mxu1 %v10948_v57  ;;  %17260 = vst [vmem:[#allocation141_spill] sm:$0xff] %v12976_v16  ;;  %v10950_v58 = vld [vmem:[%s12140_s9 + $0x340] ss:$16 sps:$4 sm:$0xff]   ;;  %v2506_v9 = vmul.f32 %v10234_v21, %v12838_v41 }
 0x1f5   : > { %5283 = vmatprep.subr.bf16.mxu1 %v17177_v35  ;;  %v3526_v54 = vpop.f32.mrf.mxu1 }
 0x1f6   : > { %v10954_v54 = vld [vmem:[%s12140_s9 + $0x364] ss:$16 sps:$4 sm:$0xff]   ;;  %v2652_v21 = vpack.c.bf16 %v2507_v38, %v2506_v9 }
 0x1f7   : > { %3458 = vmatmul.mubr.bf16.gmra.mxu0 %v10947_v28  ;;  %v12981_v57 = vpop.f32.mrf.mxu1  ;;  %v10953_v28 = vld [vmem:[%s12140_s9 + $0x2e0] ss:$16 sps:$4 sm:$0xff]  }
 0x1f8   : > { %5284 = vmatpush1.bf16.msra.mxu1 %v2654_v34  ;;  %3465 = vmatprep.mubr.bf16.mxu0 %v10951_v20  ;;  %v12991_v20 = vpop.permute.xlu1 %2125  ;;  %v12993_v34 = vpop.permute.xlu0 %2120  ;;  %v10465_v9 = vld [vmem:[%s12232_s21 + $0x190] sm:$0xff]  }
 0x1f9   : > { %5285 = vmatprep.subr.bf16.mxu1 %v17177_v35  ;;  %v3529_v50 = vpop.f32.mrf.mxu1  ;;  %17262 = vst [vmem:[#allocation143_spill] sm:$0xff] %v12991_v20  ;;  %17263 = vst [vmem:[#allocation144_spill] sm:$0xff] %v12993_v34 }
 0x1fa   : > { %v10226_v50 = vunpack.c.l.bf16 %v10467_v11 }
 0x1fb   : > { %4306 = vmatmul.mubr.bf16.gmra.mxu1 %v10950_v58  ;;  %v12989_v15 = vpop.f32.mrf.mxu1  ;;  %v2504_v58 = vmul.f32 %v10230_v47, %v12847_v63  ;;  %v2503_v47 = vmul.f32 %v10227_v61, %v12853_v27 }
 0x1fc   : > { %5286 = vmatpush1.bf16.msra.mxu1 %v2653_v46  ;;  %4313 = vmatprep.mubr.bf16.mxu1 %v10954_v54  ;;  %v10962_v54 = vld [vmem:[%s12140_s9 + $0x384] ss:$16 sps:$4 sm:$0xff]   ;;  %v10223_v46 = vunpack.c.h.bf16 %v10466_v42  ;;  %v2502_v11 = vmul.f32 %v10226_v50, %v12855_v6  ;;  %v13010_v17 = vpop.permute.xlu0 %2110  ;;  %v10480_v50 = vld [vmem:[%s12232_s21 + $0x208] sm:$0xff]  }
 0x1fd   : > { %5287 = vmatprep.subr.bf16.mxu1 %v17177_v35  ;;  %v3534_v12 = vpop.f32.mrf.mxu1  ;;  %v2651_v38 = vpack.c.bf16 %v2505_v37, %v2504_v58  ;;  %17265 = vst [vmem:[#allocation146_spill] sm:$0xff] %v13010_v17  ;;  %v10219_v58 = vunpack.c.h.bf16 %v10465_v9 }
 0x1fe   : > { %v10222_v12 = vunpack.c.l.bf16 %v10466_v42  ;;  %v10965_v42 = vld [vmem:[%s12140_s9 + $0x32c] ss:$16 sps:$4 sm:$0xff]   ;;  %v2501_v37 = vmul.f32 %v10223_v46, %v12862_v19  ;;  %v2650_v27 = vpack.c.bf16 %v2503_v47, %v2502_v11  ;;  %v10279_v46 = vunpack.c.h.bf16 %v10480_v50  ;;  %v10968_v47 = vld [vmem:[%s12140_s9 + $0x3a4] ss:$16 sps:$4 sm:$0xff]  }
 0x1ff   : > { %3466 = vmatmul.mubr.bf16.gmra.mxu0 %v10953_v28  ;;  %v13001_v41 = vpop.f32.mrf.mxu1  ;;  %v13008_v28 = vpop.permute.xlu1 %2115  ;;  %v2499_v32 = vmul.f32 %v10219_v58, %v12870_v13 }
 0x200   : > { %5288 = vmatpush1.bf16.msra.mxu1 %v2652_v21  ;;  %3473 = vmatprep.mubr.bf16.mxu0 %v10957_v45  ;;  %17264 = vst [vmem:[#allocation145_spill] sm:$0xff] %v13008_v28  ;;  %v10488_v21 = vld [vmem:[%s12232_s21 + $0x248] sm:$0xff]   ;;  %v10959_v45 = vld [vmem:[%s12140_s9 + $0x300] ss:$16 sps:$4 sm:$0xff]   ;;  %v2500_v61 = vmul.f32 %v10222_v12, %v12864_v0  ;;  %v13027_v12 = vpop.permute.xlu0 %2100  ;;  %v2529_v58 = vmul.f32 %v10279_v46, %v12879_v4 }
 0x201   : > { %5289 = vmatprep.subr.bf16.mxu1 %v17177_v35  ;;  %v3537_v51 = vpop.f32.mrf.mxu1  ;;  %v10311_v6 = vunpack.c.h.bf16 %v10488_v21  ;;  %v10310_v48 = vunpack.c.l.bf16 %v10488_v21  ;;  %17267 = vst [vmem:[#allocation148_spill] sm:$0xff] %v13027_v12  ;;  %v10479_v21 = vld [vmem:[%s12232_s21 + $0x200] sm:$0xff]  }
 0x202   : > { %v2649_v11 = vpack.c.bf16 %v2501_v37, %v2500_v61  ;;  %v10963_v37 = vld [vmem:[%s12140_s9 + $0x328] ss:$16 sps:$4 sm:$0xff]  }
 0x203   : > { %4314 = vmatmul.mubr.bf16.gmra.mxu1 %v10956_v14  ;;  %v13014_v63 = vpop.f32.mrf.mxu1  ;;  %v10218_v14 = vunpack.c.l.bf16 %v10465_v9  ;;  %v13025_v19 = vpop.permute.xlu1 %2105  ;;  %v10278_v9 = vunpack.c.l.bf16 %v10480_v50 }
 0x204   : > { %5290 = vmatpush1.bf16.msra.mxu1 %v2651_v38  ;;  %4321 = vmatprep.mubr.bf16.mxu1 %v10962_v54  ;;  %v10960_v54 = vld [vmem:[%s12140_s9 + $0x380] ss:$16 sps:$4 sm:$0xff]   ;;  %17266 = vst [vmem:[#allocation147_spill] sm:$0xff] %v13025_v19  ;;  %v13056_v46 = vpop.permute.xlu0 %2090 }
 0x205   : > { %5291 = vmatprep.subr.bf16.mxu1 %v17177_v35  ;;  %v3542_v51 = vpop.f32.mrf.mxu1  ;;  %17269 = vst [vmem:[#allocation150_spill] sm:$0xff] %v13056_v46 }
 0x206   : > { %v10306_v51 = vunpack.c.l.bf16 %v10487_v49 }
 0x207   : > { %v3283_v38 = vpop.f32.mrf.mxu0  ;;  %3474 = vmatmul.mubr.bf16.gmra.mxu0 %v10959_v45  ;;  %v13023_v5 = vpop.f32.mrf.mxu1  ;;  %v10307_v45 = vunpack.c.h.bf16 %v10487_v49  ;;  %v10275_v49 = vunpack.c.h.bf16 %v10479_v21 }
 0x208   : > { %v13030_v0 = vadd.f32 %v12949_v60, %v3283_v38  ;;  %5292 = vmatpush1.bf16.msra.mxu1 %v2650_v27  ;;  %9714 = vmatprep.mubr.msk.bf16.mxu0 %vm3173_vm0, %v10965_v42  ;;  %v2498_v60 = vmul.f32 %v10218_v14, %v12872_v39  ;;  %v2545_v27 = vmul.f32 %v10311_v6, %v12960_v2  ;;  %v10486_v38 = vld [vmem:[%s12232_s21 + $0x238] sm:$0xff]  }
 0x209   : > { %v3285_v8 = vpop.f32.mrf.mxu0  ;;  %5293 = vmatprep.subr.bf16.mxu1 %v17177_v35  ;;  %v3545_v31 = vpop.f32.mrf.mxu1  ;;  %v2544_v42 = vmul.f32 %v10310_v48, %v12962_v40  ;;  %v2528_v6 = vmul.f32 %v10278_v9, %v12881_v62  ;;  %v10478_v48 = vld [vmem:[%s12232_s21 + $0x1f8] sm:$0xff]   ;;  %v10303_v50 = vunpack.c.h.bf16 %v10486_v38  ;;  %v10302_v14 = vunpack.c.l.bf16 %v10486_v38  ;;  %v10966_v38 = vld [vmem:[%s12140_s9 + $0x3a0] ss:$16 sps:$4 sm:$0xff]  }
 0x20a   : > { %v10274_v8 = vunpack.c.l.bf16 %v10479_v21  ;;  %v2648_v21 = vpack.c.bf16 %v2499_v32, %v2498_v60  ;;  %v10969_v9 = vld [vmem:[%s12140_s9 + $0x34c] ss:$16 sps:$4 sm:$0xff]   ;;  %v10271_v62 = vunpack.c.h.bf16 %v10478_v48  ;;  %v10477_v60 = vld [vmem:[%s12232_s21 + $0x1f0] sm:$0xff]  }
 0x20b   : > { %v3286_v55 = vpop.f32.mrf.mxu0  ;;  %4322 = vmatmul.mubr.bf16.gmra.mxu1 %v10960_v54  ;;  %v13042_v61 = vpop.f32.mrf.mxu1  ;;  %v2671_v2 = vpack.c.bf16 %v2545_v27, %v2544_v42 }
 0x20c   : > { %v13045_v31 = vadd.f32 %v12958_v7, %v3286_v55  ;;  %5294 = vmatpush1.bf16.msra.mxu1 %v2649_v11  ;;  %4329 = vmatprep.mubr.bf16.mxu1 %v10968_v47  ;;  %v2543_v7 = vmul.f32 %v10307_v45, %v12991_v20  ;;  %v2542_v55 = vmul.f32 %v10306_v51, %v12993_v34  ;;  %v10485_v47 = vld [vmem:[%s12232_s21 + $0x230] sm:$0xff]   ;;  %v13054_v11 = vpop.permute.xlu1 %2095  ;;  %v10267_v34 = vunpack.c.h.bf16 %v10477_v60 }
 0x20d   : > { %v3288_v54 = vpop.f32.mrf.mxu0  ;;  %5295 = vmatprep.subr.bf16.mxu1 %v17177_v35  ;;  %v3550_v40 = vpop.f32.mrf.mxu1  ;;  %17268 = vst [vmem:[#allocation149_spill] sm:$0xff] %v13054_v11  ;;  %v2663_v45 = vpack.c.bf16 %v2529_v58, %v2528_v6  ;;  %v2527_v51 = vmul.f32 %v10275_v49, %v12887_v36  ;;  %v10299_v27 = vunpack.c.h.bf16 %v10485_v47  ;;  %v10298_v42 = vunpack.c.l.bf16 %v10485_v47  ;;  %v10484_v58 = vld [vmem:[%s12232_s21 + $0x228] sm:$0xff]   ;;  %v10974_v49 = vld [vmem:[%s12140_s9 + $0x3c4] ss:$16 sps:$4 sm:$0xff]   ;;  %v10972_v36 = vld [vmem:[%s12140_s9 + $0x3c0] ss:$16 sps:$4 sm:$0xff]  }
 0x20e   : > { %v10270_v40 = vunpack.c.l.bf16 %v10478_v48  ;;  %v10971_v47 = vld [vmem:[%s12140_s9 + $0x348] ss:$16 sps:$4 sm:$0xff]   ;;  %v10266_v20 = vunpack.c.l.bf16 %v10477_v60 }
 0x20f   : > { %v3291_v4 = vpop.f32.mrf.mxu0  ;;  %4531 = vmatmul.mubr.bf16.vlgmr.msra.gmra.mxu0 %v10963_v37  ;;  %v13060_v54 = vpop.f32.mrf.mxu1 }
 0x210   : > { %v13063_v32 = vadd.f32 %v12969_v29, %v3291_v4  ;;  %5296 = vmatpush1.bf16.msra.mxu1 %v2648_v21  ;;  %5515 = vmatpush1.bf16.msra.mxu0 %v2671_v2  ;;  %v2526_v29 = vmul.f32 %v10274_v8, %v12889_v18  ;;  %v2670_v4 = vpack.c.bf16 %v2543_v7, %v2542_v55  ;;  %v13080_v8 = vpop.permute.xlu0 %2080  ;;  %v10476_v55 = vld [vmem:[%s12232_s21 + $0x1e8] sm:$0xff]  }
 0x211   : > { %v3293_v37 = vpop.f32.mrf.mxu0  ;;  %5297 = vmatprep.subr.bf16.mxu1 %v17177_v35  ;;  %5516 = vmatprep.subr.bf16.mxu0 %v17177_v35  ;;  %v3553_v48 = vpop.f32.mrf.mxu1  ;;  %v2541_v21 = vmul.f32 %v10303_v50, %v13008_v28  ;;  %v2540_v2 = vmul.f32 %v10302_v14, %v13010_v17  ;;  %17272 = vst [vmem:[#allocation153_spill] sm:$0xff] %v13080_v8  ;;  %v10262_v18 = vunpack.c.l.bf16 %v10476_v55 }
 0x212   : > { %17270 = vst [vmem:[#allocation151_spill] sm:$0xff] %v13063_v32  ;;  %9715 = vmatprep.mubr.msk.bf16.mxu0 %vm3173_vm0, %v10969_v9  ;;  %v13078_v48 = vpop.permute.xlu1 %2085  ;;  %v2525_v14 = vmul.f32 %v10271_v62, %v12897_v3  ;;  %v2524_v7 = vmul.f32 %v10270_v40, %v12899_v10  ;;  %v10295_v9 = vunpack.c.h.bf16 %v10484_v58  ;;  %v10483_v62 = vld [vmem:[%s12232_s21 + $0x220] sm:$0xff]   ;;  %v10975_v40 = vld [vmem:[%s12140_s9 + $0x36c] ss:$16 sps:$4 sm:$0xff]   ;;  %v11097_v32 = vld [vmem:[%s12140_s9 + $0x5e8] ss:$16 sps:$4 sm:$0xff]  }
 0x213   : > { %v3294_v6 = vpop.f32.mrf.mxu0  ;;  %4330 = vmatmul.mubr.bf16.gmra.mxu1 %v10966_v38  ;;  %v13076_v37 = vpop.f32.mrf.mxu1  ;;  %17271 = vst [vmem:[#allocation152_spill] sm:$0xff] %v13078_v48  ;;  %v10294_v38 = vunpack.c.l.bf16 %v10484_v58 }
 0x214   : > { %v13083_v50 = vadd.f32 %v12981_v57, %v3294_v6  ;;  %5298 = vmatpush2.bf16.msra.mxu1 %v2663_v45  ;;  %5517 = vmatpush1.bf16.msra.mxu0 %v2670_v4  ;;  %v2662_v57 = vpack.c.bf16 %v2527_v51, %v2526_v29  ;;  %v2669_v6 = vpack.c.bf16 %v2541_v21, %v2540_v2  ;;  %v10290_v29 = vunpack.c.l.bf16 %v10483_v62 }
 0x215   : > { %v3296_v60 = vpop.f32.mrf.mxu0  ;;  %5299 = vmatprep.subr.bf16.mxu1 %v17177_v35  ;;  %5518 = vmatprep.subr.bf16.mxu0 %v17177_v35  ;;  %v3558_v28 = vpop.f32.mrf.mxu1  ;;  %v2539_v45 = vmul.f32 %v10299_v27, %v13025_v19  ;;  %v2538_v4 = vmul.f32 %v10298_v42, %v13027_v12  ;;  %v2523_v51 = vmul.f32 %v10267_v34, %v12909_v25  ;;  %v10475_v27 = vld [vmem:[%s12232_s21 + $0x1e0] sm:$0xff]   ;;  %v10291_v42 = vunpack.c.h.bf16 %v10483_v62  ;;  %v10481_v19 = vld [vmem:[%s12232_s21 + $0x210] sm:$0xff]  }
 0x216   : > { %17273 = vst [vmem:[#allocation154_spill] sm:$0xff] %v13083_v50  ;;  %4337 = vmatprep.mubr.bf16.mxu1 %v10974_v49  ;;  %v10263_v60 = vunpack.c.h.bf16 %v10476_v55  ;;  %v2661_v28 = vpack.c.bf16 %v2525_v14, %v2524_v7  ;;  %v2537_v49 = vmul.f32 %v10295_v9, %v13054_v11  ;;  %v10482_v14 = vld [vmem:[%s12232_s21 + $0x218] sm:$0xff]   ;;  %v13108_v34 = vpop.permute.xlu1 %2075  ;;  %v13110_v7 = vpop.permute.xlu0 %2070  ;;  %v10980_v55 = vld [vmem:[%s12140_s9 + $0x3e4] ss:$16 sps:$4 sm:$0xff]   ;;  %v10978_v12 = vld [vmem:[%s12140_s9 + $0x3e0] ss:$16 sps:$4 sm:$0xff]  }
 0x217   : > { %v3299_v17 = vpop.f32.mrf.mxu0  ;;  %4539 = vmatmul.mubr.bf16.gmra.mxu0 %v10971_v47  ;;  %v13095_v58 = vpop.f32.mrf.mxu1  ;;  %v2536_v47 = vmul.f32 %v10294_v38, %v13056_v46  ;;  %17275 = vst [vmem:[#allocation156_spill] sm:$0xff] %v13108_v34  ;;  %17276 = vst [vmem:[#allocation157_spill] sm:$0xff] %v13110_v7  ;;  %v11040_v25 = vld [vmem:[%s12140_s9 + $0x524] ss:$16 sps:$4 sm:$0xff]  }
 0x218   : > { %v13098_v3 = vadd.f32 %v12989_v15, %v3299_v17  ;;  %5300 = vmatpush2.bf16.msra.mxu1 %v2662_v57  ;;  %5519 = vmatpush1.bf16.msra.mxu0 %v2669_v6  ;;  %v2522_v17 = vmul.f32 %v10266_v20, %v12911_v26  ;;  %v2668_v15 = vpack.c.bf16 %v2539_v45, %v2538_v4  ;;  %v10977_v6 = vld [vmem:[%s12140_s9 + $0x368] ss:$16 sps:$4 sm:$0xff]   ;;  %v10259_v20 = vunpack.c.h.bf16 %v10475_v27 }
 0x219   : > { %v3301_v21 = vpop.f32.mrf.mxu0  ;;  %5301 = vmatprep.subr.bf16.mxu1 %v17177_v35  ;;  %5520 = vmatprep.subr.bf16.mxu0 %v17177_v35  ;;  %v3561_v2 = vpop.f32.mrf.mxu1  ;;  %v10258_v45 = vunpack.c.l.bf16 %v10475_v27  ;;  %v2521_v38 = vmul.f32 %v10263_v60, %v12919_v1  ;;  %v2520_v4 = vmul.f32 %v10262_v18, %v12921_v43  ;;  %v10981_v18 = vld [vmem:[%s12140_s9 + $0x38c] ss:$16 sps:$4 sm:$0xff]  }
 0x21a   : > { %17274 = vst [vmem:[#allocation155_spill] sm:$0xff] %v13098_v3  ;;  %9716 = vmatprep.mubr.msk.bf16.mxu0 %vm3173_vm0, %v10975_v40  ;;  %v10474_v40 = vld [vmem:[%s12232_s21 + $0x1d8] sm:$0xff]   ;;  %v10287_v21 = vunpack.c.h.bf16 %v10482_v14  ;;  %v13132_v46 = vpop.permute.xlu1 %2065  ;;  %v10495_v3 = vld [vmem:[%s12232_s21 + $0x280] sm:$0xff]  }
 0x21b   : > { %v3302_v57 = vpop.f32.mrf.mxu0  ;;  %4338 = vmatmul.mubr.bf16.gmra.mxu1 %v10972_v36  ;;  %v13115_v62 = vpop.f32.mrf.mxu1  ;;  %v10286_v36 = vunpack.c.l.bf16 %v10482_v14  ;;  %v10254_v11 = vunpack.c.l.bf16 %v10474_v40  ;;  %17278 = vst [vmem:[#allocation159_spill] sm:$0xff] %v13132_v46 }
 0x21c   : > { %v13118_v9 = vadd.f32 %v13001_v41, %v3302_v57  ;;  %5302 = vmatpush2.bf16.msra.mxu1 %v2661_v28  ;;  %5521 = vmatpush1.bf16.msra.mxu0 %v2668_v15  ;;  %v2660_v41 = vpack.c.bf16 %v2523_v51, %v2522_v17  ;;  %v2667_v57 = vpack.c.bf16 %v2537_v49, %v2536_v47  ;;  %v10473_v17 = vld [vmem:[%s12232_s21 + $0x1d0] sm:$0xff]   ;;  %v10283_v49 = vunpack.c.h.bf16 %v10481_v19 }
 0x21d   : > { %v3304_v2 = vpop.f32.mrf.mxu0  ;;  %5303 = vmatprep.subr.bf16.mxu1 %v17177_v35  ;;  %5522 = vmatprep.subr.bf16.mxu0 %v17177_v35  ;;  %v3566_v27 = vpop.f32.mrf.mxu1  ;;  %v2535_v28 = vmul.f32 %v10291_v42, %v13078_v48  ;;  %v2534_v15 = vmul.f32 %v10290_v29, %v13080_v8  ;;  %v2659_v42 = vpack.c.bf16 %v2521_v38, %v2520_v4  ;;  %v10282_v47 = vunpack.c.l.bf16 %v10481_v19  ;;  %v10489_v38 = vld [vmem:[%s12232_s21 + $0x250] sm:$0xff]   ;;  %v10983_v19 = vld [vmem:[%s12140_s9 + $0x388] ss:$16 sps:$4 sm:$0xff]  }
 0x21e   : > { %17277 = vst [vmem:[#allocation158_spill] sm:$0xff] %v13118_v9  ;;  %4345 = vmatprep.mubr.bf16.mxu1 %v10980_v55  ;;  %v10255_v2 = vunpack.c.h.bf16 %v10474_v40  ;;  %v13134_v27 = vpop.permute.xlu0 %2060  ;;  %v2519_v29 = vmul.f32 %v10259_v20, %v12930_v30  ;;  %v10986_v20 = vld [vmem:[%s12140_s9 + $0x404] ss:$16 sps:$4 sm:$0xff]   ;;  %v10250_v48 = vunpack.c.l.bf16 %v10473_v17 }
 0x21f   : > { %v3307_v60 = vpop.f32.mrf.mxu0  ;;  %4547 = vmatmul.mubr.bf16.gmra.mxu0 %v10977_v6  ;;  %v13130_v14 = vpop.f32.mrf.mxu1  ;;  %17279 = vst [vmem:[#allocation160_spill] sm:$0xff] %v13134_v27  ;;  %v2666_v40 = vpack.c.bf16 %v2535_v28, %v2534_v15  ;;  %v10314_v28 = vunpack.c.l.bf16 %v10489_v38 }
 0x220   : > { %v13137_v51 = vadd.f32 %v13014_v63, %v3307_v60  ;;  %5304 = vmatpush2.bf16.msra.mxu1 %v2660_v41  ;;  %5523 = vmatpush1.bf16.msra.mxu0 %v2667_v57  ;;  %v2518_v63 = vmul.f32 %v10258_v45, %v12932_v33  ;;  %v2533_v41 = vmul.f32 %v10287_v21, %v13108_v34 }
 0x221   : > { %v3309_v55 = vpop.f32.mrf.mxu0  ;;  %5305 = vmatprep.subr.bf16.mxu1 %v17177_v35  ;;  %5524 = vmatprep.subr.bf16.mxu0 %v17177_v35  ;;  %v3569_v6 = vpop.f32.mrf.mxu1  ;;  %v2532_v57 = vmul.f32 %v10286_v36, %v13110_v7  ;;  %v2517_v45 = vmul.f32 %v10255_v2, %v12941_v59  ;;  %v2516_v21 = vmul.f32 %v10254_v11, %v12943_v24  ;;  %v10315_v36 = vunpack.c.h.bf16 %v10489_v38  ;;  %v10987_v11 = vld [vmem:[%s12140_s9 + $0x3ac] ss:$16 sps:$4 sm:$0xff]   ;;  %v10984_v38 = vld [vmem:[%s12140_s9 + $0x400] ss:$16 sps:$4 sm:$0xff]  }
 0x222   : > { %17280 = vst [vmem:[#allocation161_spill] sm:$0xff] %v13137_v51  ;;  %9717 = vmatprep.mubr.msk.bf16.mxu0 %vm3173_vm0, %v10981_v18  ;;  %v10251_v55 = vunpack.c.h.bf16 %v10473_v17  ;;  %v2658_v18 = vpack.c.bf16 %v2519_v29, %v2518_v63  ;;  %v13163_v2 = vpop.permute.xlu0 %2140  ;;  %v11047_v24 = vld [vmem:[%s12140_s9 + $0x4ec] ss:$16 sps:$4 sm:$0xff]  }
 0x223   : > { %v3310_v4 = vpop.f32.mrf.mxu0  ;;  %4346 = vmatmul.mubr.bf16.gmra.mxu1 %v10978_v12  ;;  %v13150_v60 = vpop.f32.mrf.mxu1  ;;  %v2665_v17 = vpack.c.bf16 %v2533_v41, %v2532_v57  ;;  %17283 = vst [vmem:[#allocation164_spill] sm:$0xff] %v13163_v2  ;;  %v2657_v29 = vpack.c.bf16 %v2517_v45, %v2516_v21  ;;  %v2514_v41 = vmul.f32 %v10250_v48, %v12978_v44 }
 0x224   : > { %v13153_v6 = vadd.f32 %v13023_v5, %v3310_v4  ;;  %5306 = vmatpush2.bf16.msra.mxu1 %v2659_v42  ;;  %5525 = vmatpush1.bf16.msra.mxu0 %v2666_v40  ;;  %v2531_v5 = vmul.f32 %v10283_v49, %v13132_v46  ;;  %v2530_v42 = vmul.f32 %v10282_v47, %v13134_v27  ;;  %v13161_v40 = vpop.permute.xlu1 %2145 }
 0x225   : > { %v3312_v15 = vpop.f32.mrf.mxu0  ;;  %5307 = vmatprep.subr.bf16.mxu1 %v17177_v35  ;;  %5526 = vmatprep.subr.bf16.mxu0 %v17177_v35  ;;  %v3574_v12 = vpop.f32.mrf.mxu1  ;;  %17282 = vst [vmem:[#allocation163_spill] sm:$0xff] %v13161_v40  ;;  %v2515_v49 = vmul.f32 %v10251_v55, %v12976_v16  ;;  %v10989_v55 = vld [vmem:[%s12140_s9 + $0x3a8] ss:$16 sps:$4 sm:$0xff]  }
 0x226   : > { %17281 = vst [vmem:[#allocation162_spill] sm:$0xff] %v13153_v6  ;;  %4353 = vmatprep.mubr.bf16.mxu1 %v10986_v20  ;;  %v2664_v57 = vpack.c.bf16 %v2531_v5, %v2530_v42  ;;  %v2547_v20 = vmul.f32 %v10315_v36, %v13161_v40  ;;  %v10993_v36 = vld [vmem:[%s12140_s9 + $0x3cc] ss:$16 sps:$4 sm:$0xff]   ;;  %v11091_v6 = vld [vmem:[%s12140_s9 + $0x5c8] ss:$16 sps:$4 sm:$0xff]  }
 0x227   : > { %v3315_v4 = vpop.f32.mrf.mxu0  ;;  %4555 = vmatmul.mubr.bf16.gmra.mxu0 %v10983_v19  ;;  %v13167_v15 = vpop.f32.mrf.mxu1  ;;  %v10992_v19 = vld [vmem:[%s12140_s9 + $0x424] ss:$16 sps:$4 sm:$0xff]  }
 0x228   : > { %v13170_v12 = vadd.f32 %v13042_v61, %v3315_v4  ;;  %5308 = vmatpush2.bf16.msra.mxu1 %v2658_v18  ;;  %5527 = vmatpush1.bf16.msra.mxu0 %v2665_v17  ;;  %v2546_v61 = vmul.f32 %v10314_v28, %v13163_v2  ;;  %v2656_v17 = vpack.c.bf16 %v2515_v49, %v2514_v41  ;;  %v13281_v8 = vpop.permute.xlu1 %2225 }
 0x229   : > { %v3317_v47 = vpop.f32.mrf.mxu0  ;;  %5309 = vmatprep.subr.bf16.mxu1 %v17177_v35  ;;  %5528 = vmatprep.subr.bf16.mxu0 %v17177_v35  ;;  %v3577_v63 = vpop.f32.mrf.mxu1  ;;  %17298 = vst [vmem:[#allocation179_spill] sm:$0xff] %v13281_v8 }
 0x22a   : > { %17284 = vst [vmem:[#allocation165_spill] sm:$0xff] %v13170_v12  ;;  %9718 = vmatprep.mubr.msk.bf16.mxu0 %vm3173_vm0, %v10987_v11  ;;  %v2672_v5 = vpack.c.bf16 %v2547_v20, %v2546_v61  ;;  %v10990_v11 = vld [vmem:[%s12140_s9 + $0x420] ss:$16 sps:$4 sm:$0xff]   ;;  %v10995_v63 = vld [vmem:[%s12140_s9 + $0x3c8] ss:$16 sps:$4 sm:$0xff]  }
 0x22b   : > { %v3318_v45 = vpop.f32.mrf.mxu0  ;;  %4354 = vmatmul.mubr.bf16.gmra.mxu1 %v10984_v38  ;;  %v13181_v21 = vpop.f32.mrf.mxu1  ;;  %v10998_v38 = vld [vmem:[%s12140_s9 + $0x444] ss:$16 sps:$4 sm:$0xff]  }
 0x22c   : > { %v13184_v18 = vadd.f32 %v13060_v54, %v3318_v45  ;;  %5310 = vmatpush2.bf16.msra.mxu1 %v2657_v29  ;;  %5529 = vmatpush1.bf16.msra.mxu0 %v2664_v57  ;;  %v10999_v57 = vld [vmem:[%s12140_s9 + $0x3ec] ss:$16 sps:$4 sm:$0xff]   ;;  %v10996_v45 = vld [vmem:[%s12140_s9 + $0x440] ss:$16 sps:$4 sm:$0xff]  }
 0x22d   : > { %v3320_v48 = vpop.f32.mrf.mxu0  ;;  %5311 = vmatprep.subr.bf16.mxu1 %v17177_v35  ;;  %5544 = vmatprep.subr.bf16.mxu0 %v17177_v35  ;;  %v3582_v28 = vpop.f32.mrf.mxu1 }
 0x22e   : > { %17285 = vst [vmem:[#allocation166_spill] sm:$0xff] %v13184_v18  ;;  %4361 = vmatprep.mubr.bf16.mxu1 %v10992_v19 }
 0x22f   : > { %v3323_v42 = vpop.f32.mrf.mxu0  ;;  %4563 = vmatmul.mubr.bf16.gmra.mxu0 %v10989_v55  ;;  %v13190_v4 = vpop.f32.mrf.mxu1 }
 0x230   : > { %v13193_v54 = vadd.f32 %v13076_v37, %v3323_v42  ;;  %5312 = vmatpush2.bf16.msra.mxu1 %v2656_v17  ;;  %5545 = vmatpush2.bf16.msra.mxu0 %v2672_v5  ;;  %v11001_v5 = vld [vmem:[%s12140_s9 + $0x3e8] ss:$16 sps:$4 sm:$0xff]  }
 0x231   : > { %v3325_v29 = vpop.f32.mrf.mxu0  ;;  %9719 = vmatprep.mubr.msk.bf16.mxu0 %vm3173_vm0, %v10993_v36  ;;  %v3585_v49 = vpop.f32.mrf.mxu1  ;;  %6297 = vmatprep.subr.bf16.mxu1 %v17177_v35  ;;  %v11004_v36 = vld [vmem:[%s12140_s9 + $0x464] ss:$16 sps:$4 sm:$0xff]  }
 0x232   : > { %17286 = vst [vmem:[#allocation167_spill] sm:$0xff] %v13193_v54  ;;  %6530 = vmatprep.subr.bf16.mxu0 %v17177_v35 }
 0x233   : > { %v3326_v47 = vpop.f32.mrf.mxu0  ;;  %4362 = vmatmul.mubr.bf16.gmra.mxu1 %v10990_v11  ;;  %v13200_v41 = vpop.f32.mrf.mxu1 }
 0x234   : > { %v13203_v37 = vadd.f32 %v13095_v58, %v3326_v47  ;;  %4369 = vmatprep.mubr.bf16.mxu1 %v10998_v38  ;;  %v11005_v38 = vld [vmem:[%s12140_s9 + $0x40c] ss:$16 sps:$4 sm:$0xff]   ;;  %v11002_v47 = vld [vmem:[%s12140_s9 + $0x460] ss:$16 sps:$4 sm:$0xff]  }
 0x235   : > { %v3328_v20 = vpop.f32.mrf.mxu0  ;;  %v3590_v61 = vpop.f32.mrf.mxu1 }
 0x236   : > { %17287 = vst [vmem:[#allocation168_spill] sm:$0xff] %v13203_v37  ;;  %v11010_v20 = vld [vmem:[%s12140_s9 + $0x484] ss:$16 sps:$4 sm:$0xff]  }
 0x237   : > { %v3331_v19 = vpop.f32.mrf.mxu0  ;;  %4571 = vmatmul.mubr.bf16.gmra.mxu0 %v10995_v63  ;;  %v13207_v55 = vpop.f32.mrf.mxu1 }
 0x238   : > { %v13210_v48 = vadd.f32 %v13115_v62, %v3331_v19  ;;  %9720 = vmatprep.mubr.msk.bf16.mxu0 %vm3173_vm0, %v10999_v57 }
 0x239   : > { %v3333_v58 = vpop.f32.mrf.mxu0  ;;  %v3593_v28 = vpop.f32.mrf.mxu1 }
 0x23a   : > { %17288 = vst [vmem:[#allocation169_spill] sm:$0xff] %v13210_v48  ;;  %v11011_v28 = vld [vmem:[%s12140_s9 + $0x42c] ss:$16 sps:$4 sm:$0xff]  }
 0x23b   : > { %v3334_v17 = vpop.f32.mrf.mxu0  ;;  %4370 = vmatmul.mubr.bf16.gmra.mxu1 %v10996_v45  ;;  %v13215_v42 = vpop.f32.mrf.mxu1  ;;  %v11007_v45 = vld [vmem:[%s12140_s9 + $0x408] ss:$16 sps:$4 sm:$0xff]  }
 0x23c   : > { %v13218_v11 = vadd.f32 %v13130_v14, %v3334_v17  ;;  %4377 = vmatprep.mubr.bf16.mxu1 %v11004_v36 }
 0x23d   : > { %v3336_v62 = vpop.f32.mrf.mxu0  ;;  %v3598_v29 = vpop.f32.mrf.mxu1 }
 0x23e   : > { %17289 = vst [vmem:[#allocation170_spill] sm:$0xff] %v13218_v11 }
 0x23f   : > { %v3339_v49 = vpop.f32.mrf.mxu0  ;;  %4579 = vmatmul.mubr.bf16.gmra.mxu0 %v11001_v5  ;;  %v13222_v63 = vpop.f32.mrf.mxu1 }
 0x240   : > { %v13225_v57 = vadd.f32 %v13150_v60, %v3339_v49  ;;  %9721 = vmatprep.mubr.msk.bf16.mxu0 %vm3173_vm0, %v11005_v38  ;;  %v11008_v38 = vld [vmem:[%s12140_s9 + $0x480] ss:$16 sps:$4 sm:$0xff]   ;;  %v11016_v49 = vld [vmem:[%s12140_s9 + $0x4a4] ss:$16 sps:$4 sm:$0xff]  }
 0x241   : > { %v3341_v14 = vpop.f32.mrf.mxu0  ;;  %v3601_v61 = vpop.f32.mrf.mxu1 }
 0x242   : > { %17290 = vst [vmem:[#allocation171_spill] sm:$0xff] %v13225_v57  ;;  %v11013_v14 = vld [vmem:[%s12140_s9 + $0x428] ss:$16 sps:$4 sm:$0xff]   ;;  %v11083_v57 = vld [vmem:[%s12140_s9 + $0x5ac] ss:$16 sps:$4 sm:$0xff]  }
 0x243   : > { %v3342_v19 = vpop.f32.mrf.mxu0  ;;  %4378 = vmatmul.mubr.bf16.gmra.mxu1 %v11002_v47  ;;  %v13230_v36 = vpop.f32.mrf.mxu1 }
 0x244   : > { %v13233_v58 = vadd.f32 %v13167_v15, %v3342_v19  ;;  %4385 = vmatprep.mubr.bf16.mxu1 %v11010_v20 }
 0x245   : > { %v3344_v60 = vpop.f32.mrf.mxu0  ;;  %v3606_v17 = vpop.f32.mrf.mxu1 }
 0x246   : > { %17291 = vst [vmem:[#allocation172_spill] sm:$0xff] %v13233_v58 }
 0x247   : > { %v3347_v5 = vpop.f32.mrf.mxu0  ;;  %4587 = vmatmul.mubr.bf16.gmra.mxu0 %v11007_v45  ;;  %v13237_v62 = vpop.f32.mrf.mxu1  ;;  %v11017_v45 = vld [vmem:[%s12140_s9 + $0x44c] ss:$16 sps:$4 sm:$0xff]  }
 0x248   : > { %v13240_v29 = vadd.f32 %v13181_v21, %v3347_v5  ;;  %9722 = vmatprep.mubr.msk.bf16.mxu0 %vm3173_vm0, %v11011_v28  ;;  %v11014_v28 = vld [vmem:[%s12140_s9 + $0x4a0] ss:$16 sps:$4 sm:$0xff]  }
 0x249   : > { %v3349_v15 = vpop.f32.mrf.mxu0  ;;  %v3609_v47 = vpop.f32.mrf.mxu1 }
 0x24a   : > { %17292 = vst [vmem:[#allocation173_spill] sm:$0xff] %v13240_v29 }
 0x24b   : > { %v3350_v20 = vpop.f32.mrf.mxu0  ;;  %4386 = vmatmul.mubr.bf16.gmra.mxu1 %v11008_v38  ;;  %v13245_v61 = vpop.f32.mrf.mxu1  ;;  %v11022_v38 = vld [vmem:[%s12140_s9 + $0x4c4] ss:$16 sps:$4 sm:$0xff]  }
 0x24c   : > { %v13248_v19 = vadd.f32 %v13190_v4, %v3350_v20  ;;  %4393 = vmatprep.mubr.bf16.mxu1 %v11016_v49  ;;  %v11019_v20 = vld [vmem:[%s12140_s9 + $0x448] ss:$16 sps:$4 sm:$0xff]  }
 0x24d   : > { %v3352_v21 = vpop.f32.mrf.mxu0  ;;  %v3614_v60 = vpop.f32.mrf.mxu1 }
 0x24e   : > { %17293 = vst [vmem:[#allocation174_spill] sm:$0xff] %v13248_v19  ;;  %v11023_v60 = vld [vmem:[%s12140_s9 + $0x46c] ss:$16 sps:$4 sm:$0xff]  }
 0x24f   : > { %v3355_v17 = vpop.f32.mrf.mxu0  ;;  %4595 = vmatmul.mubr.bf16.gmra.mxu0 %v11013_v14  ;;  %v13252_v5 = vpop.f32.mrf.mxu1 }
 0x250   : > { %v13255_v15 = vadd.f32 %v13200_v41, %v3355_v17  ;;  %9723 = vmatprep.mubr.msk.bf16.mxu0 %vm3173_vm0, %v11017_v45  ;;  %v11020_v45 = vld [vmem:[%s12140_s9 + $0x4c0] ss:$16 sps:$4 sm:$0xff]  }
 0x251   : > { %v3357_v4 = vpop.f32.mrf.mxu0  ;;  %v3617_v47 = vpop.f32.mrf.mxu1 }
 0x252   : > { %17294 = vst [vmem:[#allocation175_spill] sm:$0xff] %v13255_v15  ;;  %v11076_v15 = vld [vmem:[%s12140_s9 + $0x5e4] ss:$16 sps:$4 sm:$0xff]  }
 0x253   : > { %v3358_v49 = vpop.f32.mrf.mxu0  ;;  %4394 = vmatmul.mubr.bf16.gmra.mxu1 %v11014_v28  ;;  %v13260_v21 = vpop.f32.mrf.mxu1  ;;  %v11028_v28 = vld [vmem:[%s12140_s9 + $0x4e4] ss:$16 sps:$4 sm:$0xff]  }
 0x254   : > { %v13263_v14 = vadd.f32 %v13207_v55, %v3358_v49  ;;  %4401 = vmatprep.mubr.bf16.mxu1 %v11022_v38  ;;  %v11025_v38 = vld [vmem:[%s12140_s9 + $0x468] ss:$16 sps:$4 sm:$0xff]  }
 0x255   : > { %v3360_v41 = vpop.f32.mrf.mxu0  ;;  %v3622_v17 = vpop.f32.mrf.mxu1 }
 0x256   : > { %17295 = vst [vmem:[#allocation176_spill] sm:$0xff] %v13263_v14  ;;  %v11029_v17 = vld [vmem:[%s12140_s9 + $0x48c] ss:$16 sps:$4 sm:$0xff]  }
 0x257   : > { %v3363_v40 = vpop.f32.mrf.mxu0  ;;  %4603 = vmatmul.mubr.bf16.gmra.mxu0 %v11019_v20  ;;  %v13267_v4 = vpop.f32.mrf.mxu1 }
 0x258   : > { %v13270_v47 = vadd.f32 %v13215_v42, %v3363_v40  ;;  %9724 = vmatprep.mubr.msk.bf16.mxu0 %vm3173_vm0, %v11023_v60  ;;  %v13283_v60 = vpop.permute.xlu0 %2220 }
 0x259   : > { %v3365_v55 = vpop.f32.mrf.mxu0  ;;  %v3625_v49 = vpop.f32.mrf.mxu1  ;;  %17299 = vst [vmem:[#allocation180_spill] sm:$0xff] %v13283_v60 }
 0x25a   : > { %17296 = vst [vmem:[#allocation177_spill] sm:$0xff] %v13270_v47 }
 0x25b   : > { %v3366_v2 = vpop.f32.mrf.mxu0  ;;  %4402 = vmatmul.mubr.bf16.gmra.mxu1 %v11020_v45  ;;  %v13275_v41 = vpop.f32.mrf.mxu1  ;;  %v11026_v45 = vld [vmem:[%s12140_s9 + $0x4e0] ss:$16 sps:$4 sm:$0xff]  }
 0x25c   : > { %v13278_v20 = vadd.f32 %v13222_v63, %v3366_v2  ;;  %4409 = vmatprep.mubr.bf16.mxu1 %v11028_v28  ;;  %v11034_v2 = vld [vmem:[%s12140_s9 + $0x504] ss:$16 sps:$4 sm:$0xff]   ;;  %v13298_v46 = vpop.permute.xlu0 %2210 }
 0x25d   : > { %v3368_v40 = vpop.f32.mrf.mxu0  ;;  %v3630_v42 = vpop.f32.mrf.mxu1  ;;  %17302 = vst [vmem:[#allocation183_spill] sm:$0xff] %v13298_v46 }
 0x25e   : > { %17297 = vst [vmem:[#allocation178_spill] sm:$0xff] %v13278_v20  ;;  %v11031_v42 = vld [vmem:[%s12140_s9 + $0x488] ss:$16 sps:$4 sm:$0xff]  }
 0x25f   : > { %v3371_v55 = vpop.f32.mrf.mxu0  ;;  %4611 = vmatmul.mubr.bf16.gmra.mxu0 %v11025_v38  ;;  %v13286_v49 = vpop.f32.mrf.mxu1 }
 0x260   : > { %v13289_v34 = vadd.f32 %v13230_v36, %v3371_v55  ;;  %9725 = vmatprep.mubr.msk.bf16.mxu0 %vm3173_vm0, %v11029_v17  ;;  %v13296_v38 = vpop.permute.xlu1 %2215  ;;  %v11035_v36 = vld [vmem:[%s12140_s9 + $0x4ac] ss:$16 sps:$4 sm:$0xff]   ;;  %v13314_v26 = vpop.permute.xlu0 %2200 }
 0x261   : > { %v3373_v63 = vpop.f32.mrf.mxu0  ;;  %v3633_v28 = vpop.f32.mrf.mxu1  ;;  %17301 = vst [vmem:[#allocation182_spill] sm:$0xff] %v13296_v38  ;;  %17306 = vst [vmem:[#allocation187_spill] sm:$0xff] %v13314_v26 }
 0x262   : > { %17300 = vst [vmem:[#allocation181_spill] sm:$0xff] %v13289_v34  ;;  %v11065_v34 = vld [vmem:[%s12140_s9 + $0x54c] ss:$16 sps:$4 sm:$0xff]  }
 0x263   : > { %v3374_v40 = vpop.f32.mrf.mxu0  ;;  %4410 = vmatmul.mubr.bf16.gmra.mxu1 %v11026_v45  ;;  %v13294_v7 = vpop.f32.mrf.mxu1  ;;  %v11032_v45 = vld [vmem:[%s12140_s9 + $0x500] ss:$16 sps:$4 sm:$0xff]  }
 0x264   : > { %v13301_v27 = vadd.f32 %v13237_v62, %v3374_v40  ;;  %4417 = vmatprep.mubr.bf16.mxu1 %v11034_v2  ;;  %v13312_v2 = vpop.permute.xlu1 %2205 }
 0x265   : > { %v3376_v17 = vpop.f32.mrf.mxu0  ;;  %v3638_v55 = vpop.f32.mrf.mxu1  ;;  %17305 = vst [vmem:[#allocation186_spill] sm:$0xff] %v13312_v2 }
 0x266   : > { %17303 = vst [vmem:[#allocation184_spill] sm:$0xff] %v13301_v27 }
 0x267   : > { %v3379_v63 = vpop.f32.mrf.mxu0  ;;  %4619 = vmatmul.mubr.bf16.gmra.mxu0 %v11031_v42  ;;  %v13305_v28 = vpop.f32.mrf.mxu1  ;;  %v11037_v42 = vld [vmem:[%s12140_s9 + $0x4a8] ss:$16 sps:$4 sm:$0xff]  }
 0x268   : > { %v13308_v10 = vadd.f32 %v13245_v61, %v3379_v63  ;;  %9726 = vmatprep.mubr.msk.bf16.mxu0 %vm3173_vm0, %v11035_v36  ;;  %v11041_v61 = vld [vmem:[%s12140_s9 + $0x4cc] ss:$16 sps:$4 sm:$0xff]   ;;  %v13326_v30 = vpop.permute.xlu1 %2195 }
 0x269   : > { %v3381_v62 = vpop.f32.mrf.mxu0  ;;  %v3641_v40 = vpop.f32.mrf.mxu1  ;;  %17308 = vst [vmem:[#allocation189_spill] sm:$0xff] %v13326_v30 }
 0x26a   : > { %17304 = vst [vmem:[#allocation185_spill] sm:$0xff] %v13308_v10  ;;  %v11038_v40 = vld [vmem:[%s12140_s9 + $0x520] ss:$16 sps:$4 sm:$0xff]  }
 0x26b   : > { %v3382_v17 = vpop.f32.mrf.mxu0  ;;  %4418 = vmatmul.mubr.bf16.gmra.mxu1 %v11032_v45  ;;  %v13317_v55 = vpop.f32.mrf.mxu1 }
 0x26c   : > { %v13320_v1 = vadd.f32 %v13252_v5, %v3382_v17  ;;  %4425 = vmatprep.mubr.bf16.mxu1 %v11040_v25  ;;  %v13328_v45 = vpop.permute.xlu0 %2190  ;;  %v11046_v25 = vld [vmem:[%s12140_s9 + $0x544] ss:$16 sps:$4 sm:$0xff]   ;;  %v13342_v16 = vpop.permute.xlu1 %2185 }
 0x26d   : > { %v3384_v36 = vpop.f32.mrf.mxu0  ;;  %v3646_v63 = vpop.f32.mrf.mxu1  ;;  %17309 = vst [vmem:[#allocation190_spill] sm:$0xff] %v13328_v45  ;;  %17312 = vst [vmem:[#allocation193_spill] sm:$0xff] %v13342_v16 }
 0x26e   : > { %17307 = vst [vmem:[#allocation188_spill] sm:$0xff] %v13320_v1 }
 0x26f   : > { %v3387_v62 = vpop.f32.mrf.mxu0  ;;  %4627 = vmatmul.mubr.bf16.gmra.mxu0 %v11037_v42  ;;  %v13324_v43 = vpop.f32.mrf.mxu1  ;;  %v11043_v42 = vld [vmem:[%s12140_s9 + $0x4c8] ss:$16 sps:$4 sm:$0xff]  }
 0x270   : > { %v13331_v33 = vadd.f32 %v13260_v21, %v3387_v62  ;;  %9727 = vmatprep.mubr.msk.bf16.mxu0 %vm3173_vm0, %v11041_v61  ;;  %v13344_v61 = vpop.permute.xlu0 %2180 }
 0x271   : > { %v3389_v5 = vpop.f32.mrf.mxu0  ;;  %v3649_v17 = vpop.f32.mrf.mxu1  ;;  %17313 = vst [vmem:[#allocation194_spill] sm:$0xff] %v13344_v61 }
 0x272   : > { %17310 = vst [vmem:[#allocation191_spill] sm:$0xff] %v13331_v33  ;;  %v11058_v33 = vld [vmem:[%s12140_s9 + $0x584] ss:$16 sps:$4 sm:$0xff]  }
 0x273   : > { %v3390_v36 = vpop.f32.mrf.mxu0  ;;  %4426 = vmatmul.mubr.bf16.gmra.mxu1 %v11038_v40  ;;  %v13336_v63 = vpop.f32.mrf.mxu1  ;;  %v11044_v40 = vld [vmem:[%s12140_s9 + $0x540] ss:$16 sps:$4 sm:$0xff]  }
 0x274   : > { %v13339_v59 = vadd.f32 %v13267_v4, %v3390_v36  ;;  %4433 = vmatprep.mubr.bf16.mxu1 %v11046_v25  ;;  %v11052_v4 = vld [vmem:[%s12140_s9 + $0x564] ss:$16 sps:$4 sm:$0xff]   ;;  %v13359_v39 = vpop.permute.xlu0 %2170 }
 0x275   : > { %v3392_v21 = vpop.f32.mrf.mxu0  ;;  %v3654_v62 = vpop.f32.mrf.mxu1  ;;  %17316 = vst [vmem:[#allocation197_spill] sm:$0xff] %v13359_v39 }
 0x276   : > { %17311 = vst [vmem:[#allocation192_spill] sm:$0xff] %v13339_v59  ;;  %v11049_v62 = vld [vmem:[%s12140_s9 + $0x4e8] ss:$16 sps:$4 sm:$0xff]  }
 0x277   : > { %v3395_v5 = vpop.f32.mrf.mxu0  ;;  %4635 = vmatmul.mubr.bf16.gmra.mxu0 %v11043_v42  ;;  %v13347_v17 = vpop.f32.mrf.mxu1 }
 0x278   : > { %v13350_v44 = vadd.f32 %v13275_v41, %v3395_v5  ;;  %9728 = vmatprep.mubr.msk.bf16.mxu0 %vm3173_vm0, %v11047_v24  ;;  %v13357_v42 = vpop.permute.xlu1 %2175  ;;  %v11053_v41 = vld [vmem:[%s12140_s9 + $0x50c] ss:$16 sps:$4 sm:$0xff]  }
 0x279   : > { %v3397_v25 = vpop.f32.mrf.mxu0  ;;  %v3657_v36 = vpop.f32.mrf.mxu1  ;;  %17315 = vst [vmem:[#allocation196_spill] sm:$0xff] %v13357_v42 }
 0x27a   : > { %17314 = vst [vmem:[#allocation195_spill] sm:$0xff] %v13350_v44 }
 0x27b   : > { %v3398_v21 = vpop.f32.mrf.mxu0  ;;  %4434 = vmatmul.mubr.bf16.gmra.mxu1 %v11044_v40  ;;  %v13355_v13 = vpop.f32.mrf.mxu1  ;;  %v11050_v40 = vld [vmem:[%s12140_s9 + $0x560] ss:$16 sps:$4 sm:$0xff]  }
 0x27c   : > { %v13362_v59 = vadd.f32 %v13286_v49, %v3398_v21  ;;  %4441 = vmatprep.mubr.bf16.mxu1 %v11052_v4  ;;  %v13373_v4 = vpop.permute.xlu1 %2165 }
 0x27d   : > { %v3400_v24 = vpop.f32.mrf.mxu0  ;;  %v3662_v5 = vpop.f32.mrf.mxu1  ;;  %17319 = vst [vmem:[#allocation200_spill] sm:$0xff] %v13373_v4 }
 0x27e   : > { %17317 = vst [vmem:[#allocation198_spill] sm:$0xff] %v13362_v59  ;;  %v13375_v59 = vpop.permute.xlu0 %2160 }
 0x27f   : > { %v3403_v25 = vpop.f32.mrf.mxu0  ;;  %4643 = vmatmul.mubr.bf16.gmra.mxu0 %v11049_v62  ;;  %v13366_v36 = vpop.f32.mrf.mxu1  ;;  %17320 = vst [vmem:[#allocation201_spill] sm:$0xff] %v13375_v59  ;;  %v11055_v62 = vld [vmem:[%s12140_s9 + $0x508] ss:$16 sps:$4 sm:$0xff]  }
 0x280   : > { %v13369_v44 = vadd.f32 %v13294_v7, %v3403_v25  ;;  %9729 = vmatprep.mubr.msk.bf16.mxu0 %vm3173_vm0, %v11053_v41  ;;  %v11059_v7 = vld [vmem:[%s12140_s9 + $0x52c] ss:$16 sps:$4 sm:$0xff]   ;;  %v13387_v10 = vpop.permute.xlu1 %2155 }
 0x281   : > { %v3405_v49 = vpop.f32.mrf.mxu0  ;;  %v3665_v21 = vpop.f32.mrf.mxu1  ;;  %17322 = vst [vmem:[#allocation203_spill] sm:$0xff] %v13387_v10 }
 0x282   : > { %17318 = vst [vmem:[#allocation199_spill] sm:$0xff] %v13369_v44  ;;  %v11056_v21 = vld [vmem:[%s12140_s9 + $0x580] ss:$16 sps:$4 sm:$0xff]  }
 0x283   : > { %v3406_v24 = vpop.f32.mrf.mxu0  ;;  %4442 = vmatmul.mubr.bf16.gmra.mxu1 %v11050_v40  ;;  %v13378_v5 = vpop.f32.mrf.mxu1 }
 0x284   : > { %v13381_v1 = vadd.f32 %v13305_v28, %v3406_v24  ;;  %4449 = vmatprep.mubr.bf16.mxu1 %v11058_v33  ;;  %v13389_v40 = vpop.permute.xlu0 %2150  ;;  %v11064_v33 = vld [vmem:[%s12140_s9 + $0x5a4] ss:$16 sps:$4 sm:$0xff]  }
 0x285   : > { %v3408_v41 = vpop.f32.mrf.mxu0  ;;  %v3670_v25 = vpop.f32.mrf.mxu1  ;;  %17323 = vst [vmem:[#allocation204_spill] sm:$0xff] %v13389_v40 }
 0x286   : > { %17321 = vst [vmem:[#allocation202_spill] sm:$0xff] %v13381_v1 }
 0x287   : > { %v3411_v49 = vpop.f32.mrf.mxu0  ;;  %4651 = vmatmul.mubr.bf16.gmra.mxu0 %v11055_v62  ;;  %v13385_v44 = vpop.f32.mrf.mxu1  ;;  %v11061_v62 = vld [vmem:[%s12140_s9 + $0x528] ss:$16 sps:$4 sm:$0xff]  }
 0x288   : > { %v13392_v27 = vadd.f32 %v13317_v55, %v3411_v49  ;;  %9730 = vmatprep.mubr.msk.bf16.mxu0 %vm3173_vm0, %v11059_v7  ;;  %v13405_v7 = vpop.permute.xlu0 %2300 }
 0x289   : > { %v3413_v28 = vpop.f32.mrf.mxu0  ;;  %v3673_v24 = vpop.f32.mrf.mxu1  ;;  %17327 = vst [vmem:[#allocation208_spill] sm:$0xff] %v13405_v7 }
 0x28a   : > { %17324 = vst [vmem:[#allocation205_spill] sm:$0xff] %v13392_v27  ;;  %v13403_v27 = vpop.permute.xlu1 %2305 }
 0x28b   : > { %v3414_v41 = vpop.f32.mrf.mxu0  ;;  %4450 = vmatmul.mubr.bf16.gmra.mxu1 %v11056_v21  ;;  %v13397_v25 = vpop.f32.mrf.mxu1  ;;  %17326 = vst [vmem:[#allocation207_spill] sm:$0xff] %v13403_v27  ;;  %v11062_v21 = vld [vmem:[%s12140_s9 + $0x5a0] ss:$16 sps:$4 sm:$0xff]  }
 0x28c   : > { %v13400_v1 = vadd.f32 %v13324_v43, %v3414_v41  ;;  %4457 = vmatprep.mubr.bf16.mxu1 %v11064_v33  ;;  %v11070_v43 = vld [vmem:[%s12140_s9 + $0x5c4] ss:$16 sps:$4 sm:$0xff]   ;;  %v13420_v47 = vpop.permute.xlu0 %2290 }
 0x28d   : > { %v3416_v55 = vpop.f32.mrf.mxu0  ;;  %v3678_v49 = vpop.f32.mrf.mxu1  ;;  %17330 = vst [vmem:[#allocation211_spill] sm:$0xff] %v13420_v47 }
 0x28e   : > { %17325 = vst [vmem:[#allocation206_spill] sm:$0xff] %v13400_v1  ;;  %v11067_v49 = vld [vmem:[%s12140_s9 + $0x548] ss:$16 sps:$4 sm:$0xff]  }
 0x28f   : > { %v3419_v28 = vpop.f32.mrf.mxu0  ;;  %4659 = vmatmul.mubr.bf16.gmra.mxu0 %v11061_v62  ;;  %v13408_v24 = vpop.f32.mrf.mxu1 }
 0x290   : > { %v13411_v20 = vadd.f32 %v13336_v63, %v3419_v28  ;;  %9731 = vmatprep.mubr.msk.bf16.mxu0 %vm3173_vm0, %v11065_v34  ;;  %v13418_v62 = vpop.permute.xlu1 %2295  ;;  %v11071_v63 = vld [vmem:[%s12140_s9 + $0x56c] ss:$16 sps:$4 sm:$0xff]  }
 0x291   : > { %v3421_v33 = vpop.f32.mrf.mxu0  ;;  %v3681_v41 = vpop.f32.mrf.mxu1  ;;  %17329 = vst [vmem:[#allocation210_spill] sm:$0xff] %v13418_v62 }
 0x292   : > { %17328 = vst [vmem:[#allocation209_spill] sm:$0xff] %v13411_v20 }
 0x293   : > { %v3422_v55 = vpop.f32.mrf.mxu0  ;;  %4458 = vmatmul.mubr.bf16.gmra.mxu1 %v11062_v21  ;;  %v13416_v1 = vpop.f32.mrf.mxu1  ;;  %v11068_v21 = vld [vmem:[%s12140_s9 + $0x5c0] ss:$16 sps:$4 sm:$0xff]  }
 0x294   : > { %v13423_v14 = vadd.f32 %v13347_v17, %v3422_v55  ;;  %4465 = vmatprep.mubr.bf16.mxu1 %v11070_v43  ;;  %v13434_v43 = vpop.permute.xlu1 %2285 }
 0x295   : > { %v3424_v34 = vpop.f32.mrf.mxu0  ;;  %v3686_v28 = vpop.f32.mrf.mxu1  ;;  %17333 = vst [vmem:[#allocation214_spill] sm:$0xff] %v13434_v43 }
 0x296   : > { %17331 = vst [vmem:[#allocation212_spill] sm:$0xff] %v13423_v14  ;;  %v13436_v14 = vpop.permute.xlu0 %2280 }
 0x297   : > { %v3427_v33 = vpop.f32.mrf.mxu0  ;;  %4667 = vmatmul.mubr.bf16.gmra.mxu0 %v11067_v49  ;;  %v13427_v41 = vpop.f32.mrf.mxu1  ;;  %17334 = vst [vmem:[#allocation215_spill] sm:$0xff] %v13436_v14  ;;  %v11073_v49 = vld [vmem:[%s12140_s9 + $0x568] ss:$16 sps:$4 sm:$0xff]  }
 0x298   : > { %v13430_v20 = vadd.f32 %v13355_v13, %v3427_v33  ;;  %9732 = vmatprep.mubr.msk.bf16.mxu0 %vm3173_vm0, %v11071_v63  ;;  %v11077_v13 = vld [vmem:[%s12140_s9 + $0x58c] ss:$16 sps:$4 sm:$0xff]   ;;  %v13448_v29 = vpop.permute.xlu1 %2275 }
 0x299   : > { %v3429_v17 = vpop.f32.mrf.mxu0  ;;  %v3689_v55 = vpop.f32.mrf.mxu1  ;;  %17336 = vst [vmem:[#allocation217_spill] sm:$0xff] %v13448_v29 }
 0x29a   : > { %17332 = vst [vmem:[#allocation213_spill] sm:$0xff] %v13430_v20  ;;  %v11074_v55 = vld [vmem:[%s12140_s9 + $0x5e0] ss:$16 sps:$4 sm:$0xff]  }
 0x29b   : > { %v3430_v34 = vpop.f32.mrf.mxu0  ;;  %4466 = vmatmul.mubr.bf16.gmra.mxu1 %v11068_v21  ;;  %v13439_v28 = vpop.f32.mrf.mxu1 }
 0x29c   : > { %v13442_v19 = vadd.f32 %v13366_v36, %v3430_v34  ;;  %4473 = vmatprep.mubr.bf16.mxu1 %v11076_v15  ;;  %v13450_v21 = vpop.permute.xlu0 %2270  ;;  %v11082_v15 = vld [vmem:[%s12140_s9 + $0x604] ss:$16 sps:$4 sm:$0xff]  }
 0x29d   : > { %v3432_v63 = vpop.f32.mrf.mxu0  ;;  %v3694_v33 = vpop.f32.mrf.mxu1  ;;  %17337 = vst [vmem:[#allocation218_spill] sm:$0xff] %v13450_v21 }
 0x29e   : > { %17335 = vst [vmem:[#allocation216_spill] sm:$0xff] %v13442_v19 }
 0x29f   : > { %v3435_v17 = vpop.f32.mrf.mxu0  ;;  %4675 = vmatmul.mubr.bf16.gmra.mxu0 %v11073_v49  ;;  %v13446_v20 = vpop.f32.mrf.mxu1  ;;  %v11079_v49 = vld [vmem:[%s12140_s9 + $0x588] ss:$16 sps:$4 sm:$0xff]  }
 0x2a0   : > { %v13453_v58 = vadd.f32 %v13378_v5, %v3435_v17  ;;  %9733 = vmatprep.mubr.msk.bf16.mxu0 %vm3173_vm0, %v11077_v13  ;;  %v13466_v13 = vpop.permute.xlu0 %2260 }
 0x2a1   : > { %v3437_v36 = vpop.f32.mrf.mxu0  ;;  %v3697_v34 = vpop.f32.mrf.mxu1  ;;  %17341 = vst [vmem:[#allocation222_spill] sm:$0xff] %v13466_v13 }
 0x2a2   : > { %17338 = vst [vmem:[#allocation219_spill] sm:$0xff] %v13453_v58  ;;  %v13464_v58 = vpop.permute.xlu1 %2265 }
 0x2a3   : > { %v3438_v63 = vpop.f32.mrf.mxu0  ;;  %4474 = vmatmul.mubr.bf16.gmra.mxu1 %v11074_v55  ;;  %v13458_v33 = vpop.f32.mrf.mxu1  ;;  %17340 = vst [vmem:[#allocation221_spill] sm:$0xff] %v13464_v58  ;;  %v11080_v55 = vld [vmem:[%s12140_s9 + $0x600] ss:$16 sps:$4 sm:$0xff]  }
 0x2a4   : > { %v13461_v19 = vadd.f32 %v13385_v44, %v3438_v63  ;;  %4481 = vmatprep.mubr.bf16.mxu1 %v11082_v15  ;;  %v11088_v44 = vld [vmem:[%s12140_s9 + $0x624] ss:$16 sps:$4 sm:$0xff]   ;;  %v13481_v48 = vpop.permute.xlu0 %2250 }
 0x2a5   : > { %v3440_v5 = vpop.f32.mrf.mxu0  ;;  %v3702_v17 = vpop.f32.mrf.mxu1  ;;  %17344 = vst [vmem:[#allocation225_spill] sm:$0xff] %v13481_v48 }
 0x2a6   : > { %17339 = vst [vmem:[#allocation220_spill] sm:$0xff] %v13461_v19  ;;  %v11085_v17 = vld [vmem:[%s12140_s9 + $0x5a8] ss:$16 sps:$4 sm:$0xff]  }
 0x2a7   : > { %v3443_v36 = vpop.f32.mrf.mxu0  ;;  %4683 = vmatmul.mubr.bf16.gmra.mxu0 %v11079_v49  ;;  %v13469_v34 = vpop.f32.mrf.mxu1 }
 0x2a8   : > { %v13472_v11 = vadd.f32 %v13397_v25, %v3443_v36  ;;  %9734 = vmatprep.mubr.msk.bf16.mxu0 %vm3173_vm0, %v11083_v57  ;;  %v13479_v49 = vpop.permute.xlu1 %2255  ;;  %v11089_v36 = vld [vmem:[%s12140_s9 + $0x5cc] ss:$16 sps:$4 sm:$0xff]  }
 0x2a9   : > { %v3445_v15 = vpop.f32.mrf.mxu0  ;;  %v3705_v63 = vpop.f32.mrf.mxu1  ;;  %17343 = vst [vmem:[#allocation224_spill] sm:$0xff] %v13479_v49 }
 0x2aa   : > { %17342 = vst [vmem:[#allocation223_spill] sm:$0xff] %v13472_v11  ;;  %v10497_v11 = vld [vmem:[%s12232_s21 + $0x290] sm:$0xff]  }
 0x2ab   : > { %v3446_v5 = vpop.f32.mrf.mxu0  ;;  %4482 = vmatmul.mubr.bf16.gmra.mxu1 %v11080_v55  ;;  %v13477_v19 = vpop.f32.mrf.mxu1  ;;  %v11086_v55 = vld [vmem:[%s12140_s9 + $0x620] ss:$16 sps:$4 sm:$0xff]  }
 0x2ac   : > { %v13484_v25 = vadd.f32 %v13408_v24, %v3446_v5  ;;  %4489 = vmatprep.mubr.bf16.mxu1 %v11088_v44  ;;  %v11094_v24 = vld [vmem:[%s12140_s9 + $0x644] ss:$16 sps:$4 sm:$0xff]   ;;  %v13496_v18 = vpop.permute.xlu1 %2245 }
 0x2ad   : > { %v3448_v57 = vpop.f32.mrf.mxu0  ;;  %v3710_v15 = vpop.f32.mrf.mxu1  ;;  %17347 = vst [vmem:[#allocation228_spill] sm:$0xff] %v13496_v18 }
 0x2ae   : > { %17345 = vst [vmem:[#allocation226_spill] sm:$0xff] %v13484_v25  ;;  %v10347_v25 = vunpack.c.h.bf16 %v10497_v11  ;;  %v10346_v57 = vunpack.c.l.bf16 %v10497_v11  ;;  %v13498_v15 = vpop.permute.xlu0 %2240 }
 0x2af   : > { %v3451_v63 = vpop.f32.mrf.mxu0  ;;  %4691 = vmatmul.mubr.bf16.gmra.mxu0 %v11085_v17  ;;  %v13489_v37 = vpop.f32.mrf.mxu1  ;;  %17348 = vst [vmem:[#allocation229_spill] sm:$0xff] %v13498_v15  ;;  %v10496_v17 = vld [vmem:[%s12232_s21 + $0x288] sm:$0xff]  }
 0x2b0   : > { %v13492_v54 = vadd.f32 %v13416_v1, %v3451_v63  ;;  %9735 = vmatprep.mubr.msk.bf16.mxu0 %vm3173_vm0, %v11089_v36  ;;  %v11095_v36 = vld [vmem:[%s12140_s9 + $0x5ec] ss:$16 sps:$4 sm:$0xff]   ;;  %v10343_v51 = vunpack.c.h.bf16 %v10496_v17  ;;  %v10342_v9 = vunpack.c.l.bf16 %v10496_v17 }
 0x2b1   : > { %v3453_v5 = vpop.f32.mrf.mxu0  ;;  %v3713_v44 = vpop.f32.mrf.mxu1 }
 0x2b2   : > { %17346 = vst [vmem:[#allocation227_spill] sm:$0xff] %v13492_v54  ;;  %v2563_v44 = vmul.f32 %v10347_v25, %v13281_v8  ;;  %v2562_v54 = vmul.f32 %v10346_v57, %v13283_v60  ;;  %v11100_v25 = vld [vmem:[%s12140_s9 + $0x664] ss:$16 sps:$4 sm:$0xff]   ;;  %v10339_v57 = vunpack.c.h.bf16 %v10495_v3  ;;  %v2560_v60 = vmul.f32 %v10342_v9, %v13298_v46 }
 0x2b3   : > { %v3454_v12 = vpop.f32.mrf.mxu0  ;;  %4490 = vmatmul.mubr.bf16.gmra.mxu1 %v11086_v55  ;;  %v13502_v1 = vpop.f32.mrf.mxu1  ;;  %v11092_v55 = vld [vmem:[%s12140_s9 + $0x640] ss:$16 sps:$4 sm:$0xff]   ;;  %v10338_v8 = vunpack.c.l.bf16 %v10495_v3 }
 0x2b4   : > { %v13505_v63 = vadd.f32 %v13427_v41, %v3454_v12  ;;  %5313 = vmatprep.mubr.bf16.mxu1 %v11094_v24  ;;  %v13514_v12 = vpop.permute.xlu1 %2385  ;;  %v13516_v41 = vpop.permute.xlu0 %2380 }
 0x2b5   : > { %v3456_v5 = vpop.f32.mrf.mxu0  ;;  %v4301_v11 = vpop.f32.mrf.mxu1  ;;  %17350 = vst [vmem:[#allocation231_spill] sm:$0xff] %v13514_v12  ;;  %17351 = vst [vmem:[#allocation232_spill] sm:$0xff] %v13516_v41 }
 0x2b6   : > { %17349 = vst [vmem:[#allocation230_spill] sm:$0xff] %v13505_v63  ;;  %v2680_v11 = vpack.c.bf16 %v2563_v44, %v2562_v54  ;;  %v10494_v63 = vld [vmem:[%s12232_s21 + $0x278] sm:$0xff]  }
 0x2b7   : > { %v3459_v56 = vpop.f32.mrf.mxu0  ;;  %4699 = vmatmul.mubr.bf16.gmra.mxu0 %v11091_v6  ;;  %v13512_v50 = vpop.f32.mrf.mxu1  ;;  %v2561_v6 = vmul.f32 %v10343_v51, %v13296_v38  ;;  %v10335_v54 = vunpack.c.h.bf16 %v10494_v63  ;;  %v2559_v51 = vmul.f32 %v10339_v57, %v13312_v2  ;;  %v10492_v38 = vld [vmem:[%s12232_s21 + $0x268] sm:$0xff]  }
 0x2b8   : > { %v13519_v24 = vadd.f32 %v13439_v28, %v3459_v56  ;;  %9736 = vmatprep.mubr.msk.bf16.mxu0 %vm3173_vm0, %v11095_v36  ;;  %v11101_v36 = vld [vmem:[%s12140_s9 + $0x60c] ss:$16 sps:$4 sm:$0xff]   ;;  %v13537_v46 = vpop.permute.xlu1 %2235 }
 0x2b9   : > { %v3461_v17 = vpop.f32.mrf.mxu0  ;;  %v4304_v5 = vpop.f32.mrf.mxu1  ;;  %v2679_v9 = vpack.c.bf16 %v2561_v6, %v2560_v60  ;;  %17353 = vst [vmem:[#allocation234_spill] sm:$0xff] %v13537_v46 }
 0x2ba   : > { %v10334_v17 = vunpack.c.l.bf16 %v10494_v63  ;;  %v10493_v5 = vld [vmem:[%s12232_s21 + $0x270] sm:$0xff]  }
 0x2bb   : > { %v3462_v22 = vpop.f32.mrf.mxu0  ;;  %5314 = vmatmul.mubr.bf16.vlgmr.msra.gmra.mxu1 %v11092_v55  ;;  %v13527_v56 = vpop.f32.mrf.mxu1  ;;  %v2558_v55 = vmul.f32 %v10338_v8, %v13314_v26  ;;  %v11106_v8 = vld [vmem:[%s12140_s9 + $0x684] ss:$16 sps:$4 sm:$0xff]   ;;  %v10331_v60 = vunpack.c.h.bf16 %v10493_v5  ;;  %v10330_v26 = vunpack.c.l.bf16 %v10493_v5 }
 0x2bc   : > { %v13530_v28 = vadd.f32 %v13446_v20, %v3462_v22  ;;  %6298 = vmatpush1.bf16.msra.mxu1 %v2680_v11  ;;  %5321 = vmatprep.mubr.bf16.mxu1 %v11100_v25  ;;  %v13539_v22 = vpop.permute.xlu0 %2230  ;;  %v11098_v25 = vld [vmem:[%s12140_s9 + $0x660] ss:$16 sps:$4 sm:$0xff]  }
 0x2bd   : > { %v3464_v44 = vpop.f32.mrf.mxu0  ;;  %6299 = vmatprep.subr.bf16.mxu1 %v17177_v35  ;;  %v4309_v3 = vpop.f32.mrf.mxu1  ;;  %17354 = vst [vmem:[#allocation235_spill] sm:$0xff] %v13539_v22  ;;  %v2678_v6 = vpack.c.bf16 %v2559_v51, %v2558_v55  ;;  %v10327_v51 = vunpack.c.h.bf16 %v10492_v38 }
 0x2be   : > { %17352 = vst [vmem:[#allocation233_spill] sm:$0xff] %v13530_v28  ;;  %v2556_v3 = vmul.f32 %v10334_v17, %v13328_v45  ;;  %v10491_v45 = vld [vmem:[%s12232_s21 + $0x260] sm:$0xff]  }
 0x2bf   : > { %v3467_v20 = vpop.f32.mrf.mxu0  ;;  %4707 = vmatmul.mubr.bf16.gmra.mxu0 %v11097_v32  ;;  %v13542_v11 = vpop.f32.mrf.mxu1  ;;  %v2557_v32 = vmul.f32 %v10335_v54, %v13326_v30  ;;  %v11107_v54 = vld [vmem:[%s12140_s9 + $0x62c] ss:$16 sps:$4 sm:$0xff]   ;;  %v10326_v30 = vunpack.c.l.bf16 %v10492_v38 }
 0x2c0   : > { %v13545_v44 = vadd.f32 %v13458_v33, %v3467_v20  ;;  %6300 = vmatpush1.bf16.msra.mxu1 %v2679_v9  ;;  %9737 = vmatprep.mubr.msk.bf16.mxu0 %vm3173_vm0, %v11101_v36  ;;  %v11103_v33 = vld [vmem:[%s12140_s9 + $0x608] ss:$16 sps:$4 sm:$0xff]   ;;  %v13556_v36 = vpop.permute.xlu1 %2375  ;;  %v13558_v20 = vpop.permute.xlu0 %2370 }
 0x2c1   : > { %v3469_v63 = vpop.f32.mrf.mxu0  ;;  %6301 = vmatprep.subr.bf16.mxu1 %v17177_v35  ;;  %v4312_v57 = vpop.f32.mrf.mxu1  ;;  %17356 = vst [vmem:[#allocation237_spill] sm:$0xff] %v13556_v36  ;;  %17357 = vst [vmem:[#allocation238_spill] sm:$0xff] %v13558_v20  ;;  %v2677_v5 = vpack.c.bf16 %v2557_v32, %v2556_v3  ;;  %v10322_v32 = vunpack.c.l.bf16 %v10491_v45 }
 0x2c2   : > { %17355 = vst [vmem:[#allocation236_spill] sm:$0xff] %v13545_v44  ;;  %v2554_v57 = vmul.f32 %v10330_v26, %v13344_v61 }
 0x2c3   : > { %v3470_v2 = vpop.f32.mrf.mxu0  ;;  %5322 = vmatmul.mubr.bf16.gmra.mxu1 %v11098_v25  ;;  %v13554_v9 = vpop.f32.mrf.mxu1  ;;  %v2555_v25 = vmul.f32 %v10331_v60, %v13342_v16  ;;  %v10323_v60 = vunpack.c.h.bf16 %v10491_v45  ;;  %v11109_v45 = vld [vmem:[%s12140_s9 + $0x628] ss:$16 sps:$4 sm:$0xff]  }
 0x2c4   : > { %v13561_v63 = vadd.f32 %v13469_v34, %v3470_v2  ;;  %6302 = vmatpush1.bf16.msra.mxu1 %v2678_v6  ;;  %5329 = vmatprep.mubr.bf16.mxu1 %v11106_v8  ;;  %v11104_v2 = vld [vmem:[%s12140_s9 + $0x680] ss:$16 sps:$4 sm:$0xff]   ;;  %v11112_v6 = vld [vmem:[%s12140_s9 + $0x6a4] ss:$16 sps:$4 sm:$0xff]  }
 0x2c5   : > { %v3472_v55 = vpop.f32.mrf.mxu0  ;;  %6303 = vmatprep.subr.bf16.mxu1 %v17177_v35  ;;  %v4317_v17 = vpop.f32.mrf.mxu1  ;;  %v2676_v3 = vpack.c.bf16 %v2555_v25, %v2554_v57  ;;  %v2550_v25 = vmul.f32 %v10322_v32, %v13375_v59 }
 0x2c6   : > { %17358 = vst [vmem:[#allocation239_spill] sm:$0xff] %v13561_v63  ;;  %v2552_v55 = vmul.f32 %v10326_v30, %v13359_v39  ;;  %v13582_v17 = vpop.permute.xlu0 %2360  ;;  %v11115_v30 = vld [vmem:[%s12140_s9 + $0x64c] ss:$16 sps:$4 sm:$0xff]  }
 0x2c7   : > { %v3475_v44 = vpop.f32.mrf.mxu0  ;;  %4715 = vmatmul.mubr.bf16.gmra.mxu0 %v11103_v33  ;;  %v13569_v34 = vpop.f32.mrf.mxu1  ;;  %v2553_v33 = vmul.f32 %v10327_v51, %v13357_v42  ;;  %17361 = vst [vmem:[#allocation242_spill] sm:$0xff] %v13582_v17  ;;  %v2551_v51 = vmul.f32 %v10323_v60, %v13373_v4  ;;  %v10505_v42 = vld [vmem:[%s12232_s21 + $0x2d0] sm:$0xff]  }
 0x2c8   : > { %v13572_v8 = vadd.f32 %v13477_v19, %v3475_v44  ;;  %6304 = vmatpush1.bf16.msra.mxu1 %v2677_v5  ;;  %9738 = vmatprep.mubr.msk.bf16.mxu0 %vm3173_vm0, %v11107_v54  ;;  %v10490_v19 = vld [vmem:[%s12232_s21 + $0x258] sm:$0xff]   ;;  %v13580_v44 = vpop.permute.xlu1 %2365  ;;  %v10513_v54 = vld [vmem:[%s12232_s21 + $0x310] sm:$0xff]   ;;  %v10379_v60 = vunpack.c.h.bf16 %v10505_v42 }
 0x2c9   : > { %v3477_v26 = vpop.f32.mrf.mxu0  ;;  %6305 = vmatprep.subr.bf16.mxu1 %v17177_v35  ;;  %v4320_v38 = vpop.f32.mrf.mxu1  ;;  %17360 = vst [vmem:[#allocation241_spill] sm:$0xff] %v13580_v44  ;;  %v10319_v57 = vunpack.c.h.bf16 %v10490_v19  ;;  %v2675_v16 = vpack.c.bf16 %v2553_v33, %v2552_v55  ;;  %v10318_v61 = vunpack.c.l.bf16 %v10490_v19  ;;  %v11118_v33 = vld [vmem:[%s12140_s9 + $0x6c4] ss:$16 sps:$4 sm:$0xff]   ;;  %v2674_v55 = vpack.c.bf16 %v2551_v51, %v2550_v25 }
 0x2ca   : > { %17359 = vst [vmem:[#allocation240_spill] sm:$0xff] %v13572_v8  ;;  %v10411_v8 = vunpack.c.h.bf16 %v10513_v54  ;;  %v13602_v4 = vpop.permute.xlu0 %2350  ;;  %v10378_v19 = vunpack.c.l.bf16 %v10505_v42  ;;  %v11113_v42 = vld [vmem:[%s12140_s9 + $0x648] ss:$16 sps:$4 sm:$0xff]  }
 0x2cb   : > { %v3478_v5 = vpop.f32.mrf.mxu0  ;;  %5330 = vmatmul.mubr.bf16.gmra.mxu1 %v11104_v2  ;;  %v13586_v26 = vpop.f32.mrf.mxu1  ;;  %17364 = vst [vmem:[#allocation245_spill] sm:$0xff] %v13602_v4  ;;  %v2549_v28 = vmul.f32 %v10319_v57, %v13387_v10  ;;  %v10503_v57 = vld [vmem:[%s12232_s21 + $0x2c0] sm:$0xff]   ;;  %v11233_v10 = vld [vmem:[%s12140_s9 + $0x8cc] ss:$16 sps:$4 sm:$0xff]  }
 0x2cc   : > { %v13589_v38 = vadd.f32 %v13489_v37, %v3478_v5  ;;  %6306 = vmatpush1.bf16.msra.mxu1 %v2676_v3  ;;  %5337 = vmatprep.mubr.bf16.mxu1 %v11112_v6  ;;  %v10410_v37 = vunpack.c.l.bf16 %v10513_v54  ;;  %v10512_v3 = vld [vmem:[%s12232_s21 + $0x308] sm:$0xff]   ;;  %v11110_v5 = vld [vmem:[%s12140_s9 + $0x6a0] ss:$16 sps:$4 sm:$0xff]   ;;  %v13600_v32 = vpop.permute.xlu1 %2355 }
 0x2cd   : > { %v3480_v39 = vpop.f32.mrf.mxu0  ;;  %6307 = vmatprep.subr.bf16.mxu1 %v17177_v35  ;;  %v4325_v2 = vpop.f32.mrf.mxu1  ;;  %17363 = vst [vmem:[#allocation244_spill] sm:$0xff] %v13600_v32  ;;  %v10504_v54 = vld [vmem:[%s12232_s21 + $0x2c8] sm:$0xff]  }
 0x2ce   : > { %17362 = vst [vmem:[#allocation243_spill] sm:$0xff] %v13589_v38  ;;  %v10406_v2 = vunpack.c.l.bf16 %v10512_v3  ;;  %v10375_v25 = vunpack.c.h.bf16 %v10504_v54 }
 0x2cf   : > { %v4532_v6 = vpop.f32.mrf.mxu0  ;;  %4723 = vmatmul.mubr.bf16.gmra.mxu0 %v11109_v45  ;;  %v13598_v38 = vpop.f32.mrf.mxu1  ;;  %v10407_v45 = vunpack.c.h.bf16 %v10512_v3 }
 0x2d0   : > { %v13605_v39 = vadd.f32 %v4532_v6, %v13502_v1  ;;  %6308 = vmatpush1.bf16.msra.mxu1 %v2675_v16  ;;  %9839 = vmatprep.mubr.msk.bf16.mxu0 %vm3173_vm0, %v11115_v30  ;;  %v2548_v1 = vmul.f32 %v10318_v61, %v13389_v40  ;;  %v2595_v16 = vmul.f32 %v10411_v8, %v13514_v12  ;;  %v10511_v6 = vld [vmem:[%s12232_s21 + $0x300] sm:$0xff]  }
 0x2d1   : > { %v4534_v59 = vpop.f32.mrf.mxu0  ;;  %6309 = vmatprep.subr.bf16.mxu1 %v17177_v35  ;;  %v4328_v63 = vpop.f32.mrf.mxu1  ;;  %v2594_v30 = vmul.f32 %v10410_v37, %v13516_v41  ;;  %v2579_v61 = vmul.f32 %v10379_v60, %v13403_v27  ;;  %v2578_v8 = vmul.f32 %v10378_v19, %v13405_v7  ;;  %v10403_v37 = vunpack.c.h.bf16 %v10511_v6  ;;  %v11119_v19 = vld [vmem:[%s12140_s9 + $0x66c] ss:$16 sps:$4 sm:$0xff]  }
 0x2d2   : > { %17365 = vst [vmem:[#allocation246_spill] sm:$0xff] %v13605_v39  ;;  %v10374_v59 = vunpack.c.l.bf16 %v10504_v54  ;;  %v10402_v3 = vunpack.c.l.bf16 %v10511_v6  ;;  %v2673_v54 = vpack.c.bf16 %v2549_v28, %v2548_v1  ;;  %v13631_v60 = vpop.permute.xlu0 %2340  ;;  %v11116_v6 = vld [vmem:[%s12140_s9 + $0x6c0] ss:$16 sps:$4 sm:$0xff]   ;;  %v10371_v27 = vunpack.c.h.bf16 %v10503_v57  ;;  %v10502_v1 = vld [vmem:[%s12232_s21 + $0x2b8] sm:$0xff]  }
 0x2d3   : > { %v4535_v39 = vpop.f32.mrf.mxu0  ;;  %5338 = vmatmul.mubr.bf16.gmra.mxu1 %v11110_v5  ;;  %v13617_v51 = vpop.f32.mrf.mxu1  ;;  %v2696_v12 = vpack.c.bf16 %v2595_v16, %v2594_v30  ;;  %17367 = vst [vmem:[#allocation248_spill] sm:$0xff] %v13631_v60 }
 0x2d4   : > { %v13620_v63 = vadd.f32 %v4535_v39, %v13512_v50  ;;  %6310 = vmatpush1.bf16.msra.mxu1 %v2674_v55  ;;  %5345 = vmatprep.mubr.bf16.mxu1 %v11118_v33  ;;  %v2593_v50 = vmul.f32 %v10407_v45, %v13556_v36  ;;  %v2592_v39 = vmul.f32 %v10406_v2, %v13558_v20  ;;  %v10510_v33 = vld [vmem:[%s12232_s21 + $0x2f8] sm:$0xff]   ;;  %v13629_v55 = vpop.permute.xlu1 %2345  ;;  %v10367_v20 = vunpack.c.h.bf16 %v10502_v1 }
 0x2d5   : > { %v4537_v5 = vpop.f32.mrf.mxu0  ;;  %6311 = vmatprep.subr.bf16.mxu1 %v17177_v35  ;;  %v4333_v41 = vpop.f32.mrf.mxu1  ;;  %17366 = vst [vmem:[#allocation247_spill] sm:$0xff] %v13629_v55  ;;  %v2688_v45 = vpack.c.bf16 %v2579_v61, %v2578_v8  ;;  %v2577_v2 = vmul.f32 %v10375_v25, %v13418_v62  ;;  %v10399_v16 = vunpack.c.h.bf16 %v10510_v33  ;;  %v10398_v30 = vunpack.c.l.bf16 %v10510_v33  ;;  %v10509_v61 = vld [vmem:[%s12232_s21 + $0x2f0] sm:$0xff]   ;;  %v11121_v33 = vld [vmem:[%s12140_s9 + $0x668] ss:$16 sps:$4 sm:$0xff]  }
 0x2d6   : > { %v10370_v41 = vunpack.c.l.bf16 %v10503_v57  ;;  %v11124_v25 = vld [vmem:[%s12140_s9 + $0x6e4] ss:$16 sps:$4 sm:$0xff]   ;;  %v10366_v36 = vunpack.c.l.bf16 %v10502_v1 }
 0x2d7   : > { %v4540_v7 = vpop.f32.mrf.mxu0  ;;  %5547 = vmatmul.mubr.bf16.vlgmr.msra.gmra.mxu0 %v11113_v42  ;;  %v13635_v5 = vpop.f32.mrf.mxu1 }
 0x2d8   : > { %v13638_v28 = vadd.f32 %v4540_v7, %v13527_v56  ;;  %6312 = vmatpush1.bf16.msra.mxu1 %v2673_v54  ;;  %6531 = vmatpush1.bf16.msra.mxu0 %v2696_v12  ;;  %v2576_v7 = vmul.f32 %v10374_v59, %v13420_v47  ;;  %v2695_v56 = vpack.c.bf16 %v2593_v50, %v2592_v39  ;;  %v13655_v59 = vpop.permute.xlu0 %2330  ;;  %v10501_v39 = vld [vmem:[%s12232_s21 + $0x2b0] sm:$0xff]  }
 0x2d9   : > { %v4542_v42 = vpop.f32.mrf.mxu0  ;;  %6313 = vmatprep.subr.bf16.mxu1 %v17177_v35  ;;  %6532 = vmatprep.subr.bf16.mxu0 %v17177_v35  ;;  %v4336_v57 = vpop.f32.mrf.mxu1  ;;  %v2591_v54 = vmul.f32 %v10403_v37, %v13580_v44  ;;  %v2590_v12 = vmul.f32 %v10402_v3, %v13582_v17  ;;  %17369 = vst [vmem:[#allocation250_spill] sm:$0xff] %v13655_v59 }
 0x2da   : > { %9840 = vmatprep.mubr.msk.bf16.mxu0 %vm3173_vm0, %v11119_v19  ;;  %v13653_v57 = vpop.permute.xlu1 %2335  ;;  %v2575_v3 = vmul.f32 %v10371_v27, %v13434_v43  ;;  %v2574_v50 = vmul.f32 %v10370_v41, %v13436_v14  ;;  %v10395_v19 = vunpack.c.h.bf16 %v10509_v61  ;;  %v10508_v27 = vld [vmem:[%s12232_s21 + $0x2e8] sm:$0xff]   ;;  %v11122_v14 = vld [vmem:[%s12140_s9 + $0x6e0] ss:$16 sps:$4 sm:$0xff]   ;;  %v10362_v43 = vunpack.c.l.bf16 %v10501_v39 }
 0x2db   : > { %v4543_v8 = vpop.f32.mrf.mxu0  ;;  %5346 = vmatmul.mubr.bf16.gmra.mxu1 %v11116_v6  ;;  %v13651_v42 = vpop.f32.mrf.mxu1  ;;  %17368 = vst [vmem:[#allocation249_spill] sm:$0xff] %v13653_v57  ;;  %v10394_v6 = vunpack.c.l.bf16 %v10509_v61  ;;  %v11125_v41 = vld [vmem:[%s12140_s9 + $0x68c] ss:$16 sps:$4 sm:$0xff]  }
 0x2dc   : > { %v13658_v37 = vadd.f32 %v4543_v8, %v13542_v11  ;;  %6314 = vmatpush2.bf16.msra.mxu1 %v2688_v45  ;;  %6533 = vmatpush1.bf16.msra.mxu0 %v2695_v56  ;;  %v2687_v11 = vpack.c.bf16 %v2577_v2, %v2576_v7  ;;  %v2694_v8 = vpack.c.bf16 %v2591_v54, %v2590_v12  ;;  %v10390_v7 = vunpack.c.l.bf16 %v10508_v27 }
 0x2dd   : > { %v4545_v1 = vpop.f32.mrf.mxu0  ;;  %6315 = vmatprep.subr.bf16.mxu1 %v17177_v35  ;;  %6534 = vmatprep.subr.bf16.mxu0 %v17177_v35  ;;  %v4341_v17 = vpop.f32.mrf.mxu1  ;;  %v2589_v45 = vmul.f32 %v10399_v16, %v13600_v32  ;;  %v2588_v56 = vmul.f32 %v10398_v30, %v13602_v4  ;;  %v2573_v2 = vmul.f32 %v10367_v20, %v13448_v29  ;;  %v10500_v16 = vld [vmem:[%s12232_s21 + $0x2a8] sm:$0xff]   ;;  %v10391_v30 = vunpack.c.h.bf16 %v10508_v27 }
 0x2de   : > { %5353 = vmatprep.mubr.bf16.mxu1 %v11124_v25  ;;  %v10363_v1 = vunpack.c.h.bf16 %v10501_v39  ;;  %v2686_v17 = vpack.c.bf16 %v2575_v3, %v2574_v50  ;;  %v2587_v25 = vmul.f32 %v10395_v19, %v13629_v55  ;;  %v10507_v3 = vld [vmem:[%s12232_s21 + $0x2e0] sm:$0xff]   ;;  %v13683_v20 = vpop.permute.xlu1 %2325  ;;  %v13685_v50 = vpop.permute.xlu0 %2320  ;;  %v11227_v29 = vld [vmem:[%s12140_s9 + $0x8ac] ss:$16 sps:$4 sm:$0xff]  }
 0x2df   : > { %v4548_v44 = vpop.f32.mrf.mxu0  ;;  %5555 = vmatmul.mubr.bf16.gmra.mxu0 %v11121_v33  ;;  %v13670_v61 = vpop.f32.mrf.mxu1  ;;  %v2586_v33 = vmul.f32 %v10394_v6, %v13631_v60  ;;  %17370 = vst [vmem:[#allocation251_spill] sm:$0xff] %v13683_v20  ;;  %17371 = vst [vmem:[#allocation252_spill] sm:$0xff] %v13685_v50  ;;  %v11130_v39 = vld [vmem:[%s12140_s9 + $0x704] ss:$16 sps:$4 sm:$0xff]   ;;  %v10506_v60 = vld [vmem:[%s12232_s21 + $0x2d8] sm:$0xff]  }
 0x2e0   : > { %v13673_v47 = vadd.f32 %v4548_v44, %v13554_v9  ;;  %6316 = vmatpush2.bf16.msra.mxu1 %v2687_v11  ;;  %6535 = vmatpush1.bf16.msra.mxu0 %v2694_v8  ;;  %v2572_v9 = vmul.f32 %v10366_v36, %v13450_v21  ;;  %v2693_v44 = vpack.c.bf16 %v2589_v45, %v2588_v56  ;;  %v11127_v8 = vld [vmem:[%s12140_s9 + $0x688] ss:$16 sps:$4 sm:$0xff]   ;;  %v10359_v36 = vunpack.c.h.bf16 %v10500_v16  ;;  %v11128_v55 = vld [vmem:[%s12140_s9 + $0x700] ss:$16 sps:$4 sm:$0xff]  }
 0x2e1   : > { %v4550_v54 = vpop.f32.mrf.mxu0  ;;  %6317 = vmatprep.subr.bf16.mxu1 %v17177_v35  ;;  %6536 = vmatprep.subr.bf16.mxu0 %v17177_v35  ;;  %v4344_v12 = vpop.f32.mrf.mxu1  ;;  %v10358_v45 = vunpack.c.l.bf16 %v10500_v16  ;;  %v2571_v6 = vmul.f32 %v10363_v1, %v13464_v58  ;;  %v2570_v56 = vmul.f32 %v10362_v43, %v13466_v13  ;;  %v11131_v43 = vld [vmem:[%s12140_s9 + $0x6ac] ss:$16 sps:$4 sm:$0xff]  }
 0x2e2   : > { %9841 = vmatprep.mubr.msk.bf16.mxu0 %vm3173_vm0, %v11125_v41  ;;  %v10499_v41 = vld [vmem:[%s12232_s21 + $0x2a0] sm:$0xff]   ;;  %v10387_v54 = vunpack.c.h.bf16 %v10507_v3  ;;  %v13707_v32 = vpop.permute.xlu1 %2315  ;;  %v11221_v58 = vld [vmem:[%s12140_s9 + $0x88c] ss:$16 sps:$4 sm:$0xff]  }
 0x2e3   : > { %v4551_v11 = vpop.f32.mrf.mxu0  ;;  %5354 = vmatmul.mubr.bf16.gmra.mxu1 %v11122_v14  ;;  %v13690_v27 = vpop.f32.mrf.mxu1  ;;  %v10386_v14 = vunpack.c.l.bf16 %v10507_v3  ;;  %v10354_v4 = vunpack.c.l.bf16 %v10499_v41  ;;  %17372 = vst [vmem:[#allocation253_spill] sm:$0xff] %v13707_v32 }
 0x2e4   : > { %v13693_v19 = vadd.f32 %v4551_v11, %v13569_v34  ;;  %6318 = vmatpush2.bf16.msra.mxu1 %v2686_v17  ;;  %6537 = vmatpush1.bf16.msra.mxu0 %v2693_v44  ;;  %v2685_v34 = vpack.c.bf16 %v2573_v2, %v2572_v9  ;;  %v2692_v11 = vpack.c.bf16 %v2587_v25, %v2586_v33  ;;  %v10498_v9 = vld [vmem:[%s12232_s21 + $0x298] sm:$0xff]   ;;  %v10383_v25 = vunpack.c.h.bf16 %v10506_v60 }
 0x2e5   : > { %v4553_v12 = vpop.f32.mrf.mxu0  ;;  %6319 = vmatprep.subr.bf16.mxu1 %v17177_v35  ;;  %6538 = vmatprep.subr.bf16.mxu0 %v17177_v35  ;;  %v4349_v16 = vpop.f32.mrf.mxu1  ;;  %v2585_v17 = vmul.f32 %v10391_v30, %v13653_v57  ;;  %v2584_v44 = vmul.f32 %v10390_v7, %v13655_v59  ;;  %v2684_v30 = vpack.c.bf16 %v2571_v6, %v2570_v56  ;;  %v10382_v33 = vunpack.c.l.bf16 %v10506_v60  ;;  %v10514_v6 = vld [vmem:[%s12232_s21 + $0x318] sm:$0xff]   ;;  %s374_s21 = scalar_lea.vmem [#allocation8], %s9482_s11 }
 0x2e6   : > { %5361 = vmatprep.mubr.bf16.mxu1 %v11130_v39  ;;  %v10355_v12 = vunpack.c.h.bf16 %v10499_v41  ;;  %v13709_v16 = vpop.permute.xlu0 %2310  ;;  %v2569_v7 = vmul.f32 %v10359_v36, %v13479_v49  ;;  %v11136_v36 = vld [vmem:[%s12140_s9 + $0x724] ss:$16 sps:$4 sm:$0xff]   ;;  %v11133_v60 = vld [vmem:[%s12140_s9 + $0x6a8] ss:$16 sps:$4 sm:$0xff]   ;;  %v10350_v59 = vunpack.c.l.bf16 %v10498_v9  ;;  %v11197_v57 = vld [vmem:[%s12140_s9 + $0x80c] ss:$16 sps:$4 sm:$0xff]  }
 0x2e7   : > { %v4556_v1 = vpop.f32.mrf.mxu0  ;;  %5563 = vmatmul.mubr.bf16.gmra.mxu0 %v11127_v8  ;;  %v13705_v3 = vpop.f32.mrf.mxu1  ;;  %17373 = vst [vmem:[#allocation254_spill] sm:$0xff] %v13709_v16  ;;  %v2691_v41 = vpack.c.bf16 %v2585_v17, %v2584_v44  ;;  %v10414_v17 = vunpack.c.l.bf16 %v10514_v6  ;;  %v11215_v49 = vld [vmem:[%s12140_s9 + $0x86c] ss:$16 sps:$4 sm:$0xff]   ;;  %s9343_s20 = sshll.u32 %s374_s21, 4  ;;  %s16655_s20 = int_to_ptr.vmem [resolvable:$true] %s9343_s20 }
 0x2e8   : > { %v13712_v2 = vadd.f32 %v4556_v1, %v13586_v26  ;;  %6320 = vmatpush2.bf16.msra.mxu1 %v2685_v34  ;;  %6539 = vmatpush1.bf16.msra.mxu0 %v2692_v11  ;;  %v2568_v26 = vmul.f32 %v10358_v45, %v13481_v48  ;;  %v2583_v34 = vmul.f32 %v10387_v54, %v13683_v20  ;;  %s11883_s12 = scalar_lea.vmem %s16655_s20, 64  ;;  %p11890_p1 = scmp.lt.s32.totalorder %s16655_s20, %s11888_s15 }
 0x2e9   : > { %v4558_v39 = vpop.f32.mrf.mxu0  ;;  %6321 = vmatprep.subr.bf16.mxu1 %v17177_v35  ;;  %6540 = vmatprep.subr.bf16.mxu0 %v17177_v35  ;;  %v4352_v8 = vpop.f32.mrf.mxu1  ;;  %v2582_v11 = vmul.f32 %v10386_v14, %v13685_v50  ;;  %v2567_v45 = vmul.f32 %v10355_v12, %v13496_v18  ;;  %v2566_v54 = vmul.f32 %v10354_v4, %v13498_v15  ;;  %v10415_v14 = vunpack.c.h.bf16 %v10514_v6  ;;  %v11137_v4 = vld [vmem:[%s12140_s9 + $0x6cc] ss:$16 sps:$4 sm:$0xff]   ;;  %v11134_v6 = vld [vmem:[%s12140_s9 + $0x720] ss:$16 sps:$4 sm:$0xff]   ;;  %p11884_p4 = scmp.ne.s32.totalorder %s16655_s20, %s11883_s12  ;;  %p11891_p12 = scmp.lt.s32.totalorder %s11889_s19, %s11883_s12 }
 0x2ea   : > { %9842 = vmatprep.mubr.msk.bf16.mxu0 %vm3173_vm0, %v11131_v43  ;;  %v10351_v39 = vunpack.c.h.bf16 %v10498_v9  ;;  %v2683_v43 = vpack.c.bf16 %v2569_v7, %v2568_v26  ;;  %v13738_v12 = vpop.permute.xlu0 %2390  ;;  %v11191_v50 = vld [vmem:[%s12140_s9 + $0x7ec] ss:$16 sps:$4 sm:$0xff]  }
 0x2eb   : > { %v4559_v56 = vpop.f32.mrf.mxu0  ;;  %5362 = vmatmul.mubr.bf16.gmra.mxu1 %v11128_v55  ;;  %v13725_v1 = vpop.f32.mrf.mxu1  ;;  %v2690_v9 = vpack.c.bf16 %v2583_v34, %v2582_v11  ;;  %17375 = vst [vmem:[#allocation256_spill] sm:$0xff] %v13738_v12  ;;  %v2682_v7 = vpack.c.bf16 %v2567_v45, %v2566_v54  ;;  %v2564_v34 = vmul.f32 %v10350_v59, %v13539_v22  ;;  %v11209_v18 = vld [vmem:[%s12140_s9 + $0x84c] ss:$16 sps:$4 sm:$0xff]   ;;  %p11885_p9 = pnand %p11884_p4, %p18074_p5  ;;  %p11892_p11 = por %p11891_p12, %p11890_p1 }
 0x2ec   : > { %v13728_v8 = vadd.f32 %v4559_v56, %v13598_v38  ;;  %6322 = vmatpush2.bf16.msra.mxu1 %v2684_v30  ;;  %6541 = vmatpush1.bf16.msra.mxu0 %v2691_v41  ;;  %v2581_v38 = vmul.f32 %v10383_v25, %v13707_v32  ;;  %v2580_v30 = vmul.f32 %v10382_v33, %v13709_v16  ;;  %v13736_v41 = vpop.permute.xlu1 %2395  ;;  %v11185_v16 = vld [vmem:[%s12140_s9 + $0x7cc] ss:$16 sps:$4 sm:$0xff]  }
 0x2ed   : > { %v4561_v44 = vpop.f32.mrf.mxu0  ;;  %6323 = vmatprep.subr.bf16.mxu1 %v17177_v35  ;;  %6542 = vmatprep.subr.bf16.mxu0 %v17177_v35  ;;  %v4357_v55 = vpop.f32.mrf.mxu1  ;;  %17374 = vst [vmem:[#allocation255_spill] sm:$0xff] %v13736_v41  ;;  %v2565_v25 = vmul.f32 %v10351_v39, %v13537_v46  ;;  %v11139_v39 = vld [vmem:[%s12140_s9 + $0x6c8] ss:$16 sps:$4 sm:$0xff]   ;;  %v11203_v46 = vld [vmem:[%s12140_s9 + $0x82c] ss:$16 sps:$4 sm:$0xff]   ;;  %p11886_p10 = pneg %p11885_p9 }
 0x2ee   : > { %5369 = vmatprep.mubr.bf16.mxu1 %v11136_v36  ;;  %v2689_v11 = vpack.c.bf16 %v2581_v38, %v2580_v30  ;;  %v2597_v36 = vmul.f32 %v10415_v14, %v13736_v41  ;;  %v11143_v14 = vld [vmem:[%s12140_s9 + $0x6ec] ss:$16 sps:$4 sm:$0xff]  }
 0x2ef   : > { %v4564_v56 = vpop.f32.mrf.mxu0  ;;  %5571 = vmatmul.mubr.bf16.gmra.mxu0 %v11133_v60  ;;  %v13742_v44 = vpop.f32.mrf.mxu1  ;;  %v11142_v60 = vld [vmem:[%s12140_s9 + $0x744] ss:$16 sps:$4 sm:$0xff]   ;;  %p11893_p8 = pnand %p11892_p11, %p11886_p10 }
 0x2f0   : > { %v13745_v55 = vadd.f32 %v4564_v56, %v13617_v51  ;;  %6324 = vmatpush2.bf16.msra.mxu1 %v2683_v43  ;;  %6543 = vmatpush1.bf16.msra.mxu0 %v2690_v9  ;;  %v2596_v51 = vmul.f32 %v10414_v17, %v13738_v12  ;;  %v2681_v9 = vpack.c.bf16 %v2565_v25, %v2564_v34  ;;  %v11401_v25 = vld [vmem:[%s12140_s9 + $0xe4] ss:$16 sps:$4 sm:$0xff]   ;;  %v11145_v34 = vld [vmem:[%s12140_s9 + $0x6e8] ss:$16 sps:$4 sm:$0xff]   ;;  %v11179_v12 = vld [vmem:[%s12140_s9 + $0x7ac] ss:$16 sps:$4 sm:$0xff]  }
 0x2f1   : > { %v4566_v33 = vpop.f32.mrf.mxu0  ;;  %6325 = vmatprep.subr.bf16.mxu1 %v17177_v35  ;;  %6544 = vmatprep.subr.bf16.mxu0 %v17177_v35  ;;  %v4360_v26 = vpop.f32.mrf.mxu1 }
 0x2f2   : > { %9843 = vmatprep.mubr.msk.bf16.mxu0 %vm3173_vm0, %v11137_v4  ;;  %v2697_v38 = vpack.c.bf16 %v2597_v36, %v2596_v51  ;;  %v11402_v33 = vld [vmem:[%s12140_s9 + $0x2e4] ss:$16 sps:$4 sm:$0xff]   ;;  %v11149_v36 = vld [vmem:[%s12140_s9 + $0x70c] ss:$16 sps:$4 sm:$0xff]  }
 0x2f3   : > { %v4567_v45 = vpop.f32.mrf.mxu0  ;;  %5370 = vmatmul.mubr.bf16.gmra.mxu1 %v11134_v6  ;;  %v13756_v54 = vpop.f32.mrf.mxu1 }
 0x2f4   : > { %v13759_v43 = vadd.f32 %v4567_v45, %v13635_v5  ;;  %6326 = vmatpush2.bf16.msra.mxu1 %v2682_v7  ;;  %6545 = vmatpush1.bf16.msra.mxu0 %v2689_v11  ;;  %v11140_v5 = vld [vmem:[%s12140_s9 + $0x740] ss:$16 sps:$4 sm:$0xff]  }
 0x2f5   : > { %v4569_v59 = vpop.f32.mrf.mxu0  ;;  %6327 = vmatprep.subr.bf16.mxu1 %v17177_v35  ;;  %6560 = vmatprep.subr.bf16.mxu0 %v17177_v35  ;;  %v4365_v17 = vpop.f32.mrf.mxu1  ;;  %v11148_v35 = vld [vmem:[%s12140_s9 + $0x764] ss:$16 sps:$4 sm:$0xff]  }
 0x2f6   : > { %5377 = vmatprep.mubr.bf16.mxu1 %v11142_v60  ;;  %v11154_v17 = vld [vmem:[%s12140_s9 + $0x784] ss:$16 sps:$4 sm:$0xff]  }
 0x2f7   : > { %v4572_v30 = vpop.f32.mrf.mxu0  ;;  %5579 = vmatmul.mubr.bf16.gmra.mxu0 %v11139_v39  ;;  %v13765_v4 = vpop.f32.mrf.mxu1  ;;  %v11146_v39 = vld [vmem:[%s12140_s9 + $0x760] ss:$16 sps:$4 sm:$0xff]  }
 0x2f8   : > { %v13768_v56 = vadd.f32 %v4572_v30, %v13651_v42  ;;  %6328 = vmatpush2.bf16.msra.mxu1 %v2681_v9  ;;  %6561 = vmatpush2.bf16.msra.mxu0 %v2697_v38  ;;  %v11151_v30 = vld [vmem:[%s12140_s9 + $0x708] ss:$16 sps:$4 sm:$0xff]  }
 0x2f9   : > { %v4574_v6 = vpop.f32.mrf.mxu0  ;;  %9844 = vmatprep.mubr.msk.bf16.mxu0 %vm3173_vm0, %v11143_v14  ;;  %v4368_v7 = vpop.f32.mrf.mxu1  ;;  %7430 = vmatprep.subr.bf16.mxu1 %v11401_v25 }
 0x2fa   : > { %7471 = vmatprep.subr.bf16.mxu0 %v11402_v33  ;;  %v11155_v6 = vld [vmem:[%s12140_s9 + $0x72c] ss:$16 sps:$4 sm:$0xff]   ;;  %v11152_v33 = vld [vmem:[%s12140_s9 + $0x780] ss:$16 sps:$4 sm:$0xff]  }
 0x2fb   : > { %v4575_v26 = vpop.f32.mrf.mxu0  ;;  %5378 = vmatmul.mubr.bf16.gmra.mxu1 %v11140_v5  ;;  %v13775_v11 = vpop.f32.mrf.mxu1 }
 0x2fc   : > { %v13778_v42 = vadd.f32 %v4575_v26, %v13670_v61  ;;  %5385 = vmatprep.mubr.bf16.mxu1 %v11148_v35 }
 0x2fd   : > { %v4577_v51 = vpop.f32.mrf.mxu0  ;;  %v4373_v60 = vpop.f32.mrf.mxu1 }
 0x2ff   : > { %v4580_v45 = vpop.f32.mrf.mxu0  ;;  %5587 = vmatmul.mubr.bf16.gmra.mxu0 %v11145_v34  ;;  %v13782_v59 = vpop.f32.mrf.mxu1 }
 0x300   : > { %v13785_v14 = vadd.f32 %v4580_v45, %v13690_v27  ;;  %9845 = vmatprep.mubr.msk.bf16.mxu0 %vm3173_vm0, %v11149_v36  ;;  %v11160_v36 = vld [vmem:[%s12140_s9 + $0x7a4] ss:$16 sps:$4 sm:$0xff]   ;;  %v11157_v45 = vld [vmem:[%s12140_s9 + $0x728] ss:$16 sps:$4 sm:$0xff]  }
 0x301   : > { %v4582_v61 = vpop.f32.mrf.mxu0  ;;  %v4376_v9 = vpop.f32.mrf.mxu1 }
 0x302   : > { %v11161_v61 = vld [vmem:[%s12140_s9 + $0x74c] ss:$16 sps:$4 sm:$0xff]  }
 0x303   : > { %v4583_v38 = vpop.f32.mrf.mxu0  ;;  %5386 = vmatmul.mubr.bf16.gmra.mxu1 %v11146_v39  ;;  %v13790_v5 = vpop.f32.mrf.mxu1 }
 0x304   : > { %v13793_v35 = vadd.f32 %v4583_v38, %v13705_v3  ;;  %5393 = vmatprep.mubr.bf16.mxu1 %v11154_v17 }
 0x305   : > { %v4585_v27 = vpop.f32.mrf.mxu0  ;;  %v4381_v7 = vpop.f32.mrf.mxu1 }
 0x306   : > { %v11166_v7 = vld [vmem:[%s12140_s9 + $0x7c4] ss:$16 sps:$4 sm:$0xff]  }
 0x307   : > { %v4588_v25 = vpop.f32.mrf.mxu0  ;;  %5595 = vmatmul.mubr.bf16.gmra.mxu0 %v11151_v30  ;;  %v13797_v26 = vpop.f32.mrf.mxu1  ;;  %v11158_v30 = vld [vmem:[%s12140_s9 + $0x7a0] ss:$16 sps:$4 sm:$0xff]  }
 0x308   : > { %v13800_v34 = vadd.f32 %v4588_v25, %v13725_v1  ;;  %9846 = vmatprep.mubr.msk.bf16.mxu0 %vm3173_vm0, %v11155_v6 }
 0x309   : > { %v4590_v3 = vpop.f32.mrf.mxu0  ;;  %v4384_v51 = vpop.f32.mrf.mxu1 }
 0x30a   : > { %17376 = vst [vmem:[#allocation257_spill] sm:$0xff] %v13800_v34 }
 0x30b   : > { %v4591_v60 = vpop.f32.mrf.mxu0  ;;  %5394 = vmatmul.mubr.bf16.gmra.mxu1 %v11152_v33  ;;  %v13805_v39 = vpop.f32.mrf.mxu1 }
 0x30c   : > { %v13808_v17 = vadd.f32 %v4591_v60, %v13742_v44  ;;  %5401 = vmatprep.mubr.bf16.mxu1 %v11160_v36  ;;  %v11163_v36 = vld [vmem:[%s12140_s9 + $0x748] ss:$16 sps:$4 sm:$0xff]   ;;  %v11167_v60 = vld [vmem:[%s12140_s9 + $0x76c] ss:$16 sps:$4 sm:$0xff]  }
 0x30d   : > { %v4593_v1 = vpop.f32.mrf.mxu0  ;;  %v4389_v9 = vpop.f32.mrf.mxu1 }
 0x30e   : > { %17377 = vst [vmem:[#allocation258_spill] sm:$0xff] %v13808_v17 }
 0x30f   : > { %v4596_v38 = vpop.f32.mrf.mxu0  ;;  %5603 = vmatmul.mubr.bf16.gmra.mxu0 %v11157_v45  ;;  %v13812_v6 = vpop.f32.mrf.mxu1 }
 0x310   : > { %v13815_v27 = vadd.f32 %v4596_v38, %v13756_v54  ;;  %9847 = vmatprep.mubr.msk.bf16.mxu0 %vm3173_vm0, %v11161_v61  ;;  %v11164_v61 = vld [vmem:[%s12140_s9 + $0x7c0] ss:$16 sps:$4 sm:$0xff]  }
 0x311   : > { %v4598_v44 = vpop.f32.mrf.mxu0  ;;  %v4392_v25 = vpop.f32.mrf.mxu1 }
 0x312   : > { %17378 = vst [vmem:[#allocation259_spill] sm:$0xff] %v13815_v27  ;;  %v11169_v25 = vld [vmem:[%s12140_s9 + $0x768] ss:$16 sps:$4 sm:$0xff]   ;;  %v11749_v27 = vld [vmem:[%s12140_s9 + $0xac4] ss:$16 sps:$4 sm:$0xff]  }
 0x313   : > { %v4599_v33 = vpop.f32.mrf.mxu0  ;;  %5402 = vmatmul.mubr.bf16.gmra.mxu1 %v11158_v30  ;;  %v13820_v3 = vpop.f32.mrf.mxu1  ;;  %v11172_v30 = vld [vmem:[%s12140_s9 + $0x7e4] ss:$16 sps:$4 sm:$0xff]  }
 0x314   : > { %v13823_v51 = vadd.f32 %v4599_v33, %v13765_v4  ;;  %5409 = vmatprep.mubr.bf16.mxu1 %v11166_v7 }
 0x315   : > { %v4601_v54 = vpop.f32.mrf.mxu0  ;;  %v4397_v45 = vpop.f32.mrf.mxu1 }
 0x316   : > { %17379 = vst [vmem:[#allocation260_spill] sm:$0xff] %v13823_v51  ;;  %v11173_v54 = vld [vmem:[%s12140_s9 + $0x78c] ss:$16 sps:$4 sm:$0xff]  }
 0x317   : > { %v4604_v1 = vpop.f32.mrf.mxu0  ;;  %5611 = vmatmul.mubr.bf16.gmra.mxu0 %v11163_v36  ;;  %v13827_v9 = vpop.f32.mrf.mxu1 }
 0x318   : > { %v13830_v38 = vadd.f32 %v4604_v1, %v13775_v11  ;;  %9848 = vmatprep.mubr.msk.bf16.mxu0 %vm3173_vm0, %v11167_v60  ;;  %v11170_v60 = vld [vmem:[%s12140_s9 + $0x7e0] ss:$16 sps:$4 sm:$0xff]  }
 0x319   : > { %v4606_v4 = vpop.f32.mrf.mxu0  ;;  %v4400_v44 = vpop.f32.mrf.mxu1 }
 0x31a   : > { %17380 = vst [vmem:[#allocation261_spill] sm:$0xff] %v13830_v38 }
 0x31b   : > { %v4607_v7 = vpop.f32.mrf.mxu0  ;;  %5410 = vmatmul.mubr.bf16.gmra.mxu1 %v11164_v61  ;;  %v13835_v33 = vpop.f32.mrf.mxu1  ;;  %v11178_v61 = vld [vmem:[%s12140_s9 + $0x804] ss:$16 sps:$4 sm:$0xff]  }
 0x31c   : > { %v13838_v36 = vadd.f32 %v4607_v7, %v13782_v59  ;;  %5417 = vmatprep.mubr.bf16.mxu1 %v11172_v30 }
 0x31d   : > { %v4609_v11 = vpop.f32.mrf.mxu0  ;;  %v4405_v45 = vpop.f32.mrf.mxu1 }
 0x31e   : > { %17381 = vst [vmem:[#allocation262_spill] sm:$0xff] %v13838_v36  ;;  %v11175_v11 = vld [vmem:[%s12140_s9 + $0x788] ss:$16 sps:$4 sm:$0xff]  }
 0x31f   : > { %v4612_v1 = vpop.f32.mrf.mxu0  ;;  %5619 = vmatmul.mubr.bf16.gmra.mxu0 %v11169_v25  ;;  %v13842_v4 = vpop.f32.mrf.mxu1 }
 0x320   : > { %v13845_v44 = vadd.f32 %v4612_v1, %v13790_v5  ;;  %9849 = vmatprep.mubr.msk.bf16.mxu0 %vm3173_vm0, %v11173_v54  ;;  %v11176_v54 = vld [vmem:[%s12140_s9 + $0x800] ss:$16 sps:$4 sm:$0xff]  }
 0x321   : > { %v4614_v59 = vpop.f32.mrf.mxu0  ;;  %v4408_v7 = vpop.f32.mrf.mxu1 }
 0x322   : > { %17382 = vst [vmem:[#allocation263_spill] sm:$0xff] %v13845_v44 }
 0x323   : > { %v4615_v30 = vpop.f32.mrf.mxu0  ;;  %5418 = vmatmul.mubr.bf16.gmra.mxu1 %v11170_v60  ;;  %v13850_v45 = vpop.f32.mrf.mxu1  ;;  %v11184_v60 = vld [vmem:[%s12140_s9 + $0x824] ss:$16 sps:$4 sm:$0xff]  }
 0x324   : > { %v13853_v25 = vadd.f32 %v4615_v30, %v13797_v26  ;;  %5425 = vmatprep.mubr.bf16.mxu1 %v11178_v61 }
 0x325   : > { %v4617_v5 = vpop.f32.mrf.mxu0  ;;  %v4413_v1 = vpop.f32.mrf.mxu1 }
 0x326   : > { %17383 = vst [vmem:[#allocation264_spill] sm:$0xff] %v13853_v25  ;;  %v11181_v5 = vld [vmem:[%s12140_s9 + $0x7a8] ss:$16 sps:$4 sm:$0xff]  }
 0x327   : > { %v4620_v41 = vpop.f32.mrf.mxu0  ;;  %5627 = vmatmul.mubr.bf16.gmra.mxu0 %v11175_v11  ;;  %v13857_v59 = vpop.f32.mrf.mxu1 }
 0x328   : > { %v13860_v7 = vadd.f32 %v4620_v41, %v13805_v39  ;;  %9850 = vmatprep.mubr.msk.bf16.mxu0 %vm3173_vm0, %v11179_v12  ;;  %v11182_v12 = vld [vmem:[%s12140_s9 + $0x820] ss:$16 sps:$4 sm:$0xff]  }
 0x329   : > { %v4622_v26 = vpop.f32.mrf.mxu0  ;;  %v4416_v30 = vpop.f32.mrf.mxu1 }
 0x32a   : > { %17384 = vst [vmem:[#allocation265_spill] sm:$0xff] %v13860_v7  ;;  %v17558_v7 = vld [vmem:[#allocation177_spill] sm:$0xff] }
 0x32b   : > { %v4623_v61 = vpop.f32.mrf.mxu0  ;;  %5426 = vmatmul.mubr.bf16.gmra.mxu1 %v11176_v54  ;;  %v13865_v1 = vpop.f32.mrf.mxu1  ;;  %v11190_v54 = vld [vmem:[%s12140_s9 + $0x844] ss:$16 sps:$4 sm:$0xff]  }
 0x32c   : > { %v13868_v11 = vadd.f32 %v4623_v61, %v13812_v6  ;;  %5433 = vmatprep.mubr.bf16.mxu1 %v11184_v60 }
 0x32d   : > { %v4625_v41 = vpop.f32.mrf.mxu0  ;;  %v4421_v39 = vpop.f32.mrf.mxu1 }
 0x32e   : > { %17385 = vst [vmem:[#allocation266_spill] sm:$0xff] %v13868_v11  ;;  %v11187_v41 = vld [vmem:[%s12140_s9 + $0x7c8] ss:$16 sps:$4 sm:$0xff]  }
 0x32f   : > { %v4628_v32 = vpop.f32.mrf.mxu0  ;;  %5635 = vmatmul.mubr.bf16.gmra.mxu0 %v11181_v5  ;;  %v13872_v26 = vpop.f32.mrf.mxu1 }
 0x330   : > { %v13875_v30 = vadd.f32 %v4628_v32, %v13820_v3  ;;  %9851 = vmatprep.mubr.msk.bf16.mxu0 %vm3173_vm0, %v11185_v16  ;;  %v11188_v16 = vld [vmem:[%s12140_s9 + $0x840] ss:$16 sps:$4 sm:$0xff]  }
 0x331   : > { %v4630_v6 = vpop.f32.mrf.mxu0  ;;  %v4424_v61 = vpop.f32.mrf.mxu1 }
 0x332   : > { %17386 = vst [vmem:[#allocation267_spill] sm:$0xff] %v13875_v30  ;;  %v17556_v30 = vld [vmem:[#allocation176_spill] sm:$0xff] }
 0x333   : > { %v4631_v60 = vpop.f32.mrf.mxu0  ;;  %5434 = vmatmul.mubr.bf16.gmra.mxu1 %v11182_v12  ;;  %v13880_v39 = vpop.f32.mrf.mxu1  ;;  %v11196_v12 = vld [vmem:[%s12140_s9 + $0x864] ss:$16 sps:$4 sm:$0xff]  }
 0x334   : > { %v13883_v5 = vadd.f32 %v4631_v60, %v13827_v9  ;;  %5441 = vmatprep.mubr.bf16.mxu1 %v11190_v54 }
 0x335   : > { %v4633_v32 = vpop.f32.mrf.mxu0  ;;  %v4429_v3 = vpop.f32.mrf.mxu1 }
 0x336   : > { %17387 = vst [vmem:[#allocation268_spill] sm:$0xff] %v13883_v5  ;;  %v11193_v32 = vld [vmem:[%s12140_s9 + $0x7e8] ss:$16 sps:$4 sm:$0xff]  }
 0x337   : > { %v4636_v20 = vpop.f32.mrf.mxu0  ;;  %5643 = vmatmul.mubr.bf16.gmra.mxu0 %v11187_v41  ;;  %v13887_v6 = vpop.f32.mrf.mxu1 }
 0x338   : > { %v13890_v61 = vadd.f32 %v4636_v20, %v13835_v33  ;;  %9852 = vmatprep.mubr.msk.bf16.mxu0 %vm3173_vm0, %v11191_v50  ;;  %v11194_v50 = vld [vmem:[%s12140_s9 + $0x860] ss:$16 sps:$4 sm:$0xff]  }
 0x339   : > { %v4638_v9 = vpop.f32.mrf.mxu0  ;;  %v4432_v60 = vpop.f32.mrf.mxu1 }
 0x33a   : > { %17388 = vst [vmem:[#allocation269_spill] sm:$0xff] %v13890_v61  ;;  %v17553_v61 = vld [vmem:[#allocation56_spill] sm:$0xff] }
 0x33b   : > { %v4639_v54 = vpop.f32.mrf.mxu0  ;;  %5442 = vmatmul.mubr.bf16.gmra.mxu1 %v11188_v16  ;;  %v13895_v3 = vpop.f32.mrf.mxu1  ;;  %v11202_v16 = vld [vmem:[%s12140_s9 + $0x884] ss:$16 sps:$4 sm:$0xff]  }
 0x33c   : > { %v13898_v41 = vadd.f32 %v4639_v54, %v13842_v4  ;;  %5449 = vmatprep.mubr.bf16.mxu1 %v11196_v12 }
 0x33d   : > { %v4641_v20 = vpop.f32.mrf.mxu0  ;;  %v4437_v33 = vpop.f32.mrf.mxu1 }
 0x33e   : > { %17389 = vst [vmem:[#allocation270_spill] sm:$0xff] %v13898_v41  ;;  %v11199_v20 = vld [vmem:[%s12140_s9 + $0x808] ss:$16 sps:$4 sm:$0xff]   ;;  %v17552_v41 = vld [vmem:[#allocation174_spill] sm:$0xff] }
 0x33f   : > { %v4644_v22 = vpop.f32.mrf.mxu0  ;;  %5651 = vmatmul.mubr.bf16.gmra.mxu0 %v11193_v32  ;;  %v13902_v9 = vpop.f32.mrf.mxu1 }
 0x340   : > { %v13905_v60 = vadd.f32 %v4644_v22, %v13850_v45  ;;  %9853 = vmatprep.mubr.msk.bf16.mxu0 %vm3173_vm0, %v11197_v57  ;;  %v11200_v57 = vld [vmem:[%s12140_s9 + $0x880] ss:$16 sps:$4 sm:$0xff]  }
 0x341   : > { %v4646_v4 = vpop.f32.mrf.mxu0  ;;  %v4440_v54 = vpop.f32.mrf.mxu1 }
 0x342   : > { %17390 = vst [vmem:[#allocation271_spill] sm:$0xff] %v13905_v60 }
 0x343   : > { %v4647_v12 = vpop.f32.mrf.mxu0  ;;  %5450 = vmatmul.mubr.bf16.gmra.mxu1 %v11194_v50  ;;  %v13910_v33 = vpop.f32.mrf.mxu1  ;;  %v11208_v50 = vld [vmem:[%s12140_s9 + $0x8a4] ss:$16 sps:$4 sm:$0xff]  }
 0x344   : > { %v13913_v32 = vadd.f32 %v4647_v12, %v13857_v59  ;;  %5457 = vmatprep.mubr.bf16.mxu1 %v11202_v16 }
 0x345   : > { %v4649_v22 = vpop.f32.mrf.mxu0  ;;  %v4445_v45 = vpop.f32.mrf.mxu1 }
 0x346   : > { %17391 = vst [vmem:[#allocation272_spill] sm:$0xff] %v13913_v32  ;;  %v11205_v22 = vld [vmem:[%s12140_s9 + $0x828] ss:$16 sps:$4 sm:$0xff]  }
 0x347   : > { %v4652_v15 = vpop.f32.mrf.mxu0  ;;  %5659 = vmatmul.mubr.bf16.gmra.mxu0 %v11199_v20  ;;  %v13917_v4 = vpop.f32.mrf.mxu1  ;;  %v17550_v32 = vld [vmem:[#allocation173_spill] sm:$0xff] }
 0x348   : > { %v13920_v54 = vadd.f32 %v4652_v15, %v13865_v1  ;;  %9854 = vmatprep.mubr.msk.bf16.mxu0 %vm3173_vm0, %v11203_v46  ;;  %v11206_v46 = vld [vmem:[%s12140_s9 + $0x8a0] ss:$16 sps:$4 sm:$0xff]  }
 0x349   : > { %v4654_v59 = vpop.f32.mrf.mxu0  ;;  %v4448_v12 = vpop.f32.mrf.mxu1 }
 0x34a   : > { %17392 = vst [vmem:[#allocation273_spill] sm:$0xff] %v13920_v54  ;;  %v17535_v54 = vld [vmem:[#allocation167_spill] sm:$0xff] }
 0x34b   : > { %v4655_v16 = vpop.f32.mrf.mxu0  ;;  %5458 = vmatmul.mubr.bf16.gmra.mxu1 %v11200_v57  ;;  %v13925_v45 = vpop.f32.mrf.mxu1  ;;  %v11214_v57 = vld [vmem:[%s12140_s9 + $0x8c4] ss:$16 sps:$4 sm:$0xff]  }
 0x34c   : > { %v13928_v20 = vadd.f32 %v4655_v16, %v13872_v26  ;;  %5465 = vmatprep.mubr.bf16.mxu1 %v11208_v50 }
 0x34d   : > { %v4657_v15 = vpop.f32.mrf.mxu0  ;;  %v4453_v1 = vpop.f32.mrf.mxu1 }
 0x34e   : > { %17393 = vst [vmem:[#allocation274_spill] sm:$0xff] %v13928_v20  ;;  %v11211_v15 = vld [vmem:[%s12140_s9 + $0x848] ss:$16 sps:$4 sm:$0xff]  }
 0x34f   : > { %v4660_v48 = vpop.f32.mrf.mxu0  ;;  %5667 = vmatmul.mubr.bf16.gmra.mxu0 %v11205_v22  ;;  %v13932_v59 = vpop.f32.mrf.mxu1 }
 0x350   : > { %v13935_v12 = vadd.f32 %v4660_v48, %v13880_v39  ;;  %9855 = vmatprep.mubr.msk.bf16.mxu0 %vm3173_vm0, %v11209_v18  ;;  %v11212_v18 = vld [vmem:[%s12140_s9 + $0x8c0] ss:$16 sps:$4 sm:$0xff]  }
 0x351   : > { %v4662_v26 = vpop.f32.mrf.mxu0  ;;  %v4456_v16 = vpop.f32.mrf.mxu1 }
 0x352   : > { %17394 = vst [vmem:[#allocation275_spill] sm:$0xff] %v13935_v12  ;;  %v11723_v12 = vld [vmem:[%s12140_s9 + $0x9a0] ss:$16 sps:$4 sm:$0xff]  }
 0x353   : > { %v4663_v50 = vpop.f32.mrf.mxu0  ;;  %5466 = vmatmul.mubr.bf16.gmra.mxu1 %v11206_v46  ;;  %v13940_v1 = vpop.f32.mrf.mxu1  ;;  %v11220_v46 = vld [vmem:[%s12140_s9 + $0x8e4] ss:$16 sps:$4 sm:$0xff]  }
 0x354   : > { %v13943_v22 = vadd.f32 %v4663_v50, %v13887_v6  ;;  %5473 = vmatprep.mubr.bf16.mxu1 %v11214_v57 }
 0x355   : > { %v4665_v48 = vpop.f32.mrf.mxu0  ;;  %v4461_v39 = vpop.f32.mrf.mxu1 }
 0x356   : > { %17395 = vst [vmem:[#allocation276_spill] sm:$0xff] %v13943_v22  ;;  %v11217_v48 = vld [vmem:[%s12140_s9 + $0x868] ss:$16 sps:$4 sm:$0xff]  }
 0x357   : > { %v4668_v13 = vpop.f32.mrf.mxu0  ;;  %5675 = vmatmul.mubr.bf16.gmra.mxu0 %v11211_v15  ;;  %v13947_v26 = vpop.f32.mrf.mxu1 }
 0x358   : > { %v13950_v16 = vadd.f32 %v4668_v13, %v13895_v3  ;;  %9856 = vmatprep.mubr.msk.bf16.mxu0 %vm3173_vm0, %v11215_v49  ;;  %v11218_v49 = vld [vmem:[%s12140_s9 + $0x8e0] ss:$16 sps:$4 sm:$0xff]  }
 0x359   : > { %v4670_v6 = vpop.f32.mrf.mxu0  ;;  %v4464_v50 = vpop.f32.mrf.mxu1 }
 0x35a   : > { %17396 = vst [vmem:[#allocation277_spill] sm:$0xff] %v13950_v16  ;;  %v17526_v16 = vld [vmem:[#allocation162_spill] sm:$0xff] }
 0x35b   : > { %v4671_v57 = vpop.f32.mrf.mxu0  ;;  %5474 = vmatmul.mubr.bf16.gmra.mxu1 %v11212_v18  ;;  %v13955_v39 = vpop.f32.mrf.mxu1  ;;  %v11226_v18 = vld [vmem:[%s12140_s9 + $0x904] ss:$16 sps:$4 sm:$0xff]  }
 0x35c   : > { %v13958_v15 = vadd.f32 %v4671_v57, %v13902_v9  ;;  %5481 = vmatprep.mubr.bf16.mxu1 %v11220_v46 }
 0x35d   : > { %v4673_v13 = vpop.f32.mrf.mxu0  ;;  %v4469_v3 = vpop.f32.mrf.mxu1 }
 0x35e   : > { %17397 = vst [vmem:[#allocation278_spill] sm:$0xff] %v13958_v15  ;;  %v11223_v13 = vld [vmem:[%s12140_s9 + $0x888] ss:$16 sps:$4 sm:$0xff]  }
 0x35f   : > { %v4676_v21 = vpop.f32.mrf.mxu0  ;;  %5683 = vmatmul.mubr.bf16.gmra.mxu0 %v11217_v48  ;;  %v13962_v6 = vpop.f32.mrf.mxu1 }
 0x360   : > { %v13965_v50 = vadd.f32 %v4676_v21, %v13910_v33  ;;  %9857 = vmatprep.mubr.msk.bf16.mxu0 %vm3173_vm0, %v11221_v58  ;;  %v11224_v58 = vld [vmem:[%s12140_s9 + $0x900] ss:$16 sps:$4 sm:$0xff]  }
 0x361   : > { %v4678_v9 = vpop.f32.mrf.mxu0  ;;  %v4472_v57 = vpop.f32.mrf.mxu1 }
 0x362   : > { %17398 = vst [vmem:[#allocation279_spill] sm:$0xff] %v13965_v50  ;;  %v11385_v50 = vld [vmem:[%s12140_s9 + $0xbe8] ss:$16 sps:$4 sm:$0xff]  }
 0x363   : > { %v4679_v46 = vpop.f32.mrf.mxu0  ;;  %5482 = vmatmul.mubr.bf16.gmra.mxu1 %v11218_v49  ;;  %v13970_v3 = vpop.f32.mrf.mxu1  ;;  %v11232_v49 = vld [vmem:[%s12140_s9 + $0x924] ss:$16 sps:$4 sm:$0xff]  }
 0x364   : > { %v13973_v48 = vadd.f32 %v4679_v46, %v13917_v4  ;;  %5489 = vmatprep.mubr.bf16.mxu1 %v11226_v18 }
 0x365   : > { %v4681_v21 = vpop.f32.mrf.mxu0  ;;  %v4477_v33 = vpop.f32.mrf.mxu1 }
 0x366   : > { %17399 = vst [vmem:[#allocation280_spill] sm:$0xff] %v13973_v48  ;;  %v11229_v21 = vld [vmem:[%s12140_s9 + $0x8a8] ss:$16 sps:$4 sm:$0xff]  }
 0x367   : > { %v4684_v62 = vpop.f32.mrf.mxu0  ;;  %5691 = vmatmul.mubr.bf16.gmra.mxu0 %v11223_v13  ;;  %v13977_v9 = vpop.f32.mrf.mxu1 }
 0x368   : > { %v13980_v57 = vadd.f32 %v4684_v62, %v13925_v45  ;;  %9858 = vmatprep.mubr.msk.bf16.mxu0 %vm3173_vm0, %v11227_v29  ;;  %v11230_v29 = vld [vmem:[%s12140_s9 + $0x920] ss:$16 sps:$4 sm:$0xff]  }
 0x369   : > { %v4686_v4 = vpop.f32.mrf.mxu0  ;;  %v4480_v46 = vpop.f32.mrf.mxu1 }
 0x36a   : > { %17400 = vst [vmem:[#allocation281_spill] sm:$0xff] %v13980_v57 }
 0x36b   : > { %v4687_v18 = vpop.f32.mrf.mxu0  ;;  %5490 = vmatmul.mubr.bf16.gmra.mxu1 %v11224_v58  ;;  %v13985_v33 = vpop.f32.mrf.mxu1  ;;  %v11238_v58 = vld [vmem:[%s12140_s9 + $0x944] ss:$16 sps:$4 sm:$0xff]  }
 0x36c   : > { %v13988_v13 = vadd.f32 %v4687_v18, %v13932_v59  ;;  %5497 = vmatprep.mubr.bf16.mxu1 %v11232_v49 }
 0x36d   : > { %v4689_v62 = vpop.f32.mrf.mxu0  ;;  %v4485_v45 = vpop.f32.mrf.mxu1 }
 0x36e   : > { %17401 = vst [vmem:[#allocation282_spill] sm:$0xff] %v13988_v13  ;;  %v11235_v62 = vld [vmem:[%s12140_s9 + $0x8c8] ss:$16 sps:$4 sm:$0xff]   ;;  %v11239_v13 = vld [vmem:[%s12140_s9 + $0x8ec] ss:$16 sps:$4 sm:$0xff]  }
 0x36f   : > { %v4692_v40 = vpop.f32.mrf.mxu0  ;;  %5699 = vmatmul.mubr.bf16.gmra.mxu0 %v11229_v21  ;;  %v13992_v4 = vpop.f32.mrf.mxu1 }
 0x370   : > { %v13995_v46 = vadd.f32 %v4692_v40, %v13940_v1  ;;  %9859 = vmatprep.mubr.msk.bf16.mxu0 %vm3173_vm0, %v11233_v10  ;;  %v11236_v10 = vld [vmem:[%s12140_s9 + $0x940] ss:$16 sps:$4 sm:$0xff]  }
 0x371   : > { %v4694_v59 = vpop.f32.mrf.mxu0  ;;  %v4488_v18 = vpop.f32.mrf.mxu1 }
 0x372   : > { %17402 = vst [vmem:[#allocation283_spill] sm:$0xff] %v13995_v46 }
 0x373   : > { %v4695_v49 = vpop.f32.mrf.mxu0  ;;  %5498 = vmatmul.mubr.bf16.gmra.mxu1 %v11230_v29  ;;  %v14000_v45 = vpop.f32.mrf.mxu1  ;;  %v11244_v29 = vld [vmem:[%s12140_s9 + $0x964] ss:$16 sps:$4 sm:$0xff]  }
 0x374   : > { %v14003_v21 = vadd.f32 %v4695_v49, %v13947_v26  ;;  %5505 = vmatprep.mubr.bf16.mxu1 %v11238_v58 }
 0x375   : > { %v4697_v40 = vpop.f32.mrf.mxu0  ;;  %v4493_v1 = vpop.f32.mrf.mxu1 }
 0x376   : > { %17403 = vst [vmem:[#allocation284_spill] sm:$0xff] %v14003_v21  ;;  %v11241_v40 = vld [vmem:[%s12140_s9 + $0x8e8] ss:$16 sps:$4 sm:$0xff]   ;;  %v11245_v21 = vld [vmem:[%s12140_s9 + $0x90c] ss:$16 sps:$4 sm:$0xff]  }
 0x377   : > { %v4700_v46 = vpop.f32.mrf.mxu0  ;;  %5707 = vmatmul.mubr.bf16.gmra.mxu0 %v11235_v62  ;;  %v14007_v59 = vpop.f32.mrf.mxu1 }
 0x378   : > { %v14010_v18 = vadd.f32 %v4700_v46, %v13955_v39  ;;  %9860 = vmatprep.mubr.msk.bf16.mxu0 %vm3173_vm0, %v11239_v13  ;;  %v11242_v13 = vld [vmem:[%s12140_s9 + $0x960] ss:$16 sps:$4 sm:$0xff]  }
 0x379   : > { %v4702_v26 = vpop.f32.mrf.mxu0  ;;  %v4496_v49 = vpop.f32.mrf.mxu1 }
 0x37a   : > { %17404 = vst [vmem:[#allocation285_spill] sm:$0xff] %v14010_v18 }
 0x37b   : > { %v4703_v58 = vpop.f32.mrf.mxu0  ;;  %5506 = vmatmul.mubr.bf16.gmra.mxu1 %v11236_v10  ;;  %v14015_v1 = vpop.f32.mrf.mxu1 }
 0x37c   : > { %v14018_v62 = vadd.f32 %v4703_v58, %v13962_v6  ;;  %6329 = vmatprep.mubr.bf16.mxu1 %v11244_v29  ;;  %v11250_v6 = vld [vmem:[%s12140_s9 + $0x984] ss:$16 sps:$4 sm:$0xff]  }
 0x37d   : > { %v4705_v39 = vpop.f32.mrf.mxu0  ;;  %v5317_v46 = vpop.f32.mrf.mxu1 }
 0x37e   : > { %17405 = vst [vmem:[#allocation286_spill] sm:$0xff] %v14018_v62  ;;  %v11247_v39 = vld [vmem:[%s12140_s9 + $0x908] ss:$16 sps:$4 sm:$0xff]  }
 0x37f   : > { %v4708_v18 = vpop.f32.mrf.mxu0  ;;  %5715 = vmatmul.mubr.bf16.gmra.mxu0 %v11241_v40  ;;  %v14022_v26 = vpop.f32.mrf.mxu1 }
 0x380   : > { %v14025_v10 = vadd.f32 %v4708_v18, %v13970_v3  ;;  %9861 = vmatprep.mubr.msk.bf16.mxu0 %vm3173_vm0, %v11245_v21  ;;  %v11251_v3 = vld [vmem:[%s12140_s9 + $0x92c] ss:$16 sps:$4 sm:$0xff]   ;;  %v11403_v18 = vld [vmem:[%s12140_s9 + $0xe0] ss:$16 sps:$4 sm:$0xff]  }
 0x381   : > { %v4710_v49 = vpop.f32.mrf.mxu0  ;;  %v5320_v58 = vpop.f32.mrf.mxu1 }
 0x382   : > { %17406 = vst [vmem:[#allocation287_spill] sm:$0xff] %v14025_v10  ;;  %v11404_v49 = vld [vmem:[%s12140_s9 + $0xc4] ss:$16 sps:$4 sm:$0xff]  }
 0x383   : > { %v4711_v29 = vpop.f32.mrf.mxu0  ;;  %6330 = vmatmul.mubr.bf16.vlgmr.msra.gmra.mxu1 %v11242_v13  ;;  %v14030_v46 = vpop.f32.mrf.mxu1  ;;  %v11248_v13 = vld [vmem:[%s12140_s9 + $0x980] ss:$16 sps:$4 sm:$0xff]  }
 0x384   : > { %v14033_v40 = vadd.f32 %v4711_v29, %v13977_v9  ;;  %6337 = vmatprep.mubr.bf16.mxu1 %v11250_v6  ;;  %7431 = vmatpush1.bf16.msra.mxu1 %v11403_v18  ;;  %v11256_v6 = vld [vmem:[%s12140_s9 + $0x9a4] ss:$16 sps:$4 sm:$0xff]   ;;  %v11405_v29 = vld [vmem:[%s12140_s9 + $0xc0] ss:$16 sps:$4 sm:$0xff]  }
 0x385   : > { %v4713_v21 = vpop.f32.mrf.mxu0  ;;  %v5325_v10 = vpop.f32.mrf.mxu1  ;;  %7432 = vmatprep.subr.bf16.mxu1 %v11404_v49  ;;  %v11253_v49 = vld [vmem:[%s12140_s9 + $0x928] ss:$16 sps:$4 sm:$0xff]  }
 0x386   : > { %17407 = vst [vmem:[#allocation288_spill] sm:$0xff] %v14033_v40  ;;  %v11406_v21 = vld [vmem:[%s12140_s9 + $0xa4] ss:$16 sps:$4 sm:$0xff]  }
 0x387   : > { %v4716_v58 = vpop.f32.mrf.mxu0  ;;  %5723 = vmatmul.mubr.bf16.gmra.mxu0 %v11247_v39  ;;  %v14039_v62 = vpop.f32.mrf.mxu1 }
 0x388   : > { %v14042_v9 = vadd.f32 %v4716_v58, %v13985_v33  ;;  %9862 = vmatprep.mubr.msk.bf16.mxu0 %vm3173_vm0, %v11251_v3  ;;  %7433 = vmatpush1.bf16.msra.mxu1 %v11405_v29  ;;  %v11257_v3 = vld [vmem:[%s12140_s9 + $0x94c] ss:$16 sps:$4 sm:$0xff]   ;;  %v11407_v58 = vld [vmem:[%s12140_s9 + $0xa0] ss:$16 sps:$4 sm:$0xff]  }
 0x389   : > { %v4718_v10 = vpop.f32.mrf.mxu0  ;;  %v5328_v18 = vpop.f32.mrf.mxu1  ;;  %7434 = vmatprep.subr.bf16.mxu1 %v11406_v21 }
 0x38a   : > { %17408 = vst [vmem:[#allocation289_spill] sm:$0xff] %v14042_v9  ;;  %v11408_v18 = vld [vmem:[%s12140_s9 + $0x84] ss:$16 sps:$4 sm:$0xff]  }
 0x38b   : > { %v4719_v39 = vpop.f32.mrf.mxu0  ;;  %6338 = vmatmul.mubr.bf16.gmra.mxu1 %v11248_v13  ;;  %v14049_v40 = vpop.f32.mrf.mxu1  ;;  %v11254_v13 = vld [vmem:[%s12140_s9 + $0x9a0] ss:$16 sps:$4 sm:$0xff]  }
 0x38c   : > { %v14052_v33 = vadd.f32 %v4719_v39, %v13992_v4  ;;  %6345 = vmatprep.mubr.bf16.mxu1 %v11256_v6  ;;  %7435 = vmatpush1.bf16.msra.mxu1 %v11407_v58  ;;  %v11262_v6 = vld [vmem:[%s12140_s9 + $0x9c4] ss:$16 sps:$4 sm:$0xff]   ;;  %v11409_v39 = vld [vmem:[%s12140_s9 + $0x80] ss:$16 sps:$4 sm:$0xff]  }
 0x38d   : > { %v4721_v29 = vpop.f32.mrf.mxu0  ;;  %v5333_v10 = vpop.f32.mrf.mxu1  ;;  %7436 = vmatprep.subr.bf16.mxu1 %v11408_v18  ;;  %v11259_v18 = vld [vmem:[%s12140_s9 + $0x948] ss:$16 sps:$4 sm:$0xff]  }
 0x38e   : > { %17409 = vst [vmem:[#allocation290_spill] sm:$0xff] %v14052_v33  ;;  %v11410_v10 = vld [vmem:[%s12140_s9 + $0x64] ss:$16 sps:$4 sm:$0xff]  }
 0x38f   : > { %v4724_v21 = vpop.f32.mrf.mxu0  ;;  %5731 = vmatmul.mubr.bf16.gmra.mxu0 %v11253_v49  ;;  %v14058_v9 = vpop.f32.mrf.mxu1 }
 0x390   : > { %v14061_v4 = vadd.f32 %v4724_v21, %v14000_v45  ;;  %9863 = vmatprep.mubr.msk.bf16.mxu0 %vm3173_vm0, %v11257_v3  ;;  %7437 = vmatpush1.bf16.msra.mxu1 %v11409_v39  ;;  %v11265_v3 = vld [vmem:[%s12140_s9 + $0x96c] ss:$16 sps:$4 sm:$0xff]   ;;  %v11411_v21 = vld [vmem:[%s12140_s9 + $0x60] ss:$16 sps:$4 sm:$0xff]  }
 0x391   : > { %v4726_v58 = vpop.f32.mrf.mxu0  ;;  %v5336_v29 = vpop.f32.mrf.mxu1  ;;  %7438 = vmatprep.subr.bf16.mxu1 %v11410_v10 }
 0x392   : > { %17410 = vst [vmem:[#allocation291_spill] sm:$0xff] %v14061_v4  ;;  %v11412_v29 = vld [vmem:[%s12140_s9 + $0x44] ss:$16 sps:$4 sm:$0xff]  }
 0x393   : > { %v4727_v49 = vpop.f32.mrf.mxu0  ;;  %6346 = vmatmul.mubr.bf16.gmra.mxu1 %v11254_v13  ;;  %v14068_v33 = vpop.f32.mrf.mxu1  ;;  %v11260_v13 = vld [vmem:[%s12140_s9 + $0x9c0] ss:$16 sps:$4 sm:$0xff]  }
 0x394   : > { %v14071_v45 = vadd.f32 %v4727_v49, %v14007_v59  ;;  %6353 = vmatprep.mubr.bf16.mxu1 %v11262_v6  ;;  %7439 = vmatpush1.bf16.msra.mxu1 %v11411_v21  ;;  %v11268_v6 = vld [vmem:[%s12140_s9 + $0x9e4] ss:$16 sps:$4 sm:$0xff]   ;;  %v11413_v49 = vld [vmem:[%s12140_s9 + $0x40] ss:$16 sps:$4 sm:$0xff]  }
 0x395   : > { %v4729_v39 = vpop.f32.mrf.mxu0  ;;  %v5341_v58 = vpop.f32.mrf.mxu1  ;;  %7440 = vmatprep.subr.bf16.mxu1 %v11412_v29  ;;  %v11263_v29 = vld [vmem:[%s12140_s9 + $0x968] ss:$16 sps:$4 sm:$0xff]  }
 0x396   : > { %17411 = vst [vmem:[#allocation292_spill] sm:$0xff] %v14071_v45  ;;  %v11414_v58 = vld [vmem:[%s12140_s9 + $0x24] ss:$16 sps:$4 sm:$0xff]  }
 0x397   : > { %v5548_v10 = vpop.f32.mrf.mxu0  ;;  %5739 = vmatmul.mubr.bf16.gmra.mxu0 %v11259_v18  ;;  %v14077_v4 = vpop.f32.mrf.mxu1 }
 0x398   : > { %v14080_v59 = vadd.f32 %v5548_v10, %v14015_v1  ;;  %9964 = vmatprep.mubr.msk.bf16.mxu0 %vm3173_vm0, %v11265_v3  ;;  %7441 = vmatpush1.bf16.msra.mxu1 %v11413_v49  ;;  %v11269_v3 = vld [vmem:[%s12140_s9 + $0x98c] ss:$16 sps:$4 sm:$0xff]   ;;  %v11415_v10 = vld [vmem:[%s12140_s9 + $0x20] ss:$16 sps:$4 sm:$0xff]  }
 0x399   : > { %v5550_v21 = vpop.f32.mrf.mxu0  ;;  %v5344_v39 = vpop.f32.mrf.mxu1  ;;  %7442 = vmatprep.subr.bf16.mxu1 %v11414_v58  ;;  %v11266_v58 = vld [vmem:[%s12140_s9 + $0x9e0] ss:$16 sps:$4 sm:$0xff]  }
 0x39a   : > { %17412 = vst [vmem:[#allocation293_spill] sm:$0xff] %v14080_v59  ;;  %v11416_v39 = vld [vmem:[%s12140_s9 + $0x4] ss:$16 sps:$4 sm:$0xff]  }
 0x39b   : > { %v5551_v18 = vpop.f32.mrf.mxu0  ;;  %6354 = vmatmul.mubr.bf16.gmra.mxu1 %v11260_v13  ;;  %v14087_v45 = vpop.f32.mrf.mxu1 }
 0x39c   : > { %v14090_v1 = vadd.f32 %v5551_v18, %v14022_v26  ;;  %6361 = vmatprep.mubr.bf16.mxu1 %v11268_v6  ;;  %7443 = vmatpush1.bf16.msra.mxu1 %v11415_v10  ;;  %v11274_v6 = vld [vmem:[%s12140_s9 + $0xa04] ss:$16 sps:$4 sm:$0xff]   ;;  %v11417_v18 = vld [vmem:[%s12140_s9 + $0x2e0] ss:$16 sps:$4 sm:$0xff]  }
 0x39d   : > { %v5553_v49 = vpop.f32.mrf.mxu0  ;;  %v5349_v21 = vpop.f32.mrf.mxu1  ;;  %7444 = vmatprep.subr.bf16.mxu1 %v11416_v39  ;;  %v11420_v39 = vld [vmem:[%s12140_s9 + $0x1e4] ss:$16 sps:$4 sm:$0xff]  }
 0x39e   : > { %17413 = vst [vmem:[#allocation294_spill] sm:$0xff] %v14090_v1  ;;  %v11418_v21 = vld [vmem:[%s12140_s9 + $0x2c4] ss:$16 sps:$4 sm:$0xff]  }
 0x39f   : > { %v5556_v13 = vpop.f32.mrf.mxu0  ;;  %6563 = vmatmul.mubr.bf16.vlgmr.msra.gmra.mxu0 %v11263_v29  ;;  %v14096_v59 = vpop.f32.mrf.mxu1  ;;  %v11419_v29 = vld [vmem:[%s12140_s9] ss:$16 sps:$4 sm:$0xff]  }
 0x3a0   : > { %v14099_v26 = vadd.f32 %v5556_v13, %v14030_v46  ;;  %9965 = vmatprep.mubr.msk.bf16.mxu0 %vm3173_vm0, %v11269_v3  ;;  %7472 = vmatpush1.bf16.msra.mxu0 %v11417_v18  ;;  %v11271_v13 = vld [vmem:[%s12140_s9 + $0x988] ss:$16 sps:$4 sm:$0xff]  }
 0x3a1   : > { %v5558_v10 = vpop.f32.mrf.mxu0  ;;  %v5352_v49 = vpop.f32.mrf.mxu1  ;;  %7473 = vmatprep.subr.bf16.mxu0 %v11418_v21  ;;  %7445 = vmatpush1.bf16.msra.mxu1 %v11419_v29 }
 0x3a2   : > { %17414 = vst [vmem:[#allocation295_spill] sm:$0xff] %v14099_v26  ;;  %7446 = vmatprep.subr.bf16.mxu1 %v11420_v39  ;;  %v11275_v10 = vld [vmem:[%s12140_s9 + $0x9ac] ss:$16 sps:$4 sm:$0xff]   ;;  %v11421_v49 = vld [vmem:[%s12140_s9 + $0x2c0] ss:$16 sps:$4 sm:$0xff]  }
 0x3a3   : > { %v5559_v46 = vpop.f32.mrf.mxu0  ;;  %6362 = vmatmul.mubr.bf16.gmra.mxu1 %v11266_v58  ;;  %v14108_v3 = vpop.f32.mrf.mxu1  ;;  %v11422_v26 = vld [vmem:[%s12140_s9 + $0x2a4] ss:$16 sps:$4 sm:$0xff]   ;;  %v11423_v39 = vld [vmem:[%s12140_s9 + $0x1e0] ss:$16 sps:$4 sm:$0xff]  }
 0x3a4   : > { %v14111_v18 = vadd.f32 %v5559_v46, %v14039_v62  ;;  %6369 = vmatprep.mubr.bf16.mxu1 %v11274_v6  ;;  %7474 = vmatpush1.bf16.msra.mxu0 %v11421_v49  ;;  %v11424_v58 = vld [vmem:[%s12140_s9 + $0x1c4] ss:$16 sps:$4 sm:$0xff]   ;;  %v11272_v62 = vld [vmem:[%s12140_s9 + $0xa00] ss:$16 sps:$4 sm:$0xff]  }
 0x3a5   : > { %v5561_v21 = vpop.f32.mrf.mxu0  ;;  %v5357_v29 = vpop.f32.mrf.mxu1  ;;  %7475 = vmatprep.subr.bf16.mxu0 %v11422_v26  ;;  %7447 = vmatpush2.bf16.msra.mxu1 %v11423_v39  ;;  %v11280_v49 = vld [vmem:[%s12140_s9 + $0xa24] ss:$16 sps:$4 sm:$0xff]   ;;  %v11425_v26 = vld [vmem:[%s12140_s9 + $0x2a0] ss:$16 sps:$4 sm:$0xff]  }
 0x3a6   : > { %17415 = vst [vmem:[#allocation296_spill] sm:$0xff] %v14111_v18  ;;  %7448 = vmatprep.subr.bf16.mxu1 %v11424_v58  ;;  %v11426_v39 = vld [vmem:[%s12140_s9 + $0x284] ss:$16 sps:$4 sm:$0xff]  }
 0x3a7   : > { %v5564_v1 = vpop.f32.mrf.mxu0  ;;  %6571 = vmatmul.mubr.bf16.gmra.mxu0 %v11271_v13  ;;  %v14119_v6 = vpop.f32.mrf.mxu1  ;;  %v11427_v13 = vld [vmem:[%s12140_s9 + $0x1c0] ss:$16 sps:$4 sm:$0xff]   ;;  %v11428_v58 = vld [vmem:[%s12140_s9 + $0x1a4] ss:$16 sps:$4 sm:$0xff]  }
 0x3a8   : > { %v14122_v46 = vadd.f32 %v5564_v1, %v14049_v40  ;;  %9966 = vmatprep.mubr.msk.bf16.mxu0 %vm3173_vm0, %v11275_v10  ;;  %7476 = vmatpush1.bf16.msra.mxu0 %v11425_v26  ;;  %v11277_v1 = vld [vmem:[%s12140_s9 + $0x9a8] ss:$16 sps:$4 sm:$0xff]  }
 0x3a9   : > { %v5566_v21 = vpop.f32.mrf.mxu0  ;;  %v5360_v29 = vpop.f32.mrf.mxu1  ;;  %7477 = vmatprep.subr.bf16.mxu0 %v11426_v39  ;;  %7449 = vmatpush2.bf16.msra.mxu1 %v11427_v13 }
 0x3aa   : > { %17416 = vst [vmem:[#allocation297_spill] sm:$0xff] %v14122_v46  ;;  %7450 = vmatprep.subr.bf16.mxu1 %v11428_v58  ;;  %v11281_v21 = vld [vmem:[%s12140_s9 + $0x9cc] ss:$16 sps:$4 sm:$0xff]   ;;  %v11429_v29 = vld [vmem:[%s12140_s9 + $0x280] ss:$16 sps:$4 sm:$0xff]  }
 0x3ab   : > { %v5567_v40 = vpop.f32.mrf.mxu0  ;;  %6370 = vmatmul.mubr.bf16.gmra.mxu1 %v11272_v62  ;;  %v14131_v10 = vpop.f32.mrf.mxu1  ;;  %v11430_v46 = vld [vmem:[%s12140_s9 + $0x1a0] ss:$16 sps:$4 sm:$0xff]   ;;  %v11431_v58 = vld [vmem:[%s12140_s9 + $0x264] ss:$16 sps:$4 sm:$0xff]  }
 0x3ac   : > { %v14134_v26 = vadd.f32 %v5567_v40, %v14058_v9  ;;  %6377 = vmatprep.mubr.bf16.mxu1 %v11280_v49  ;;  %7478 = vmatpush1.bf16.msra.mxu0 %v11429_v29  ;;  %v11432_v62 = vld [vmem:[%s12140_s9 + $0x184] ss:$16 sps:$4 sm:$0xff]   ;;  %v11278_v9 = vld [vmem:[%s12140_s9 + $0xa20] ss:$16 sps:$4 sm:$0xff]  }
 0x3ad   : > { %v5569_v39 = vpop.f32.mrf.mxu0  ;;  %v5365_v13 = vpop.f32.mrf.mxu1  ;;  %7451 = vmatpush2.bf16.msra.mxu1 %v11430_v46  ;;  %7479 = vmatprep.subr.bf16.mxu0 %v11431_v58  ;;  %v11286_v29 = vld [vmem:[%s12140_s9 + $0xa44] ss:$16 sps:$4 sm:$0xff]   ;;  %v11433_v46 = vld [vmem:[%s12140_s9 + $0x260] ss:$16 sps:$4 sm:$0xff]  }
 0x3ae   : > { %17417 = vst [vmem:[#allocation298_spill] sm:$0xff] %v14134_v26  ;;  %7452 = vmatprep.subr.bf16.mxu1 %v11432_v62  ;;  %v11434_v58 = vld [vmem:[%s12140_s9 + $0x180] ss:$16 sps:$4 sm:$0xff]   ;;  %v11436_v62 = vld [vmem:[%s12140_s9 + $0x164] ss:$16 sps:$4 sm:$0xff]  }
 0x3af   : > { %v5572_v18 = vpop.f32.mrf.mxu0  ;;  %6579 = vmatmul.mubr.bf16.gmra.mxu0 %v11277_v1  ;;  %v14142_v49 = vpop.f32.mrf.mxu1  ;;  %v11435_v1 = vld [vmem:[%s12140_s9 + $0x244] ss:$16 sps:$4 sm:$0xff]  }
 0x3b0   : > { %v14145_v40 = vadd.f32 %v5572_v18, %v14068_v33  ;;  %9967 = vmatprep.mubr.msk.bf16.mxu0 %vm3173_vm0, %v11281_v21  ;;  %7480 = vmatpush1.bf16.msra.mxu0 %v11433_v46  ;;  %v11283_v18 = vld [vmem:[%s12140_s9 + $0x9c8] ss:$16 sps:$4 sm:$0xff]  }
 0x3b1   : > { %v5574_v39 = vpop.f32.mrf.mxu0  ;;  %v5368_v13 = vpop.f32.mrf.mxu1  ;;  %7453 = vmatpush2.bf16.msra.mxu1 %v11434_v58  ;;  %7481 = vmatprep.subr.bf16.mxu0 %v11435_v1 }
 0x3b2   : > { %17418 = vst [vmem:[#allocation299_spill] sm:$0xff] %v14145_v40  ;;  %7454 = vmatprep.subr.bf16.mxu1 %v11436_v62  ;;  %v11287_v39 = vld [vmem:[%s12140_s9 + $0x9ec] ss:$16 sps:$4 sm:$0xff]   ;;  %v11437_v13 = vld [vmem:[%s12140_s9 + $0x240] ss:$16 sps:$4 sm:$0xff]  }
 0x3b3   : > { %v5575_v33 = vpop.f32.mrf.mxu0  ;;  %6378 = vmatmul.mubr.bf16.gmra.mxu1 %v11278_v9  ;;  %v14154_v21 = vpop.f32.mrf.mxu1  ;;  %v11438_v40 = vld [vmem:[%s12140_s9 + $0x160] ss:$16 sps:$4 sm:$0xff]   ;;  %v11439_v62 = vld [vmem:[%s12140_s9 + $0x224] ss:$16 sps:$4 sm:$0xff]  }
 0x3b4   : > { %v14157_v46 = vadd.f32 %v5575_v33, %v14077_v4  ;;  %6385 = vmatprep.mubr.bf16.mxu1 %v11286_v29  ;;  %7482 = vmatpush1.bf16.msra.mxu0 %v11437_v13  ;;  %v11440_v9 = vld [vmem:[%s12140_s9 + $0x144] ss:$16 sps:$4 sm:$0xff]   ;;  %v11284_v4 = vld [vmem:[%s12140_s9 + $0xa40] ss:$16 sps:$4 sm:$0xff]  }
 0x3b5   : > { %v5577_v58 = vpop.f32.mrf.mxu0  ;;  %v5373_v1 = vpop.f32.mrf.mxu1  ;;  %7455 = vmatpush2.bf16.msra.mxu1 %v11438_v40  ;;  %7483 = vmatprep.subr.bf16.mxu0 %v11439_v62  ;;  %v11292_v13 = vld [vmem:[%s12140_s9 + $0xa64] ss:$16 sps:$4 sm:$0xff]   ;;  %v11441_v40 = vld [vmem:[%s12140_s9 + $0x220] ss:$16 sps:$4 sm:$0xff]  }
 0x3b6   : > { %17419 = vst [vmem:[#allocation300_spill] sm:$0xff] %v14157_v46  ;;  %7456 = vmatprep.subr.bf16.mxu1 %v11440_v9  ;;  %v11442_v62 = vld [vmem:[%s12140_s9 + $0x140] ss:$16 sps:$4 sm:$0xff]   ;;  %v11444_v9 = vld [vmem:[%s12140_s9 + $0x124] ss:$16 sps:$4 sm:$0xff]  }
 0x3b7   : > { %v5580_v26 = vpop.f32.mrf.mxu0  ;;  %6587 = vmatmul.mubr.bf16.gmra.mxu0 %v11283_v18  ;;  %v14165_v29 = vpop.f32.mrf.mxu1  ;;  %v11443_v18 = vld [vmem:[%s12140_s9 + $0x204] ss:$16 sps:$4 sm:$0xff]  }
 0x3b8   : > { %v14168_v33 = vadd.f32 %v5580_v26, %v14087_v45  ;;  %9968 = vmatprep.mubr.msk.bf16.mxu0 %vm3173_vm0, %v11287_v39  ;;  %7484 = vmatpush1.bf16.msra.mxu0 %v11441_v40  ;;  %v11289_v26 = vld [vmem:[%s12140_s9 + $0x9e8] ss:$16 sps:$4 sm:$0xff]  }
 0x3b9   : > { %v5582_v58 = vpop.f32.mrf.mxu0  ;;  %v5376_v1 = vpop.f32.mrf.mxu1  ;;  %7457 = vmatpush2.bf16.msra.mxu1 %v11442_v62  ;;  %7485 = vmatprep.subr.bf16.mxu0 %v11443_v18 }
 0x3ba   : > { %17420 = vst [vmem:[#allocation301_spill] sm:$0xff] %v14168_v33  ;;  %7458 = vmatprep.subr.bf16.mxu1 %v11444_v9  ;;  %v11293_v58 = vld [vmem:[%s12140_s9 + $0xa0c] ss:$16 sps:$4 sm:$0xff]   ;;  %v11445_v1 = vld [vmem:[%s12140_s9 + $0x200] ss:$16 sps:$4 sm:$0xff]  }
 0x3bb   : > { %v5583_v45 = vpop.f32.mrf.mxu0  ;;  %6386 = vmatmul.mubr.bf16.gmra.mxu1 %v11284_v4  ;;  %v14177_v39 = vpop.f32.mrf.mxu1  ;;  %v11446_v33 = vld [vmem:[%s12140_s9 + $0x120] ss:$16 sps:$4 sm:$0xff]   ;;  %v11447_v9 = vld [vmem:[%s12140_s9 + $0x304] ss:$16 sps:$4 sm:$0xff]  }
 0x3bc   : > { %v14180_v40 = vadd.f32 %v5583_v45, %v14096_v59  ;;  %6393 = vmatprep.mubr.bf16.mxu1 %v11292_v13  ;;  %7486 = vmatpush1.bf16.msra.mxu0 %v11445_v1  ;;  %v11448_v4 = vld [vmem:[%s12140_s9 + $0x104] ss:$16 sps:$4 sm:$0xff]   ;;  %v11290_v59 = vld [vmem:[%s12140_s9 + $0xa60] ss:$16 sps:$4 sm:$0xff]  }
 0x3bd   : > { %v5585_v62 = vpop.f32.mrf.mxu0  ;;  %v5381_v18 = vpop.f32.mrf.mxu1  ;;  %7459 = vmatpush2.bf16.msra.mxu1 %v11446_v33  ;;  %7501 = vmatprep.subr.bf16.mxu0 %v11447_v9  ;;  %v11298_v1 = vld [vmem:[%s12140_s9 + $0xa84] ss:$16 sps:$4 sm:$0xff]   ;;  %v11449_v33 = vld [vmem:[%s12140_s9 + $0x300] ss:$16 sps:$4 sm:$0xff]  }
 0x3be   : > { %17421 = vst [vmem:[#allocation302_spill] sm:$0xff] %v14180_v40  ;;  %7460 = vmatprep.subr.bf16.mxu1 %v11448_v4  ;;  %v11450_v9 = vld [vmem:[%s12140_s9 + $0x100] ss:$16 sps:$4 sm:$0xff]   ;;  %v11451_v4 = vld [vmem:[%s12140_s9 + $0x2ec] ss:$16 sps:$4 sm:$0xff]  }
 0x3bf   : > { %v5588_v46 = vpop.f32.mrf.mxu0  ;;  %6595 = vmatmul.mubr.bf16.gmra.mxu0 %v11289_v26  ;;  %v14188_v13 = vpop.f32.mrf.mxu1  ;;  %v11452_v26 = vld [vmem:[%s12140_s9 + $0xec] ss:$16 sps:$4 sm:$0xff]  }
 0x3c0   : > { %v14191_v45 = vadd.f32 %v5588_v46, %v14108_v3  ;;  %9969 = vmatprep.mubr.msk.bf16.mxu0 %vm3173_vm0, %v11293_v58  ;;  %7502 = vmatpush2.bf16.msra.mxu0 %v11449_v33  ;;  %v11295_v3 = vld [vmem:[%s12140_s9 + $0xa08] ss:$16 sps:$4 sm:$0xff]   ;;  %v11299_v33 = vld [vmem:[%s12140_s9 + $0xa2c] ss:$16 sps:$4 sm:$0xff]  }
 0x3c1   : > { %v5590_v62 = vpop.f32.mrf.mxu0  ;;  %v5384_v18 = vpop.f32.mrf.mxu1  ;;  %7461 = vmatpush2.bf16.msra.mxu1 %v11450_v9  ;;  %7553 = vmatprep.subr.bf16.mxu0 %v11451_v4  ;;  %v11296_v4 = vld [vmem:[%s12140_s9 + $0xa80] ss:$16 sps:$4 sm:$0xff]  }
 0x3c2   : > { %17422 = vst [vmem:[#allocation303_spill] sm:$0xff] %v14191_v45  ;;  %7512 = vmatprep.subr.bf16.mxu1 %v11452_v26 }
 0x3c3   : > { %v5591_v40 = vpop.f32.mrf.mxu0  ;;  %6394 = vmatmul.mubr.bf16.gmra.mxu1 %v11290_v59  ;;  %v14200_v46 = vpop.f32.mrf.mxu1  ;;  %v11304_v59 = vld [vmem:[%s12140_s9 + $0xaa4] ss:$16 sps:$4 sm:$0xff]  }
 0x3c4   : > { %v14203_v58 = vadd.f32 %v5591_v40, %v14119_v6  ;;  %6401 = vmatprep.mubr.bf16.mxu1 %v11298_v1 }
 0x3c5   : > { %v5593_v62 = vpop.f32.mrf.mxu0  ;;  %v5389_v18 = vpop.f32.mrf.mxu1 }
 0x3c6   : > { %17423 = vst [vmem:[#allocation304_spill] sm:$0xff] %v14203_v58  ;;  %v11301_v62 = vld [vmem:[%s12140_s9 + $0xa28] ss:$16 sps:$4 sm:$0xff]   ;;  %v11305_v58 = vld [vmem:[%s12140_s9 + $0xa4c] ss:$16 sps:$4 sm:$0xff]  }
 0x3c7   : > { %v5596_v9 = vpop.f32.mrf.mxu0  ;;  %6603 = vmatmul.mubr.bf16.gmra.mxu0 %v11295_v3  ;;  %v14207_v45 = vpop.f32.mrf.mxu1 }
 0x3c8   : > { %v14210_v26 = vadd.f32 %v5596_v9, %v14131_v10  ;;  %9970 = vmatprep.mubr.msk.bf16.mxu0 %vm3173_vm0, %v11299_v33  ;;  %v11302_v33 = vld [vmem:[%s12140_s9 + $0xaa0] ss:$16 sps:$4 sm:$0xff]  }
 0x3c9   : > { %v5598_v6 = vpop.f32.mrf.mxu0  ;;  %v5392_v40 = vpop.f32.mrf.mxu1 }
 0x3ca   : > { %17424 = vst [vmem:[#allocation305_spill] sm:$0xff] %v14210_v26 }
 0x3cb   : > { %v5599_v1 = vpop.f32.mrf.mxu0  ;;  %6402 = vmatmul.mubr.bf16.gmra.mxu1 %v11296_v4  ;;  %v14215_v18 = vpop.f32.mrf.mxu1  ;;  %v11310_v4 = vld [vmem:[%s12140_s9 + $0xac4] ss:$16 sps:$4 sm:$0xff]  }
 0x3cc   : > { %v14218_v3 = vadd.f32 %v5599_v1, %v14142_v49  ;;  %6409 = vmatprep.mubr.bf16.mxu1 %v11304_v59 }
 0x3cd   : > { %v5601_v10 = vpop.f32.mrf.mxu0  ;;  %v5397_v9 = vpop.f32.mrf.mxu1 }
 0x3ce   : > { %17425 = vst [vmem:[#allocation306_spill] sm:$0xff] %v14218_v3  ;;  %v11307_v10 = vld [vmem:[%s12140_s9 + $0xa48] ss:$16 sps:$4 sm:$0xff]   ;;  %v11311_v3 = vld [vmem:[%s12140_s9 + $0xa6c] ss:$16 sps:$4 sm:$0xff]  }
 0x3cf   : > { %v5604_v26 = vpop.f32.mrf.mxu0  ;;  %6611 = vmatmul.mubr.bf16.gmra.mxu0 %v11301_v62  ;;  %v14222_v6 = vpop.f32.mrf.mxu1 }
 0x3d0   : > { %v14225_v40 = vadd.f32 %v5604_v26, %v14154_v21  ;;  %9971 = vmatprep.mubr.msk.bf16.mxu0 %vm3173_vm0, %v11305_v58  ;;  %v11308_v58 = vld [vmem:[%s12140_s9 + $0xac0] ss:$16 sps:$4 sm:$0xff]  }
 0x3d1   : > { %v5606_v49 = vpop.f32.mrf.mxu0  ;;  %v5400_v1 = vpop.f32.mrf.mxu1 }
 0x3d2   : > { %17426 = vst [vmem:[#allocation307_spill] sm:$0xff] %v14225_v40 }
 0x3d3   : > { %v5607_v59 = vpop.f32.mrf.mxu0  ;;  %6410 = vmatmul.mubr.bf16.gmra.mxu1 %v11302_v33  ;;  %v14230_v9 = vpop.f32.mrf.mxu1  ;;  %v11316_v33 = vld [vmem:[%s12140_s9 + $0xae4] ss:$16 sps:$4 sm:$0xff]  }
 0x3d4   : > { %v14233_v62 = vadd.f32 %v5607_v59, %v14165_v29  ;;  %6417 = vmatprep.mubr.bf16.mxu1 %v11310_v4 }
 0x3d5   : > { %v5609_v21 = vpop.f32.mrf.mxu0  ;;  %v5405_v26 = vpop.f32.mrf.mxu1 }
 0x3d6   : > { %17427 = vst [vmem:[#allocation308_spill] sm:$0xff] %v14233_v62  ;;  %v11313_v21 = vld [vmem:[%s12140_s9 + $0xa68] ss:$16 sps:$4 sm:$0xff]   ;;  %v11317_v62 = vld [vmem:[%s12140_s9 + $0xa8c] ss:$16 sps:$4 sm:$0xff]  }
 0x3d7   : > { %v5612_v40 = vpop.f32.mrf.mxu0  ;;  %6619 = vmatmul.mubr.bf16.gmra.mxu0 %v11307_v10  ;;  %v14237_v49 = vpop.f32.mrf.mxu1 }
 0x3d8   : > { %v14240_v1 = vadd.f32 %v5612_v40, %v14177_v39  ;;  %9972 = vmatprep.mubr.msk.bf16.mxu0 %vm3173_vm0, %v11311_v3  ;;  %v11314_v3 = vld [vmem:[%s12140_s9 + $0xae0] ss:$16 sps:$4 sm:$0xff]  }
 0x3d9   : > { %v5614_v29 = vpop.f32.mrf.mxu0  ;;  %v5408_v59 = vpop.f32.mrf.mxu1 }
 0x3da   : > { %17428 = vst [vmem:[#allocation309_spill] sm:$0xff] %v14240_v1 }
 0x3db   : > { %v5615_v4 = vpop.f32.mrf.mxu0  ;;  %6418 = vmatmul.mubr.bf16.gmra.mxu1 %v11308_v58  ;;  %v14245_v26 = vpop.f32.mrf.mxu1  ;;  %v11322_v58 = vld [vmem:[%s12140_s9 + $0xb04] ss:$16 sps:$4 sm:$0xff]  }
 0x3dc   : > { %v14248_v10 = vadd.f32 %v5615_v4, %v14188_v13  ;;  %6425 = vmatprep.mubr.bf16.mxu1 %v11316_v33 }
 0x3dd   : > { %v5617_v39 = vpop.f32.mrf.mxu0  ;;  %v5413_v40 = vpop.f32.mrf.mxu1 }
 0x3de   : > { %17429 = vst [vmem:[#allocation310_spill] sm:$0xff] %v14248_v10  ;;  %v11319_v39 = vld [vmem:[%s12140_s9 + $0xa88] ss:$16 sps:$4 sm:$0xff]   ;;  %v11323_v10 = vld [vmem:[%s12140_s9 + $0xaac] ss:$16 sps:$4 sm:$0xff]  }
 0x3df   : > { %v5620_v1 = vpop.f32.mrf.mxu0  ;;  %6627 = vmatmul.mubr.bf16.gmra.mxu0 %v11313_v21  ;;  %v14252_v29 = vpop.f32.mrf.mxu1 }
 0x3e0   : > { %v14255_v59 = vadd.f32 %v5620_v1, %v14200_v46  ;;  %9973 = vmatprep.mubr.msk.bf16.mxu0 %vm3173_vm0, %v11317_v62  ;;  %v11320_v62 = vld [vmem:[%s12140_s9 + $0xb00] ss:$16 sps:$4 sm:$0xff]  }
 0x3e1   : > { %v5622_v13 = vpop.f32.mrf.mxu0  ;;  %v5416_v4 = vpop.f32.mrf.mxu1 }
 0x3e2   : > { %17430 = vst [vmem:[#allocation311_spill] sm:$0xff] %v14255_v59 }
 0x3e3   : > { %v5623_v33 = vpop.f32.mrf.mxu0  ;;  %6426 = vmatmul.mubr.bf16.gmra.mxu1 %v11314_v3  ;;  %v14260_v40 = vpop.f32.mrf.mxu1  ;;  %v11328_v3 = vld [vmem:[%s12140_s9 + $0xb24] ss:$16 sps:$4 sm:$0xff]  }
 0x3e4   : > { %v14263_v21 = vadd.f32 %v5623_v33, %v14207_v45  ;;  %6433 = vmatprep.mubr.bf16.mxu1 %v11322_v58 }
 0x3e5   : > { %v5625_v46 = vpop.f32.mrf.mxu0  ;;  %v5421_v1 = vpop.f32.mrf.mxu1 }
 0x3e6   : > { %17431 = vst [vmem:[#allocation312_spill] sm:$0xff] %v14263_v21  ;;  %v11325_v46 = vld [vmem:[%s12140_s9 + $0xaa8] ss:$16 sps:$4 sm:$0xff]   ;;  %v11329_v21 = vld [vmem:[%s12140_s9 + $0xacc] ss:$16 sps:$4 sm:$0xff]  }
 0x3e7   : > { %v5628_v59 = vpop.f32.mrf.mxu0  ;;  %6635 = vmatmul.mubr.bf16.gmra.mxu0 %v11319_v39  ;;  %v14267_v13 = vpop.f32.mrf.mxu1 }
 0x3e8   : > { %v14270_v4 = vadd.f32 %v5628_v59, %v14215_v18  ;;  %9974 = vmatprep.mubr.msk.bf16.mxu0 %vm3173_vm0, %v11323_v10  ;;  %v11326_v10 = vld [vmem:[%s12140_s9 + $0xb20] ss:$16 sps:$4 sm:$0xff]  }
 0x3e9   : > { %v5630_v45 = vpop.f32.mrf.mxu0  ;;  %v5424_v33 = vpop.f32.mrf.mxu1 }
 0x3ea   : > { %17432 = vst [vmem:[#allocation313_spill] sm:$0xff] %v14270_v4 }
 0x3eb   : > { %v5631_v58 = vpop.f32.mrf.mxu0  ;;  %6434 = vmatmul.mubr.bf16.gmra.mxu1 %v11320_v62  ;;  %v14275_v1 = vpop.f32.mrf.mxu1  ;;  %v11334_v62 = vld [vmem:[%s12140_s9 + $0xb44] ss:$16 sps:$4 sm:$0xff]  }
 0x3ec   : > { %v14278_v39 = vadd.f32 %v5631_v58, %v14222_v6  ;;  %6441 = vmatprep.mubr.bf16.mxu1 %v11328_v3 }
 0x3ed   : > { %v5633_v18 = vpop.f32.mrf.mxu0  ;;  %v5429_v59 = vpop.f32.mrf.mxu1 }
 0x3ee   : > { %17433 = vst [vmem:[#allocation314_spill] sm:$0xff] %v14278_v39  ;;  %v11331_v18 = vld [vmem:[%s12140_s9 + $0xac8] ss:$16 sps:$4 sm:$0xff]   ;;  %v11335_v39 = vld [vmem:[%s12140_s9 + $0xaec] ss:$16 sps:$4 sm:$0xff]  }
 0x3ef   : > { %v5636_v4 = vpop.f32.mrf.mxu0  ;;  %6643 = vmatmul.mubr.bf16.gmra.mxu0 %v11325_v46  ;;  %v14282_v45 = vpop.f32.mrf.mxu1 }
 0x3f0   : > { %v14285_v33 = vadd.f32 %v5636_v4, %v14230_v9  ;;  %9975 = vmatprep.mubr.msk.bf16.mxu0 %vm3173_vm0, %v11329_v21  ;;  %v11332_v21 = vld [vmem:[%s12140_s9 + $0xb40] ss:$16 sps:$4 sm:$0xff]  }
 0x3f1   : > { %v5638_v6 = vpop.f32.mrf.mxu0  ;;  %v5432_v58 = vpop.f32.mrf.mxu1 }
 0x3f2   : > { %17434 = vst [vmem:[#allocation315_spill] sm:$0xff] %v14285_v33 }
 0x3f3   : > { %v5639_v3 = vpop.f32.mrf.mxu0  ;;  %6442 = vmatmul.mubr.bf16.gmra.mxu1 %v11326_v10  ;;  %v14290_v59 = vpop.f32.mrf.mxu1  ;;  %v11340_v10 = vld [vmem:[%s12140_s9 + $0xb64] ss:$16 sps:$4 sm:$0xff]  }
 0x3f4   : > { %v14293_v46 = vadd.f32 %v5639_v3, %v14237_v49  ;;  %6449 = vmatprep.mubr.bf16.mxu1 %v11334_v62 }
 0x3f5   : > { %v5641_v9 = vpop.f32.mrf.mxu0  ;;  %v5437_v4 = vpop.f32.mrf.mxu1 }
 0x3f6   : > { %17435 = vst [vmem:[#allocation316_spill] sm:$0xff] %v14293_v46  ;;  %v11337_v9 = vld [vmem:[%s12140_s9 + $0xae8] ss:$16 sps:$4 sm:$0xff]   ;;  %v11341_v46 = vld [vmem:[%s12140_s9 + $0xb0c] ss:$16 sps:$4 sm:$0xff]  }
 0x3f7   : > { %v5644_v33 = vpop.f32.mrf.mxu0  ;;  %6651 = vmatmul.mubr.bf16.gmra.mxu0 %v11331_v18  ;;  %v14297_v6 = vpop.f32.mrf.mxu1 }
 0x3f8   : > { %v14300_v58 = vadd.f32 %v5644_v33, %v14245_v26  ;;  %9976 = vmatprep.mubr.msk.bf16.mxu0 %vm3173_vm0, %v11335_v39  ;;  %v11338_v39 = vld [vmem:[%s12140_s9 + $0xb60] ss:$16 sps:$4 sm:$0xff]  }
 0x3f9   : > { %v5646_v49 = vpop.f32.mrf.mxu0  ;;  %v5440_v3 = vpop.f32.mrf.mxu1 }
 0x3fa   : > { %17436 = vst [vmem:[#allocation317_spill] sm:$0xff] %v14300_v58 }
 0x3fb   : > { %v5647_v62 = vpop.f32.mrf.mxu0  ;;  %6450 = vmatmul.mubr.bf16.gmra.mxu1 %v11332_v21  ;;  %v14305_v4 = vpop.f32.mrf.mxu1  ;;  %v11346_v21 = vld [vmem:[%s12140_s9 + $0xb84] ss:$16 sps:$4 sm:$0xff]  }
 0x3fc   : > { %v14308_v18 = vadd.f32 %v5647_v62, %v14252_v29  ;;  %6457 = vmatprep.mubr.bf16.mxu1 %v11340_v10 }
 0x3fd   : > { %v5649_v26 = vpop.f32.mrf.mxu0  ;;  %v5445_v33 = vpop.f32.mrf.mxu1 }
 0x3fe   : > { %17437 = vst [vmem:[#allocation318_spill] sm:$0xff] %v14308_v18  ;;  %v11343_v26 = vld [vmem:[%s12140_s9 + $0xb08] ss:$16 sps:$4 sm:$0xff]   ;;  %v11347_v18 = vld [vmem:[%s12140_s9 + $0xb2c] ss:$16 sps:$4 sm:$0xff]  }
 0x3ff   : > { %v5652_v58 = vpop.f32.mrf.mxu0  ;;  %6659 = vmatmul.mubr.bf16.gmra.mxu0 %v11337_v9  ;;  %v14312_v49 = vpop.f32.mrf.mxu1 }
 0x400   : > { %v14315_v3 = vadd.f32 %v5652_v58, %v14260_v40  ;;  %9977 = vmatprep.mubr.msk.bf16.mxu0 %vm3173_vm0, %v11341_v46  ;;  %v11344_v46 = vld [vmem:[%s12140_s9 + $0xb80] ss:$16 sps:$4 sm:$0xff]  }
 0x401   : > { %v5654_v29 = vpop.f32.mrf.mxu0  ;;  %v5448_v62 = vpop.f32.mrf.mxu1 }
 0x402   : > { %17438 = vst [vmem:[#allocation319_spill] sm:$0xff] %v14315_v3 }
 0x403   : > { %v5655_v10 = vpop.f32.mrf.mxu0  ;;  %6458 = vmatmul.mubr.bf16.gmra.mxu1 %v11338_v39  ;;  %v14320_v33 = vpop.f32.mrf.mxu1  ;;  %v11352_v39 = vld [vmem:[%s12140_s9 + $0xba4] ss:$16 sps:$4 sm:$0xff]  }
 0x404   : > { %v14323_v9 = vadd.f32 %v5655_v10, %v14267_v13  ;;  %6465 = vmatprep.mubr.bf16.mxu1 %v11346_v21 }
 0x405   : > { %v5657_v40 = vpop.f32.mrf.mxu0  ;;  %v5453_v58 = vpop.f32.mrf.mxu1 }
 0x406   : > { %17439 = vst [vmem:[#allocation320_spill] sm:$0xff] %v14323_v9  ;;  %v11349_v40 = vld [vmem:[%s12140_s9 + $0xb28] ss:$16 sps:$4 sm:$0xff]   ;;  %v11353_v9 = vld [vmem:[%s12140_s9 + $0xb4c] ss:$16 sps:$4 sm:$0xff]  }
 0x407   : > { %v5660_v3 = vpop.f32.mrf.mxu0  ;;  %6667 = vmatmul.mubr.bf16.gmra.mxu0 %v11343_v26  ;;  %v14327_v29 = vpop.f32.mrf.mxu1 }
 0x408   : > { %v14330_v62 = vadd.f32 %v5660_v3, %v14275_v1  ;;  %9978 = vmatprep.mubr.msk.bf16.mxu0 %vm3173_vm0, %v11347_v18  ;;  %v11350_v18 = vld [vmem:[%s12140_s9 + $0xba0] ss:$16 sps:$4 sm:$0xff]  }
 0x409   : > { %v5662_v13 = vpop.f32.mrf.mxu0  ;;  %v5456_v10 = vpop.f32.mrf.mxu1 }
 0x40a   : > { %17440 = vst [vmem:[#allocation321_spill] sm:$0xff] %v14330_v62 }
 0x40b   : > { %v5663_v21 = vpop.f32.mrf.mxu0  ;;  %6466 = vmatmul.mubr.bf16.gmra.mxu1 %v11344_v46  ;;  %v14335_v58 = vpop.f32.mrf.mxu1  ;;  %v11358_v46 = vld [vmem:[%s12140_s9 + $0xbc4] ss:$16 sps:$4 sm:$0xff]  }
 0x40c   : > { %v14338_v26 = vadd.f32 %v5663_v21, %v14282_v45  ;;  %6473 = vmatprep.mubr.bf16.mxu1 %v11352_v39 }
 0x40d   : > { %v5665_v1 = vpop.f32.mrf.mxu0  ;;  %v5461_v3 = vpop.f32.mrf.mxu1 }
 0x40e   : > { %17441 = vst [vmem:[#allocation322_spill] sm:$0xff] %v14338_v26  ;;  %v11355_v1 = vld [vmem:[%s12140_s9 + $0xb48] ss:$16 sps:$4 sm:$0xff]   ;;  %v11359_v26 = vld [vmem:[%s12140_s9 + $0xb6c] ss:$16 sps:$4 sm:$0xff]  }
 0x40f   : > { %v5668_v62 = vpop.f32.mrf.mxu0  ;;  %6675 = vmatmul.mubr.bf16.gmra.mxu0 %v11349_v40  ;;  %v14342_v13 = vpop.f32.mrf.mxu1 }
 0x410   : > { %v14345_v10 = vadd.f32 %v5668_v62, %v14290_v59  ;;  %9979 = vmatprep.mubr.msk.bf16.mxu0 %vm3173_vm0, %v11353_v9  ;;  %v11356_v9 = vld [vmem:[%s12140_s9 + $0xbc0] ss:$16 sps:$4 sm:$0xff]  }
 0x411   : > { %v5670_v45 = vpop.f32.mrf.mxu0  ;;  %v5464_v21 = vpop.f32.mrf.mxu1 }
 0x412   : > { %17442 = vst [vmem:[#allocation323_spill] sm:$0xff] %v14345_v10 }
 0x413   : > { %v5671_v39 = vpop.f32.mrf.mxu0  ;;  %6474 = vmatmul.mubr.bf16.gmra.mxu1 %v11350_v18  ;;  %v14350_v3 = vpop.f32.mrf.mxu1  ;;  %v11364_v18 = vld [vmem:[%s12140_s9 + $0xbe4] ss:$16 sps:$4 sm:$0xff]  }
 0x414   : > { %v14353_v40 = vadd.f32 %v5671_v39, %v14297_v6  ;;  %6481 = vmatprep.mubr.bf16.mxu1 %v11358_v46 }
 0x415   : > { %v5673_v59 = vpop.f32.mrf.mxu0  ;;  %v5469_v62 = vpop.f32.mrf.mxu1 }
 0x416   : > { %17443 = vst [vmem:[#allocation324_spill] sm:$0xff] %v14353_v40  ;;  %v11361_v59 = vld [vmem:[%s12140_s9 + $0xb68] ss:$16 sps:$4 sm:$0xff]   ;;  %v11365_v40 = vld [vmem:[%s12140_s9 + $0xb8c] ss:$16 sps:$4 sm:$0xff]  }
 0x417   : > { %v5676_v10 = vpop.f32.mrf.mxu0  ;;  %6683 = vmatmul.mubr.bf16.gmra.mxu0 %v11355_v1  ;;  %v14357_v45 = vpop.f32.mrf.mxu1 }
 0x418   : > { %v14360_v21 = vadd.f32 %v5676_v10, %v14305_v4  ;;  %9980 = vmatprep.mubr.msk.bf16.mxu0 %vm3173_vm0, %v11359_v26  ;;  %v11362_v26 = vld [vmem:[%s12140_s9 + $0xbe0] ss:$16 sps:$4 sm:$0xff]  }
 0x419   : > { %v5678_v6 = vpop.f32.mrf.mxu0  ;;  %v5472_v39 = vpop.f32.mrf.mxu1 }
 0x41a   : > { %17444 = vst [vmem:[#allocation325_spill] sm:$0xff] %v14360_v21 }
 0x41b   : > { %v5679_v46 = vpop.f32.mrf.mxu0  ;;  %6482 = vmatmul.mubr.bf16.gmra.mxu1 %v11356_v9  ;;  %v14365_v62 = vpop.f32.mrf.mxu1  ;;  %v11370_v9 = vld [vmem:[%s12140_s9 + $0xc04] ss:$16 sps:$4 sm:$0xff]  }
 0x41c   : > { %v14368_v1 = vadd.f32 %v5679_v46, %v14312_v49  ;;  %6489 = vmatprep.mubr.bf16.mxu1 %v11364_v18 }
 0x41d   : > { %v5681_v4 = vpop.f32.mrf.mxu0  ;;  %v5477_v10 = vpop.f32.mrf.mxu1 }
 0x41e   : > { %17445 = vst [vmem:[#allocation326_spill] sm:$0xff] %v14368_v1  ;;  %v11367_v4 = vld [vmem:[%s12140_s9 + $0xb88] ss:$16 sps:$4 sm:$0xff]   ;;  %v11371_v1 = vld [vmem:[%s12140_s9 + $0xbac] ss:$16 sps:$4 sm:$0xff]  }
 0x41f   : > { %v5684_v21 = vpop.f32.mrf.mxu0  ;;  %6691 = vmatmul.mubr.bf16.gmra.mxu0 %v11361_v59  ;;  %v14372_v6 = vpop.f32.mrf.mxu1 }
 0x420   : > { %v14375_v39 = vadd.f32 %v5684_v21, %v14320_v33  ;;  %9981 = vmatprep.mubr.msk.bf16.mxu0 %vm3173_vm0, %v11365_v40  ;;  %v11368_v40 = vld [vmem:[%s12140_s9 + $0xc00] ss:$16 sps:$4 sm:$0xff]  }
 0x421   : > { %v5686_v49 = vpop.f32.mrf.mxu0  ;;  %v5480_v46 = vpop.f32.mrf.mxu1 }
 0x422   : > { %17446 = vst [vmem:[#allocation327_spill] sm:$0xff] %v14375_v39 }
 0x423   : > { %v5687_v18 = vpop.f32.mrf.mxu0  ;;  %6490 = vmatmul.mubr.bf16.gmra.mxu1 %v11362_v26  ;;  %v14380_v10 = vpop.f32.mrf.mxu1  ;;  %v11376_v26 = vld [vmem:[%s12140_s9 + $0xc24] ss:$16 sps:$4 sm:$0xff]  }
 0x424   : > { %v14383_v59 = vadd.f32 %v5687_v18, %v14327_v29  ;;  %6497 = vmatprep.mubr.bf16.mxu1 %v11370_v9 }
 0x425   : > { %v5689_v33 = vpop.f32.mrf.mxu0  ;;  %v5485_v21 = vpop.f32.mrf.mxu1 }
 0x426   : > { %17447 = vst [vmem:[#allocation328_spill] sm:$0xff] %v14383_v59  ;;  %v11373_v33 = vld [vmem:[%s12140_s9 + $0xba8] ss:$16 sps:$4 sm:$0xff]  }
 0x427   : > { %v5692_v39 = vpop.f32.mrf.mxu0  ;;  %6699 = vmatmul.mubr.bf16.gmra.mxu0 %v11367_v4  ;;  %v14387_v49 = vpop.f32.mrf.mxu1 }
 0x428   : > { %v14390_v46 = vadd.f32 %v5692_v39, %v14335_v58  ;;  %9982 = vmatprep.mubr.msk.bf16.mxu0 %vm3173_vm0, %v11371_v1  ;;  %v11377_v58 = vld [vmem:[%s12140_s9 + $0xbcc] ss:$16 sps:$4 sm:$0xff]   ;;  %v11374_v1 = vld [vmem:[%s12140_s9 + $0xc20] ss:$16 sps:$4 sm:$0xff]  }
 0x429   : > { %v5694_v29 = vpop.f32.mrf.mxu0  ;;  %v5488_v18 = vpop.f32.mrf.mxu1 }
 0x42a   : > { %17448 = vst [vmem:[#allocation329_spill] sm:$0xff] %v14390_v46  ;;  %v11382_v18 = vld [vmem:[%s12140_s9 + $0xc44] ss:$16 sps:$4 sm:$0xff]  }
 0x42b   : > { %v5695_v9 = vpop.f32.mrf.mxu0  ;;  %6498 = vmatmul.mubr.bf16.gmra.mxu1 %v11368_v40  ;;  %v14395_v21 = vpop.f32.mrf.mxu1 }
 0x42c   : > { %v14398_v4 = vadd.f32 %v5695_v9, %v14342_v13  ;;  %6505 = vmatprep.mubr.bf16.mxu1 %v11376_v26  ;;  %v11379_v26 = vld [vmem:[%s12140_s9 + $0xbc8] ss:$16 sps:$4 sm:$0xff]  }
 0x42d   : > { %v5697_v39 = vpop.f32.mrf.mxu0  ;;  %v5493_v46 = vpop.f32.mrf.mxu1 }
 0x42e   : > { %17449 = vst [vmem:[#allocation330_spill] sm:$0xff] %v14398_v4  ;;  %v11383_v39 = vld [vmem:[%s12140_s9 + $0xbec] ss:$16 sps:$4 sm:$0xff]  }
 0x42f   : > { %v5700_v59 = vpop.f32.mrf.mxu0  ;;  %6707 = vmatmul.mubr.bf16.gmra.mxu0 %v11373_v33  ;;  %v14402_v29 = vpop.f32.mrf.mxu1 }
 0x430   : > { %v14405_v40 = vadd.f32 %v5700_v59, %v14350_v3  ;;  %9983 = vmatprep.mubr.msk.bf16.mxu0 %vm3173_vm0, %v11377_v58  ;;  %v11959_v3 = vmov 1966171168  }
 0x431   : > { %v5702_v13 = vpop.f32.mrf.mxu0  ;;  %v5496_v9 = vpop.f32.mrf.mxu1  ;;  %v7384_v59 = vunpack.c.l.s4 %v11959_v3 }
 0x432   : > { %17450 = vst [vmem:[#allocation331_spill] sm:$0xff] %v14405_v40  ;;  %v7386_v40 = vlaneseq  ;;  %v11380_v13 = vld [vmem:[%s12140_s9 + $0xc40] ss:$16 sps:$4 sm:$0xff]  }
 0x433   : > { %v5703_v4 = vpop.f32.mrf.mxu0  ;;  %6506 = vmatmul.mubr.bf16.gmra.mxu1 %v11374_v1  ;;  %v14411_v46 = vpop.f32.mrf.mxu1 }
 0x434   : > { %v14414_v33 = vadd.f32 %v5703_v4, %v14357_v45  ;;  %6513 = vmatprep.mubr.bf16.mxu1 %v11382_v18  ;;  %v11388_v18 = vld [vmem:[%s12140_s9 + $0xc64] ss:$16 sps:$4 sm:$0xff]   ;;  %v7387_v9 = vshrl.u32 %v7386_v40, 7 }
 0x435   : > { %v5705_v58 = vpop.f32.mrf.mxu0  ;;  %v5501_v57 = vpop.f32.mrf.mxu1 }
 0x436   : > { %17451 = vst [vmem:[#allocation332_spill] sm:$0xff] %v14414_v33  ;;  %v7385_v57 = vunpack.c.0.s8 %v7384_v59  ;;  %v9990_v58 = vld.sshfl [vmem:[%s14420_s8] sm:$0x33 pattern:$0x75316420] }
 0x437   : > { %v5708_v1 = vpop.f32.mrf.mxu0  ;;  %6715 = vmatmul.mubr.bf16.gmra.mxu0 %v11379_v26  ;;  %v14423_v45 = vpop.f32.mrf.mxu1 }
 0x438   : > { %v14426_v4 = vadd.f32 %v5708_v1, %v14365_v62  ;;  %9984 = vmatprep.mubr.msk.bf16.mxu0 %vm3173_vm0, %v11383_v39  ;;  %v11389_v62 = vld [vmem:[%s12140_s9 + $0xc0c] ss:$16 sps:$4 sm:$0xff]   ;;  %v7382_v1 = vcombine.high %v9990_v58, %v9990_v58  ;;  %v14438_v39 = vsub.s32 %v7385_v57, %v7387_v9  ;;  %v11391_v9 = vld [vmem:[%s12140_s9 + $0xc08] ss:$16 sps:$4 sm:$0xff]  }
 0x439   : > { %v5710_v3 = vpop.f32.mrf.mxu0  ;;  %v5504_v33 = vpop.f32.mrf.mxu1 }
 0x43a   : > { %17452 = vst [vmem:[#allocation333_spill] sm:$0xff] %v14426_v4  ;;  %v11386_v33 = vld [vmem:[%s12140_s9 + $0xc60] ss:$16 sps:$4 sm:$0xff]  }
 0x43b   : > { %v5711_v48 = vpop.f32.mrf.mxu0  ;;  %6514 = vmatmul.mubr.bf16.gmra.mxu1 %v11380_v13  ;;  %v14432_v26 = vpop.f32.mrf.mxu1 }
 0x43c   : > { %v14435_v15 = vadd.f32 %v5711_v48, %v14372_v6  ;;  %6521 = vmatprep.mubr.bf16.mxu1 %v11388_v18  ;;  %v14448_v48 = vrot.slane %v7382_v1, %v14438_v39 }
 0x43d   : > { %v5713_v59 = vpop.f32.mrf.mxu0  ;;  %v5509_v40 = vpop.f32.mrf.mxu1 }
 0x43e   : > { %17453 = vst [vmem:[#allocation334_spill] sm:$0xff] %v14435_v15 }
 0x43f   : > { %v5716_v3 = vpop.f32.mrf.mxu0  ;;  %6723 = vmatmul.mubr.bf16.gmra.mxu0 %v11385_v50  ;;  %v14441_v4 = vpop.f32.mrf.mxu1 }
 0x440   : > { %v14444_v13 = vadd.f32 %v5716_v3, %v14380_v10  ;;  %9985 = vmatprep.mubr.msk.bf16.mxu0 %vm3173_vm0, %v11389_v62  ;;  %v11392_v10 = vld [vmem:[%s12140_s9 + $0xc2c] ss:$16 sps:$4 sm:$0xff]   ;;  %v14459_v3 = vrot.slane %v9990_v58, %v14438_v39 }
 0x441   : > { %v5718_v6 = vpop.f32.mrf.mxu0  ;;  %v5512_v18 = vpop.f32.mrf.mxu1 }
 0x442   : > { %17454 = vst [vmem:[#allocation335_spill] sm:$0xff] %v14444_v13 }
 0x443   : > { %v5719_v57 = vpop.f32.mrf.mxu0  ;;  %6522 = vmatmul.mubr.bf16.gmra.mxu1 %v11386_v33  ;;  %v14451_v59 = vpop.f32.mrf.mxu1 }
 0x444   : > { %v14454_v50 = vadd.f32 %v5719_v57, %v14387_v49  ;;  %7462 = vmatprep.mubr.bf16.mxu1 %v14448_v48 }
 0x445   : > { %v5721_v40 = vpop.f32.mrf.mxu0  ;;  %v6333_v62 = vpop.f32.mrf.mxu1 }
 0x446   : > { %17455 = vst [vmem:[#allocation336_spill] sm:$0xff] %v14454_v50  ;;  %v11394_v40 = vld [vmem:[%s12140_s9 + $0xc28] ss:$16 sps:$4 sm:$0xff]   ;;  %v11395_v50 = vld [vmem:[%s12140_s9 + $0xc4c] ss:$16 sps:$4 sm:$0xff]  }
 0x447   : > { %v5724_v1 = vpop.f32.mrf.mxu0  ;;  %6731 = vmatmul.mubr.bf16.gmra.mxu0 %v11391_v9  ;;  %v14461_v33 = vpop.f32.mrf.mxu1  ;;  %v11453_v9 = vld [vmem:[%s12140_s9 + $0xe8] ss:$16 sps:$4 sm:$0xff]  }
 0x448   : > { %v14464_v6 = vadd.f32 %v5724_v1, %v14395_v21  ;;  %9986 = vmatprep.mubr.msk.bf16.mxu0 %vm3173_vm0, %v11392_v10  ;;  %v11454_v10 = vld [vmem:[%s12140_s9 + $0xcc] ss:$16 sps:$4 sm:$0xff]  }
 0x449   : > { %v5726_v49 = vpop.f32.mrf.mxu0  ;;  %v6336_v18 = vpop.f32.mrf.mxu1 }
 0x44a   : > { %17456 = vst [vmem:[#allocation337_spill] sm:$0xff] %v14464_v6 }
 0x44b   : > { %v5727_v57 = vpop.f32.mrf.mxu0  ;;  %7463 = vmatmul.mubr.bf16.vlgmr.msra.gmra.mxu1 %v14459_v3  ;;  %v14469_v62 = vpop.f32.mrf.mxu1 }
 0x44c   : > { %v14472_v58 = vadd.f32 %v5727_v57, %v14402_v29  ;;  %7513 = vmatpush1.bf16.msra.mxu1 %v11453_v9  ;;  %7544 = vmatprep.mubr.bf16.mxu1 %v14448_v48  ;;  %v11455_v57 = vld [vmem:[%s12140_s9 + $0xc8] ss:$16 sps:$4 sm:$0xff]  }
 0x44d   : > { %v5729_v21 = vpop.f32.mrf.mxu0  ;;  %7514 = vmatprep.subr.bf16.mxu1 %v11454_v10  ;;  %v6341_v1 = vpop.f32.mrf.mxu1 }
 0x44e   : > { %17457 = vst [vmem:[#allocation338_spill] sm:$0xff] %v14472_v58  ;;  %v11456_v21 = vld [vmem:[%s12140_s9 + $0xac] ss:$16 sps:$4 sm:$0xff]   ;;  %v11397_v1 = vld [vmem:[%s12140_s9 + $0xc48] ss:$16 sps:$4 sm:$0xff]  }
 0x44f   : > { %v5732_v49 = vpop.f32.mrf.mxu0  ;;  %6739 = vmatmul.mubr.bf16.gmra.mxu0 %v11394_v40  ;;  %v14478_v18 = vpop.f32.mrf.mxu1 }
 0x450   : > { %v14481_v29 = vadd.f32 %v5732_v49, %v14411_v46  ;;  %7515 = vmatpush1.bf16.msra.mxu1 %v11455_v57  ;;  %9987 = vmatprep.mubr.msk.bf16.mxu0 %vm3173_vm0, %v11395_v50  ;;  %v11457_v46 = vld [vmem:[%s12140_s9 + $0xa8] ss:$16 sps:$4 sm:$0xff]   ;;  %v11398_v49 = vld [vmem:[%s12140_s9 + $0xc6c] ss:$16 sps:$4 sm:$0xff]  }
 0x451   : > { %v5734_v9 = vpop.f32.mrf.mxu0  ;;  %7516 = vmatprep.subr.bf16.mxu1 %v11456_v21  ;;  %v6344_v13 = vpop.f32.mrf.mxu1  ;;  %v11458_v57 = vld [vmem:[%s12140_s9 + $0x8c] ss:$16 sps:$4 sm:$0xff]  }
 0x452   : > { %17458 = vst [vmem:[#allocation339_spill] sm:$0xff] %v14481_v29 }
 0x453   : > { %v5735_v10 = vpop.f32.mrf.mxu0  ;;  %v14487_v15 = vpop.f32.mrf.mxu1 }
 0x454   : > { %v14490_v40 = vadd.f32 %v5735_v10, %v14423_v45  ;;  %7517 = vmatpush1.bf16.msra.mxu1 %v11457_v46  ;;  %v11459_v45 = vld [vmem:[%s12140_s9 + $0x88] ss:$16 sps:$4 sm:$0xff]   ;;  %v11460_v46 = vld [vmem:[%s12140_s9 + $0x6c] ss:$16 sps:$4 sm:$0xff]  }
 0x455   : > { %v5737_v6 = vpop.f32.mrf.mxu0  ;;  %7518 = vmatprep.subr.bf16.mxu1 %v11458_v57  ;;  %v6349_v50 = vpop.f32.mrf.mxu1 }
 0x456   : > { %17459 = vst [vmem:[#allocation340_spill] sm:$0xff] %v14490_v40  ;;  %v11400_v50 = vld [vmem:[%s12140_s9 + $0xc68] ss:$16 sps:$4 sm:$0xff]  }
 0x457   : > { %v5740_v9 = vpop.f32.mrf.mxu0  ;;  %6747 = vmatmul.mubr.bf16.gmra.mxu0 %v11397_v1  ;;  %v14495_v13 = vpop.f32.mrf.mxu1 }
 0x458   : > { %v14498_v21 = vadd.f32 %v5740_v9, %v14432_v26  ;;  %7519 = vmatpush1.bf16.msra.mxu1 %v11459_v45  ;;  %9988 = vmatprep.mubr.msk.bf16.mxu0 %vm3173_vm0, %v11398_v49  ;;  %v11461_v26 = vld [vmem:[%s12140_s9 + $0x68] ss:$16 sps:$4 sm:$0xff]   ;;  %v7398_v9 = vcombine.high %v14448_v48, %v14448_v48  ;;  %v11462_v49 = vld [vmem:[%s12140_s9 + $0x4c] ss:$16 sps:$4 sm:$0xff]  }
 0x459   : > { %v5742_v10 = vpop.f32.mrf.mxu0  ;;  %7520 = vmatprep.subr.bf16.mxu1 %v11460_v46  ;;  %v6352_v6 = vpop.f32.mrf.mxu1 }
 0x45a   : > { %17460 = vst [vmem:[#allocation341_spill] sm:$0xff] %v14498_v21 }
 0x45b   : > { %v5743_v57 = vpop.f32.mrf.mxu0  ;;  %v14504_v58 = vpop.f32.mrf.mxu1 }
 0x45c   : > { %v14507_v1 = vadd.f32 %v5743_v57, %v14441_v4  ;;  %7521 = vmatpush1.bf16.msra.mxu1 %v11461_v26  ;;  %v11463_v4 = vld [vmem:[%s12140_s9 + $0x48] ss:$16 sps:$4 sm:$0xff]   ;;  %v11464_v26 = vld [vmem:[%s12140_s9 + $0x2c] ss:$16 sps:$4 sm:$0xff]  }
 0x45d   : > { %v5745_v45 = vpop.f32.mrf.mxu0  ;;  %7522 = vmatprep.subr.bf16.mxu1 %v11462_v49  ;;  %v6357_v10 = vpop.f32.mrf.mxu1 }
 0x45e   : > { %17461 = vst [vmem:[#allocation342_spill] sm:$0xff] %v14507_v1  ;;  %v14523_v45 = vcombine.high %v14459_v3, %v14459_v3  ;;  %v11465_v10 = vld [vmem:[%s12140_s9 + $0x28] ss:$16 sps:$4 sm:$0xff]  }
 0x45f   : > { %v6564_v46 = vpop.f32.mrf.mxu0  ;;  %6755 = vmatmul.mubr.bf16.gmra.mxu0 %v11400_v50  ;;  %v14513_v6 = vpop.f32.mrf.mxu1  ;;  %v11467_v1 = vld [vmem:[%s12140_s9 + $0x8] ss:$16 sps:$4 sm:$0xff]  }
 0x460   : > { %v14516_v21 = vadd.f32 %v6564_v46, %v14451_v59  ;;  %7523 = vmatpush1.bf16.msra.mxu1 %v11463_v4  ;;  %9991 = vmatprep.mubr.msk.bf16.mxu0 %vm3173_vm0, %v7398_v9  ;;  %v11466_v4 = vld [vmem:[%s12140_s9 + $0xc] ss:$16 sps:$4 sm:$0xff]  }
 0x461   : > { %v6566_v57 = vpop.f32.mrf.mxu0  ;;  %7524 = vmatprep.subr.bf16.mxu1 %v11464_v26  ;;  %v6360_v48 = vpop.f32.mrf.mxu1 }
 0x462   : > { %17462 = vst [vmem:[#allocation343_spill] sm:$0xff] %v14516_v21 }
 0x463   : > { %v6567_v50 = vpop.f32.mrf.mxu0  ;;  %v14525_v49 = vpop.f32.mrf.mxu1 }
 0x464   : > { %v14528_v59 = vadd.f32 %v6567_v50, %v14461_v33  ;;  %7525 = vmatpush1.bf16.msra.mxu1 %v11465_v10  ;;  %v11468_v33 = vld [vmem:[%s12140_s9 + $0x2e8] ss:$16 sps:$4 sm:$0xff]   ;;  %v11469_v10 = vld [vmem:[%s12140_s9 + $0x1ec] ss:$16 sps:$4 sm:$0xff]  }
 0x465   : > { %v6569_v46 = vpop.f32.mrf.mxu0  ;;  %7526 = vmatprep.subr.bf16.mxu1 %v11466_v4  ;;  %v6365_v57 = vpop.f32.mrf.mxu1 }
 0x466   : > { %17463 = vst [vmem:[#allocation344_spill] sm:$0xff] %v14528_v59  ;;  %v11470_v46 = vld [vmem:[%s12140_s9 + $0x2cc] ss:$16 sps:$4 sm:$0xff]  }
 0x467   : > { %v6572_v26 = vpop.f32.mrf.mxu0  ;;  %7504 = vmatmul.mubr.bf16.vlgmr.msra.gmra.mxu0 %v14523_v45  ;;  %v14533_v48 = vpop.f32.mrf.mxu1 }
 0x468   : > { %v14536_v21 = vadd.f32 %v6572_v26, %v14469_v62  ;;  %7527 = vmatpush1.bf16.msra.mxu1 %v11467_v1  ;;  %7554 = vmatpush1.bf16.msra.mxu0 %v11468_v33  ;;  %v11471_v1 = vld [vmem:[%s12140_s9 + $0x1e8] ss:$16 sps:$4 sm:$0xff]  }
 0x469   : > { %v6574_v50 = vpop.f32.mrf.mxu0  ;;  %7528 = vmatprep.subr.bf16.mxu1 %v11469_v10  ;;  %7555 = vmatprep.subr.bf16.mxu0 %v11470_v46  ;;  %v6368_v4 = vpop.f32.mrf.mxu1  ;;  %v11472_v26 = vld [vmem:[%s12140_s9 + $0x2c8] ss:$16 sps:$4 sm:$0xff]   ;;  %v11474_v10 = vld [vmem:[%s12140_s9 + $0x2ac] ss:$16 sps:$4 sm:$0xff]  }
 0x46a   : > { %17464 = vst [vmem:[#allocation345_spill] sm:$0xff] %v14536_v21  ;;  %9992 = vmatprep.mubr.msk.bf16.mxu0 %vm3173_vm0, %v7398_v9  ;;  %v11473_v50 = vld [vmem:[%s12140_s9 + $0x1cc] ss:$16 sps:$4 sm:$0xff]  }
 0x46b   : > { %v6575_v57 = vpop.f32.mrf.mxu0  ;;  %v14543_v59 = vpop.f32.mrf.mxu1 }
 0x46c   : > { %v14546_v62 = vadd.f32 %v6575_v57, %v14478_v18  ;;  %7529 = vmatpush2.bf16.msra.mxu1 %v11471_v1  ;;  %7556 = vmatpush1.bf16.msra.mxu0 %v11472_v26  ;;  %v11475_v57 = vld [vmem:[%s12140_s9 + $0x1c8] ss:$16 sps:$4 sm:$0xff]  }
 0x46d   : > { %v6577_v33 = vpop.f32.mrf.mxu0  ;;  %7530 = vmatprep.subr.bf16.mxu1 %v11473_v50  ;;  %7557 = vmatprep.subr.bf16.mxu0 %v11474_v10  ;;  %v6373_v9 = vpop.f32.mrf.mxu1  ;;  %v11476_v1 = vld [vmem:[%s12140_s9 + $0x2a8] ss:$16 sps:$4 sm:$0xff]   ;;  %v11478_v50 = vld [vmem:[%s12140_s9 + $0x28c] ss:$16 sps:$4 sm:$0xff]  }
 0x46e   : > { %17465 = vst [vmem:[#allocation346_spill] sm:$0xff] %v14546_v62  ;;  %v11477_v33 = vld [vmem:[%s12140_s9 + $0x1ac] ss:$16 sps:$4 sm:$0xff]  }
 0x46f   : > { %v6580_v46 = vpop.f32.mrf.mxu0  ;;  %v14552_v4 = vpop.f32.mrf.mxu1 }
 0x470   : > { %v14555_v18 = vadd.f32 %v6580_v46, %v14487_v15  ;;  %7531 = vmatpush2.bf16.msra.mxu1 %v11475_v57  ;;  %7558 = vmatpush1.bf16.msra.mxu0 %v11476_v1  ;;  %v11479_v46 = vld [vmem:[%s12140_s9 + $0x1a8] ss:$16 sps:$4 sm:$0xff]  }
 0x471   : > { %v6582_v26 = vpop.f32.mrf.mxu0  ;;  %7532 = vmatprep.subr.bf16.mxu1 %v11477_v33  ;;  %7559 = vmatprep.subr.bf16.mxu0 %v11478_v50  ;;  %v6376_v10 = vpop.f32.mrf.mxu1  ;;  %v11480_v57 = vld [vmem:[%s12140_s9 + $0x288] ss:$16 sps:$4 sm:$0xff]   ;;  %v11482_v33 = vld [vmem:[%s12140_s9 + $0x26c] ss:$16 sps:$4 sm:$0xff]  }
 0x472   : > { %17466 = vst [vmem:[#allocation347_spill] sm:$0xff] %v14555_v18  ;;  %v11481_v26 = vld [vmem:[%s12140_s9 + $0x18c] ss:$16 sps:$4 sm:$0xff]  }
 0x473   : > { %v6583_v9 = vpop.f32.mrf.mxu0  ;;  %v14561_v62 = vpop.f32.mrf.mxu1 }
 0x474   : > { %v14564_v15 = vadd.f32 %v6583_v9, %v14495_v13  ;;  %7533 = vmatpush2.bf16.msra.mxu1 %v11479_v46  ;;  %7560 = vmatpush1.bf16.msra.mxu0 %v11480_v57  ;;  %v11483_v9 = vld [vmem:[%s12140_s9 + $0x188] ss:$16 sps:$4 sm:$0xff]  }
 0x475   : > { %v6585_v1 = vpop.f32.mrf.mxu0  ;;  %7534 = vmatprep.subr.bf16.mxu1 %v11481_v26  ;;  %7561 = vmatprep.subr.bf16.mxu0 %v11482_v33  ;;  %v6381_v50 = vpop.f32.mrf.mxu1  ;;  %v11484_v46 = vld [vmem:[%s12140_s9 + $0x268] ss:$16 sps:$4 sm:$0xff]   ;;  %v11486_v26 = vld [vmem:[%s12140_s9 + $0x24c] ss:$16 sps:$4 sm:$0xff]  }
 0x476   : > { %17467 = vst [vmem:[#allocation348_spill] sm:$0xff] %v14564_v15  ;;  %v11485_v1 = vld [vmem:[%s12140_s9 + $0x16c] ss:$16 sps:$4 sm:$0xff]  }
 0x477   : > { %v6588_v10 = vpop.f32.mrf.mxu0  ;;  %v14570_v18 = vpop.f32.mrf.mxu1 }
 0x478   : > { %v14573_v13 = vadd.f32 %v6588_v10, %v14504_v58  ;;  %7535 = vmatpush2.bf16.msra.mxu1 %v11483_v9  ;;  %7562 = vmatpush1.bf16.msra.mxu0 %v11484_v46  ;;  %v11487_v10 = vld [vmem:[%s12140_s9 + $0x168] ss:$16 sps:$4 sm:$0xff]  }
 0x479   : > { %v6590_v57 = vpop.f32.mrf.mxu0  ;;  %7536 = vmatprep.subr.bf16.mxu1 %v11485_v1  ;;  %7563 = vmatprep.subr.bf16.mxu0 %v11486_v26  ;;  %v6384_v33 = vpop.f32.mrf.mxu1  ;;  %v11488_v9 = vld [vmem:[%s12140_s9 + $0x248] ss:$16 sps:$4 sm:$0xff]   ;;  %v11490_v1 = vld [vmem:[%s12140_s9 + $0x22c] ss:$16 sps:$4 sm:$0xff]  }
 0x47a   : > { %17468 = vst [vmem:[#allocation349_spill] sm:$0xff] %v14573_v13  ;;  %v11489_v57 = vld [vmem:[%s12140_s9 + $0x14c] ss:$16 sps:$4 sm:$0xff]  }
 0x47b   : > { %v6591_v50 = vpop.f32.mrf.mxu0  ;;  %v14579_v15 = vpop.f32.mrf.mxu1  ;;  %v14591_v13 = vld.sshfl [vmem:[%s14420_s8 + $0x4] sm:$0x33 pattern:$0x75316420] }
 0x47c   : > { %v14582_v58 = vadd.f32 %v6591_v50, %v14513_v6  ;;  %7537 = vmatpush2.bf16.msra.mxu1 %v11487_v10  ;;  %7564 = vmatpush1.bf16.msra.mxu0 %v11488_v9  ;;  %v11491_v50 = vld [vmem:[%s12140_s9 + $0x148] ss:$16 sps:$4 sm:$0xff]  }
 0x47d   : > { %v6593_v46 = vpop.f32.mrf.mxu0  ;;  %7538 = vmatprep.subr.bf16.mxu1 %v11489_v57  ;;  %7565 = vmatprep.subr.bf16.mxu0 %v11490_v1  ;;  %v6389_v26 = vpop.f32.mrf.mxu1  ;;  %v11492_v10 = vld [vmem:[%s12140_s9 + $0x228] ss:$16 sps:$4 sm:$0xff]   ;;  %v11494_v57 = vld [vmem:[%s12140_s9 + $0x20c] ss:$16 sps:$4 sm:$0xff]  }
 0x47e   : > { %17469 = vst [vmem:[#allocation350_spill] sm:$0xff] %v14582_v58  ;;  %v11493_v46 = vld [vmem:[%s12140_s9 + $0x12c] ss:$16 sps:$4 sm:$0xff]   ;;  %v7602_v26 = vcombine.high %v14591_v13, %v14591_v13 }
 0x47f   : > { %v6596_v33 = vpop.f32.mrf.mxu0  ;;  %v14588_v21 = vpop.f32.mrf.mxu1 }
 0x480   : > { %v14594_v6 = vadd.f32 %v6596_v33, %v14525_v49  ;;  %7539 = vmatpush2.bf16.msra.mxu1 %v11491_v50  ;;  %7566 = vmatpush1.bf16.msra.mxu0 %v11492_v10  ;;  %v11495_v33 = vld [vmem:[%s12140_s9 + $0x128] ss:$16 sps:$4 sm:$0xff]  }
 0x481   : > { %v6598_v9 = vpop.f32.mrf.mxu0  ;;  %7540 = vmatprep.subr.bf16.mxu1 %v11493_v46  ;;  %7567 = vmatprep.subr.bf16.mxu0 %v11494_v57  ;;  %v6392_v1 = vpop.f32.mrf.mxu1  ;;  %v11496_v50 = vld [vmem:[%s12140_s9 + $0x208] ss:$16 sps:$4 sm:$0xff]   ;;  %v11498_v46 = vld [vmem:[%s12140_s9 + $0x30c] ss:$16 sps:$4 sm:$0xff]  }
 0x482   : > { %17470 = vst [vmem:[#allocation351_spill] sm:$0xff] %v14594_v6  ;;  %v11497_v9 = vld [vmem:[%s12140_s9 + $0x10c] ss:$16 sps:$4 sm:$0xff]   ;;  %v14612_v1 = vrot.slane %v7602_v26, %v14438_v39 }
 0x483   : > { %v6599_v58 = vpop.f32.mrf.mxu0  ;;  %v14602_v29 = vpop.f32.mrf.mxu1 }
 0x484   : > { %v14605_v49 = vadd.f32 %v6599_v58, %v14533_v48  ;;  %7541 = vmatpush2.bf16.msra.mxu1 %v11495_v33  ;;  %7568 = vmatpush1.bf16.msra.mxu0 %v11496_v50  ;;  %v11499_v58 = vld [vmem:[%s12140_s9 + $0x108] ss:$16 sps:$4 sm:$0xff]  }
 0x485   : > { %v6601_v10 = vpop.f32.mrf.mxu0  ;;  %7542 = vmatprep.subr.bf16.mxu1 %v11497_v9  ;;  %7583 = vmatprep.subr.bf16.mxu0 %v11498_v46  ;;  %v6397_v57 = vpop.f32.mrf.mxu1  ;;  %v11500_v33 = vld [vmem:[%s12140_s9 + $0x308] ss:$16 sps:$4 sm:$0xff]   ;;  %v11502_v9 = vld [vmem:[%s12140_s9 + $0x604] ss:$16 sps:$4 sm:$0xff]   ;;  %v14625_v46 = vcombine.high %v14612_v1, %v14612_v1 }
 0x486   : > { %17471 = vst [vmem:[#allocation352_spill] sm:$0xff] %v14605_v49  ;;  %v11501_v10 = vld [vmem:[%s12140_s9 + $0x404] ss:$16 sps:$4 sm:$0xff]  }
 0x487   : > { %v6604_v6 = vpop.f32.mrf.mxu0  ;;  %v14614_v40 = vpop.f32.mrf.mxu1 }
 0x488   : > { %v14617_v48 = vadd.f32 %v6604_v6, %v14543_v59  ;;  %7543 = vmatpush2.bf16.msra.mxu1 %v11499_v58  ;;  %7584 = vmatpush2.bf16.msra.mxu0 %v11500_v33  ;;  %v11503_v58 = vld [vmem:[%s12140_s9 + $0x400] ss:$16 sps:$4 sm:$0xff]  }
 0x489   : > { %v6606_v50 = vpop.f32.mrf.mxu0  ;;  %7650 = vmatprep.subr.bf16.mxu0 %v11501_v10  ;;  %7691 = vmatprep.subr.bf16.mxu1 %v11502_v9  ;;  %v6400_v26 = vpop.f32.mrf.mxu1  ;;  %v11504_v33 = vld [vmem:[%s12140_s9 + $0x600] ss:$16 sps:$4 sm:$0xff]   ;;  %v11505_v10 = vld [vmem:[%s12140_s9 + $0x3e4] ss:$16 sps:$4 sm:$0xff]  }
 0x48a   : > { %17472 = vst [vmem:[#allocation353_spill] sm:$0xff] %v14617_v48  ;;  %v11506_v9 = vld [vmem:[%s12140_s9 + $0x5e4] ss:$16 sps:$4 sm:$0xff]  }
 0x48b   : > { %v6607_v59 = vpop.f32.mrf.mxu0  ;;  %7545 = vmatmul.mubr.bf16.vlgmr.msra.gmra.mxu1 %v14459_v3  ;;  %7586 = vmatmul.mubr.bf16.vlgmr.msra.gmra.mxu0 %v14523_v45  ;;  %v14629_v6 = vpop.f32.mrf.mxu1 }
 0x48c   : > { %v14632_v57 = vadd.f32 %v6607_v59, %v14552_v4  ;;  %7651 = vmatpush1.bf16.msra.mxu0 %v11503_v58  ;;  %7692 = vmatpush1.bf16.msra.mxu1 %v11504_v33  ;;  %v11507_v59 = vld [vmem:[%s12140_s9 + $0x3e0] ss:$16 sps:$4 sm:$0xff]  }
 0x48d   : > { %v6609_v50 = vpop.f32.mrf.mxu0  ;;  %7652 = vmatprep.subr.bf16.mxu0 %v11505_v10  ;;  %7693 = vmatprep.subr.bf16.mxu1 %v11506_v9  ;;  %v6405_v3 = vpop.f32.mrf.mxu1  ;;  %v11508_v58 = vld [vmem:[%s12140_s9 + $0x5e0] ss:$16 sps:$4 sm:$0xff]   ;;  %v11510_v10 = vld [vmem:[%s12140_s9 + $0x5c4] ss:$16 sps:$4 sm:$0xff]  }
 0x48e   : > { %17473 = vst [vmem:[#allocation354_spill] sm:$0xff] %v14632_v57  ;;  %9994 = vmatprep.mubr.msk.bf16.mxu1 %vm3173_vm0, %v14625_v46  ;;  %7682 = vmatprep.mubr.bf16.mxu0 %v14612_v1  ;;  %v11509_v50 = vld [vmem:[%s12140_s9 + $0x3c4] ss:$16 sps:$4 sm:$0xff]  }
 0x48f   : > { %v6612_v45 = vpop.f32.mrf.mxu0  ;;  %v14641_v4 = vpop.f32.mrf.mxu1 }
 0x490   : > { %v14644_v26 = vadd.f32 %v6612_v45, %v14561_v62  ;;  %7653 = vmatpush1.bf16.msra.mxu0 %v11507_v59  ;;  %7694 = vmatpush1.bf16.msra.mxu1 %v11508_v58  ;;  %v11511_v45 = vld [vmem:[%s12140_s9 + $0x3c0] ss:$16 sps:$4 sm:$0xff]  }
 0x491   : > { %v6614_v33 = vpop.f32.mrf.mxu0  ;;  %7654 = vmatprep.subr.bf16.mxu0 %v11509_v50  ;;  %7695 = vmatprep.subr.bf16.mxu1 %v11510_v10  ;;  %v6408_v9 = vpop.f32.mrf.mxu1  ;;  %v11512_v59 = vld [vmem:[%s12140_s9 + $0x5c0] ss:$16 sps:$4 sm:$0xff]   ;;  %v11514_v50 = vld [vmem:[%s12140_s9 + $0x5a4] ss:$16 sps:$4 sm:$0xff]  }
 0x492   : > { %17474 = vst [vmem:[#allocation355_spill] sm:$0xff] %v14644_v26  ;;  %v11513_v33 = vld [vmem:[%s12140_s9 + $0x3a4] ss:$16 sps:$4 sm:$0xff]  }
 0x493   : > { %v6615_v3 = vpop.f32.mrf.mxu0  ;;  %v14650_v48 = vpop.f32.mrf.mxu1 }
 0x494   : > { %v14653_v62 = vadd.f32 %v6615_v3, %v14570_v18  ;;  %7655 = vmatpush1.bf16.msra.mxu0 %v11511_v45  ;;  %7696 = vmatpush1.bf16.msra.mxu1 %v11512_v59  ;;  %v11515_v3 = vld [vmem:[%s12140_s9 + $0x3a0] ss:$16 sps:$4 sm:$0xff]  }
 0x495   : > { %v6617_v58 = vpop.f32.mrf.mxu0  ;;  %7656 = vmatprep.subr.bf16.mxu0 %v11513_v33  ;;  %7697 = vmatprep.subr.bf16.mxu1 %v11514_v50  ;;  %v6413_v10 = vpop.f32.mrf.mxu1  ;;  %v11516_v45 = vld [vmem:[%s12140_s9 + $0x5a0] ss:$16 sps:$4 sm:$0xff]   ;;  %v11518_v33 = vld [vmem:[%s12140_s9 + $0x584] ss:$16 sps:$4 sm:$0xff]  }
 0x496   : > { %17475 = vst [vmem:[#allocation356_spill] sm:$0xff] %v14653_v62  ;;  %v11517_v58 = vld [vmem:[%s12140_s9 + $0x384] ss:$16 sps:$4 sm:$0xff]  }
 0x497   : > { %v6620_v9 = vpop.f32.mrf.mxu0  ;;  %v14659_v26 = vpop.f32.mrf.mxu1 }
 0x498   : > { %v14662_v18 = vadd.f32 %v6620_v9, %v14579_v15  ;;  %7657 = vmatpush1.bf16.msra.mxu0 %v11515_v3  ;;  %7698 = vmatpush1.bf16.msra.mxu1 %v11516_v45  ;;  %v11519_v9 = vld [vmem:[%s12140_s9 + $0x380] ss:$16 sps:$4 sm:$0xff]  }
 0x499   : > { %v6622_v59 = vpop.f32.mrf.mxu0  ;;  %7658 = vmatprep.subr.bf16.mxu0 %v11517_v58  ;;  %7699 = vmatprep.subr.bf16.mxu1 %v11518_v33  ;;  %v6416_v50 = vpop.f32.mrf.mxu1  ;;  %v11520_v3 = vld [vmem:[%s12140_s9 + $0x580] ss:$16 sps:$4 sm:$0xff]   ;;  %v11522_v58 = vld [vmem:[%s12140_s9 + $0x564] ss:$16 sps:$4 sm:$0xff]  }
 0x49a   : > { %17476 = vst [vmem:[#allocation357_spill] sm:$0xff] %v14662_v18  ;;  %v11521_v59 = vld [vmem:[%s12140_s9 + $0x364] ss:$16 sps:$4 sm:$0xff]  }
 0x49b   : > { %v6623_v10 = vpop.f32.mrf.mxu0  ;;  %v14668_v62 = vpop.f32.mrf.mxu1 }
 0x49c   : > { %v14671_v15 = vadd.f32 %v6623_v10, %v14588_v21  ;;  %7659 = vmatpush1.bf16.msra.mxu0 %v11519_v9  ;;  %7700 = vmatpush1.bf16.msra.mxu1 %v11520_v3  ;;  %v11523_v10 = vld [vmem:[%s12140_s9 + $0x360] ss:$16 sps:$4 sm:$0xff]  }
 0x49d   : > { %v6625_v45 = vpop.f32.mrf.mxu0  ;;  %7660 = vmatprep.subr.bf16.mxu0 %v11521_v59  ;;  %7701 = vmatprep.subr.bf16.mxu1 %v11522_v58  ;;  %v6421_v33 = vpop.f32.mrf.mxu1  ;;  %v11524_v9 = vld [vmem:[%s12140_s9 + $0x560] ss:$16 sps:$4 sm:$0xff]   ;;  %v11526_v59 = vld [vmem:[%s12140_s9 + $0x544] ss:$16 sps:$4 sm:$0xff]  }
 0x49e   : > { %17477 = vst [vmem:[#allocation358_spill] sm:$0xff] %v14671_v15  ;;  %v11525_v45 = vld [vmem:[%s12140_s9 + $0x344] ss:$16 sps:$4 sm:$0xff]  }
 0x49f   : > { %v6628_v50 = vpop.f32.mrf.mxu0  ;;  %v14677_v18 = vpop.f32.mrf.mxu1 }
 0x4a0   : > { %v14680_v21 = vadd.f32 %v6628_v50, %v14602_v29  ;;  %7661 = vmatpush1.bf16.msra.mxu0 %v11523_v10  ;;  %7702 = vmatpush1.bf16.msra.mxu1 %v11524_v9  ;;  %v11527_v50 = vld [vmem:[%s12140_s9 + $0x340] ss:$16 sps:$4 sm:$0xff]  }
 0x4a1   : > { %v6630_v3 = vpop.f32.mrf.mxu0  ;;  %7662 = vmatprep.subr.bf16.mxu0 %v11525_v45  ;;  %7703 = vmatprep.subr.bf16.mxu1 %v11526_v59  ;;  %v6424_v58 = vpop.f32.mrf.mxu1  ;;  %v11528_v10 = vld [vmem:[%s12140_s9 + $0x540] ss:$16 sps:$4 sm:$0xff]   ;;  %v11530_v45 = vld [vmem:[%s12140_s9 + $0x524] ss:$16 sps:$4 sm:$0xff]  }
 0x4a2   : > { %17478 = vst [vmem:[#allocation359_spill] sm:$0xff] %v14680_v21  ;;  %v11529_v3 = vld [vmem:[%s12140_s9 + $0x324] ss:$16 sps:$4 sm:$0xff]   ;;  %v14697_v21 = vrot.slane %v14591_v13, %v14438_v39 }
 0x4a3   : > { %v6631_v33 = vpop.f32.mrf.mxu0  ;;  %v14686_v57 = vpop.f32.mrf.mxu1 }
 0x4a4   : > { %v14689_v29 = vadd.f32 %v6631_v33, %v14614_v40  ;;  %7663 = vmatpush1.bf16.msra.mxu0 %v11527_v50  ;;  %7704 = vmatpush1.bf16.msra.mxu1 %v11528_v10  ;;  %v11531_v50 = vld [vmem:[%s12140_s9 + $0x320] ss:$16 sps:$4 sm:$0xff]  }
 0x4a5   : > { %v6633_v9 = vpop.f32.mrf.mxu0  ;;  %7664 = vmatprep.subr.bf16.mxu0 %v11529_v3  ;;  %7705 = vmatprep.subr.bf16.mxu1 %v11530_v45  ;;  %v6429_v59 = vpop.f32.mrf.mxu1  ;;  %v11532_v10 = vld [vmem:[%s12140_s9 + $0x520] ss:$16 sps:$4 sm:$0xff]   ;;  %v11533_v3 = vld [vmem:[%s12140_s9 + $0x504] ss:$16 sps:$4 sm:$0xff]  }
 0x4a6   : > { %17479 = vst [vmem:[#allocation360_spill] sm:$0xff] %v14689_v29  ;;  %v11534_v45 = vld [vmem:[%s12140_s9 + $0x624] ss:$16 sps:$4 sm:$0xff]   ;;  %v14710_v29 = vcombine.high %v14697_v21, %v14697_v21 }
 0x4a7   : > { %v6636_v58 = vpop.f32.mrf.mxu0  ;;  %v14699_v40 = vpop.f32.mrf.mxu1 }
 0x4a8   : > { %v14702_v33 = vadd.f32 %v6636_v58, %v14629_v6  ;;  %7665 = vmatpush1.bf16.msra.mxu0 %v11531_v50  ;;  %7706 = vmatpush1.bf16.msra.mxu1 %v11532_v10  ;;  %v11535_v50 = vld [vmem:[%s12140_s9 + $0x500] ss:$16 sps:$4 sm:$0xff]  }
 0x4a9   : > { %v6638_v9 = vpop.f32.mrf.mxu0  ;;  %7666 = vmatprep.subr.bf16.mxu0 %v11533_v3  ;;  %7721 = vmatprep.subr.bf16.mxu1 %v11534_v45  ;;  %v6432_v13 = vpop.f32.mrf.mxu1  ;;  %v11536_v10 = vld [vmem:[%s12140_s9 + $0x620] ss:$16 sps:$4 sm:$0xff]   ;;  %v11537_v3 = vld [vmem:[%s12140_s9 + $0x4e4] ss:$16 sps:$4 sm:$0xff]   ;;  %v11538_v45 = vld [vmem:[%s12140_s9 + $0x40c] ss:$16 sps:$4 sm:$0xff]  }
 0x4aa   : > { %17480 = vst [vmem:[#allocation361_spill] sm:$0xff] %v14702_v33 }
 0x4ab   : > { %v6639_v59 = vpop.f32.mrf.mxu0  ;;  %v14712_v6 = vpop.f32.mrf.mxu1 }
 0x4ac   : > { %v14715_v58 = vadd.f32 %v6639_v59, %v14641_v4  ;;  %7667 = vmatpush2.bf16.msra.mxu0 %v11535_v50  ;;  %7722 = vmatpush2.bf16.msra.mxu1 %v11536_v10  ;;  %v11539_v59 = vld [vmem:[%s12140_s9 + $0x4e0] ss:$16 sps:$4 sm:$0xff]   ;;  %v11540_v50 = vld [vmem:[%s12140_s9 + $0x408] ss:$16 sps:$4 sm:$0xff]  }
 0x4ad   : > { %v6641_v9 = vpop.f32.mrf.mxu0  ;;  %7668 = vmatprep.subr.bf16.mxu0 %v11537_v3  ;;  %7732 = vmatprep.subr.bf16.mxu1 %v11538_v45  ;;  %v6437_v13 = vpop.f32.mrf.mxu1  ;;  %v11542_v3 = vld [vmem:[%s12140_s9 + $0x3ec] ss:$16 sps:$4 sm:$0xff]  }
 0x4ae   : > { %17481 = vst [vmem:[#allocation362_spill] sm:$0xff] %v14715_v58  ;;  %v11541_v9 = vld [vmem:[%s12140_s9 + $0x4c4] ss:$16 sps:$4 sm:$0xff]  }
 0x4af   : > { %v6644_v33 = vpop.f32.mrf.mxu0  ;;  %7724 = vmatmul.mubr.bf16.vlgmr.msra.gmra.mxu1 %v14710_v29  ;;  %v14722_v15 = vpop.f32.mrf.mxu1 }
 0x4b0   : > { %v14725_v4 = vadd.f32 %v6644_v33, %v14650_v48  ;;  %7669 = vmatpush2.bf16.msra.mxu0 %v11539_v59  ;;  %7733 = vmatpush1.bf16.msra.mxu1 %v11540_v50  ;;  %v11543_v33 = vld [vmem:[%s12140_s9 + $0x4c0] ss:$16 sps:$4 sm:$0xff]   ;;  %v11544_v59 = vld [vmem:[%s12140_s9 + $0x3e8] ss:$16 sps:$4 sm:$0xff]  }
 0x4b1   : > { %v6646_v10 = vpop.f32.mrf.mxu0  ;;  %7670 = vmatprep.subr.bf16.mxu0 %v11541_v9  ;;  %7734 = vmatprep.subr.bf16.mxu1 %v11542_v3  ;;  %v6440_v45 = vpop.f32.mrf.mxu1  ;;  %v11546_v9 = vld [vmem:[%s12140_s9 + $0x3cc] ss:$16 sps:$4 sm:$0xff]  }
 0x4b2   : > { %17482 = vst [vmem:[#allocation363_spill] sm:$0xff] %v14725_v4  ;;  %7764 = vmatprep.mubr.bf16.mxu1 %v14612_v1  ;;  %v11545_v10 = vld [vmem:[%s12140_s9 + $0x4a4] ss:$16 sps:$4 sm:$0xff]  }
 0x4b3   : > { %v6647_v13 = vpop.f32.mrf.mxu0  ;;  %v14732_v58 = vpop.f32.mrf.mxu1 }
 0x4b4   : > { %v14735_v48 = vadd.f32 %v6647_v13, %v14659_v26  ;;  %7671 = vmatpush2.bf16.msra.mxu0 %v11543_v33  ;;  %7735 = vmatpush1.bf16.msra.mxu1 %v11544_v59  ;;  %v11547_v13 = vld [vmem:[%s12140_s9 + $0x4a0] ss:$16 sps:$4 sm:$0xff]   ;;  %v11548_v33 = vld [vmem:[%s12140_s9 + $0x3c8] ss:$16 sps:$4 sm:$0xff]  }
 0x4b5   : > { %v6649_v50 = vpop.f32.mrf.mxu0  ;;  %7672 = vmatprep.subr.bf16.mxu0 %v11545_v10  ;;  %7736 = vmatprep.subr.bf16.mxu1 %v11546_v9  ;;  %v6445_v1 = vpop.f32.mrf.mxu1  ;;  %v11550_v10 = vld [vmem:[%s12140_s9 + $0x3ac] ss:$16 sps:$4 sm:$0xff]  }
 0x4b6   : > { %17483 = vst [vmem:[#allocation364_spill] sm:$0xff] %v14735_v48  ;;  %v11549_v50 = vld [vmem:[%s12140_s9 + $0x484] ss:$16 sps:$4 sm:$0xff]  }
 0x4b7   : > { %v6652_v3 = vpop.f32.mrf.mxu0  ;;  %v14741_v45 = vpop.f32.mrf.mxu1 }
 0x4b8   : > { %v14744_v26 = vadd.f32 %v6652_v3, %v14668_v62  ;;  %7673 = vmatpush2.bf16.msra.mxu0 %v11547_v13  ;;  %7737 = vmatpush1.bf16.msra.mxu1 %v11548_v33  ;;  %v11551_v3 = vld [vmem:[%s12140_s9 + $0x480] ss:$16 sps:$4 sm:$0xff]   ;;  %v11552_v13 = vld [vmem:[%s12140_s9 + $0x3a8] ss:$16 sps:$4 sm:$0xff]  }
 0x4b9   : > { %v6654_v59 = vpop.f32.mrf.mxu0  ;;  %7674 = vmatprep.subr.bf16.mxu0 %v11549_v50  ;;  %7738 = vmatprep.subr.bf16.mxu1 %v11550_v10  ;;  %v6448_v9 = vpop.f32.mrf.mxu1  ;;  %v11554_v50 = vld [vmem:[%s12140_s9 + $0x38c] ss:$16 sps:$4 sm:$0xff]  }
 0x4ba   : > { %17484 = vst [vmem:[#allocation365_spill] sm:$0xff] %v14744_v26  ;;  %v11553_v59 = vld [vmem:[%s12140_s9 + $0x464] ss:$16 sps:$4 sm:$0xff]  }
 0x4bb   : > { %v6655_v1 = vpop.f32.mrf.mxu0  ;;  %v14750_v4 = vpop.f32.mrf.mxu1 }
 0x4bc   : > { %v14753_v62 = vadd.f32 %v6655_v1, %v14677_v18  ;;  %7675 = vmatpush2.bf16.msra.mxu0 %v11551_v3  ;;  %7739 = vmatpush1.bf16.msra.mxu1 %v11552_v13  ;;  %v11555_v1 = vld [vmem:[%s12140_s9 + $0x460] ss:$16 sps:$4 sm:$0xff]   ;;  %v11556_v3 = vld [vmem:[%s12140_s9 + $0x388] ss:$16 sps:$4 sm:$0xff]  }
 0x4bd   : > { %v6657_v33 = vpop.f32.mrf.mxu0  ;;  %7676 = vmatprep.subr.bf16.mxu0 %v11553_v59  ;;  %7740 = vmatprep.subr.bf16.mxu1 %v11554_v50  ;;  %v6453_v10 = vpop.f32.mrf.mxu1  ;;  %v11558_v59 = vld [vmem:[%s12140_s9 + $0x36c] ss:$16 sps:$4 sm:$0xff]  }
 0x4be   : > { %17485 = vst [vmem:[#allocation366_spill] sm:$0xff] %v14753_v62  ;;  %v11557_v33 = vld [vmem:[%s12140_s9 + $0x444] ss:$16 sps:$4 sm:$0xff]  }
 0x4bf   : > { %v6660_v9 = vpop.f32.mrf.mxu0  ;;  %v14759_v48 = vpop.f32.mrf.mxu1 }
 0x4c0   : > { %v14762_v18 = vadd.f32 %v6660_v9, %v14686_v57  ;;  %7677 = vmatpush2.bf16.msra.mxu0 %v11555_v1  ;;  %7741 = vmatpush1.bf16.msra.mxu1 %v11556_v3  ;;  %v11559_v9 = vld [vmem:[%s12140_s9 + $0x440] ss:$16 sps:$4 sm:$0xff]   ;;  %v11560_v1 = vld [vmem:[%s12140_s9 + $0x368] ss:$16 sps:$4 sm:$0xff]  }
 0x4c1   : > { %v6662_v13 = vpop.f32.mrf.mxu0  ;;  %7678 = vmatprep.subr.bf16.mxu0 %v11557_v33  ;;  %7742 = vmatprep.subr.bf16.mxu1 %v11558_v59  ;;  %v6456_v50 = vpop.f32.mrf.mxu1  ;;  %v11562_v33 = vld [vmem:[%s12140_s9 + $0x34c] ss:$16 sps:$4 sm:$0xff]  }
 0x4c2   : > { %17486 = vst [vmem:[#allocation367_spill] sm:$0xff] %v14762_v18  ;;  %v11561_v13 = vld [vmem:[%s12140_s9 + $0x424] ss:$16 sps:$4 sm:$0xff]  }
 0x4c3   : > { %v6663_v10 = vpop.f32.mrf.mxu0  ;;  %v14768_v26 = vpop.f32.mrf.mxu1 }
 0x4c4   : > { %v14771_v57 = vadd.f32 %v6663_v10, %v14699_v40  ;;  %7679 = vmatpush2.bf16.msra.mxu0 %v11559_v9  ;;  %7743 = vmatpush1.bf16.msra.mxu1 %v11560_v1  ;;  %v11563_v10 = vld [vmem:[%s12140_s9 + $0x420] ss:$16 sps:$4 sm:$0xff]   ;;  %v11564_v9 = vld [vmem:[%s12140_s9 + $0x348] ss:$16 sps:$4 sm:$0xff]  }
 0x4c5   : > { %v6665_v3 = vpop.f32.mrf.mxu0  ;;  %7680 = vmatprep.subr.bf16.mxu0 %v11561_v13  ;;  %7744 = vmatprep.subr.bf16.mxu1 %v11562_v33  ;;  %v6461_v59 = vpop.f32.mrf.mxu1  ;;  %v11566_v13 = vld [vmem:[%s12140_s9 + $0x60c] ss:$16 sps:$4 sm:$0xff]  }
 0x4c6   : > { %17487 = vst [vmem:[#allocation368_spill] sm:$0xff] %v14771_v57  ;;  %v11565_v3 = vld [vmem:[%s12140_s9 + $0x32c] ss:$16 sps:$4 sm:$0xff]  }
 0x4c7   : > { %v6668_v50 = vpop.f32.mrf.mxu0  ;;  %v14777_v62 = vpop.f32.mrf.mxu1 }
 0x4c8   : > { %v14780_v40 = vadd.f32 %v6668_v50, %v14712_v6  ;;  %7681 = vmatpush2.bf16.msra.mxu0 %v11563_v10  ;;  %7745 = vmatpush1.bf16.msra.mxu1 %v11564_v9  ;;  %v11567_v50 = vld [vmem:[%s12140_s9 + $0x328] ss:$16 sps:$4 sm:$0xff]  }
 0x4c9   : > { %v6670_v1 = vpop.f32.mrf.mxu0  ;;  %7746 = vmatprep.subr.bf16.mxu1 %v11565_v3  ;;  %7773 = vmatprep.subr.bf16.mxu0 %v11566_v13  ;;  %v6464_v33 = vpop.f32.mrf.mxu1  ;;  %v11568_v10 = vld [vmem:[%s12140_s9 + $0x608] ss:$16 sps:$4 sm:$0xff]   ;;  %v11570_v3 = vld [vmem:[%s12140_s9 + $0x5ec] ss:$16 sps:$4 sm:$0xff]  }
 0x4ca   : > { %17488 = vst [vmem:[#allocation369_spill] sm:$0xff] %v14780_v40  ;;  %v11569_v1 = vld [vmem:[%s12140_s9 + $0x50c] ss:$16 sps:$4 sm:$0xff]  }
 0x4cb   : > { %v6671_v59 = vpop.f32.mrf.mxu0  ;;  %7683 = vmatmul.mubr.bf16.vlgmr.msra.gmra.mxu0 %v14697_v21  ;;  %v14787_v18 = vpop.f32.mrf.mxu1 }
 0x4cc   : > { %v14790_v6 = vadd.f32 %v6671_v59, %v14722_v15  ;;  %7747 = vmatpush1.bf16.msra.mxu1 %v11567_v50  ;;  %7774 = vmatpush1.bf16.msra.mxu0 %v11568_v10  ;;  %v11571_v50 = vld [vmem:[%s12140_s9 + $0x508] ss:$16 sps:$4 sm:$0xff]  }
 0x4cd   : > { %v6673_v9 = vpop.f32.mrf.mxu0  ;;  %7748 = vmatprep.subr.bf16.mxu1 %v11569_v1  ;;  %7775 = vmatprep.subr.bf16.mxu0 %v11570_v3  ;;  %v6469_v13 = vpop.f32.mrf.mxu1  ;;  %v11572_v10 = vld [vmem:[%s12140_s9 + $0x5e8] ss:$16 sps:$4 sm:$0xff]   ;;  %v11573_v1 = vld [vmem:[%s12140_s9 + $0x4ec] ss:$16 sps:$4 sm:$0xff]  }
 0x4ce   : > { %17489 = vst [vmem:[#allocation370_spill] sm:$0xff] %v14790_v6  ;;  %9995 = vmatprep.mubr.msk.bf16.mxu0 %vm3173_vm0, %v14625_v46  ;;  %v11574_v3 = vld [vmem:[%s12140_s9 + $0x5cc] ss:$16 sps:$4 sm:$0xff]  }
 0x4cf   : > { %v6676_v33 = vpop.f32.mrf.mxu0  ;;  %v14798_v15 = vpop.f32.mrf.mxu1 }
 0x4d0   : > { %v14801_v59 = vadd.f32 %v6676_v33, %v14732_v58  ;;  %7749 = vmatpush2.bf16.msra.mxu1 %v11571_v50  ;;  %7776 = vmatpush1.bf16.msra.mxu0 %v11572_v10  ;;  %v11575_v33 = vld [vmem:[%s12140_s9 + $0x4e8] ss:$16 sps:$4 sm:$0xff]  }
 0x4d1   : > { %v6678_v9 = vpop.f32.mrf.mxu0  ;;  %7750 = vmatprep.subr.bf16.mxu1 %v11573_v1  ;;  %7777 = vmatprep.subr.bf16.mxu0 %v11574_v3  ;;  %v6472_v46 = vpop.f32.mrf.mxu1  ;;  %v11576_v50 = vld [vmem:[%s12140_s9 + $0x5c8] ss:$16 sps:$4 sm:$0xff]   ;;  %v11578_v1 = vld [vmem:[%s12140_s9 + $0x5ac] ss:$16 sps:$4 sm:$0xff]  }
 0x4d2   : > { %17490 = vst [vmem:[#allocation371_spill] sm:$0xff] %v14801_v59  ;;  %v11577_v9 = vld [vmem:[%s12140_s9 + $0x4cc] ss:$16 sps:$4 sm:$0xff]  }
 0x4d3   : > { %v6679_v13 = vpop.f32.mrf.mxu0  ;;  %v14807_v57 = vpop.f32.mrf.mxu1 }
 0x4d4   : > { %v14810_v58 = vadd.f32 %v6679_v13, %v14741_v45  ;;  %7751 = vmatpush2.bf16.msra.mxu1 %v11575_v33  ;;  %7778 = vmatpush1.bf16.msra.mxu0 %v11576_v50  ;;  %v11579_v13 = vld [vmem:[%s12140_s9 + $0x4c8] ss:$16 sps:$4 sm:$0xff]  }
 0x4d5   : > { %v6681_v10 = vpop.f32.mrf.mxu0  ;;  %7752 = vmatprep.subr.bf16.mxu1 %v11577_v9  ;;  %7779 = vmatprep.subr.bf16.mxu0 %v11578_v1  ;;  %v6477_v3 = vpop.f32.mrf.mxu1  ;;  %v11580_v33 = vld [vmem:[%s12140_s9 + $0x5a8] ss:$16 sps:$4 sm:$0xff]   ;;  %v11582_v9 = vld [vmem:[%s12140_s9 + $0x58c] ss:$16 sps:$4 sm:$0xff]  }
 0x4d6   : > { %17491 = vst [vmem:[#allocation372_spill] sm:$0xff] %v14810_v58  ;;  %v11581_v10 = vld [vmem:[%s12140_s9 + $0x4ac] ss:$16 sps:$4 sm:$0xff]  }
 0x4d7   : > { %v6684_v46 = vpop.f32.mrf.mxu0  ;;  %v14816_v40 = vpop.f32.mrf.mxu1 }
 0x4d8   : > { %v14819_v45 = vadd.f32 %v6684_v46, %v14750_v4  ;;  %7753 = vmatpush2.bf16.msra.mxu1 %v11579_v13  ;;  %7780 = vmatpush1.bf16.msra.mxu0 %v11580_v33  ;;  %v11583_v46 = vld [vmem:[%s12140_s9 + $0x4a8] ss:$16 sps:$4 sm:$0xff]  }
 0x4d9   : > { %v6686_v50 = vpop.f32.mrf.mxu0  ;;  %7754 = vmatprep.subr.bf16.mxu1 %v11581_v10  ;;  %7781 = vmatprep.subr.bf16.mxu0 %v11582_v9  ;;  %v6480_v1 = vpop.f32.mrf.mxu1  ;;  %v11584_v13 = vld [vmem:[%s12140_s9 + $0x588] ss:$16 sps:$4 sm:$0xff]   ;;  %v11586_v10 = vld [vmem:[%s12140_s9 + $0x56c] ss:$16 sps:$4 sm:$0xff]  }
 0x4da   : > { %17492 = vst [vmem:[#allocation373_spill] sm:$0xff] %v14819_v45  ;;  %v11585_v50 = vld [vmem:[%s12140_s9 + $0x48c] ss:$16 sps:$4 sm:$0xff]  }
 0x4db   : > { %v6687_v3 = vpop.f32.mrf.mxu0  ;;  %v14825_v6 = vpop.f32.mrf.mxu1  ;;  %v14846_v45 = vld.sshfl [vmem:[%s14420_s8 + $0x8] sm:$0x33 pattern:$0x75316420] }
 0x4dc   : > { %v14828_v4 = vadd.f32 %v6687_v3, %v14759_v48  ;;  %7755 = vmatpush2.bf16.msra.mxu1 %v11583_v46  ;;  %7782 = vmatpush1.bf16.msra.mxu0 %v11584_v13  ;;  %v11587_v3 = vld [vmem:[%s12140_s9 + $0x488] ss:$16 sps:$4 sm:$0xff]  }
 0x4dd   : > { %v6689_v33 = vpop.f32.mrf.mxu0  ;;  %7756 = vmatprep.subr.bf16.mxu1 %v11585_v50  ;;  %7783 = vmatprep.subr.bf16.mxu0 %v11586_v10  ;;  %v6485_v9 = vpop.f32.mrf.mxu1  ;;  %v11588_v46 = vld [vmem:[%s12140_s9 + $0x568] ss:$16 sps:$4 sm:$0xff]   ;;  %v11590_v50 = vld [vmem:[%s12140_s9 + $0x54c] ss:$16 sps:$4 sm:$0xff]  }
 0x4de   : > { %17493 = vst [vmem:[#allocation374_spill] sm:$0xff] %v14828_v4  ;;  %v11589_v33 = vld [vmem:[%s12140_s9 + $0x46c] ss:$16 sps:$4 sm:$0xff]  }
 0x4df   : > { %v6692_v1 = vpop.f32.mrf.mxu0  ;;  %v14834_v59 = vpop.f32.mrf.mxu1 }
 0x4e0   : > { %v14837_v48 = vadd.f32 %v6692_v1, %v14768_v26  ;;  %7757 = vmatpush2.bf16.msra.mxu1 %v11587_v3  ;;  %7784 = vmatpush1.bf16.msra.mxu0 %v11588_v46  ;;  %v11591_v1 = vld [vmem:[%s12140_s9 + $0x468] ss:$16 sps:$4 sm:$0xff]  }
 0x4e1   : > { %v6694_v13 = vpop.f32.mrf.mxu0  ;;  %7758 = vmatprep.subr.bf16.mxu1 %v11589_v33  ;;  %7785 = vmatprep.subr.bf16.mxu0 %v11590_v50  ;;  %v6488_v10 = vpop.f32.mrf.mxu1  ;;  %v11592_v3 = vld [vmem:[%s12140_s9 + $0x548] ss:$16 sps:$4 sm:$0xff]   ;;  %v11594_v33 = vld [vmem:[%s12140_s9 + $0x52c] ss:$16 sps:$4 sm:$0xff]  }
 0x4e2   : > { %17494 = vst [vmem:[#allocation375_spill] sm:$0xff] %v14837_v48  ;;  %v11593_v13 = vld [vmem:[%s12140_s9 + $0x44c] ss:$16 sps:$4 sm:$0xff]   ;;  %v7822_v10 = vcombine.high %v14846_v45, %v14846_v45 }
 0x4e3   : > { %v6695_v9 = vpop.f32.mrf.mxu0  ;;  %v14843_v58 = vpop.f32.mrf.mxu1 }
 0x4e4   : > { %v14849_v26 = vadd.f32 %v6695_v9, %v14777_v62  ;;  %7759 = vmatpush2.bf16.msra.mxu1 %v11591_v1  ;;  %7786 = vmatpush1.bf16.msra.mxu0 %v11592_v3  ;;  %v11595_v9 = vld [vmem:[%s12140_s9 + $0x448] ss:$16 sps:$4 sm:$0xff]  }
 0x4e5   : > { %v6697_v46 = vpop.f32.mrf.mxu0  ;;  %7760 = vmatprep.subr.bf16.mxu1 %v11593_v13  ;;  %7787 = vmatprep.subr.bf16.mxu0 %v11594_v33  ;;  %v6493_v50 = vpop.f32.mrf.mxu1  ;;  %v11596_v1 = vld [vmem:[%s12140_s9 + $0x528] ss:$16 sps:$4 sm:$0xff]   ;;  %v11598_v13 = vld [vmem:[%s12140_s9 + $0x62c] ss:$16 sps:$4 sm:$0xff]  }
 0x4e6   : > { %17495 = vst [vmem:[#allocation376_spill] sm:$0xff] %v14849_v26  ;;  %v11597_v46 = vld [vmem:[%s12140_s9 + $0x42c] ss:$16 sps:$4 sm:$0xff]   ;;  %v14867_v50 = vrot.slane %v7822_v10, %v14438_v39 }
 0x4e7   : > { %v6700_v48 = vpop.f32.mrf.mxu0  ;;  %v14857_v49 = vpop.f32.mrf.mxu1 }
 0x4e8   : > { %v14860_v62 = vadd.f32 %v6700_v48, %v14787_v18  ;;  %7761 = vmatpush2.bf16.msra.mxu1 %v11595_v9  ;;  %7788 = vmatpush1.bf16.msra.mxu0 %v11596_v1  ;;  %v11599_v48 = vld [vmem:[%s12140_s9 + $0x428] ss:$16 sps:$4 sm:$0xff]  }
 0x4e9   : > { %v6702_v3 = vpop.f32.mrf.mxu0  ;;  %7762 = vmatprep.subr.bf16.mxu1 %v11597_v46  ;;  %7803 = vmatprep.subr.bf16.mxu0 %v11598_v13  ;;  %v6496_v33 = vpop.f32.mrf.mxu1  ;;  %v11600_v9 = vld [vmem:[%s12140_s9 + $0x628] ss:$16 sps:$4 sm:$0xff]   ;;  %v11602_v46 = vld [vmem:[%s12140_s9 + $0x924] ss:$16 sps:$4 sm:$0xff]   ;;  %v14880_v13 = vcombine.high %v14867_v50, %v14867_v50 }
 0x4ea   : > { %17496 = vst [vmem:[#allocation377_spill] sm:$0xff] %v14860_v62  ;;  %v11601_v3 = vld [vmem:[%s12140_s9 + $0x724] ss:$16 sps:$4 sm:$0xff]  }
 0x4eb   : > { %v6703_v26 = vpop.f32.mrf.mxu0  ;;  %v14869_v4 = vpop.f32.mrf.mxu1 }
 0x4ec   : > { %v14872_v18 = vadd.f32 %v6703_v26, %v14798_v15  ;;  %7763 = vmatpush2.bf16.msra.mxu1 %v11599_v48  ;;  %7804 = vmatpush2.bf16.msra.mxu0 %v11600_v9  ;;  %v11603_v48 = vld [vmem:[%s12140_s9 + $0x720] ss:$16 sps:$4 sm:$0xff]  }
 0x4ed   : > { %v6705_v1 = vpop.f32.mrf.mxu0  ;;  %7870 = vmatprep.subr.bf16.mxu0 %v11601_v3  ;;  %7911 = vmatprep.subr.bf16.mxu1 %v11602_v46  ;;  %v6501_v10 = vpop.f32.mrf.mxu1  ;;  %v11604_v9 = vld [vmem:[%s12140_s9 + $0x920] ss:$16 sps:$4 sm:$0xff]   ;;  %v11605_v3 = vld [vmem:[%s12140_s9 + $0x704] ss:$16 sps:$4 sm:$0xff]  }
 0x4ee   : > { %17497 = vst [vmem:[#allocation378_spill] sm:$0xff] %v14872_v18  ;;  %v11606_v46 = vld [vmem:[%s12140_s9 + $0x904] ss:$16 sps:$4 sm:$0xff]  }
 0x4ef   : > { %v6708_v15 = vpop.f32.mrf.mxu0  ;;  %7765 = vmatmul.mubr.bf16.vlgmr.msra.gmra.mxu1 %v14697_v21  ;;  %7806 = vmatmul.mubr.bf16.vlgmr.msra.gmra.mxu0 %v14710_v29  ;;  %v14884_v26 = vpop.f32.mrf.mxu1 }
 0x4f0   : > { %v14887_v33 = vadd.f32 %v6708_v15, %v14807_v57  ;;  %7871 = vmatpush1.bf16.msra.mxu0 %v11603_v48  ;;  %7912 = vmatpush1.bf16.msra.mxu1 %v11604_v9  ;;  %v11607_v15 = vld [vmem:[%s12140_s9 + $0x700] ss:$16 sps:$4 sm:$0xff]  }
 0x4f1   : > { %v6710_v1 = vpop.f32.mrf.mxu0  ;;  %7872 = vmatprep.subr.bf16.mxu0 %v11605_v3  ;;  %7913 = vmatprep.subr.bf16.mxu1 %v11606_v46  ;;  %v6504_v21 = vpop.f32.mrf.mxu1  ;;  %v11608_v48 = vld [vmem:[%s12140_s9 + $0x900] ss:$16 sps:$4 sm:$0xff]   ;;  %v11610_v3 = vld [vmem:[%s12140_s9 + $0x8e4] ss:$16 sps:$4 sm:$0xff]  }
 0x4f2   : > { %17498 = vst [vmem:[#allocation379_spill] sm:$0xff] %v14887_v33  ;;  %9997 = vmatprep.mubr.msk.bf16.mxu1 %vm3173_vm0, %v14880_v13  ;;  %7902 = vmatprep.mubr.bf16.mxu0 %v14867_v50  ;;  %v11609_v1 = vld [vmem:[%s12140_s9 + $0x6e4] ss:$16 sps:$4 sm:$0xff]  }
 0x4f3   : > { %v6711_v29 = vpop.f32.mrf.mxu0  ;;  %v14896_v57 = vpop.f32.mrf.mxu1 }
 0x4f4   : > { %v14899_v10 = vadd.f32 %v6711_v29, %v14816_v40  ;;  %7873 = vmatpush1.bf16.msra.mxu0 %v11607_v15  ;;  %7914 = vmatpush1.bf16.msra.mxu1 %v11608_v48  ;;  %v11611_v29 = vld [vmem:[%s12140_s9 + $0x6e0] ss:$16 sps:$4 sm:$0xff]  }
 0x4f5   : > { %v6713_v9 = vpop.f32.mrf.mxu0  ;;  %7874 = vmatprep.subr.bf16.mxu0 %v11609_v1  ;;  %7915 = vmatprep.subr.bf16.mxu1 %v11610_v3  ;;  %v6509_v46 = vpop.f32.mrf.mxu1  ;;  %v11612_v15 = vld [vmem:[%s12140_s9 + $0x8e0] ss:$16 sps:$4 sm:$0xff]   ;;  %v11614_v1 = vld [vmem:[%s12140_s9 + $0x8c4] ss:$16 sps:$4 sm:$0xff]  }
 0x4f6   : > { %17499 = vst [vmem:[#allocation380_spill] sm:$0xff] %v14899_v10  ;;  %v11613_v9 = vld [vmem:[%s12140_s9 + $0x6c4] ss:$16 sps:$4 sm:$0xff]  }
 0x4f7   : > { %v6716_v21 = vpop.f32.mrf.mxu0  ;;  %v14905_v62 = vpop.f32.mrf.mxu1 }
 0x4f8   : > { %v14908_v40 = vadd.f32 %v6716_v21, %v14825_v6  ;;  %7875 = vmatpush1.bf16.msra.mxu0 %v11611_v29  ;;  %7916 = vmatpush1.bf16.msra.mxu1 %v11612_v15  ;;  %v11615_v21 = vld [vmem:[%s12140_s9 + $0x6c0] ss:$16 sps:$4 sm:$0xff]  }
 0x4f9   : > { %v6718_v48 = vpop.f32.mrf.mxu0  ;;  %7876 = vmatprep.subr.bf16.mxu0 %v11613_v9  ;;  %7917 = vmatprep.subr.bf16.mxu1 %v11614_v1  ;;  %v6512_v3 = vpop.f32.mrf.mxu1  ;;  %v11616_v29 = vld [vmem:[%s12140_s9 + $0x8c0] ss:$16 sps:$4 sm:$0xff]   ;;  %v11618_v9 = vld [vmem:[%s12140_s9 + $0x8a4] ss:$16 sps:$4 sm:$0xff]  }
 0x4fa   : > { %17500 = vst [vmem:[#allocation381_spill] sm:$0xff] %v14908_v40  ;;  %v11617_v48 = vld [vmem:[%s12140_s9 + $0x6a4] ss:$16 sps:$4 sm:$0xff]  }
 0x4fb   : > { %v6719_v46 = vpop.f32.mrf.mxu0  ;;  %v14914_v18 = vpop.f32.mrf.mxu1 }
 0x4fc   : > { %v14917_v6 = vadd.f32 %v6719_v46, %v14834_v59  ;;  %7877 = vmatpush1.bf16.msra.mxu0 %v11615_v21  ;;  %7918 = vmatpush1.bf16.msra.mxu1 %v11616_v29  ;;  %v11619_v46 = vld [vmem:[%s12140_s9 + $0x6a0] ss:$16 sps:$4 sm:$0xff]  }
 0x4fd   : > { %v6721_v15 = vpop.f32.mrf.mxu0  ;;  %7878 = vmatprep.subr.bf16.mxu0 %v11617_v48  ;;  %7919 = vmatprep.subr.bf16.mxu1 %v11618_v9  ;;  %v6517_v1 = vpop.f32.mrf.mxu1  ;;  %v11620_v21 = vld [vmem:[%s12140_s9 + $0x8a0] ss:$16 sps:$4 sm:$0xff]   ;;  %v11622_v48 = vld [vmem:[%s12140_s9 + $0x884] ss:$16 sps:$4 sm:$0xff]  }
 0x4fe   : > { %17501 = vst [vmem:[#allocation382_spill] sm:$0xff] %v14917_v6  ;;  %v11621_v15 = vld [vmem:[%s12140_s9 + $0x684] ss:$16 sps:$4 sm:$0xff]   ;;  %v14952_v6 = vrot.slane %v14846_v45, %v14438_v39 }
 0x4ff   : > { %v6724_v3 = vpop.f32.mrf.mxu0  ;;  %v14923_v33 = vpop.f32.mrf.mxu1 }
 0x500   : > { %v14926_v59 = vadd.f32 %v6724_v3, %v14843_v58  ;;  %7879 = vmatpush1.bf16.msra.mxu0 %v11619_v46  ;;  %7920 = vmatpush1.bf16.msra.mxu1 %v11620_v21  ;;  %v11623_v3 = vld [vmem:[%s12140_s9 + $0x680] ss:$16 sps:$4 sm:$0xff]  }
 0x501   : > { %v6726_v29 = vpop.f32.mrf.mxu0  ;;  %7880 = vmatprep.subr.bf16.mxu0 %v11621_v15  ;;  %7921 = vmatprep.subr.bf16.mxu1 %v11622_v48  ;;  %v6520_v9 = vpop.f32.mrf.mxu1  ;;  %v11624_v46 = vld [vmem:[%s12140_s9 + $0x880] ss:$16 sps:$4 sm:$0xff]   ;;  %v11626_v15 = vld [vmem:[%s12140_s9 + $0x864] ss:$16 sps:$4 sm:$0xff]  }
 0x502   : > { %17502 = vst [vmem:[#allocation383_spill] sm:$0xff] %v14926_v59  ;;  %v11625_v29 = vld [vmem:[%s12140_s9 + $0x664] ss:$16 sps:$4 sm:$0xff]   ;;  %v14967_v59 = vcombine.high %v14952_v6, %v14952_v6 }
 0x503   : > { %v6727_v1 = vpop.f32.mrf.mxu0  ;;  %v14932_v10 = vpop.f32.mrf.mxu1 }
 0x504   : > { %v14935_v58 = vadd.f32 %v6727_v1, %v14857_v49  ;;  %7881 = vmatpush1.bf16.msra.mxu0 %v11623_v3  ;;  %7922 = vmatpush1.bf16.msra.mxu1 %v11624_v46  ;;  %v11627_v1 = vld [vmem:[%s12140_s9 + $0x660] ss:$16 sps:$4 sm:$0xff]  }
 0x505   : > { %v6729_v21 = vpop.f32.mrf.mxu0  ;;  %7882 = vmatprep.subr.bf16.mxu0 %v11625_v29  ;;  %7923 = vmatprep.subr.bf16.mxu1 %v11626_v15  ;;  %v6525_v48 = vpop.f32.mrf.mxu1  ;;  %v11628_v3 = vld [vmem:[%s12140_s9 + $0x860] ss:$16 sps:$4 sm:$0xff]   ;;  %v11630_v29 = vld [vmem:[%s12140_s9 + $0x844] ss:$16 sps:$4 sm:$0xff]  }
 0x506   : > { %17503 = vst [vmem:[#allocation384_spill] sm:$0xff] %v14935_v58  ;;  %v11629_v21 = vld [vmem:[%s12140_s9 + $0x644] ss:$16 sps:$4 sm:$0xff]  }
 0x507   : > { %v6732_v9 = vpop.f32.mrf.mxu0  ;;  %v14941_v40 = vpop.f32.mrf.mxu1 }
 0x508   : > { %v14944_v49 = vadd.f32 %v6732_v9, %v14869_v4  ;;  %7883 = vmatpush1.bf16.msra.mxu0 %v11627_v1  ;;  %7924 = vmatpush1.bf16.msra.mxu1 %v11628_v3  ;;  %v11631_v1 = vld [vmem:[%s12140_s9 + $0x640] ss:$16 sps:$4 sm:$0xff]  }
 0x509   : > { %v6734_v46 = vpop.f32.mrf.mxu0  ;;  %7884 = vmatprep.subr.bf16.mxu0 %v11629_v21  ;;  %7925 = vmatprep.subr.bf16.mxu1 %v11630_v29  ;;  %v6528_v15 = vpop.f32.mrf.mxu1  ;;  %v11632_v3 = vld [vmem:[%s12140_s9 + $0x840] ss:$16 sps:$4 sm:$0xff]   ;;  %v11633_v21 = vld [vmem:[%s12140_s9 + $0x824] ss:$16 sps:$4 sm:$0xff]  }
 0x50a   : > { %17504 = vst [vmem:[#allocation385_spill] sm:$0xff] %v14944_v49  ;;  %v11634_v29 = vld [vmem:[%s12140_s9 + $0x944] ss:$16 sps:$4 sm:$0xff]  }
 0x50b   : > { %v6735_v48 = vpop.f32.mrf.mxu0  ;;  %v14954_v4 = vpop.f32.mrf.mxu1 }
 0x50c   : > { %v14957_v9 = vadd.f32 %v6735_v48, %v14884_v26  ;;  %7885 = vmatpush1.bf16.msra.mxu0 %v11631_v1  ;;  %7926 = vmatpush1.bf16.msra.mxu1 %v11632_v3  ;;  %v11635_v1 = vld [vmem:[%s12140_s9 + $0x820] ss:$16 sps:$4 sm:$0xff]  }
 0x50d   : > { %v6737_v46 = vpop.f32.mrf.mxu0  ;;  %7886 = vmatprep.subr.bf16.mxu0 %v11633_v21  ;;  %7941 = vmatprep.subr.bf16.mxu1 %v11634_v29  ;;  %v14963_v45 = vpop.f32.mrf.mxu1  ;;  %v11636_v3 = vld [vmem:[%s12140_s9 + $0x940] ss:$16 sps:$4 sm:$0xff]   ;;  %v11637_v21 = vld [vmem:[%s12140_s9 + $0x804] ss:$16 sps:$4 sm:$0xff]   ;;  %v11638_v29 = vld [vmem:[%s12140_s9 + $0x72c] ss:$16 sps:$4 sm:$0xff]  }
 0x50e   : > { %17505 = vst [vmem:[#allocation386_spill] sm:$0xff] %v14957_v9  ;;  %v17520_v9 = vld [vmem:[#allocation155_spill] sm:$0xff] }
 0x50f   : > { %v6740_v15 = vpop.f32.mrf.mxu0  ;;  %v7468_v26 = vpop.f32.mrf.mxu1 }
 0x510   : > { %v14970_v48 = vadd.f32 %v6740_v15, %v14896_v57  ;;  %7887 = vmatpush2.bf16.msra.mxu0 %v11635_v1  ;;  %7942 = vmatpush2.bf16.msra.mxu1 %v11636_v3  ;;  %v11639_v15 = vld [vmem:[%s12140_s9 + $0x800] ss:$16 sps:$4 sm:$0xff]   ;;  %v11640_v26 = vld [vmem:[%s12140_s9 + $0x728] ss:$16 sps:$4 sm:$0xff]   ;;  %v11641_v3 = vld [vmem:[%s12140_s9 + $0x7e4] ss:$16 sps:$4 sm:$0xff]  }
 0x511   : > { %v6742_v46 = vpop.f32.mrf.mxu0  ;;  %7888 = vmatprep.subr.bf16.mxu0 %v11637_v21  ;;  %7952 = vmatprep.subr.bf16.mxu1 %v11638_v29  ;;  %v7469_v58 = vpop.f32.mrf.mxu1 }
 0x512   : > { %17506 = vst [vmem:[#allocation387_spill] sm:$0xff] %v14970_v48  ;;  %v11642_v46 = vld [vmem:[%s12140_s9 + $0x70c] ss:$16 sps:$4 sm:$0xff]  }
 0x513   : > { %v6743_v49 = vpop.f32.mrf.mxu0  ;;  %7944 = vmatmul.mubr.bf16.vlgmr.msra.gmra.mxu1 %v14967_v59  ;;  %v17521_v48 = vld [vmem:[#allocation32_spill] sm:$0xff] }
 0x514   : > { %v14978_v57 = vadd.f32 %v6743_v49, %v14905_v62  ;;  %7889 = vmatpush2.bf16.msra.mxu0 %v11639_v15  ;;  %7953 = vmatpush1.bf16.msra.mxu1 %v11640_v26  ;;  %v11643_v62 = vld [vmem:[%s12140_s9 + $0x7e0] ss:$16 sps:$4 sm:$0xff]   ;;  %v11644_v49 = vld [vmem:[%s12140_s9 + $0x708] ss:$16 sps:$4 sm:$0xff]   ;;  %v11645_v15 = vld [vmem:[%s12140_s9 + $0x7c4] ss:$16 sps:$4 sm:$0xff]  }
 0x515   : > { %v6745_v1 = vpop.f32.mrf.mxu0  ;;  %7890 = vmatprep.subr.bf16.mxu0 %v11641_v3  ;;  %7954 = vmatprep.subr.bf16.mxu1 %v11642_v46  ;;  %v11646_v26 = vld [vmem:[%s12140_s9 + $0x6ec] ss:$16 sps:$4 sm:$0xff]   ;;  %v11647_v3 = vld [vmem:[%s12140_s9 + $0x7c0] ss:$16 sps:$4 sm:$0xff]  }
 0x516   : > { %17507 = vst [vmem:[#allocation388_spill] sm:$0xff] %v14978_v57  ;;  %7984 = vmatprep.mubr.bf16.mxu1 %v14867_v50  ;;  %v17522_v57 = vld [vmem:[#allocation158_spill] sm:$0xff] }
 0x517   : > { %v6748_v58 = vpop.f32.mrf.mxu0 }
 0x518   : > { %v14986_v21 = vadd.f32 %v6748_v58, %v14914_v18  ;;  %7891 = vmatpush2.bf16.msra.mxu0 %v11643_v62  ;;  %7955 = vmatpush1.bf16.msra.mxu1 %v11644_v49  ;;  %v11648_v18 = vld [vmem:[%s12140_s9 + $0x6e8] ss:$16 sps:$4 sm:$0xff]   ;;  %v11649_v58 = vld [vmem:[%s12140_s9 + $0x7a4] ss:$16 sps:$4 sm:$0xff]   ;;  %v11650_v62 = vld [vmem:[%s12140_s9 + $0x6cc] ss:$16 sps:$4 sm:$0xff]  }
 0x519   : > { %v6750_v29 = vpop.f32.mrf.mxu0  ;;  %7892 = vmatprep.subr.bf16.mxu0 %v11645_v15  ;;  %7956 = vmatprep.subr.bf16.mxu1 %v11646_v26  ;;  %v11652_v15 = vld [vmem:[%s12140_s9 + $0x6c8] ss:$16 sps:$4 sm:$0xff]  }
 0x51a   : > { %17508 = vst [vmem:[#allocation389_spill] sm:$0xff] %v14986_v21 }
 0x51b   : > { %v6751_v1 = vpop.f32.mrf.mxu0 }
 0x51c   : > { %v14993_v50 = vadd.f32 %v6751_v1, %v14923_v33  ;;  %7893 = vmatpush2.bf16.msra.mxu0 %v11647_v3  ;;  %7957 = vmatpush1.bf16.msra.mxu1 %v11648_v18  ;;  %v11651_v33 = vld [vmem:[%s12140_s9 + $0x7a0] ss:$16 sps:$4 sm:$0xff]   ;;  %v11653_v1 = vld [vmem:[%s12140_s9 + $0x784] ss:$16 sps:$4 sm:$0xff]   ;;  %v11654_v3 = vld [vmem:[%s12140_s9 + $0x6ac] ss:$16 sps:$4 sm:$0xff]  }
 0x51d   : > { %v6753_v46 = vpop.f32.mrf.mxu0  ;;  %7894 = vmatprep.subr.bf16.mxu0 %v11649_v58  ;;  %7958 = vmatprep.subr.bf16.mxu1 %v11650_v62  ;;  %v11656_v58 = vld [vmem:[%s12140_s9 + $0x6a8] ss:$16 sps:$4 sm:$0xff]   ;;  %v11657_v62 = vld [vmem:[%s12140_s9 + $0x764] ss:$16 sps:$4 sm:$0xff]  }
 0x51e   : > { %17509 = vst [vmem:[#allocation390_spill] sm:$0xff] %v14993_v50 }
 0x51f   : > { %v6756_v49 = vpop.f32.mrf.mxu0 }
 0x520   : > { %v15000_v29 = vadd.f32 %v6756_v49, %v14932_v10  ;;  %7895 = vmatpush2.bf16.msra.mxu0 %v11651_v33  ;;  %7959 = vmatpush1.bf16.msra.mxu1 %v11652_v15  ;;  %v11655_v10 = vld [vmem:[%s12140_s9 + $0x780] ss:$16 sps:$4 sm:$0xff]   ;;  %v11658_v49 = vld [vmem:[%s12140_s9 + $0x68c] ss:$16 sps:$4 sm:$0xff]  }
 0x521   : > { %v6758_v26 = vpop.f32.mrf.mxu0  ;;  %7896 = vmatprep.subr.bf16.mxu0 %v11653_v1  ;;  %7960 = vmatprep.subr.bf16.mxu1 %v11654_v3  ;;  %v11660_v1 = vld [vmem:[%s12140_s9 + $0x688] ss:$16 sps:$4 sm:$0xff]   ;;  %v11661_v3 = vld [vmem:[%s12140_s9 + $0x744] ss:$16 sps:$4 sm:$0xff]  }
 0x522   : > { %17510 = vst [vmem:[#allocation391_spill] sm:$0xff] %v15000_v29  ;;  %v11659_v26 = vld [vmem:[%s12140_s9 + $0x760] ss:$16 sps:$4 sm:$0xff]  }
 0x523   : > { %v6759_v18 = vpop.f32.mrf.mxu0 }
 0x524   : > { %v15007_v46 = vadd.f32 %v6759_v18, %v14941_v40  ;;  %7897 = vmatpush2.bf16.msra.mxu0 %v11655_v10  ;;  %7961 = vmatpush1.bf16.msra.mxu1 %v11656_v58  ;;  %v11662_v18 = vld [vmem:[%s12140_s9 + $0x66c] ss:$16 sps:$4 sm:$0xff]  }
 0x525   : > { %7898 = vmatprep.subr.bf16.mxu0 %v11657_v62  ;;  %7962 = vmatprep.subr.bf16.mxu1 %v11658_v49  ;;  %v6761_v33 = vpop.f32.mrf.mxu0  ;;  %v11663_v49 = vld [vmem:[%s12140_s9 + $0x740] ss:$16 sps:$4 sm:$0xff]  }
 0x526   : > { %17511 = vst [vmem:[#allocation392_spill] sm:$0xff] %v15007_v46  ;;  %v11664_v33 = vld [vmem:[%s12140_s9 + $0x668] ss:$16 sps:$4 sm:$0xff]  }
 0x527   : > { %v7505_v15 = vpop.f32.mrf.mxu0 }
 0x528   : > { %7899 = vmatpush2.bf16.msra.mxu0 %v11659_v26  ;;  %7963 = vmatpush1.bf16.msra.mxu1 %v11660_v1  ;;  %v15016_v40 = vadd.f32 %v7505_v15, %v14954_v4  ;;  %v11665_v4 = vld [vmem:[%s12140_s9 + $0x64c] ss:$16 sps:$4 sm:$0xff]   ;;  %v11668_v1 = vld [vmem:[%s12140_s9 + $0x928] ss:$16 sps:$4 sm:$0xff]  }
 0x529   : > { %7900 = vmatprep.subr.bf16.mxu0 %v11661_v3  ;;  %7964 = vmatprep.subr.bf16.mxu1 %v11662_v18  ;;  %v7507_v10 = vpop.f32.mrf.mxu0  ;;  %v11666_v15 = vld [vmem:[%s12140_s9 + $0x92c] ss:$16 sps:$4 sm:$0xff]  }
 0x52a   : > { %17512 = vst [vmem:[#allocation393_spill] sm:$0xff] %v15016_v40  ;;  %v15021_v58 = vadd.f32 %v7507_v10, %v14963_v45  ;;  %v11667_v45 = vld [vmem:[%s12140_s9 + $0x648] ss:$16 sps:$4 sm:$0xff]   ;;  %v11669_v3 = vld [vmem:[%s12140_s9 + $0x82c] ss:$16 sps:$4 sm:$0xff]  }
 0x52b   : > { %v7509_v62 = vpop.f32.mrf.mxu0  ;;  %v11670_v18 = vld [vmem:[%s12140_s9 + $0x90c] ss:$16 sps:$4 sm:$0xff]   ;;  %v11671_v10 = vld [vmem:[%s12140_s9 + $0x828] ss:$16 sps:$4 sm:$0xff]  }
 0x52c   : > { %17513 = vst [vmem:[#allocation394_spill] sm:$0xff] %v15021_v58  ;;  %7901 = vmatpush2.bf16.msra.mxu0 %v11663_v49  ;;  %7965 = vmatpush1.bf16.msra.mxu1 %v11664_v33  ;;  %v11672_v62 = vld [vmem:[%s12140_s9 + $0x908] ss:$16 sps:$4 sm:$0xff]   ;;  %v11673_v49 = vld [vmem:[%s12140_s9 + $0x80c] ss:$16 sps:$4 sm:$0xff]  }
 0x52d   : > { %7966 = vmatprep.subr.bf16.mxu1 %v11665_v4  ;;  %7993 = vmatprep.subr.bf16.mxu0 %v11666_v15  ;;  %v7510_v26 = vpop.f32.mrf.mxu0  ;;  %v11674_v33 = vld [vmem:[%s12140_s9 + $0x8ec] ss:$16 sps:$4 sm:$0xff]   ;;  %v11675_v4 = vld [vmem:[%s12140_s9 + $0x808] ss:$16 sps:$4 sm:$0xff]  }
 0x52e   : > { %v11676_v15 = vld [vmem:[%s12140_s9 + $0x8e8] ss:$16 sps:$4 sm:$0xff]   ;;  %v11677_v26 = vld [vmem:[%s12140_s9 + $0x7ec] ss:$16 sps:$4 sm:$0xff]  }
 0x52f   : > { %7903 = vmatmul.mubr.bf16.vlgmr.msra.gmra.mxu0 %v14952_v6  ;;  %v17523_v58 = vld [vmem:[#allocation29_spill] sm:$0xff] }
 0x530   : > { %7967 = vmatpush1.bf16.msra.mxu1 %v11667_v45  ;;  %7994 = vmatpush1.bf16.msra.mxu0 %v11668_v1  ;;  %v11679_v45 = vld [vmem:[%s12140_s9 + $0x7e8] ss:$16 sps:$4 sm:$0xff]  }
 0x531   : > { %7968 = vmatprep.subr.bf16.mxu1 %v11669_v3  ;;  %7995 = vmatprep.subr.bf16.mxu0 %v11670_v18  ;;  %v11680_v1 = vld [vmem:[%s12140_s9 + $0x8c8] ss:$16 sps:$4 sm:$0xff]   ;;  %v11681_v3 = vld [vmem:[%s12140_s9 + $0x7cc] ss:$16 sps:$4 sm:$0xff]  }
 0x532   : > { %9998 = vmatprep.mubr.msk.bf16.mxu0 %vm3173_vm0, %v14880_v13  ;;  %v11678_v13 = vld [vmem:[%s12140_s9 + $0x8cc] ss:$16 sps:$4 sm:$0xff]  }
 0x533   : > { %v11682_v18 = vld [vmem:[%s12140_s9 + $0x8ac] ss:$16 sps:$4 sm:$0xff]  }
 0x534   : > { %7969 = vmatpush2.bf16.msra.mxu1 %v11671_v10  ;;  %7996 = vmatpush1.bf16.msra.mxu0 %v11672_v62  ;;  %v11683_v10 = vld [vmem:[%s12140_s9 + $0x7c8] ss:$16 sps:$4 sm:$0xff]  }
 0x535   : > { %7970 = vmatprep.subr.bf16.mxu1 %v11673_v49  ;;  %7997 = vmatprep.subr.bf16.mxu0 %v11674_v33  ;;  %v11684_v62 = vld [vmem:[%s12140_s9 + $0x8a8] ss:$16 sps:$4 sm:$0xff]   ;;  %v11685_v49 = vld [vmem:[%s12140_s9 + $0x7ac] ss:$16 sps:$4 sm:$0xff]  }
 0x536   : > { %v11686_v33 = vld [vmem:[%s12140_s9 + $0x88c] ss:$16 sps:$4 sm:$0xff]  }
 0x538   : > { %7971 = vmatpush2.bf16.msra.mxu1 %v11675_v4  ;;  %7998 = vmatpush1.bf16.msra.mxu0 %v11676_v15  ;;  %v11687_v4 = vld [vmem:[%s12140_s9 + $0x7a8] ss:$16 sps:$4 sm:$0xff]  }
 0x539   : > { %7972 = vmatprep.subr.bf16.mxu1 %v11677_v26  ;;  %7999 = vmatprep.subr.bf16.mxu0 %v11678_v13  ;;  %v11688_v15 = vld [vmem:[%s12140_s9 + $0x888] ss:$16 sps:$4 sm:$0xff]   ;;  %v11689_v26 = vld [vmem:[%s12140_s9 + $0x78c] ss:$16 sps:$4 sm:$0xff]  }
 0x53a   : > { %v11690_v13 = vld [vmem:[%s12140_s9 + $0x86c] ss:$16 sps:$4 sm:$0xff]  }
 0x53c   : > { %7973 = vmatpush2.bf16.msra.mxu1 %v11679_v45  ;;  %8000 = vmatpush1.bf16.msra.mxu0 %v11680_v1  ;;  %v15055_v45 = vld.sshfl [vmem:[%s14420_s8 + $0xc] sm:$0x33 pattern:$0x75316420]  ;;  %v11691_v1 = vld [vmem:[%s12140_s9 + $0x788] ss:$16 sps:$4 sm:$0xff]  }
 0x53d   : > { %7974 = vmatprep.subr.bf16.mxu1 %v11681_v3  ;;  %8001 = vmatprep.subr.bf16.mxu0 %v11682_v18  ;;  %v11692_v3 = vld [vmem:[%s12140_s9 + $0x868] ss:$16 sps:$4 sm:$0xff]   ;;  %v11693_v18 = vld [vmem:[%s12140_s9 + $0x76c] ss:$16 sps:$4 sm:$0xff]  }
 0x540   : > { %7975 = vmatpush2.bf16.msra.mxu1 %v11683_v10  ;;  %8002 = vmatpush1.bf16.msra.mxu0 %v11684_v62  ;;  %v11694_v10 = vld [vmem:[%s12140_s9 + $0x84c] ss:$16 sps:$4 sm:$0xff]   ;;  %v8042_v62 = vcombine.high %v15055_v45, %v15055_v45 }
 0x541   : > { %7976 = vmatprep.subr.bf16.mxu1 %v11685_v49  ;;  %8003 = vmatprep.subr.bf16.mxu0 %v11686_v33 }
 0x544   : > { %7977 = vmatpush2.bf16.msra.mxu1 %v11687_v4  ;;  %8004 = vmatpush1.bf16.msra.mxu0 %v11688_v15  ;;  %v11695_v4 = vld [vmem:[%s12140_s9 + $0x768] ss:$16 sps:$4 sm:$0xff]  }
 0x545   : > { %7978 = vmatprep.subr.bf16.mxu1 %v11689_v26  ;;  %8005 = vmatprep.subr.bf16.mxu0 %v11690_v13  ;;  %v11696_v15 = vld [vmem:[%s12140_s9 + $0x848] ss:$16 sps:$4 sm:$0xff]   ;;  %v11697_v13 = vld [vmem:[%s12140_s9 + $0x74c] ss:$16 sps:$4 sm:$0xff]  }
 0x548   : > { %7979 = vmatpush2.bf16.msra.mxu1 %v11691_v1  ;;  %8006 = vmatpush1.bf16.msra.mxu0 %v11692_v3  ;;  %v11698_v1 = vld [vmem:[%s12140_s9 + $0x94c] ss:$16 sps:$4 sm:$0xff]  }
 0x549   : > { %7980 = vmatprep.subr.bf16.mxu1 %v11693_v18  ;;  %8007 = vmatprep.subr.bf16.mxu0 %v11694_v10  ;;  %v15070_v10 = vrot.slane %v8042_v62, %v14438_v39 }
 0x54b   : > { %v7546_v49 = vpop.f32.mrf.mxu1  ;;  %v7587_v33 = vpop.f32.mrf.mxu0 }
 0x54c   : > { %7981 = vmatpush2.bf16.msra.mxu1 %v11695_v4  ;;  %8008 = vmatpush1.bf16.msra.mxu0 %v11696_v15  ;;  %v15065_v26 = vadd.f32 %v7587_v33, %v7546_v49  ;;  %v11699_v15 = vld [vmem:[%s12140_s9 + $0x748] ss:$16 sps:$4 sm:$0xff]   ;;  %v11701_v33 = vld [vmem:[%s12140_s9 + $0xa44] ss:$16 sps:$4 sm:$0xff]  }
 0x54d   : > { %7982 = vmatprep.subr.bf16.mxu1 %v11697_v13  ;;  %8023 = vmatprep.subr.bf16.mxu0 %v11698_v1  ;;  %v7548_v3 = vpop.f32.mrf.mxu1  ;;  %v7589_v18 = vpop.f32.mrf.mxu0  ;;  %v11700_v49 = vld [vmem:[%s12140_s9 + $0x948] ss:$16 sps:$4 sm:$0xff]   ;;  %v11702_v13 = vld [vmem:[%s12140_s9 + $0xc44] ss:$16 sps:$4 sm:$0xff]  }
 0x54e   : > { %17514 = vst [vmem:[#allocation395_spill] sm:$0xff] %v15065_v26  ;;  %v15072_v29 = vadd.f32 %v7589_v18, %v7548_v3  ;;  %v15080_v3 = vcombine.high %v15070_v10, %v15070_v10  ;;  %v11704_v18 = vld [vmem:[%s12140_s9 + $0xc40] ss:$16 sps:$4 sm:$0xff]  }
 0x54f   : > { %v7550_v4 = vpop.f32.mrf.mxu1  ;;  %v7591_v46 = vpop.f32.mrf.mxu0 }
 0x550   : > { %17515 = vst [vmem:[#allocation396_spill] sm:$0xff] %v15072_v29  ;;  %7983 = vmatpush2.bf16.msra.mxu1 %v11699_v15  ;;  %8024 = vmatpush2.bf16.msra.mxu0 %v11700_v49  ;;  %v11703_v46 = vld [vmem:[%s12140_s9 + $0xa40] ss:$16 sps:$4 sm:$0xff]   ;;  %v11705_v4 = vld [vmem:[%s12140_s9 + $0xa24] ss:$16 sps:$4 sm:$0xff]  }
 0x551   : > { %8090 = vmatprep.subr.bf16.mxu0 %v11701_v33  ;;  %8131 = vmatprep.subr.bf16.mxu1 %v11702_v13  ;;  %v7551_v1 = vpop.f32.mrf.mxu1  ;;  %v7592_v62 = vpop.f32.mrf.mxu0  ;;  %v11706_v15 = vld [vmem:[%s12140_s9 + $0xc24] ss:$16 sps:$4 sm:$0xff]   ;;  %v6763_v13 = vmul.f32 %v13030_v0, %v12379_v53  ;;  %v17517_v0 = vld [vmem:[#allocation36_spill] sm:$0xff] }
 0x552   : > { %v11709_v49 = vld [vmem:[%s12140_s9 + $0xa04] ss:$16 sps:$4 sm:$0xff]   ;;  %v6764_v1 = vmul.f32 %v13045_v31, %v12377_v52  ;;  %v11711_v62 = vld [vmem:[%s12140_s9 + $0xa00] ss:$16 sps:$4 sm:$0xff]  }
 0x553   : > { %7985 = vmatmul.mubr.bf16.vlgmr.msra.gmra.mxu1 %v14952_v6  ;;  %8026 = vmatmul.mubr.bf16.vlgmr.msra.gmra.mxu0 %v14967_v59  ;;  %v11707_v6 = vld [vmem:[%s12140_s9 + $0xa20] ss:$16 sps:$4 sm:$0xff]   ;;  %v11710_v33 = vld [vmem:[%s12140_s9 + $0xc04] ss:$16 sps:$4 sm:$0xff]  }
 0x554   : > { %8091 = vmatpush1.bf16.msra.mxu0 %v11703_v46  ;;  %8132 = vmatpush1.bf16.msra.mxu1 %v11704_v18  ;;  %v11708_v59 = vld [vmem:[%s12140_s9 + $0xc20] ss:$16 sps:$4 sm:$0xff]  }
 0x555   : > { %8092 = vmatprep.subr.bf16.mxu0 %v11705_v4  ;;  %8133 = vmatprep.subr.bf16.mxu1 %v11706_v15  ;;  %v11712_v46 = vld [vmem:[%s12140_s9 + $0xc00] ss:$16 sps:$4 sm:$0xff]   ;;  %v17516_v4 = vld [vmem:[#allocation151_spill] sm:$0xff] }
 0x556   : > { %10000 = vmatprep.mubr.msk.bf16.mxu1 %vm3173_vm0, %v15080_v3  ;;  %8122 = vmatprep.mubr.bf16.mxu0 %v15070_v10  ;;  %v15101_v18 = vld [vmem:[#allocation5] ss:$0 sm:$0xff]  ;;  %v6765_v15 = vmul.f32 %v17516_v4, %v12359_v23 }
 0x557   : > { %v6970_v21 = vadd.f32 %v15101_v18, %v6763_v13  ;;  %v6971_v50 = vadd.f32 %v15101_v18, %v6764_v1  ;;  %v11715_v4 = vld [vmem:[%s12140_s9 + $0x9e0] ss:$16 sps:$4 sm:$0xff]  }
 0x558   : > { %8093 = vmatpush1.bf16.msra.mxu0 %v11707_v6  ;;  %8134 = vmatpush1.bf16.msra.mxu1 %v11708_v59  ;;  %v11713_v6 = vld [vmem:[%s12140_s9 + $0x9e4] ss:$16 sps:$4 sm:$0xff]   ;;  %v11719_v29 = vld [vmem:[%s12140_s9 + $0x9c0] ss:$16 sps:$4 sm:$0xff]  }
 0x559   : > { %8094 = vmatprep.subr.bf16.mxu0 %v11709_v49  ;;  %8135 = vmatprep.subr.bf16.mxu1 %v11710_v33  ;;  %v11714_v59 = vld [vmem:[%s12140_s9 + $0xbe4] ss:$16 sps:$4 sm:$0xff]   ;;  %v17518_v49 = vld [vmem:[#allocation154_spill] sm:$0xff]  ;;  %v7170_v1 = vmax.f32 %v6970_v21, 0.0  ;;  %v7171_v40 = vmax.f32 %v6971_v50, 0.0  ;;  %v17525_v50 = vld [vmem:[#allocation28_spill] sm:$0xff] }
 0x55a   : > { %v6766_v31 = vmul.f32 %v17518_v49, %v17517_v0  ;;  %v17519_v33 = vld [vmem:[#allocation33_spill] sm:$0xff] }
 0x55b   : > { %v11717_v49 = vld [vmem:[%s12140_s9 + $0x9c4] ss:$16 sps:$4 sm:$0xff]   ;;  %v15132_v22 = vmul.f32 %v7170_v1, %v12379_v53 }
 0x55c   : > { %8095 = vmatpush1.bf16.msra.mxu0 %v11711_v62  ;;  %8136 = vmatpush1.bf16.msra.mxu1 %v11712_v46  ;;  %v6767_v62 = vmul.f32 %v17520_v9, %v17519_v33  ;;  %v6768_v46 = vmul.f32 %v17522_v57, %v17521_v48  ;;  %v11718_v9 = vld [vmem:[%s12140_s9 + $0xbc4] ss:$16 sps:$4 sm:$0xff]   ;;  %v6973_v57 = vadd.f32 %v15101_v18, %v6766_v31 }
 0x55d   : > { %8096 = vmatprep.subr.bf16.mxu0 %v11713_v6  ;;  %8137 = vmatprep.subr.bf16.mxu1 %v11714_v59  ;;  %v11716_v6 = vld [vmem:[%s12140_s9 + $0xbe0] ss:$16 sps:$4 sm:$0xff]   ;;  %v6972_v59 = vadd.f32 %v15101_v18, %v6765_v15  ;;  %17527 = vst [vmem:[#allocation151_spill] sm:$0xff] %v15132_v22  ;;  %v11725_v1 = vld [vmem:[%s12140_s9 + $0x984] ss:$16 sps:$4 sm:$0xff]  }
 0x55e   : > { %v6974_v13 = vadd.f32 %v15101_v18, %v6767_v62  ;;  %v6975_v26 = vadd.f32 %v15101_v18, %v6768_v46  ;;  %v17524_v46 = vld [vmem:[#allocation161_spill] sm:$0xff] }
 0x55f   : > { %v7172_v15 = vmax.f32 %v6972_v59, 0.0  ;;  %v6769_v21 = vmul.f32 %v17524_v46, %v17523_v58  ;;  %v15135_v59 = vmul.f32 %v7171_v40, %v12377_v52  ;;  %v17533_v46 = vld [vmem:[#allocation166_spill] sm:$0xff]  ;;  %v11726_v52 = vld [vmem:[%s12140_s9 + $0xb84] ss:$16 sps:$4 sm:$0xff]  }
 0x560   : > { %8097 = vmatpush1.bf16.msra.mxu0 %v11715_v4  ;;  %8138 = vmatpush1.bf16.msra.mxu1 %v11716_v6  ;;  %v11720_v4 = vld [vmem:[%s12140_s9 + $0xbc0] ss:$16 sps:$4 sm:$0xff]   ;;  %v11721_v6 = vld [vmem:[%s12140_s9 + $0x9a4] ss:$16 sps:$4 sm:$0xff]   ;;  %v7174_v31 = vmax.f32 %v6974_v13, 0.0  ;;  %v7175_v62 = vmax.f32 %v6975_v26, 0.0 }
 0x561   : > { %8098 = vmatprep.subr.bf16.mxu0 %v11717_v49  ;;  %8139 = vmatprep.subr.bf16.mxu1 %v11718_v9  ;;  %v11722_v49 = vld [vmem:[%s12140_s9 + $0xba4] ss:$16 sps:$4 sm:$0xff]   ;;  %v7173_v9 = vmax.f32 %v6973_v57, 0.0  ;;  %17528 = vst [vmem:[#allocation36_spill] sm:$0xff] %v15135_v59  ;;  %v11724_v57 = vld [vmem:[%s12140_s9 + $0xba0] ss:$16 sps:$4 sm:$0xff]   ;;  %v15142_v26 = vmul.f32 %v7172_v15, %v12359_v23 }
 0x562   : > { %v17532_v13 = vld [vmem:[#allocation24_spill] sm:$0xff]  ;;  %v15157_v23 = vmul.f32 %v7175_v62, %v17521_v48  ;;  %v17546_v48 = vld [vmem:[#allocation171_spill] sm:$0xff] }
 0x563   : > { %17531 = vst [vmem:[#allocation154_spill] sm:$0xff] %v15142_v26  ;;  %v6772_v20 = vmul.f32 %v17533_v46, %v17532_v13  ;;  %v15151_v40 = vmul.f32 %v7173_v9, %v17517_v0  ;;  %v17539_v15 = vld [vmem:[#allocation20_spill] sm:$0xff]  ;;  %v17544_v9 = vld [vmem:[#allocation170_spill] sm:$0xff]  ;;  %v17547_v26 = vld [vmem:[#allocation15_spill] sm:$0xff] }
 0x564   : > { %8099 = vmatpush1.bf16.msra.mxu0 %v11719_v29  ;;  %8140 = vmatpush1.bf16.msra.mxu1 %v11720_v4  ;;  %v6770_v29 = vmul.f32 %v17526_v16, %v17525_v50  ;;  %v17529_v4 = vld [vmem:[#allocation25_spill] sm:$0xff]  ;;  %17538 = vst [vmem:[#allocation32_spill] sm:$0xff] %v15157_v23  ;;  %v17543_v0 = vld [vmem:[#allocation16_spill] sm:$0xff] }
 0x565   : > { %8100 = vmatprep.subr.bf16.mxu0 %v11721_v6  ;;  %8141 = vmatprep.subr.bf16.mxu1 %v11722_v49  ;;  %v17530_v6 = vld [vmem:[#allocation165_spill] sm:$0xff]  ;;  %17536 = vst [vmem:[#allocation33_spill] sm:$0xff] %v15151_v40  ;;  %v6776_v59 = vmul.f32 %v17544_v9, %v17543_v0  ;;  %v17548_v40 = vld [vmem:[#allocation172_spill] sm:$0xff] }
 0x566   : > { %v6771_v49 = vmul.f32 %v17530_v6, %v17529_v4  ;;  %v17534_v16 = vld [vmem:[#allocation21_spill] sm:$0xff]  ;;  %v17540_v6 = vld [vmem:[#allocation168_spill] sm:$0xff]  ;;  %v6977_v46 = vadd.f32 %v15101_v18, %v6770_v29  ;;  %v6979_v29 = vadd.f32 %v15101_v18, %v6772_v20  ;;  %v17555_v20 = vld [vmem:[#allocation55_spill] sm:$0xff] }
 0x567   : > { %v6773_v53 = vmul.f32 %v17535_v54, %v17534_v16  ;;  %v6976_v54 = vadd.f32 %v15101_v18, %v6769_v21  ;;  %v11728_v21 = vld [vmem:[%s12140_s9 + $0xb80] ss:$16 sps:$4 sm:$0xff]   ;;  %v11729_v9 = vld [vmem:[%s12140_s9 + $0x964] ss:$16 sps:$4 sm:$0xff]  }
 0x568   : > { %8101 = vmatpush1.bf16.msra.mxu0 %v11723_v12  ;;  %8142 = vmatpush1.bf16.msra.mxu1 %v11724_v57  ;;  %v15154_v12 = vmul.f32 %v7174_v31, %v17519_v33  ;;  %v6774_v57 = vmul.f32 %v17540_v6, %v17539_v15  ;;  %v6978_v33 = vadd.f32 %v15101_v18, %v6771_v49  ;;  %v17545_v31 = vld [vmem:[#allocation13_spill] sm:$0xff]  ;;  %v11727_v6 = vld [vmem:[%s12140_s9 + $0x980] ss:$16 sps:$4 sm:$0xff]   ;;  %v7179_v38 = vmax.f32 %v6979_v29, 0.0 }
 0x569   : > { %8102 = vmatprep.subr.bf16.mxu0 %v11725_v1  ;;  %8143 = vmatprep.subr.bf16.mxu1 %v11726_v52  ;;  %v17541_v1 = vld [vmem:[#allocation17_spill] sm:$0xff]  ;;  %v6777_v62 = vmul.f32 %v17546_v48, %v17545_v31  ;;  %v6980_v23 = vadd.f32 %v15101_v18, %v6773_v53  ;;  %v6782_v53 = vmul.f32 %v17556_v30, %v17555_v20  ;;  %v7176_v25 = vmax.f32 %v6976_v54, 0.0 }
 0x56a   : > { %17537 = vst [vmem:[#allocation155_spill] sm:$0xff] %v15154_v12  ;;  %v17542_v52 = vld [vmem:[#allocation169_spill] sm:$0xff]  ;;  %v6778_v12 = vmul.f32 %v17548_v40, %v17547_v26  ;;  %v6981_v48 = vadd.f32 %v15101_v18, %v6774_v57  ;;  %v15193_v57 = vrot.slane %v15055_v45, %v14438_v39  ;;  %v7178_v36 = vmax.f32 %v6978_v33, 0.0 }
 0x56b   : > { %v6775_v22 = vmul.f32 %v17542_v52, %v17541_v1  ;;  %v17549_v52 = vld [vmem:[#allocation58_spill] sm:$0xff]  ;;  %v11730_v49 = vld [vmem:[%s12140_s9 + $0xb64] ss:$16 sps:$4 sm:$0xff]   ;;  %v6984_v44 = vadd.f32 %v15101_v18, %v6777_v62 }
 0x56c   : > { %8103 = vmatpush1.bf16.msra.mxu0 %v11727_v6  ;;  %8144 = vmatpush1.bf16.msra.mxu1 %v11728_v21  ;;  %v6779_v60 = vmul.f32 %v17550_v32, %v17549_v52  ;;  %v17551_v40 = vld [vmem:[#allocation57_spill] sm:$0xff]  ;;  %v17554_v21 = vld [vmem:[#allocation175_spill] sm:$0xff]  ;;  %v6983_v32 = vadd.f32 %v15101_v18, %v6776_v59  ;;  %v6985_v30 = vadd.f32 %v15101_v18, %v6778_v12  ;;  %v11732_v59 = vld [vmem:[%s12140_s9 + $0xb60] ss:$16 sps:$4 sm:$0xff]  }
 0x56d   : > { %8104 = vmatprep.subr.bf16.mxu0 %v11729_v9  ;;  %8145 = vmatprep.subr.bf16.mxu1 %v11730_v49  ;;  %v6780_v6 = vmul.f32 %v17552_v41, %v17551_v40  ;;  %v6781_v5 = vmul.f32 %v17554_v21, %v17553_v61  ;;  %v6982_v11 = vadd.f32 %v15101_v18, %v6775_v22  ;;  %v17557_v9 = vld [vmem:[#allocation54_spill] sm:$0xff]  ;;  %v7177_v21 = vmax.f32 %v6977_v46, 0.0  ;;  %v11733_v39 = vld [vmem:[%s12140_s9 + $0xb44] ss:$16 sps:$4 sm:$0xff]  }
 0x56e   : > { %v6783_v49 = vmul.f32 %v17558_v7, %v17557_v9  ;;  %v11731_v22 = vld [vmem:[%s12140_s9 + $0x960] ss:$16 sps:$4 sm:$0xff]   ;;  %v7180_v7 = vmax.f32 %v6980_v23, 0.0  ;;  %v6986_v51 = vadd.f32 %v15101_v18, %v6779_v60  ;;  %v11734_v45 = vld [vmem:[%s12140_s9 + $0xc64] ss:$16 sps:$4 sm:$0xff]   ;;  %v7181_v46 = vmax.f32 %v6981_v48, 0.0 }
 0x56f   : > { %v15195_v41 = vpop.f32.mrf.mxu1  ;;  %v6987_v12 = vadd.f32 %v15101_v18, %v6780_v6  ;;  %v6988_v62 = vadd.f32 %v15101_v18, %v6781_v5  ;;  %v7182_v33 = vmax.f32 %v6982_v11, 0.0  ;;  %v7183_v29 = vmax.f32 %v6983_v32, 0.0  ;;  %v11736_v11 = vld [vmem:[%s12140_s9 + $0xc60] ss:$16 sps:$4 sm:$0xff]  }
 0x570   : > { %8105 = vmatpush1.bf16.msra.mxu0 %v11731_v22  ;;  %8146 = vmatpush1.bf16.msra.mxu1 %v11732_v59  ;;  %v6989_v22 = vadd.f32 %v15101_v18, %v6782_v53  ;;  %v6990_v60 = vadd.f32 %v15101_v18, %v6783_v49  ;;  %v15212_v23 = vcombine.high %v15193_v57, %v15193_v57  ;;  %v7184_v5 = vmax.f32 %v6984_v44, 0.0  ;;  %v11735_v53 = vld [vmem:[%s12140_s9 + $0xb40] ss:$16 sps:$4 sm:$0xff]  }
 0x571   : > { %8106 = vmatprep.subr.bf16.mxu0 %v11733_v39  ;;  %8161 = vmatprep.subr.bf16.mxu1 %v11734_v45  ;;  %v15204_v54 = vpop.f32.mrf.mxu1  ;;  %v15215_v39 = vmul.f32 %v7176_v25, %v17523_v58  ;;  %v15218_v48 = vmul.f32 %v7177_v21, %v17525_v50  ;;  %v7185_v6 = vmax.f32 %v6985_v30, 0.0  ;;  %v15223_v32 = vmul.f32 %v7178_v36, %v17529_v4  ;;  %v11737_v58 = vld [vmem:[%s12140_s9 + $0xb24] ss:$16 sps:$4 sm:$0xff]   ;;  %v11738_v50 = vld [vmem:[%s12140_s9 + $0xa4c] ss:$16 sps:$4 sm:$0xff]  }
 0x572   : > { %17559 = vst [vmem:[#allocation158_spill] sm:$0xff] %v15212_v23  ;;  %v15226_v49 = vmul.f32 %v7179_v38, %v17532_v13  ;;  %v15229_v45 = vmul.f32 %v7180_v7, %v17534_v16  ;;  %v7186_v25 = vmax.f32 %v6986_v51, 0.0  ;;  %v15234_v21 = vmul.f32 %v7181_v46, %v17539_v15  ;;  %v17568_v16 = vld [vmem:[#allocation53_spill] sm:$0xff]  ;;  %v17569_v7 = vld [vmem:[#allocation178_spill] sm:$0xff] }
 0x573   : > { %v7729_v59 = vpop.f32.mrf.mxu1  ;;  %17560 = vst [vmem:[#allocation29_spill] sm:$0xff] %v15215_v39  ;;  %17561 = vst [vmem:[#allocation161_spill] sm:$0xff] %v15218_v48  ;;  %v7187_v30 = vmax.f32 %v6987_v12, 0.0  ;;  %v7188_v36 = vmax.f32 %v6988_v62, 0.0  ;;  %v7189_v4 = vmax.f32 %v6989_v22, 0.0  ;;  %v15237_v38 = vmul.f32 %v7182_v33, %v17541_v1  ;;  %v17572_v12 = vld [vmem:[#allocation52_spill] sm:$0xff] }
 0x574   : > { %8107 = vmatpush2.bf16.msra.mxu0 %v11735_v53  ;;  %8162 = vmatpush2.bf16.msra.mxu1 %v11736_v11  ;;  %17562 = vst [vmem:[#allocation28_spill] sm:$0xff] %v15223_v32  ;;  %17563 = vst [vmem:[#allocation162_spill] sm:$0xff] %v15226_v49  ;;  %v15240_v51 = vmul.f32 %v7183_v29, %v17543_v0  ;;  %v7190_v13 = vmax.f32 %v6990_v60, 0.0  ;;  %v6784_v59 = vmul.f32 %v17569_v7, %v17568_v16  ;;  %v17573_v62 = vld [vmem:[#allocation181_spill] sm:$0xff]  ;;  %v11739_v22 = vld [vmem:[%s12140_s9 + $0xb20] ss:$16 sps:$4 sm:$0xff]  }
 0x575   : > { %17564 = vst [vmem:[#allocation25_spill] sm:$0xff] %v15229_v45  ;;  %8108 = vmatprep.subr.bf16.mxu0 %v11737_v58  ;;  %8172 = vmatprep.subr.bf16.mxu1 %v11738_v50  ;;  %v7730_v44 = vpop.f32.mrf.mxu1  ;;  %17565 = vst [vmem:[#allocation165_spill] sm:$0xff] %v15234_v21  ;;  %v15246_v15 = vmul.f32 %v7184_v5, %v17545_v31  ;;  %v15249_v46 = vmul.f32 %v7185_v6, %v17547_v26  ;;  %v11740_v33 = vld [vmem:[%s12140_s9 + $0xa48] ss:$16 sps:$4 sm:$0xff]   ;;  %v17575_v29 = vld [vmem:[#allocation184_spill] sm:$0xff] }
 0x576   : > { %17566 = vst [vmem:[#allocation24_spill] sm:$0xff] %v15237_v38  ;;  %17567 = vst [vmem:[#allocation166_spill] sm:$0xff] %v15240_v51  ;;  %v6785_v1 = vmul.f32 %v17573_v62, %v17572_v12  ;;  %v17574_v0 = vld [vmem:[#allocation51_spill] sm:$0xff]  ;;  %v17576_v53 = vld [vmem:[#allocation50_spill] sm:$0xff]  ;;  %v15262_v26 = vmul.f32 %v7186_v25, %v17549_v52  ;;  %v15268_v7 = vmul.f32 %v7189_v4, %v17555_v20 }
 0x577   : > { %8164 = vmatmul.mubr.bf16.vlgmr.msra.gmra.mxu1 %v15212_v23  ;;  %17570 = vst [vmem:[#allocation21_spill] sm:$0xff] %v15246_v15  ;;  %17571 = vst [vmem:[#allocation167_spill] sm:$0xff] %v15249_v46  ;;  %v6786_v60 = vmul.f32 %v17575_v29, %v17574_v0  ;;  %v17577_v11 = vld [vmem:[#allocation185_spill] sm:$0xff]  ;;  %v11742_v31 = vld [vmem:[%s12140_s9 + $0xa2c] ss:$16 sps:$4 sm:$0xff]   ;;  %v15271_v62 = vmul.f32 %v7188_v36, %v17553_v61  ;;  %v15284_v20 = vmul.f32 %v7190_v13, %v17557_v9 }
 0x578   : > { %8109 = vmatpush2.bf16.msra.mxu0 %v11739_v22  ;;  %8173 = vmatpush1.bf16.msra.mxu1 %v11740_v33  ;;  %v6787_v58 = vmul.f32 %v17577_v11, %v17576_v53  ;;  %v11741_v50 = vld [vmem:[%s12140_s9 + $0xb04] ss:$16 sps:$4 sm:$0xff]   ;;  %17578 = vst [vmem:[#allocation20_spill] sm:$0xff] %v15262_v26  ;;  %v17580_v6 = vld [vmem:[#allocation188_spill] sm:$0xff]  ;;  %17581 = vst [vmem:[#allocation168_spill] sm:$0xff] %v15268_v7  ;;  %v15274_v22 = vmul.f32 %v7187_v30, %v17551_v40 }
 0x579   : > { %8110 = vmatprep.subr.bf16.mxu0 %v11741_v50  ;;  %8174 = vmatprep.subr.bf16.mxu1 %v11742_v31  ;;  %v17579_v5 = vld [vmem:[#allocation49_spill] sm:$0xff]  ;;  %17582 = vst [vmem:[#allocation17_spill] sm:$0xff] %v15271_v62  ;;  %v15277_v33 = vadd.f32 %v15101_v18, %v6784_v59  ;;  %v17584_v52 = vld [vmem:[#allocation48_spill] sm:$0xff]  ;;  %v17585_v25 = vld [vmem:[#allocation191_spill] sm:$0xff]  ;;  %v6992_v61 = vadd.f32 %v15101_v18, %v6785_v1 }
 0x57a   : > { %v6788_v44 = vmul.f32 %v17580_v6, %v17579_v5  ;;  %8204 = vmatprep.mubr.bf16.mxu1 %v15070_v10  ;;  %17583 = vst [vmem:[#allocation169_spill] sm:$0xff] %v15274_v22  ;;  %v6789_v29 = vmul.f32 %v17585_v25, %v17584_v52  ;;  %v17586_v11 = vld [vmem:[#allocation47_spill] sm:$0xff]  ;;  %v17587_v50 = vld [vmem:[#allocation192_spill] sm:$0xff]  ;;  %17588 = vst [vmem:[#allocation16_spill] sm:$0xff] %v15284_v20  ;;  %v6993_v25 = vadd.f32 %v15101_v18, %v6786_v60 }
 0x57b   : > { %v6790_v10 = vmul.f32 %v17587_v50, %v17586_v11  ;;  %v17589_v36 = vld [vmem:[#allocation46_spill] sm:$0xff]  ;;  %v17590_v4 = vld [vmem:[#allocation195_spill] sm:$0xff]  ;;  %v17591_v40 = vld [vmem:[#allocation45_spill] sm:$0xff]  ;;  %v6994_v22 = vadd.f32 %v15101_v18, %v6787_v58 }
 0x57c   : > { %v6791_v31 = vmul.f32 %v17590_v4, %v17589_v36  ;;  %v17592_v30 = vld [vmem:[#allocation198_spill] sm:$0xff]  ;;  %v11744_v26 = vld [vmem:[%s12140_s9 + $0xa28] ss:$16 sps:$4 sm:$0xff]   ;;  %v11745_v13 = vld [vmem:[%s12140_s9 + $0xae4] ss:$16 sps:$4 sm:$0xff]   ;;  %v6995_v4 = vadd.f32 %v15101_v18, %v6788_v44  ;;  %v7193_v23 = vmax.f32 %v6993_v25, 0.0 }
 0x57d   : > { %v6792_v6 = vmul.f32 %v17592_v30, %v17591_v40  ;;  %v11743_v59 = vld [vmem:[%s12140_s9 + $0xb00] ss:$16 sps:$4 sm:$0xff]   ;;  %8175 = vmatpush1.bf16.msra.mxu1 %v11744_v26  ;;  %v17594_v62 = vld [vmem:[#allocation199_spill] sm:$0xff]  ;;  %v11746_v1 = vld [vmem:[%s12140_s9 + $0xa0c] ss:$16 sps:$4 sm:$0xff]   ;;  %v6997_v32 = vadd.f32 %v15101_v18, %v6790_v10  ;;  %v7192_v10 = vmax.f32 %v6992_v61, 0.0 }
 0x57e   : > { %8111 = vmatpush2.bf16.msra.mxu0 %v11743_v59  ;;  %v17593_v50 = vld [vmem:[#allocation42_spill] sm:$0xff]  ;;  %8176 = vmatprep.subr.bf16.mxu1 %v11746_v1  ;;  %v17595_v30 = vld [vmem:[#allocation41_spill] sm:$0xff]  ;;  %v17597_v20 = vld [vmem:[#allocation40_spill] sm:$0xff] }
 0x57f   : > { %v6793_v9 = vmul.f32 %v17594_v62, %v17593_v50  ;;  %8112 = vmatprep.subr.bf16.mxu0 %v11745_v13  ;;  %v17596_v7 = vld [vmem:[#allocation202_spill] sm:$0xff]  ;;  %v17598_v26 = vld [vmem:[#allocation205_spill] sm:$0xff]  ;;  %v17599_v60 = vld [vmem:[#allocation39_spill] sm:$0xff]  ;;  %v6996_v62 = vadd.f32 %v15101_v18, %v6789_v29  ;;  %v6999_v38 = vadd.f32 %v15101_v18, %v6792_v6  ;;  %v7191_v29 = vmax.f32 %v15277_v33, 0.0 }
 0x580   : > { %v6794_v59 = vmul.f32 %v17596_v7, %v17595_v30  ;;  %v6795_v39 = vmul.f32 %v17598_v26, %v17597_v20  ;;  %v17600_v48 = vld [vmem:[#allocation206_spill] sm:$0xff]  ;;  %v17602_v49 = vld [vmem:[#allocation209_spill] sm:$0xff]  ;;  %v17604_v44 = vld [vmem:[#allocation212_spill] sm:$0xff]  ;;  %v6998_v7 = vadd.f32 %v15101_v18, %v6791_v31  ;;  %v7194_v31 = vmax.f32 %v6994_v22, 0.0 }
 0x581   : > { %v6796_v58 = vmul.f32 %v17600_v48, %v17599_v60  ;;  %v17601_v13 = vld [vmem:[#allocation38_spill] sm:$0xff]  ;;  %v17603_v45 = vld [vmem:[#allocation37_spill] sm:$0xff]  ;;  %v17605_v26 = vld [vmem:[#allocation35_spill] sm:$0xff]  ;;  %v7195_v33 = vmax.f32 %v6995_v4, 0.0  ;;  %v7196_v61 = vmax.f32 %v6996_v62, 0.0  ;;  %v7199_v17 = vmax.f32 %v6999_v38, 0.0 }
 0x582   : > { %v6797_v1 = vmul.f32 %v17602_v49, %v17601_v13  ;;  %v6798_v21 = vmul.f32 %v17604_v44, %v17603_v45  ;;  %v17606_v51 = vld [vmem:[#allocation213_spill] sm:$0xff]  ;;  %v11747_v48 = vld [vmem:[%s12140_s9 + $0xae0] ss:$16 sps:$4 sm:$0xff]   ;;  %v7000_v49 = vadd.f32 %v15101_v18, %v6793_v9  ;;  %v11750_v44 = vld [vmem:[%s12140_s9 + $0x9ec] ss:$16 sps:$4 sm:$0xff]   ;;  %v7001_v6 = vadd.f32 %v15101_v18, %v6794_v59 }
 0x583   : > { %v6799_v15 = vmul.f32 %v17606_v51, %v17605_v26  ;;  %8113 = vmatpush2.bf16.msra.mxu0 %v11747_v48  ;;  %v11748_v46 = vld [vmem:[%s12140_s9 + $0xa08] ss:$16 sps:$4 sm:$0xff]   ;;  %v7002_v51 = vadd.f32 %v15101_v18, %v6795_v39  ;;  %v7197_v48 = vmax.f32 %v6997_v32, 0.0  ;;  %v11751_v22 = vld [vmem:[%s12140_s9 + $0xac0] ss:$16 sps:$4 sm:$0xff]   ;;  %v15333_v4 = vmul.f32 %v7193_v23, %v17574_v0 }
 0x584   : > { %8177 = vmatpush1.bf16.msra.mxu1 %v11748_v46  ;;  %8114 = vmatprep.subr.bf16.mxu0 %v11749_v27  ;;  %v7003_v46 = vadd.f32 %v15101_v18, %v6796_v58  ;;  %v7004_v25 = vadd.f32 %v15101_v18, %v6797_v1  ;;  %v7005_v9 = vadd.f32 %v15101_v18, %v6798_v21  ;;  %v7198_v27 = vmax.f32 %v6998_v7, 0.0  ;;  %v11752_v59 = vld [vmem:[%s12140_s9 + $0x9e8] ss:$16 sps:$4 sm:$0xff]   ;;  %v11753_v39 = vld [vmem:[%s12140_s9 + $0xaa4] ss:$16 sps:$4 sm:$0xff]  }
 0x585   : > { %8178 = vmatprep.subr.bf16.mxu1 %v11750_v44  ;;  %v7006_v44 = vadd.f32 %v15101_v18, %v6799_v15  ;;  %v7200_v34 = vmax.f32 %v7000_v49, 0.0  ;;  %v11754_v58 = vld [vmem:[%s12140_s9 + $0x9cc] ss:$16 sps:$4 sm:$0xff]   ;;  %17607 = vst [vmem:[#allocation170_spill] sm:$0xff] %v15333_v4  ;;  %v15336_v32 = vmul.f32 %v7192_v10, %v17572_v12  ;;  %v15339_v21 = vmul.f32 %v7191_v29, %v17568_v16  ;;  %v11755_v0 = vld [vmem:[%s12140_s9 + $0xaa0] ss:$16 sps:$4 sm:$0xff]  }
 0x586   : > { %v7201_v38 = vmax.f32 %v7001_v6, 0.0  ;;  %v7202_v15 = vmax.f32 %v7002_v51, 0.0  ;;  %v7203_v62 = vmax.f32 %v7003_v46, 0.0  ;;  %v15342_v1 = vmul.f32 %v7194_v31, %v17576_v53  ;;  %v11756_v16 = vld [vmem:[%s12140_s9 + $0x9c8] ss:$16 sps:$4 sm:$0xff]   ;;  %v17612_v31 = vld [vmem:[#allocation34_spill] sm:$0xff] }
 0x587   : > { %8115 = vmatpush2.bf16.msra.mxu0 %v11751_v22  ;;  %17608 = vst [vmem:[#allocation13_spill] sm:$0xff] %v15336_v32  ;;  %17609 = vst [vmem:[#allocation171_spill] sm:$0xff] %v15339_v21  ;;  %v7204_v7 = vmax.f32 %v7004_v25, 0.0  ;;  %v7205_v49 = vmax.f32 %v7005_v9, 0.0  ;;  %v15345_v22 = vmul.f32 %v7196_v61, %v17584_v52  ;;  %v15348_v23 = vmul.f32 %v7195_v33, %v17579_v5  ;;  %v17613_v52 = vld [vmem:[#allocation216_spill] sm:$0xff]  ;;  %v17614_v51 = vld [vmem:[#allocation31_spill] sm:$0xff] }
 0x588   : > { %8179 = vmatpush1.bf16.msra.mxu1 %v11752_v59  ;;  %8116 = vmatprep.subr.bf16.mxu0 %v11753_v39  ;;  %17610 = vst [vmem:[#allocation15_spill] sm:$0xff] %v15342_v1  ;;  %v7206_v12 = vmax.f32 %v7006_v44, 0.0  ;;  %v15353_v29 = vmul.f32 %v7199_v17, %v17591_v40  ;;  %v15356_v53 = vmul.f32 %v7198_v27, %v17589_v36  ;;  %v17615_v5 = vld [vmem:[#allocation219_spill] sm:$0xff]  ;;  %v11758_v61 = vld [vmem:[%s12140_s9 + $0x9ac] ss:$16 sps:$4 sm:$0xff]   ;;  %v17646_v21 = vld [vmem:[#allocation73_spill] sm:$0xff] }
 0x589   : > { %8180 = vmatprep.subr.bf16.mxu1 %v11754_v58  ;;  %17611 = vst [vmem:[#allocation172_spill] sm:$0xff] %v15348_v23  ;;  %v15359_v10 = vmul.f32 %v7197_v48, %v17586_v11  ;;  %v6800_v6 = vmul.f32 %v17613_v52, %v17612_v31  ;;  %v6801_v46 = vmul.f32 %v17615_v5, %v17614_v51  ;;  %v11757_v33 = vld [vmem:[%s12140_s9 + $0xa84] ss:$16 sps:$4 sm:$0xff]   ;;  %v17618_v40 = vld [vmem:[#allocation30_spill] sm:$0xff]  ;;  %v17619_v25 = vld [vmem:[#allocation220_spill] sm:$0xff] }
 0x58a   : > { %v15368_v17 = vmul.f32 %v7200_v34, %v17593_v50  ;;  %v15371_v36 = vmul.f32 %v7202_v15, %v17597_v20  ;;  %v15374_v11 = vmul.f32 %v7203_v62, %v17599_v60  ;;  %v6802_v9 = vmul.f32 %v17619_v25, %v17618_v40  ;;  %v17622_v34 = vld [vmem:[#allocation27_spill] sm:$0xff]  ;;  %v17624_v59 = vld [vmem:[#allocation26_spill] sm:$0xff]  ;;  %v17647_v32 = vld [vmem:[#allocation72_spill] sm:$0xff] }
 0x58b   : > { %8117 = vmatpush2.bf16.msra.mxu0 %v11755_v0  ;;  %v15379_v48 = vmul.f32 %v7201_v38, %v17595_v30  ;;  %v15382_v27 = vmul.f32 %v7204_v7, %v17601_v13  ;;  %v15385_v44 = vmul.f32 %v7205_v49, %v17603_v45  ;;  %v17623_v50 = vld [vmem:[#allocation223_spill] sm:$0xff]  ;;  %v17625_v60 = vld [vmem:[#allocation226_spill] sm:$0xff]  ;;  %v7684_v58 = vpop.f32.mrf.mxu0  ;;  %v15392_v15 = vmul.f32 %v7206_v12, %v17605_v26 }
 0x58c   : > { %8181 = vmatpush1.bf16.msra.mxu1 %v11756_v16  ;;  %8118 = vmatprep.subr.bf16.mxu0 %v11757_v33  ;;  %17616 = vst [vmem:[#allocation58_spill] sm:$0xff] %v15371_v36  ;;  %17617 = vst [vmem:[#allocation173_spill] sm:$0xff] %v15374_v11  ;;  %v6803_v20 = vmul.f32 %v17623_v50, %v17622_v34  ;;  %v6804_v39 = vmul.f32 %v17625_v60, %v17624_v59  ;;  %v17627_v30 = vld [vmem:[#allocation23_spill] sm:$0xff]  ;;  %v11759_v0 = vld [vmem:[%s12140_s9 + $0xa80] ss:$16 sps:$4 sm:$0xff]  }
 0x58d   : > { %8182 = vmatprep.subr.bf16.mxu1 %v11758_v61  ;;  %17620 = vst [vmem:[#allocation57_spill] sm:$0xff] %v15382_v27  ;;  %17621 = vst [vmem:[#allocation174_spill] sm:$0xff] %v15385_v44  ;;  %v17628_v38 = vld [vmem:[#allocation227_spill] sm:$0xff]  ;;  %v15399_v45 = vadd.f32 %v15195_v41, %v7684_v58  ;;  %v7007_v7 = vadd.f32 %v15101_v18, %v6800_v6  ;;  %v7008_v49 = vadd.f32 %v15101_v18, %v6801_v46  ;;  %v17630_v16 = vld [vmem:[#allocation22_spill] sm:$0xff]  ;;  %v7686_v12 = vpop.f32.mrf.mxu0 }
 0x58e   : > { %17626 = vst [vmem:[#allocation56_spill] sm:$0xff] %v15392_v15  ;;  %v6805_v62 = vmul.f32 %v17628_v38, %v17627_v30  ;;  %v11760_v13 = vld [vmem:[%s12140_s9 + $0x9a8] ss:$16 sps:$4 sm:$0xff]   ;;  %v17631_v52 = vld [vmem:[#allocation230_spill] sm:$0xff]  ;;  %v11761_v33 = vld [vmem:[%s12140_s9 + $0xa64] ss:$16 sps:$4 sm:$0xff]   ;;  %v7009_v61 = vadd.f32 %v15101_v18, %v6802_v9  ;;  %v15413_v46 = vadd.f32 %v15204_v54, %v7686_v12  ;;  %v7010_v58 = vadd.f32 %v15101_v18, %v6803_v20 }
 0x58f   : > { %8119 = vmatpush2.bf16.msra.mxu0 %v11759_v0  ;;  %17629 = vst [vmem:[#allocation175_spill] sm:$0xff] %v15399_v45  ;;  %v6806_v5 = vmul.f32 %v17631_v52, %v17630_v16  ;;  %v11762_v26 = vld [vmem:[%s12140_s9 + $0x98c] ss:$16 sps:$4 sm:$0xff]   ;;  %v17632_v25 = vld [vmem:[#allocation19_spill] sm:$0xff]  ;;  %v17634_v60 = vld [vmem:[#allocation233_spill] sm:$0xff]  ;;  %v7011_v38 = vadd.f32 %v15101_v18, %v6804_v39  ;;  %v7688_v45 = vpop.f32.mrf.mxu0  ;;  %v7208_v4 = vmax.f32 %v7008_v49, 0.0 }
 0x590   : > { %8183 = vmatpush1.bf16.msra.mxu1 %v11760_v13  ;;  %8120 = vmatprep.subr.bf16.mxu0 %v11761_v33  ;;  %v6807_v41 = vmul.f32 %v13519_v24, %v17632_v25  ;;  %v17633_v50 = vld [vmem:[#allocation18_spill] sm:$0xff]  ;;  %17635 = vst [vmem:[#allocation55_spill] sm:$0xff] %v15413_v46  ;;  %v17636_v0 = vld [vmem:[#allocation12_spill] sm:$0xff]  ;;  %v17639_v9 = vld [vmem:[#allocation239_spill] sm:$0xff]  ;;  %v7012_v24 = vadd.f32 %v15101_v18, %v6805_v62 }
 0x591   : > { %8184 = vmatprep.subr.bf16.mxu1 %v11762_v26  ;;  %v6808_v6 = vmul.f32 %v17634_v60, %v17633_v50  ;;  %v17637_v13 = vld [vmem:[#allocation236_spill] sm:$0xff]  ;;  %v17638_v33 = vld [vmem:[#allocation14_spill] sm:$0xff]  ;;  %v17642_v54 = vld [vmem:[#allocation43_spill] sm:$0xff]  ;;  %v7013_v39 = vadd.f32 %v15101_v18, %v6806_v5  ;;  %v6814_v45 = vmul.f32 %v13620_v63, %v17646_v21  ;;  %v6815_v5 = vmul.f32 %v13638_v28, %v17647_v32 }
 0x592   : > { %v6809_v52 = vmul.f32 %v17637_v13, %v17636_v0  ;;  %v6810_v26 = vmul.f32 %v17639_v9, %v17638_v33  ;;  %v17640_v36 = vld [vmem:[#allocation44_spill] sm:$0xff]  ;;  %v17643_v12 = vld [vmem:[#allocation243_spill] sm:$0xff]  ;;  %v17644_v44 = vld [vmem:[#allocation74_spill] sm:$0xff]  ;;  %v7212_v28 = vmax.f32 %v7012_v24, 0.0 }
 0x593   : > { %v17641_v60 = vld [vmem:[#allocation240_spill] sm:$0xff]  ;;  %v6812_v46 = vmul.f32 %v17643_v12, %v17642_v54  ;;  %v11764_v20 = vld [vmem:[%s12140_s9 + $0x988] ss:$16 sps:$4 sm:$0xff]   ;;  %v17645_v13 = vld [vmem:[#allocation246_spill] sm:$0xff]  ;;  %v7207_v12 = vmax.f32 %v7007_v7, 0.0  ;;  %v7213_v49 = vmax.f32 %v7013_v39, 0.0 }
 0x594   : > { %v6811_v11 = vmul.f32 %v17641_v60, %v17640_v36  ;;  %v11763_v27 = vld [vmem:[%s12140_s9 + $0xa60] ss:$16 sps:$4 sm:$0xff]   ;;  %8185 = vmatpush1.bf16.msra.mxu1 %v11764_v20  ;;  %v6813_v15 = vmul.f32 %v17645_v13, %v17644_v44  ;;  %v11765_v9 = vld [vmem:[%s12140_s9 + $0x96c] ss:$16 sps:$4 sm:$0xff]   ;;  %v7689_v60 = vpop.f32.mrf.mxu0  ;;  %v7015_v20 = vadd.f32 %v15101_v18, %v6808_v6  ;;  %v7209_v13 = vmax.f32 %v7009_v61, 0.0 }
 0x595   : > { %8121 = vmatpush2.bf16.msra.mxu0 %v11763_v27  ;;  %8186 = vmatprep.subr.bf16.mxu1 %v11765_v9  ;;  %v11766_v62 = vld [vmem:[%s12140_s9 + $0xc4c] ss:$16 sps:$4 sm:$0xff]   ;;  %v7014_v27 = vadd.f32 %v15101_v18, %v6807_v41  ;;  %v7016_v63 = vadd.f32 %v15101_v18, %v6809_v52  ;;  %v7017_v9 = vadd.f32 %v15101_v18, %v6810_v26  ;;  %v7211_v60 = vmax.f32 %v7011_v38, 0.0  ;;  %v11767_v6 = vld [vmem:[%s12140_s9 + $0x968] ss:$16 sps:$4 sm:$0xff]  }
 0x596   : > { %8213 = vmatprep.subr.bf16.mxu0 %v11766_v62  ;;  %v7210_v62 = vmax.f32 %v7010_v58, 0.0  ;;  %v7018_v7 = vadd.f32 %v15101_v18, %v6811_v11  ;;  %v7019_v41 = vadd.f32 %v15101_v18, %v6812_v46  ;;  %v11768_v1 = vld [vmem:[%s12140_s9 + $0xc48] ss:$16 sps:$4 sm:$0xff]   ;;  %v7020_v61 = vadd.f32 %v15101_v18, %v6813_v15  ;;  %v11769_v26 = vld [vmem:[%s12140_s9 + $0xb4c] ss:$16 sps:$4 sm:$0xff]  }
 0x597   : > { %v7021_v52 = vadd.f32 %v15101_v18, %v6814_v45  ;;  %v11770_v23 = vld [vmem:[%s12140_s9 + $0xc2c] ss:$16 sps:$4 sm:$0xff]   ;;  %v15451_v11 = vmul.f32 %v7207_v12, %v17612_v31  ;;  %v7214_v46 = vmax.f32 %v7014_v27, 0.0  ;;  %v7215_v58 = vmax.f32 %v7015_v20, 0.0  ;;  %v11771_v27 = vld [vmem:[%s12140_s9 + $0xb48] ss:$16 sps:$4 sm:$0xff]  }
 0x598   : > { %8123 = vmatmul.mubr.bf16.vlgmr.msra.gmra.mxu0 %v15193_v57  ;;  %8187 = vmatpush1.bf16.msra.mxu1 %v11767_v6  ;;  %v7022_v38 = vadd.f32 %v15101_v18, %v6815_v5  ;;  %v15460_v15 = vmul.f32 %v7209_v13, %v17618_v40  ;;  %v7216_v24 = vmax.f32 %v7016_v63, 0.0  ;;  %v15463_v31 = vmul.f32 %v7210_v62, %v17622_v34  ;;  %v11773_v34 = vld [vmem:[%s12140_s9 + $0xb2c] ss:$16 sps:$4 sm:$0xff]  }
 0x599   : > { %8214 = vmatpush1.bf16.msra.mxu0 %v11768_v1  ;;  %8188 = vmatprep.subr.bf16.mxu1 %v11769_v26  ;;  %v15457_v1 = vmul.f32 %v7208_v4, %v17614_v51  ;;  %v15466_v39 = vmul.f32 %v7211_v60, %v17624_v59  ;;  %v7218_v45 = vmax.f32 %v7018_v7, 0.0  ;;  %v7219_v12 = vmax.f32 %v7019_v41, 0.0  ;;  %v11774_v59 = vld [vmem:[%s12140_s9 + $0xc0c] ss:$16 sps:$4 sm:$0xff]  }
 0x59a   : > { %8215 = vmatprep.subr.bf16.mxu0 %v11770_v23  ;;  %10001 = vmatprep.mubr.msk.bf16.mxu0 %vm3173_vm0, %v15080_v3  ;;  %v7217_v23 = vmax.f32 %v7017_v9, 0.0  ;;  %v11772_v3 = vld [vmem:[%s12140_s9 + $0xc28] ss:$16 sps:$4 sm:$0xff]   ;;  %v15471_v4 = vmul.f32 %v7212_v28, %v17627_v30  ;;  %v15474_v51 = vmul.f32 %v7213_v49, %v17630_v16  ;;  %v7220_v40 = vmax.f32 %v7020_v61, 0.0  ;;  %v17649_v60 = vld [vmem:[#allocation70_spill] sm:$0xff] }
 0x59b   : > { %v7221_v20 = vmax.f32 %v7021_v52, 0.0  ;;  %v15479_v5 = vmul.f32 %v7214_v46, %v17632_v25  ;;  %v15482_v13 = vmul.f32 %v7215_v58, %v17633_v50  ;;  %v7222_v63 = vmax.f32 %v7022_v38, 0.0  ;;  %v17648_v30 = vld [vmem:[#allocation71_spill] sm:$0xff]  ;;  %v17650_v25 = vld [vmem:[#allocation69_spill] sm:$0xff]  ;;  %v11777_v61 = vld [vmem:[%s12140_s9 + $0xb0c] ss:$16 sps:$4 sm:$0xff]  }
 0x59c   : > { %8189 = vmatpush2.bf16.msra.mxu1 %v11771_v27  ;;  %v6816_v16 = vmul.f32 %v13658_v37, %v17648_v30  ;;  %v15487_v9 = vmul.f32 %v7216_v24, %v17636_v0  ;;  %v15490_v62 = vmul.f32 %v7217_v23, %v17638_v33  ;;  %v6817_v7 = vmul.f32 %v13673_v47, %v17649_v60  ;;  %v17652_v37 = vld [vmem:[#allocation68_spill] sm:$0xff]  ;;  %v11775_v28 = vld [vmem:[%s12140_s9 + $0xb28] ss:$16 sps:$4 sm:$0xff]   ;;  %v17657_v26 = vld [vmem:[#allocation66_spill] sm:$0xff] }
 0x59d   : > { %8216 = vmatpush1.bf16.msra.mxu0 %v11772_v3  ;;  %8190 = vmatprep.subr.bf16.mxu1 %v11773_v34  ;;  %v6818_v41 = vmul.f32 %v13693_v19, %v17650_v25  ;;  %v15497_v50 = vmul.f32 %v7218_v45, %v17640_v36  ;;  %v15500_v6 = vmul.f32 %v7219_v12, %v17642_v54  ;;  %v11776_v49 = vld [vmem:[%s12140_s9 + $0xc08] ss:$16 sps:$4 sm:$0xff]   ;;  %v11778_v54 = vld [vmem:[%s12140_s9 + $0xbec] ss:$16 sps:$4 sm:$0xff]  }
 0x59e   : > { %8217 = vmatprep.subr.bf16.mxu0 %v11774_v59  ;;  %v6819_v0 = vmul.f32 %v13712_v2, %v17652_v37  ;;  %v15507_v33 = vmul.f32 %v7220_v40, %v17644_v44  ;;  %v15510_v47 = vmul.f32 %v7221_v20, %v17646_v21  ;;  %v17655_v19 = vld [vmem:[#allocation67_spill] sm:$0xff]  ;;  %v15517_v2 = vmul.f32 %v7222_v63, %v17647_v32  ;;  %v17658_v46 = vld [vmem:[#allocation65_spill] sm:$0xff]  ;;  %v17659_v38 = vld [vmem:[#allocation64_spill] sm:$0xff] }
 0x59f   : > { %17651 = vst [vmem:[#allocation176_spill] sm:$0xff] %v15497_v50  ;;  %v6820_v36 = vmul.f32 %v13728_v8, %v17655_v19  ;;  %v7023_v52 = vadd.f32 %v15101_v18, %v6816_v16  ;;  %v6821_v44 = vmul.f32 %v13745_v55, %v17657_v26  ;;  %v6822_v21 = vmul.f32 %v13759_v43, %v17658_v46  ;;  %v17660_v23 = vld [vmem:[#allocation63_spill] sm:$0xff]  ;;  %v17661_v12 = vld [vmem:[#allocation62_spill] sm:$0xff]  ;;  %v17662_v27 = vld [vmem:[#allocation61_spill] sm:$0xff] }
 0x5a0   : > { %8191 = vmatpush2.bf16.msra.mxu1 %v11775_v28  ;;  %17653 = vst [vmem:[#allocation54_spill] sm:$0xff] %v15507_v33  ;;  %17654 = vst [vmem:[#allocation177_spill] sm:$0xff] %v15510_v47  ;;  %v7024_v8 = vadd.f32 %v15101_v18, %v6817_v7  ;;  %v7025_v58 = vadd.f32 %v15101_v18, %v6818_v41  ;;  %v6823_v24 = vmul.f32 %v13768_v56, %v17659_v38  ;;  %v11779_v43 = vld [vmem:[%s12140_s9 + $0xb08] ss:$16 sps:$4 sm:$0xff]   ;;  %v17663_v34 = vld [vmem:[#allocation60_spill] sm:$0xff] }
 0x5a1   : > { %8218 = vmatpush1.bf16.msra.mxu0 %v11776_v49  ;;  %8192 = vmatprep.subr.bf16.mxu1 %v11777_v61  ;;  %17656 = vst [vmem:[#allocation53_spill] sm:$0xff] %v15517_v2  ;;  %v6824_v32 = vmul.f32 %v13778_v42, %v17660_v23  ;;  %v7026_v45 = vadd.f32 %v15101_v18, %v6819_v0  ;;  %v11780_v40 = vld [vmem:[%s12140_s9 + $0xbe8] ss:$16 sps:$4 sm:$0xff]   ;;  %v17666_v16 = vld [vmem:[#allocation258_spill] sm:$0xff]  ;;  %v17667_v0 = vld [vmem:[#allocation92_spill] sm:$0xff] }
 0x5a2   : > { %8219 = vmatprep.subr.bf16.mxu0 %v11778_v54  ;;  %v6825_v55 = vmul.f32 %v13785_v14, %v17661_v12  ;;  %v6826_v3 = vmul.f32 %v13793_v35, %v17662_v27  ;;  %v7027_v20 = vadd.f32 %v15101_v18, %v6820_v36  ;;  %v17664_v59 = vld [vmem:[#allocation257_spill] sm:$0xff]  ;;  %v17665_v63 = vld [vmem:[#allocation59_spill] sm:$0xff]  ;;  %v11781_v7 = vld [vmem:[%s12140_s9 + $0xaec] ss:$16 sps:$4 sm:$0xff]   ;;  %v7028_v14 = vadd.f32 %v15101_v18, %v6821_v44 }
 0x5a3   : > { %v6827_v56 = vmul.f32 %v17664_v59, %v17663_v34  ;;  %v6828_v42 = vmul.f32 %v17666_v16, %v17665_v63  ;;  %v11782_v41 = vld [vmem:[%s12140_s9 + $0xbcc] ss:$16 sps:$4 sm:$0xff]   ;;  %v7029_v35 = vadd.f32 %v15101_v18, %v6822_v21  ;;  %v17668_v28 = vld [vmem:[#allocation259_spill] sm:$0xff]  ;;  %v7031_v59 = vadd.f32 %v15101_v18, %v6824_v32 }
 0x5a4   : > { %8193 = vmatpush2.bf16.msra.mxu1 %v11779_v43  ;;  %v6829_v49 = vmul.f32 %v17668_v28, %v17667_v0  ;;  %v17669_v36 = vld [vmem:[#allocation91_spill] sm:$0xff]  ;;  %v17670_v61 = vld [vmem:[#allocation260_spill] sm:$0xff]  ;;  %v7223_v43 = vmax.f32 %v7023_v52, 0.0  ;;  %v7224_v33 = vmax.f32 %v7024_v8, 0.0  ;;  %v7225_v44 = vmax.f32 %v7025_v58, 0.0 }
 0x5a5   : > { %8220 = vmatpush1.bf16.msra.mxu0 %v11780_v40  ;;  %8194 = vmatprep.subr.bf16.mxu1 %v11781_v7  ;;  %v6830_v54 = vmul.f32 %v17670_v61, %v17669_v36  ;;  %v7030_v40 = vadd.f32 %v15101_v18, %v6823_v24  ;;  %v17671_v16 = vld [vmem:[#allocation88_spill] sm:$0xff]  ;;  %v17672_v7 = vld [vmem:[#allocation261_spill] sm:$0xff]  ;;  %v7032_v21 = vadd.f32 %v15101_v18, %v6825_v55  ;;  %v7226_v52 = vmax.f32 %v7026_v45, 0.0 }
 0x5a6   : > { %8221 = vmatprep.subr.bf16.mxu0 %v11782_v41  ;;  %v6831_v41 = vmul.f32 %v17672_v7, %v17671_v16  ;;  %v7033_v47 = vadd.f32 %v15101_v18, %v6826_v3  ;;  %v11783_v28 = vld [vmem:[%s12140_s9 + $0xae8] ss:$16 sps:$4 sm:$0xff]   ;;  %v7227_v61 = vmax.f32 %v7027_v20, 0.0  ;;  %v7034_v24 = vadd.f32 %v15101_v18, %v6827_v56  ;;  %v11785_v50 = vld [vmem:[%s12140_s9 + $0xacc] ss:$16 sps:$4 sm:$0xff]  }
 0x5a7   : > { %v11784_v2 = vld [vmem:[%s12140_s9 + $0xbc8] ss:$16 sps:$4 sm:$0xff]   ;;  %v7035_v32 = vadd.f32 %v15101_v18, %v6828_v42  ;;  %v11786_v7 = vld [vmem:[%s12140_s9 + $0xbac] ss:$16 sps:$4 sm:$0xff]   ;;  %v7228_v8 = vmax.f32 %v7028_v14, 0.0  ;;  %v7229_v58 = vmax.f32 %v7029_v35, 0.0  ;;  %v7036_v55 = vadd.f32 %v15101_v18, %v6829_v49 }
 0x5a8   : > { %8195 = vmatpush2.bf16.msra.mxu1 %v11783_v28  ;;  %v7037_v3 = vadd.f32 %v15101_v18, %v6830_v54  ;;  %v7230_v45 = vmax.f32 %v7030_v40, 0.0  ;;  %v7231_v20 = vmax.f32 %v7031_v59, 0.0  ;;  %v7038_v56 = vadd.f32 %v15101_v18, %v6831_v41  ;;  %v11787_v49 = vld [vmem:[%s12140_s9 + $0xac8] ss:$16 sps:$4 sm:$0xff]  }
 0x5a9   : > { %8222 = vmatpush1.bf16.msra.mxu0 %v11784_v2  ;;  %8196 = vmatprep.subr.bf16.mxu1 %v11785_v50  ;;  %v15565_v2 = vmul.f32 %v7223_v43, %v17648_v30  ;;  %v15569_v50 = vmul.f32 %v7224_v33, %v17649_v60  ;;  %v15572_v42 = vmul.f32 %v7225_v44, %v17650_v25  ;;  %v7232_v14 = vmax.f32 %v7032_v21, 0.0  ;;  %v11788_v54 = vld [vmem:[%s12140_s9 + $0xba8] ss:$16 sps:$4 sm:$0xff]   ;;  %v11789_v60 = vld [vmem:[%s12140_s9 + $0xaac] ss:$16 sps:$4 sm:$0xff]  }
 0x5aa   : > { %8223 = vmatprep.subr.bf16.mxu0 %v11786_v7  ;;  %v7233_v35 = vmax.f32 %v7033_v47, 0.0  ;;  %v15577_v30 = vmul.f32 %v7226_v52, %v17652_v37  ;;  %v15580_v43 = vmul.f32 %v7227_v61, %v17655_v19  ;;  %v7234_v40 = vmax.f32 %v7034_v24, 0.0  ;;  %v11790_v25 = vld [vmem:[%s12140_s9 + $0xb8c] ss:$16 sps:$4 sm:$0xff]   ;;  %v17682_v28 = vld [vmem:[#allocation87_spill] sm:$0xff] }
 0x5ab   : > { %17673 = vst [vmem:[#allocation178_spill] sm:$0xff] %v15565_v2  ;;  %17674 = vst [vmem:[#allocation52_spill] sm:$0xff] %v15569_v50  ;;  %v7235_v59 = vmax.f32 %v7035_v32, 0.0  ;;  %v15585_v33 = vmul.f32 %v7228_v8, %v17657_v26  ;;  %v15588_v47 = vmul.f32 %v7229_v58, %v17658_v46  ;;  %v7236_v41 = vmax.f32 %v7036_v55, 0.0  ;;  %v17683_v52 = vld [vmem:[#allocation262_spill] sm:$0xff]  ;;  %v17687_v32 = vld [vmem:[#allocation263_spill] sm:$0xff] }
 0x5ac   : > { %17675 = vst [vmem:[#allocation181_spill] sm:$0xff] %v15572_v42  ;;  %8197 = vmatpush2.bf16.msra.mxu1 %v11787_v49  ;;  %17676 = vst [vmem:[#allocation51_spill] sm:$0xff] %v15577_v30  ;;  %v7237_v37 = vmax.f32 %v7037_v3, 0.0  ;;  %v15591_v19 = vmul.f32 %v7230_v45, %v17659_v38  ;;  %v15594_v44 = vmul.f32 %v7231_v20, %v17660_v23  ;;  %v7238_v21 = vmax.f32 %v7038_v56, 0.0  ;;  %v17686_v24 = vld [vmem:[#allocation86_spill] sm:$0xff]  ;;  %v17690_v55 = vld [vmem:[#allocation85_spill] sm:$0xff] }
 0x5ad   : > { %8224 = vmatpush1.bf16.msra.mxu0 %v11788_v54  ;;  %17677 = vst [vmem:[#allocation184_spill] sm:$0xff] %v15580_v43  ;;  %8198 = vmatprep.subr.bf16.mxu1 %v11789_v60  ;;  %17678 = vst [vmem:[#allocation50_spill] sm:$0xff] %v15585_v33  ;;  %v6832_v61 = vmul.f32 %v17683_v52, %v17682_v28  ;;  %v15599_v26 = vmul.f32 %v7232_v14, %v17661_v12  ;;  %v11791_v8 = vld [vmem:[%s12140_s9 + $0xaa8] ss:$16 sps:$4 sm:$0xff]   ;;  %v17691_v3 = vld [vmem:[#allocation264_spill] sm:$0xff] }
 0x5ae   : > { %8225 = vmatprep.subr.bf16.mxu0 %v11790_v25  ;;  %17679 = vst [vmem:[#allocation185_spill] sm:$0xff] %v15588_v47  ;;  %17680 = vst [vmem:[#allocation49_spill] sm:$0xff] %v15591_v19  ;;  %v15602_v46 = vmul.f32 %v7233_v35, %v17662_v27  ;;  %v6833_v7 = vmul.f32 %v17687_v32, %v17686_v24  ;;  %v11792_v38 = vld [vmem:[%s12140_s9 + $0xb88] ss:$16 sps:$4 sm:$0xff]   ;;  %v15609_v23 = vmul.f32 %v7234_v40, %v17663_v34  ;;  %v11793_v45 = vld [vmem:[%s12140_s9 + $0xa8c] ss:$16 sps:$4 sm:$0xff]  }
 0x5af   : > { %17681 = vst [vmem:[#allocation188_spill] sm:$0xff] %v15594_v44  ;;  %17684 = vst [vmem:[#allocation48_spill] sm:$0xff] %v15599_v26  ;;  %v15612_v58 = vmul.f32 %v7235_v59, %v17665_v63  ;;  %v6834_v12 = vmul.f32 %v17691_v3, %v17690_v55  ;;  %v11794_v27 = vld [vmem:[%s12140_s9 + $0xb6c] ss:$16 sps:$4 sm:$0xff]   ;;  %v17693_v56 = vld [vmem:[#allocation265_spill] sm:$0xff]  ;;  %v15623_v34 = vmul.f32 %v7237_v37, %v17669_v36  ;;  %v7807_v3 = vpop.f32.mrf.mxu0 }
 0x5b0   : > { %17685 = vst [vmem:[#allocation191_spill] sm:$0xff] %v15602_v46  ;;  %8199 = vmatpush2.bf16.msra.mxu1 %v11791_v8  ;;  %17688 = vst [vmem:[#allocation47_spill] sm:$0xff] %v15609_v23  ;;  %v17692_v20 = vld [vmem:[#allocation84_spill] sm:$0xff]  ;;  %v17694_v35 = vld [vmem:[#allocation83_spill] sm:$0xff]  ;;  %v15626_v63 = vmul.f32 %v7236_v41, %v17667_v0  ;;  %v15629_v40 = vadd.f32 %v15101_v18, %v6832_v61  ;;  %v15639_v36 = vadd.f32 %v15101_v18, %v6833_v7 }
 0x5b1   : > { %8226 = vmatpush1.bf16.msra.mxu0 %v11792_v38  ;;  %17689 = vst [vmem:[#allocation192_spill] sm:$0xff] %v15612_v58  ;;  %8200 = vmatprep.subr.bf16.mxu1 %v11793_v45  ;;  %v6835_v14 = vmul.f32 %v17693_v56, %v17692_v20  ;;  %v17695_v49 = vld [vmem:[#allocation266_spill] sm:$0xff]  ;;  %17696 = vst [vmem:[#allocation46_spill] sm:$0xff] %v15623_v34  ;;  %v17699_v60 = vld [vmem:[#allocation267_spill] sm:$0xff]  ;;  %v7766_v38 = vpop.f32.mrf.mxu1  ;;  %v15636_v45 = vmul.f32 %v7238_v21, %v17671_v16 }
 0x5b2   : > { %8227 = vmatprep.subr.bf16.mxu0 %v11794_v27  ;;  %v6836_v54 = vmul.f32 %v17695_v49, %v17694_v35  ;;  %17697 = vst [vmem:[#allocation195_spill] sm:$0xff] %v15626_v63  ;;  %v17698_v59 = vld [vmem:[#allocation82_spill] sm:$0xff]  ;;  %v17700_v52 = vld [vmem:[#allocation81_spill] sm:$0xff]  ;;  %v17701_v32 = vld [vmem:[#allocation268_spill] sm:$0xff]  ;;  %v15645_v56 = vadd.f32 %v7807_v3, %v7766_v38  ;;  %v7041_v49 = vadd.f32 %v15101_v18, %v6834_v12 }
 0x5b3   : > { %v6837_v25 = vmul.f32 %v17699_v60, %v17698_v59  ;;  %v6838_v8 = vmul.f32 %v17701_v32, %v17700_v52  ;;  %17702 = vst [vmem:[#allocation45_spill] sm:$0xff] %v15636_v45  ;;  %v17703_v0 = vld [vmem:[#allocation80_spill] sm:$0xff]  ;;  %v17704_v41 = vld [vmem:[#allocation269_spill] sm:$0xff]  ;;  %v17706_v60 = vld [vmem:[#allocation79_spill] sm:$0xff]  ;;  %v7042_v38 = vadd.f32 %v15101_v18, %v6835_v14 }
 0x5b4   : > { %v6839_v37 = vmul.f32 %v17704_v41, %v17703_v0  ;;  %v11795_v61 = vld [vmem:[%s12140_s9 + $0xa88] ss:$16 sps:$4 sm:$0xff]   ;;  %17705 = vst [vmem:[#allocation198_spill] sm:$0xff] %v15645_v56  ;;  %v17707_v32 = vld [vmem:[#allocation270_spill] sm:$0xff]  ;;  %v15654_v41 = vpop.f32.mrf.mxu1  ;;  %v7043_v12 = vadd.f32 %v15101_v18, %v6836_v54  ;;  %v17721_v19 = vld [vmem:[#allocation276_spill] sm:$0xff]  ;;  %v7241_v46 = vmax.f32 %v7041_v49, 0.0 }
 0x5b5   : > { %8201 = vmatpush2.bf16.msra.mxu1 %v11795_v61  ;;  %v11796_v27 = vld [vmem:[%s12140_s9 + $0xb68] ss:$16 sps:$4 sm:$0xff]   ;;  %v6840_v63 = vmul.f32 %v17707_v32, %v17706_v60  ;;  %v17708_v34 = vld [vmem:[#allocation78_spill] sm:$0xff]  ;;  %17710 = vst [vmem:[#allocation42_spill] sm:$0xff] %v15654_v41  ;;  %v15656_v61 = vpop.f32.mrf.mxu0  ;;  %v7044_v56 = vadd.f32 %v15101_v18, %v6837_v25 }
 0x5b6   : > { %8228 = vmatpush1.bf16.msra.mxu0 %v11796_v27  ;;  %v17709_v16 = vld [vmem:[#allocation271_spill] sm:$0xff]  ;;  %v11797_v45 = vld [vmem:[%s12140_s9 + $0xa6c] ss:$16 sps:$4 sm:$0xff]   ;;  %17711 = vst [vmem:[#allocation199_spill] sm:$0xff] %v15656_v61  ;;  %v17712_v3 = vld [vmem:[#allocation77_spill] sm:$0xff]  ;;  %v7770_v30 = vpop.f32.mrf.mxu1  ;;  %v7046_v61 = vadd.f32 %v15101_v18, %v6839_v37  ;;  %v17113_v37 = vmov 0.0  }
 0x5b7   : > { %v6841_v21 = vmul.f32 %v17709_v16, %v17708_v34  ;;  %8202 = vmatprep.subr.bf16.mxu1 %v11797_v45  ;;  %v11798_v7 = vld [vmem:[%s12140_s9 + $0xc6c] ss:$16 sps:$4 sm:$0xff]   ;;  %v7045_v16 = vadd.f32 %v15101_v18, %v6838_v8  ;;  %v17715_v2 = vld [vmem:[#allocation273_spill] sm:$0xff]  ;;  %v7811_v43 = vpop.f32.mrf.mxu0  ;;  %v17719_v33 = vld [vmem:[#allocation275_spill] sm:$0xff]  ;;  %v7239_v8 = vmax.f32 %v15629_v40, 0.0  ;;  %v7243_v23 = vmax.f32 %v7043_v12, 0.0 }
 0x5b8   : > { %8243 = vmatprep.subr.bf16.mxu0 %v11798_v7  ;;  %v17713_v27 = vld [vmem:[#allocation272_spill] sm:$0xff]  ;;  %v17716_v7 = vld [vmem:[#allocation75_spill] sm:$0xff]  ;;  %v17717_v42 = vld [vmem:[#allocation274_spill] sm:$0xff] }
 0x5b9   : > { %v6842_v32 = vmul.f32 %v17713_v27, %v17712_v3  ;;  %v17714_v45 = vld [vmem:[#allocation76_spill] sm:$0xff]  ;;  %v6844_v41 = vmul.f32 %v17717_v42, %v17716_v7  ;;  %v17718_v14 = vld [vmem:[#allocation106_spill] sm:$0xff]  ;;  %v17720_v47 = vld [vmem:[#allocation105_spill] sm:$0xff]  ;;  %v7048_v42 = vadd.f32 %v15101_v18, %v6841_v21 }
 0x5ba   : > { %v6843_v50 = vmul.f32 %v17715_v2, %v17714_v45  ;;  %v6845_v54 = vmul.f32 %v17719_v33, %v17718_v14  ;;  %v6846_v27 = vmul.f32 %v17721_v19, %v17720_v47  ;;  %v11799_v44 = vld [vmem:[%s12140_s9 + $0xa68] ss:$16 sps:$4 sm:$0xff]   ;;  %v7047_v2 = vadd.f32 %v15101_v18, %v6840_v63  ;;  %v17722_v30 = vld [vmem:[#allocation104_spill] sm:$0xff]  ;;  %v7771_v33 = vpop.f32.mrf.mxu1  ;;  %v7812_v19 = vpop.f32.mrf.mxu0 }
 0x5bb   : > { %8203 = vmatpush2.bf16.msra.mxu1 %v11799_v44  ;;  %v11800_v25 = vld [vmem:[%s12140_s9 + $0xc68] ss:$16 sps:$4 sm:$0xff]   ;;  %v7240_v44 = vmax.f32 %v15639_v36, 0.0  ;;  %v7049_v40 = vadd.f32 %v15101_v18, %v6842_v32  ;;  %v7244_v63 = vmax.f32 %v7044_v56, 0.0  ;;  %v7051_v58 = vadd.f32 %v15101_v18, %v6844_v41  ;;  %v17727_v41 = vld [vmem:[#allocation396_spill] sm:$0xff]  ;;  %s16660_s9 = scalar_lea.hbm %s16711_s7, %s10015_s22 }
 0x5bc   : > { %8244 = vmatpush2.bf16.msra.mxu0 %v11800_v25  ;;  %v17723_v43 = vld [vmem:[#allocation277_spill] sm:$0xff]  ;;  %8527 = vmatprep.subr.mxu1 %v17113_v37  ;;  %v7242_v25 = vmax.f32 %v7042_v38, 0.0  ;;  %v7050_v21 = vadd.f32 %v15101_v18, %v6843_v50  ;;  %v7246_v37 = vmax.f32 %v7046_v61, 0.0  ;;  %v7052_v33 = vadd.f32 %v15101_v18, %v6845_v54  ;;  %v17725_v49 = vld [vmem:[#allocation167_spill] sm:$0xff]  ;;  %v17726_v38 = vld [vmem:[#allocation394_spill] sm:$0xff] }
 0x5bd   : > { %v6847_v26 = vmul.f32 %v17723_v43, %v17722_v30  ;;  %10515 = vmatprep.subr.mxu0 %v15379_v48  ;;  %v17724_v48 = vld [vmem:[#allocation158_spill] sm:$0xff]  ;;  %v7245_v43 = vmax.f32 %v7045_v16, 0.0  ;;  %v7053_v36 = vadd.f32 %v15101_v18, %v6846_v27  ;;  %v7247_v12 = vmax.f32 %v7047_v2, 0.0  ;;  %v17731_v2 = vld [vmem:[#allocation21_spill] sm:$0xff] }
 0x5be   : > { %8205 = vmatmul.mubr.bf16.vlgmr.msra.gmra.mxu1 %v15193_v57  ;;  %v7248_v56 = vmax.f32 %v7048_v42, 0.0  ;;  %v15697_v57 = vmul.f32 %v7239_v8, %v17682_v28  ;;  %v7249_v61 = vmax.f32 %v7049_v40, 0.0  ;;  %v17729_v32 = vmov 0.0   ;;  %v17734_v42 = vld [vmem:[#allocation166_spill] sm:$0xff]  ;;  %v17737_v19 = vld [vmem:[#allocation101_spill] sm:$0xff] }
 0x5bf   : > { %8246 = vmatmul.mubr.bf16.vlgmr.msra.gmra.mxu0 %v17724_v48  ;;  %v7054_v50 = vadd.f32 %v15101_v18, %v6847_v26  ;;  %8528 = vmatpush1.msra.mxu1 %v15490_v62  ;;  %v15702_v16 = vmul.f32 %v7242_v25, %v17692_v20  ;;  %v15705_v54 = vmul.f32 %v7241_v46, %v17690_v55  ;;  %v7250_v62 = vmax.f32 %v7050_v21, 0.0  ;;  %v17733_v55 = vld [vmem:[#allocation278_spill] sm:$0xff]  ;;  %v17740_v40 = vld [vmem:[#allocation281_spill] sm:$0xff] }
 0x5c0   : > { %10516 = vmatpush3.msra.mxu0 %v17725_v49  ;;  %8521 = vmatprep.mubr.f32.mxu0 %v17726_v38  ;;  %17728 = vst [vmem:[#allocation41_spill] sm:$0xff] %v15697_v57  ;;  %v15708_v26 = vmul.f32 %v7240_v44, %v17686_v24  ;;  %v7251_v27 = vmax.f32 %v7051_v58, 0.0  ;;  %v15713_v28 = vmul.f32 %v7244_v63, %v17698_v59  ;;  %v7252_v20 = vmax.f32 %v7052_v33, 0.0  ;;  %v17741_v63 = vld [vmem:[#allocation24_spill] sm:$0xff] }
 0x5c1   : > { %10002 = vmatprep.mubr.msk.f32.mxu1 %vm3173_vm0, %v17727_v41  ;;  %10517 = vmatprep.subr.mxu0 %v15368_v17  ;;  %v15716_v17 = vmul.f32 %v7243_v23, %v17694_v35  ;;  %v7253_v8 = vmax.f32 %v7053_v36, 0.0  ;;  %v15721_v46 = vmul.f32 %v7246_v37, %v17703_v0  ;;  %v15724_v24 = vmul.f32 %v7245_v43, %v17700_v52  ;;  %v17735_v35 = vld [vmem:[#allocation102_spill] sm:$0xff]  ;;  %v17736_v0 = vld [vmem:[#allocation279_spill] sm:$0xff]  ;;  %v17738_v52 = vld [vmem:[#allocation280_spill] sm:$0xff] }
 0x5c2   : > { %8529 = vmatprep.subr.mxu1 %v17729_v32  ;;  %17730 = vst [vmem:[#allocation202_spill] sm:$0xff] %v15708_v26  ;;  %10518 = vmatpush3.msra.mxu0 %v17731_v2  ;;  %v7254_v58 = vmax.f32 %v7054_v50, 0.0  ;;  %v15731_v23 = vmul.f32 %v7248_v56, %v17708_v34  ;;  %v6849_v37 = vmul.f32 %v17736_v0, %v17735_v35  ;;  %v17745_v43 = vld [vmem:[#allocation282_spill] sm:$0xff]  ;;  %v17748_v36 = vld [vmem:[#allocation283_spill] sm:$0xff]  ;;  %v17752_v50 = vld [vmem:[#allocation96_spill] sm:$0xff] }
 0x5c3   : > { %8530 = vmatpush1.msra.mxu1 %v15487_v9  ;;  %10519 = vmatprep.subr.mxu0 %v15353_v29  ;;  %v17732_v9 = vld [vmem:[#allocation103_spill] sm:$0xff]  ;;  %v15734_v29 = vmul.f32 %v7247_v12, %v17706_v60  ;;  %v6850_v44 = vmul.f32 %v17738_v52, %v17737_v19  ;;  %v15743_v25 = vmul.f32 %v7249_v61, %v17712_v3  ;;  %v17750_v12 = vld [vmem:[#allocation97_spill] sm:$0xff]  ;;  %v17761_v0 = vld [vmem:[#allocation172_spill] sm:$0xff] }
 0x5c4   : > { %8531 = vmatprep.subr.mxu1 %v17729_v32  ;;  %v6848_v59 = vmul.f32 %v17733_v55, %v17732_v9  ;;  %10520 = vmatpush3.msra.mxu0 %v17734_v42  ;;  %v15750_v60 = vmul.f32 %v7251_v27, %v17716_v7  ;;  %v15753_v21 = vmul.f32 %v7250_v62, %v17714_v45  ;;  %v17744_v3 = vld [vmem:[#allocation99_spill] sm:$0xff]  ;;  %v17747_v45 = vld [vmem:[#allocation98_spill] sm:$0xff]  ;;  %v17753_v41 = vld [vmem:[#allocation285_spill] sm:$0xff] }
 0x5c5   : > { %8532 = vmatpush1.msra.mxu1 %v15482_v13  ;;  %10521 = vmatprep.subr.mxu0 %v15356_v53  ;;  %v17739_v13 = vld [vmem:[#allocation100_spill] sm:$0xff]  ;;  %v15756_v53 = vmul.f32 %v7252_v20, %v17718_v14  ;;  %v15759_v48 = vmul.f32 %v7253_v8, %v17720_v47  ;;  %v6852_v33 = vmul.f32 %v17745_v43, %v17744_v3  ;;  %v17749_v14 = vld [vmem:[#allocation165_spill] sm:$0xff]  ;;  %v17754_v62 = vld [vmem:[#allocation95_spill] sm:$0xff] }
 0x5c6   : > { %8533 = vmatprep.subr.mxu1 %v17729_v32  ;;  %v6851_v34 = vmul.f32 %v17740_v40, %v17739_v13  ;;  %10522 = vmatpush3.msra.mxu0 %v17741_v63  ;;  %v7055_v7 = vadd.f32 %v15101_v18, %v6848_v59  ;;  %v6853_v49 = vmul.f32 %v17748_v36, %v17747_v45  ;;  %v17755_v27 = vld [vmem:[#allocation286_spill] sm:$0xff]  ;;  %v17760_v59 = vld [vmem:[#allocation288_spill] sm:$0xff] }
 0x5c7   : > { %8534 = vmatpush1.msra.mxu1 %v15479_v5  ;;  %17742 = vst [vmem:[#allocation40_spill] sm:$0xff] %v15756_v53  ;;  %17743 = vst [vmem:[#allocation205_spill] sm:$0xff] %v15759_v48  ;;  %10523 = vmatprep.subr.mxu0 %v15359_v10  ;;  %v15766_v5 = vmul.f32 %v7254_v58, %v17722_v30  ;;  %v7056_v47 = vadd.f32 %v15101_v18, %v6849_v37  ;;  %v17751_v10 = vld [vmem:[#allocation284_spill] sm:$0xff]  ;;  %v17757_v8 = vld [vmem:[#allocation94_spill] sm:$0xff] }
 0x5c8   : > { %8535 = vmatprep.subr.mxu1 %v17729_v32  ;;  %10524 = vmatpush3.msra.mxu0 %v17749_v14  ;;  %v7057_v38 = vadd.f32 %v15101_v18, %v6850_v44  ;;  %v6854_v56 = vmul.f32 %v17751_v10, %v17750_v12  ;;  %v7058_v30 = vadd.f32 %v15101_v18, %v6851_v34  ;;  %v17758_v58 = vld [vmem:[#allocation287_spill] sm:$0xff]  ;;  %v17762_v52 = vld [vmem:[#allocation90_spill] sm:$0xff]  ;;  %v17763_v44 = vld [vmem:[#allocation289_spill] sm:$0xff] }
 0x5c9   : > { %17746 = vst [vmem:[#allocation39_spill] sm:$0xff] %v15766_v5  ;;  %8536 = vmatpush1.msra.mxu1 %v15474_v51  ;;  %10525 = vmatprep.subr.mxu0 %v15345_v22  ;;  %v6855_v61 = vmul.f32 %v17753_v41, %v17752_v50  ;;  %v6856_v2 = vmul.f32 %v17755_v27, %v17754_v62  ;;  %v17756_v51 = vld [vmem:[#allocation25_spill] sm:$0xff]  ;;  %v17765_v63 = vld [vmem:[#allocation290_spill] sm:$0xff]  ;;  %v17767_v36 = vld [vmem:[#allocation108_spill] sm:$0xff] }
 0x5ca   : > { %8537 = vmatprep.subr.mxu1 %v17729_v32  ;;  %10526 = vmatpush3.msra.mxu0 %v17756_v51  ;;  %v7059_v20 = vadd.f32 %v15101_v18, %v6852_v33  ;;  %v6857_v55 = vmul.f32 %v17758_v58, %v17757_v8  ;;  %v17759_v22 = vld [vmem:[#allocation93_spill] sm:$0xff]  ;;  %v7060_v37 = vadd.f32 %v15101_v18, %v6853_v49  ;;  %v17766_v43 = vld [vmem:[#allocation162_spill] sm:$0xff]  ;;  %v17768_v14 = vld [vmem:[#allocation291_spill] sm:$0xff]  ;;  %v7255_v49 = vmax.f32 %v7055_v7, 0.0 }
 0x5cb   : > { %8538 = vmatpush1.msra.mxu1 %v15471_v4  ;;  %v6858_v42 = vmul.f32 %v17760_v59, %v17759_v22  ;;  %10527 = vmatprep.subr.mxu0 %v17761_v0  ;;  %v6859_v40 = vmul.f32 %v17763_v44, %v17762_v52  ;;  %v17764_v34 = vld [vmem:[#allocation89_spill] sm:$0xff]  ;;  %v7061_v33 = vadd.f32 %v15101_v18, %v6854_v56  ;;  %v17769_v41 = vld [vmem:[#allocation107_spill] sm:$0xff]  ;;  %v17770_v27 = vld [vmem:[#allocation292_spill] sm:$0xff]  ;;  %v7256_v56 = vmax.f32 %v7056_v47, 0.0 }
 0x5cc   : > { %8539 = vmatprep.subr.mxu1 %v17729_v32  ;;  %v6860_v4 = vmul.f32 %v17765_v63, %v17764_v34  ;;  %10528 = vmatpush3.msra.mxu0 %v17766_v43  ;;  %v6861_v10 = vmul.f32 %v17768_v14, %v17767_v36  ;;  %v6862_v51 = vmul.f32 %v17770_v27, %v17769_v41  ;;  %v17771_v58 = vld [vmem:[#allocation15_spill] sm:$0xff]  ;;  %v17772_v44 = vld [vmem:[#allocation124_spill] sm:$0xff]  ;;  %v17773_v63 = vld [vmem:[#allocation293_spill] sm:$0xff]  ;;  %v7257_v14 = vmax.f32 %v7057_v38, 0.0 }
 0x5cd   : > { %8540 = vmatpush1.msra.mxu1 %v15466_v39  ;;  %10529 = vmatprep.subr.mxu0 %v17771_v58  ;;  %v7062_v59 = vadd.f32 %v15101_v18, %v6855_v61  ;;  %v7063_v0 = vadd.f32 %v15101_v18, %v6856_v2  ;;  %v6863_v39 = vmul.f32 %v17773_v63, %v17772_v44  ;;  %v17774_v43 = vld [vmem:[#allocation28_spill] sm:$0xff]  ;;  %v15813_v53 = vld [vmem:[#allocation5] ss:$0 sm:$0xff]  ;;  %v7258_v18 = vmax.f32 %v7058_v30, 0.0  ;;  %v17829_v48 = vld [vmem:[#allocation151_spill] sm:$0xff] }
 0x5ce   : > { %8541 = vmatprep.subr.mxu1 %v17729_v32  ;;  %10530 = vmatpush3.msra.mxu0 %v17774_v43  ;;  %v7064_v27 = vadd.f32 %v15813_v53, %v6857_v55  ;;  %v7065_v58 = vadd.f32 %v15813_v53, %v6858_v42  ;;  %v17775_v7 = vld [vmem:[#allocation170_spill] sm:$0xff]  ;;  %v7259_v61 = vmax.f32 %v7059_v20, 0.0  ;;  %v7066_v2 = vadd.f32 %v15813_v53, %v6859_v40  ;;  %v17776_v43 = vld [vmem:[#allocation161_spill] sm:$0xff]  ;;  %v17835_v57 = vld [vmem:[#allocation308_spill] sm:$0xff] }
 0x5cf   : > { %8542 = vmatpush1.msra.mxu1 %v15463_v31  ;;  %10531 = vmatprep.subr.mxu0 %v17775_v7  ;;  %v7067_v63 = vadd.f32 %v15813_v53, %v6860_v4  ;;  %v7260_v31 = vmax.f32 %v7060_v37, 0.0  ;;  %v7261_v47 = vmax.f32 %v7061_v33, 0.0  ;;  %v7068_v38 = vadd.f32 %v15813_v53, %v6861_v10  ;;  %v17777_v42 = vld [vmem:[#allocation13_spill] sm:$0xff] }
 0x5d0   : > { %8543 = vmatprep.subr.mxu1 %v17729_v32  ;;  %10532 = vmatpush3.msra.mxu0 %v17776_v43  ;;  %v7069_v55 = vadd.f32 %v15813_v53, %v6862_v51  ;;  %v15828_v30 = vmul.f32 %v7255_v49, %v17732_v9  ;;  %v7262_v20 = vmax.f32 %v7062_v59, 0.0  ;;  %v7263_v40 = vmax.f32 %v7063_v0, 0.0  ;;  %v17779_v7 = vld [vmem:[#allocation29_spill] sm:$0xff]  ;;  %v17782_v51 = vld [vmem:[#allocation171_spill] sm:$0xff]  ;;  %v17784_v0 = vld [vmem:[#allocation32_spill] sm:$0xff] }
 0x5d1   : > { %8544 = vmatpush1.msra.mxu1 %v15460_v15  ;;  %10533 = vmatprep.subr.mxu0 %v17777_v42  ;;  %v7070_v4 = vadd.f32 %v15813_v53, %v6863_v39  ;;  %v15834_v15 = vmul.f32 %v7256_v56, %v17735_v35  ;;  %v15837_v37 = vmul.f32 %v7257_v14, %v17737_v19  ;;  %v7264_v33 = vmax.f32 %v7064_v27, 0.0  ;;  %v17785_v14 = vld [vmem:[#allocation16_spill] sm:$0xff]  ;;  %v17795_v42 = vld [vmem:[#allocation33_spill] sm:$0xff] }
 0x5d2   : > { %8545 = vmatprep.subr.mxu1 %v17729_v32  ;;  %17778 = vst [vmem:[#allocation206_spill] sm:$0xff] %v15828_v30  ;;  %10534 = vmatpush3.msra.mxu0 %v17779_v7  ;;  %v7265_v10 = vmax.f32 %v7065_v58, 0.0  ;;  %v15842_v9 = vmul.f32 %v7258_v18, %v17739_v13  ;;  %v15845_v49 = vmul.f32 %v7259_v61, %v17744_v3  ;;  %v7266_v59 = vmax.f32 %v7066_v2, 0.0  ;;  %v17787_v58 = vld [vmem:[#allocation294_spill] sm:$0xff]  ;;  %v17788_v18 = vld [vmem:[#allocation155_spill] sm:$0xff]  ;;  %v17800_v7 = vld [vmem:[#allocation297_spill] sm:$0xff] }
 0x5d3   : > { %8546 = vmatpush1.msra.mxu1 %v15457_v1  ;;  %17780 = vst [vmem:[#allocation38_spill] sm:$0xff] %v15834_v15  ;;  %17781 = vst [vmem:[#allocation209_spill] sm:$0xff] %v15837_v37  ;;  %10535 = vmatprep.subr.mxu0 %v17782_v51  ;;  %v7267_v1 = vmax.f32 %v7067_v63, 0.0  ;;  %v15850_v35 = vmul.f32 %v7260_v31, %v17747_v45  ;;  %v15853_v19 = vmul.f32 %v7261_v47, %v17750_v12  ;;  %v17789_v12 = vld [vmem:[#allocation56_spill] sm:$0xff]  ;;  %v17790_v63 = vld [vmem:[#allocation122_spill] sm:$0xff] }
 0x5d4   : > { %8547 = vmatprep.subr.mxu1 %v17729_v32  ;;  %17783 = vst [vmem:[#allocation37_spill] sm:$0xff] %v15842_v9  ;;  %10536 = vmatpush3.msra.mxu0 %v17784_v0  ;;  %v7268_v39 = vmax.f32 %v7068_v38, 0.0  ;;  %v7269_v56 = vmax.f32 %v7069_v55, 0.0  ;;  %v15858_v13 = vmul.f32 %v7262_v20, %v17752_v50  ;;  %v15861_v3 = vmul.f32 %v7263_v40, %v17754_v62  ;;  %v17791_v50 = vld [vmem:[#allocation295_spill] sm:$0xff]  ;;  %v17792_v31 = vld [vmem:[#allocation168_spill] sm:$0xff]  ;;  %v17793_v38 = vld [vmem:[#allocation121_spill] sm:$0xff] }
 0x5d5   : > { %8548 = vmatpush1.msra.mxu1 %v15451_v11  ;;  %10537 = vmatprep.subr.mxu0 %v17785_v14  ;;  %v7270_v27 = vmax.f32 %v7070_v4, 0.0  ;;  %v17786_v11 = vld [vmem:[#allocation123_spill] sm:$0xff]  ;;  %v15868_v61 = vmul.f32 %v7264_v33, %v17757_v8  ;;  %v15871_v2 = vmul.f32 %v7265_v10, %v17759_v22  ;;  %v6865_v43 = vmul.f32 %v17791_v50, %v17790_v63  ;;  %v17794_v55 = vld [vmem:[#allocation296_spill] sm:$0xff]  ;;  %v17796_v22 = vld [vmem:[#allocation174_spill] sm:$0xff] }
 0x5d6   : > { %8549 = vmatprep.subr.mxu1 %v17729_v32  ;;  %v6864_v45 = vmul.f32 %v17787_v58, %v17786_v11  ;;  %10538 = vmatpush3.msra.mxu0 %v17788_v18  ;;  %v15878_v62 = vmul.f32 %v7266_v59, %v17762_v52  ;;  %v15881_v47 = vmul.f32 %v7267_v1, %v17764_v34  ;;  %v17799_v4 = vld [vmem:[#allocation120_spill] sm:$0xff]  ;;  %v17801_v33 = vld [vmem:[#allocation17_spill] sm:$0xff]  ;;  %v17803_v51 = vld [vmem:[#allocation119_spill] sm:$0xff] }
 0x5d7   : > { %8550 = vmatpush1.msra.mxu1 %v17789_v12  ;;  %10539 = vmatprep.subr.mxu0 %v17792_v31  ;;  %v6866_v8 = vmul.f32 %v17794_v55, %v17793_v38  ;;  %v15888_v20 = vmul.f32 %v7268_v39, %v17767_v36  ;;  %v15891_v40 = vmul.f32 %v7269_v56, %v17769_v41  ;;  %v17804_v59 = vld [vmem:[#allocation298_spill] sm:$0xff]  ;;  %v17806_v0 = vld [vmem:[#allocation57_spill] sm:$0xff]  ;;  %v15905_v41 = vpop.f32.mrf.mxu1  ;;  %v17809_v14 = vld [vmem:[#allocation299_spill] sm:$0xff] }
 0x5d8   : > { %8551 = vmatprep.subr.mxu1 %v17729_v32  ;;  %10540 = vmatpush3.msra.mxu0 %v17795_v42  ;;  %v6867_v52 = vmul.f32 %v17800_v7, %v17799_v4  ;;  %v15898_v34 = vmul.f32 %v7270_v27, %v17772_v44  ;;  %v7071_v10 = vadd.f32 %v15813_v53, %v6864_v45  ;;  %v17805_v36 = vld [vmem:[#allocation154_spill] sm:$0xff]  ;;  %v17810_v18 = vld [vmem:[#allocation117_spill] sm:$0xff]  ;;  %v17811_v44 = vld [vmem:[#allocation300_spill] sm:$0xff] }
 0x5d9   : > { %8552 = vmatpush1.msra.mxu1 %v17796_v22  ;;  %17797 = vst [vmem:[#allocation212_spill] sm:$0xff] %v15888_v20  ;;  %17798 = vst [vmem:[#allocation35_spill] sm:$0xff] %v15891_v40  ;;  %10541 = vmatprep.subr.mxu0 %v17801_v33  ;;  %v6868_v1 = vmul.f32 %v17804_v59, %v17803_v51  ;;  %v15908_v39 = vadd.f32 %v15813_v53, %v6865_v43  ;;  %v17808_v56 = vld [vmem:[#allocation118_spill] sm:$0xff]  ;;  %v17812_v12 = vld [vmem:[#allocation169_spill] sm:$0xff]  ;;  %v15923_v59 = vpop.f32.mrf.mxu1 }
 0x5da   : > { %8553 = vmatprep.subr.mxu1 %v17729_v32  ;;  %17802 = vst [vmem:[#allocation213_spill] sm:$0xff] %v15898_v34  ;;  %10542 = vmatpush3.msra.mxu0 %v17805_v36  ;;  %17807 = vst [vmem:[#allocation34_spill] sm:$0xff] %v15905_v41  ;;  %v6869_v58 = vmul.f32 %v17809_v14, %v17808_v56  ;;  %v6870_v27 = vmul.f32 %v17811_v44, %v17810_v18  ;;  %v17813_v50 = vld [vmem:[#allocation116_spill] sm:$0xff]  ;;  %v17814_v31 = vld [vmem:[#allocation301_spill] sm:$0xff] }
 0x5db   : > { %8554 = vmatpush1.msra.mxu1 %v17806_v0  ;;  %10543 = vmatprep.subr.mxu0 %v17812_v12  ;;  %v7073_v45 = vadd.f32 %v15813_v53, %v6866_v8  ;;  %v6871_v55 = vmul.f32 %v17814_v31, %v17813_v50  ;;  %v17815_v42 = vld [vmem:[#allocation115_spill] sm:$0xff]  ;;  %v17816_v22 = vld [vmem:[#allocation302_spill] sm:$0xff]  ;;  %v17817_v43 = vld [vmem:[#allocation36_spill] sm:$0xff]  ;;  %17819 = vst [vmem:[#allocation216_spill] sm:$0xff] %v15923_v59 }
 0x5dc   : > { %8555 = vmatprep.subr.mxu1 %v17729_v32  ;;  %v6872_v7 = vmul.f32 %v17816_v22, %v17815_v42  ;;  %10544 = vmatpush3.msra.mxu0 %v17817_v43  ;;  %v17818_v33 = vld [vmem:[#allocation173_spill] sm:$0xff]  ;;  %v7074_v36 = vadd.f32 %v15813_v53, %v6867_v52  ;;  %v17820_v0 = vld [vmem:[#allocation114_spill] sm:$0xff]  ;;  %v17821_v14 = vld [vmem:[#allocation303_spill] sm:$0xff]  ;;  %v7075_v31 = vadd.f32 %v15813_v53, %v6868_v1  ;;  %v7271_v1 = vmax.f32 %v7071_v10, 0.0 }
 0x5dd   : > { %8556 = vmatpush1.msra.mxu1 %v17818_v33  ;;  %v6873_v44 = vmul.f32 %v17821_v14, %v17820_v0  ;;  %v17822_v12 = vld [vmem:[#allocation113_spill] sm:$0xff]  ;;  %v17823_v34 = vld [vmem:[#allocation304_spill] sm:$0xff]  ;;  %v17827_v33 = vld [vmem:[#allocation111_spill] sm:$0xff]  ;;  %v7949_v14 = vpop.f32.mrf.mxu1  ;;  %v7076_v5 = vadd.f32 %v15813_v53, %v6869_v58  ;;  %v7273_v26 = vmax.f32 %v7073_v45, 0.0 }
 0x5de   : > { %v6874_v8 = vmul.f32 %v17823_v34, %v17822_v12  ;;  %v17824_v41 = vld [vmem:[#allocation20_spill] sm:$0xff]  ;;  %8557 = vmatprep.subr.mxu1 %v17729_v32  ;;  %v17826_v43 = vld [vmem:[#allocation305_spill] sm:$0xff]  ;;  %v17828_v40 = vld [vmem:[#allocation306_spill] sm:$0xff]  ;;  %v7077_v34 = vadd.f32 %v15813_v53, %v6870_v27 }
 0x5df   : > { %10545 = vmatprep.subr.mxu0 %v17824_v41  ;;  %v17825_v22 = vld [vmem:[#allocation112_spill] sm:$0xff]  ;;  %v6876_v59 = vmul.f32 %v17828_v40, %v17827_v33  ;;  %v17830_v52 = vld [vmem:[#allocation58_spill] sm:$0xff]  ;;  %v17832_v30 = vld [vmem:[#allocation307_spill] sm:$0xff]  ;;  %v7079_v40 = vadd.f32 %v15813_v53, %v6872_v7  ;;  %v7950_v58 = vpop.f32.mrf.mxu1  ;;  %v7080_v27 = vadd.f32 %v15813_v53, %v6873_v44  ;;  %v7272_v7 = vmax.f32 %v15908_v39, 0.0 }
 0x5e0   : > { %v6875_v20 = vmul.f32 %v17826_v43, %v17825_v22  ;;  %10546 = vmatpush3.msra.mxu0 %v17829_v48  ;;  %8558 = vmatpush1.msra.mxu1 %v17830_v52  ;;  %v17831_v41 = vld [vmem:[#allocation110_spill] sm:$0xff]  ;;  %v17833_v37 = vld [vmem:[#allocation393_spill] sm:$0xff]  ;;  %v7078_v43 = vadd.f32 %v15813_v53, %v6871_v55  ;;  %v17838_v10 = vld [vmem:[#allocation192_spill] sm:$0xff]  ;;  %v7275_v44 = vmax.f32 %v7075_v31, 0.0  ;;  %v15966_v39 = vmul.f32 %v7271_v1, %v17786_v11 }
 0x5e1   : > { %v6877_v15 = vmul.f32 %v17832_v30, %v17831_v41  ;;  %8522 = vmatmul.mubr.f32.vlgmr.msra.gmra.mxu0 %v17833_v37  ;;  %8587 = vmatprep.subr.mxu1 %v17729_v32  ;;  %v17834_v48 = vld [vmem:[#allocation109_spill] sm:$0xff]  ;;  %v7081_v30 = vadd.f32 %v15813_v53, %v6874_v8  ;;  %v17836_v37 = vld [vmem:[#allocation142_spill] sm:$0xff]  ;;  %v17839_v55 = vld [vmem:[#allocation55_spill] sm:$0xff]  ;;  %v7276_v8 = vmax.f32 %v7076_v5, 0.0  ;;  %v7277_v45 = vmax.f32 %v7077_v34, 0.0 }
 0x5e2   : > { %v6878_v52 = vmul.f32 %v17835_v57, %v17834_v48  ;;  %10550 = vmatprep.subr.mxu0 %v15750_v60  ;;  %8588 = vmatpush2.msra.mxu1 %v15500_v6  ;;  %v17837_v14 = vld [vmem:[#allocation309_spill] sm:$0xff]  ;;  %v7082_v57 = vadd.f32 %v15813_v53, %v6875_v20  ;;  %v7083_v60 = vadd.f32 %v15813_v53, %v6876_v59  ;;  %v7274_v6 = vmax.f32 %v7074_v36, 0.0  ;;  %v17844_v31 = vld [vmem:[#allocation191_spill] sm:$0xff] }
 0x5e3   : > { %v6879_v9 = vmul.f32 %v17837_v14, %v17836_v37  ;;  %10551 = vmatpush3.msra.mxu0 %v17838_v10  ;;  %8664 = vmatprep.mubr.f32.mxu0 %v17839_v55  ;;  %v7084_v58 = vadd.f32 %v15813_v53, %v6877_v15  ;;  %v17840_v14 = vld [vmem:[#allocation176_spill] sm:$0xff]  ;;  %v17841_v10 = vld [vmem:[#allocation47_spill] sm:$0xff]  ;;  %17842 = vst [vmem:[#allocation31_spill] sm:$0xff] %v15966_v39  ;;  %v7278_v20 = vmax.f32 %v7078_v43, 0.0  ;;  %v7280_v36 = vmax.f32 %v7080_v27, 0.0 }
 0x5e4   : > { %8589 = vmatprep.subr.mxu1 %v17729_v32  ;;  %10552 = vmatprep.subr.mxu0 %v15753_v21  ;;  %v7085_v59 = vadd.f32 %v15813_v53, %v6878_v52  ;;  %v17843_v55 = vld [vmem:[#allocation395_spill] sm:$0xff]  ;;  %v7279_v21 = vmax.f32 %v7079_v40, 0.0  ;;  %v7281_v5 = vmax.f32 %v7081_v30, 0.0  ;;  %v15975_v11 = vmul.f32 %v7272_v7, %v17790_v63  ;;  %v17850_v52 = vld [vmem:[#allocation310_spill] sm:$0xff] }
 0x5e5   : > { %8590 = vmatpush2.msra.mxu1 %v17840_v14  ;;  %10553 = vmatpush3.msra.mxu0 %v17841_v10  ;;  %v7086_v15 = vadd.f32 %v15813_v53, %v6879_v9  ;;  %v15978_v34 = vmul.f32 %v7273_v26, %v17793_v38  ;;  %v7282_v1 = vmax.f32 %v7082_v57, 0.0  ;;  %v7283_v43 = vmax.f32 %v7083_v60, 0.0  ;;  %v17848_v26 = vld [vmem:[#allocation48_spill] sm:$0xff]  ;;  %v17859_v14 = vld [vmem:[#allocation135_spill] sm:$0xff] }
 0x5e6   : > { %8592 = vmatmul.mubr.f32.vlgmr.msra.gmra.mxu1 %v17843_v55  ;;  %10554 = vmatprep.subr.mxu0 %v15743_v25  ;;  %17845 = vst [vmem:[#allocation219_spill] sm:$0xff] %v15975_v11  ;;  %v15983_v25 = vmul.f32 %v7274_v6, %v17799_v4  ;;  %v15986_v9 = vmul.f32 %v7275_v44, %v17803_v51  ;;  %v7284_v63 = vmax.f32 %v7084_v58, 0.0  ;;  %v17849_v4 = vld [vmem:[#allocation141_spill] sm:$0xff]  ;;  %v17855_v60 = vld [vmem:[#allocation312_spill] sm:$0xff] }
 0x5e7   : > { %8670 = vmatprep.subr.mxu1 %v17729_v32  ;;  %10555 = vmatpush3.msra.mxu0 %v17844_v31  ;;  %17846 = vst [vmem:[#allocation30_spill] sm:$0xff] %v15978_v34  ;;  %v15989_v40 = vmul.f32 %v7276_v8, %v17808_v56  ;;  %v15994_v38 = vmul.f32 %v7277_v45, %v17810_v18  ;;  %v7286_v30 = vmax.f32 %v7086_v15, 0.0  ;;  %v17856_v44 = vld [vmem:[#allocation136_spill] sm:$0xff]  ;;  %v17857_v8 = vld [vmem:[#allocation313_spill] sm:$0xff]  ;;  %v17862_v45 = vld [vmem:[#allocation315_spill] sm:$0xff] }
 0x5e8   : > { %8671 = vmatpush1.msra.mxu1 %v15881_v47  ;;  %10556 = vmatprep.subr.mxu0 %v15731_v23  ;;  %17847 = vst [vmem:[#allocation220_spill] sm:$0xff] %v15983_v25  ;;  %v15997_v47 = vmul.f32 %v7278_v20, %v17813_v50  ;;  %v7285_v23 = vmax.f32 %v7085_v59, 0.0  ;;  %v6880_v27 = vmul.f32 %v17850_v52, %v17849_v4  ;;  %v17851_v50 = vld [vmem:[#allocation188_spill] sm:$0xff]  ;;  %v17863_v59 = vld [vmem:[#allocation133_spill] sm:$0xff] }
 0x5e9   : > { %8672 = vmatprep.subr.mxu1 %v17729_v32  ;;  %10557 = vmatpush3.msra.mxu0 %v17848_v26  ;;  %v16004_v51 = vmul.f32 %v7279_v21, %v17815_v42  ;;  %v16007_v56 = vmul.f32 %v7280_v36, %v17820_v0  ;;  %v16010_v18 = vmul.f32 %v7281_v5, %v17822_v12  ;;  %v17853_v42 = vld [vmem:[#allocation311_spill] sm:$0xff]  ;;  %v17854_v12 = vld [vmem:[#allocation137_spill] sm:$0xff]  ;;  %v17864_v55 = vld [vmem:[#allocation316_spill] sm:$0xff] }
 0x5ea   : > { %8673 = vmatpush1.msra.mxu1 %v15878_v62  ;;  %10558 = vmatprep.subr.mxu0 %v15734_v29  ;;  %v16015_v7 = vmul.f32 %v7282_v1, %v17825_v22  ;;  %v16018_v62 = vmul.f32 %v7283_v43, %v17827_v33  ;;  %v17852_v29 = vld [vmem:[#allocation138_spill] sm:$0xff]  ;;  %v16025_v0 = vmul.f32 %v7284_v63, %v17831_v41  ;;  %v17858_v33 = vld [vmem:[#allocation49_spill] sm:$0xff]  ;;  %v17867_v15 = vld [vmem:[#allocation132_spill] sm:$0xff] }
 0x5eb   : > { %8674 = vmatprep.subr.mxu1 %v17729_v32  ;;  %10559 = vmatpush3.msra.mxu0 %v17851_v50  ;;  %v6881_v57 = vmul.f32 %v17853_v42, %v17852_v29  ;;  %v6882_v6 = vmul.f32 %v17855_v60, %v17854_v12  ;;  %v6883_v22 = vmul.f32 %v17857_v8, %v17856_v44  ;;  %v17861_v41 = vld [vmem:[#allocation134_spill] sm:$0xff]  ;;  %v17865_v36 = vld [vmem:[#allocation185_spill] sm:$0xff]  ;;  %v17876_v60 = vld [vmem:[#allocation128_spill] sm:$0xff] }
 0x5ec   : > { %8675 = vmatpush1.msra.mxu1 %v15871_v2  ;;  %10560 = vmatprep.subr.mxu0 %v15721_v46  ;;  %v16034_v58 = vmul.f32 %v7285_v23, %v17834_v48  ;;  %v7087_v2 = vadd.f32 %v15813_v53, %v6880_v27  ;;  %v17860_v46 = vld [vmem:[#allocation314_spill] sm:$0xff]  ;;  %v6885_v20 = vmul.f32 %v17862_v45, %v17861_v41  ;;  %v17872_v23 = vld [vmem:[#allocation319_spill] sm:$0xff]  ;;  %v17874_v42 = vld [vmem:[#allocation129_spill] sm:$0xff] }
 0x5ed   : > { %8676 = vmatprep.subr.mxu1 %v17729_v32  ;;  %10561 = vmatpush3.msra.mxu0 %v17858_v33  ;;  %v6884_v10 = vmul.f32 %v17860_v46, %v17859_v14  ;;  %v6886_v21 = vmul.f32 %v17864_v55, %v17863_v59  ;;  %v16048_v48 = vmul.f32 %v7286_v30, %v17836_v37  ;;  %v17870_v1 = vld [vmem:[#allocation318_spill] sm:$0xff]  ;;  %v17878_v33 = vld [vmem:[#allocation127_spill] sm:$0xff] }
 0x5ee   : > { %8677 = vmatpush1.msra.mxu1 %v15868_v61  ;;  %10562 = vmatprep.subr.mxu0 %v15724_v24  ;;  %v16051_v5 = vadd.f32 %v15813_v53, %v6881_v57  ;;  %v17868_v61 = vld [vmem:[#allocation317_spill] sm:$0xff]  ;;  %v17869_v24 = vld [vmem:[#allocation131_spill] sm:$0xff]  ;;  %v16060_v63 = vadd.f32 %v15813_v53, %v6882_v6  ;;  %v7090_v26 = vadd.f32 %v15813_v53, %v6883_v22  ;;  %v17871_v37 = vld [vmem:[#allocation130_spill] sm:$0xff]  ;;  %v7287_v30 = vmax.f32 %v7087_v2, 0.0 }
 0x5ef   : > { %8678 = vmatprep.subr.mxu1 %v17729_v32  ;;  %10563 = vmatpush3.msra.mxu0 %v17865_v36  ;;  %17866 = vst [vmem:[#allocation27_spill] sm:$0xff] %v16048_v48  ;;  %v6887_v31 = vmul.f32 %v17868_v61, %v17867_v15  ;;  %v6888_v43 = vmul.f32 %v17870_v1, %v17869_v24  ;;  %v17873_v27 = vld [vmem:[#allocation50_spill] sm:$0xff]  ;;  %v17875_v57 = vld [vmem:[#allocation320_spill] sm:$0xff]  ;;  %v17882_v61 = vld [vmem:[#allocation323_spill] sm:$0xff] }
 0x5f0   : > { %8679 = vmatpush1.msra.mxu1 %v15861_v3  ;;  %10564 = vmatprep.subr.mxu0 %v15713_v28  ;;  %v6889_v52 = vmul.f32 %v17872_v23, %v17871_v37  ;;  %v7091_v50 = vadd.f32 %v15813_v53, %v6884_v10  ;;  %v6890_v3 = vmul.f32 %v17875_v57, %v17874_v42  ;;  %v17877_v28 = vld [vmem:[#allocation321_spill] sm:$0xff]  ;;  %v17879_v46 = vld [vmem:[#allocation322_spill] sm:$0xff]  ;;  %v17880_v2 = vld [vmem:[#allocation184_spill] sm:$0xff] }
 0x5f1   : > { %8680 = vmatprep.subr.mxu1 %v17729_v32  ;;  %10565 = vmatpush3.msra.mxu0 %v17873_v27  ;;  %v6891_v8 = vmul.f32 %v17877_v28, %v17876_v60  ;;  %v7092_v6 = vadd.f32 %v15813_v53, %v6885_v20  ;;  %v7093_v22 = vadd.f32 %v15813_v53, %v6886_v21  ;;  %v17881_v36 = vld [vmem:[#allocation126_spill] sm:$0xff]  ;;  %v17883_v20 = vld [vmem:[#allocation125_spill] sm:$0xff]  ;;  %v17884_v21 = vld [vmem:[#allocation324_spill] sm:$0xff] }
 0x5f2   : > { %8681 = vmatpush1.msra.mxu1 %v15858_v13  ;;  %10566 = vmatprep.subr.mxu0 %v15716_v17  ;;  %v6892_v45 = vmul.f32 %v17879_v46, %v17878_v33  ;;  %v7094_v10 = vadd.f32 %v15813_v53, %v6887_v31  ;;  %v7095_v55 = vadd.f32 %v15813_v53, %v6888_v43  ;;  %v17885_v23 = vld [vmem:[#allocation160_spill] sm:$0xff]  ;;  %v17886_v27 = vld [vmem:[#allocation325_spill] sm:$0xff]  ;;  %v17887_v31 = vld [vmem:[#allocation51_spill] sm:$0xff]  ;;  %v7288_v43 = vmax.f32 %v16051_v5, 0.0 }
 0x5f3   : > { %8682 = vmatprep.subr.mxu1 %v17729_v32  ;;  %10567 = vmatpush3.msra.mxu0 %v17880_v2  ;;  %v6893_v13 = vmul.f32 %v17882_v61, %v17881_v36  ;;  %v7096_v17 = vadd.f32 %v15813_v53, %v6889_v52  ;;  %v6894_v1 = vmul.f32 %v17884_v21, %v17883_v20  ;;  %v7289_v52 = vmax.f32 %v16060_v63, 0.0  ;;  %v17889_v5 = vld [vmem:[#allocation181_spill] sm:$0xff] }
 0x5f4   : > { %8683 = vmatpush1.msra.mxu1 %v15853_v19  ;;  %10568 = vmatprep.subr.mxu0 %v15702_v16  ;;  %v6895_v57 = vmul.f32 %v17886_v27, %v17885_v23  ;;  %v7097_v28 = vadd.f32 %v15813_v53, %v6890_v3  ;;  %v7098_v19 = vadd.f32 %v15813_v53, %v6891_v8  ;;  %v7290_v46 = vmax.f32 %v7090_v26, 0.0 }
 0x5f5   : > { %8684 = vmatprep.subr.mxu1 %v17729_v32  ;;  %10569 = vmatpush3.msra.mxu0 %v17887_v31  ;;  %v16099_v16 = vmul.f32 %v7287_v30, %v17849_v4  ;;  %v7291_v2 = vmax.f32 %v7091_v50, 0.0  ;;  %v7099_v61 = vadd.f32 %v15813_v53, %v6892_v45  ;;  %v7292_v3 = vmax.f32 %v7092_v6, 0.0  ;;  %v16108_v4 = vpop.f32.mrf.mxu0  ;;  %v17892_v45 = vld [vmem:[#allocation52_spill] sm:$0xff]  ;;  %v17896_v31 = vld [vmem:[#allocation41_spill] sm:$0xff] }
 0x5f6   : > { %8685 = vmatpush1.msra.mxu1 %v15850_v35  ;;  %10570 = vmatprep.subr.mxu0 %v15705_v54  ;;  %v7293_v21 = vmax.f32 %v7093_v22, 0.0  ;;  %v7294_v8 = vmax.f32 %v7094_v10, 0.0  ;;  %v7100_v35 = vadd.f32 %v15813_v53, %v6893_v13  ;;  %v17890_v54 = vld [vmem:[#allocation202_spill] sm:$0xff]  ;;  %17891 = vst [vmem:[#allocation26_spill] sm:$0xff] %v16108_v4  ;;  %v7295_v63 = vmax.f32 %v7095_v55, 0.0  ;;  %v17894_v13 = vld [vmem:[#allocation199_spill] sm:$0xff] }
 0x5f7   : > { %17888 = vst [vmem:[#allocation223_spill] sm:$0xff] %v16099_v16  ;;  %8686 = vmatprep.subr.mxu1 %v17729_v32  ;;  %10571 = vmatpush3.msra.mxu0 %v17889_v5  ;;  %v7296_v26 = vmax.f32 %v7096_v17, 0.0  ;;  %v7101_v30 = vadd.f32 %v15813_v53, %v6894_v1  ;;  %v7102_v50 = vadd.f32 %v15813_v53, %v6895_v57  ;;  %v7297_v6 = vmax.f32 %v7097_v28, 0.0  ;;  %v17893_v10 = vld [vmem:[#allocation42_spill] sm:$0xff]  ;;  %v16118_v5 = vpop.f32.mrf.mxu0  ;;  %v17938_v4 = vld [vmem:[#allocation337_spill] sm:$0xff]  ;;  %v17943_v16 = vld [vmem:[#allocation335_spill] sm:$0xff] }
 0x5f8   : > { %8687 = vmatpush1.msra.mxu1 %v15845_v49  ;;  %10572 = vmatprep.subr.mxu0 %v17890_v54  ;;  %v7298_v22 = vmax.f32 %v7098_v19, 0.0  ;;  %v7810_v27 = vadd.f32 %v17894_v13, %v17893_v10  ;;  %v17895_v49 = vld [vmem:[#allocation37_spill] sm:$0xff]  ;;  %17897 = vst [vmem:[#allocation226_spill] sm:$0xff] %v16118_v5  ;;  %v16121_v55 = vmul.f32 %v7288_v43, %v17852_v29  ;;  %v7299_v17 = vmax.f32 %v7099_v61, 0.0  ;;  %v17899_v1 = vld [vmem:[#allocation178_spill] sm:$0xff]  ;;  %v17910_v10 = vld [vmem:[#allocation139_spill] sm:$0xff] }
 0x5f9   : > { %8688 = vmatprep.subr.mxu1 %v17729_v32  ;;  %10573 = vmatpush3.msra.mxu0 %v17892_v45  ;;  %v16126_v57 = vmul.f32 %v7291_v2, %v17859_v14  ;;  %v16129_v28 = vmul.f32 %v7290_v46, %v17856_v44  ;;  %v16132_v19 = vmul.f32 %v7289_v52, %v17854_v12  ;;  %v7300_v54 = vmax.f32 %v7100_v35, 0.0  ;;  %v17902_v45 = vld [vmem:[#allocation209_spill] sm:$0xff]  ;;  %v7908_v2 = vpop.f32.mrf.mxu0  ;;  %v17912_v13 = vld [vmem:[#allocation46_spill] sm:$0xff]  ;;  %v17945_v5 = vld [vmem:[#allocation336_spill] sm:$0xff] }
 0x5fa   : > { %8689 = vmatpush1.msra.mxu1 %v17895_v49  ;;  %10574 = vmatprep.subr.mxu0 %v17896_v31  ;;  %17898 = vst [vmem:[#allocation23_spill] sm:$0xff] %v16121_v55  ;;  %v16137_v29 = vmul.f32 %v7294_v8, %v17867_v15  ;;  %v16140_v43 = vmul.f32 %v7293_v21, %v17863_v59  ;;  %v7301_v44 = vmax.f32 %v7101_v30, 0.0  ;;  %v7302_v46 = vmax.f32 %v7102_v50, 0.0  ;;  %v17903_v61 = vld [vmem:[#allocation45_spill] sm:$0xff]  ;;  %v17904_v15 = vld [vmem:[#allocation159_spill] sm:$0xff]  ;;  %v17905_v8 = vld [vmem:[#allocation326_spill] sm:$0xff] }
 0x5fb   : > { %8690 = vmatprep.subr.mxu1 %v17729_v32  ;;  %10575 = vmatpush3.msra.mxu0 %v17899_v1  ;;  %17900 = vst [vmem:[#allocation227_spill] sm:$0xff] %v16129_v28  ;;  %17901 = vst [vmem:[#allocation22_spill] sm:$0xff] %v16132_v19  ;;  %v16143_v14 = vmul.f32 %v7292_v3, %v17861_v41  ;;  %v16148_v12 = vmul.f32 %v7296_v26, %v17871_v37  ;;  %v17906_v21 = vld [vmem:[#allocation53_spill] sm:$0xff]  ;;  %v17907_v41 = vld [vmem:[#allocation38_spill] sm:$0xff]  ;;  %v7909_v30 = vpop.f32.mrf.mxu0 }
 0x5fc   : > { %8691 = vmatpush1.msra.mxu1 %v17902_v45  ;;  %10003 = vmatprep.mubr.msk.f32.mxu1 %vm3173_vm0, %v7810_v27  ;;  %v16151_v52 = vmul.f32 %v7295_v63, %v17869_v24  ;;  %v6896_v59 = vmul.f32 %v17905_v8, %v17904_v15  ;;  %v16158_v3 = vmul.f32 %v7298_v22, %v17876_v60  ;;  %v17908_v50 = vld [vmem:[#allocation157_spill] sm:$0xff]  ;;  %v17909_v37 = vld [vmem:[#allocation327_spill] sm:$0xff]  ;;  %v17911_v24 = vld [vmem:[#allocation340_spill] sm:$0xff] }
 0x5fd   : > { %10576 = vmatprep.subr.mxu0 %v17903_v61  ;;  %8692 = vmatprep.subr.mxu1 %v17729_v32  ;;  %v16161_v35 = vmul.f32 %v7297_v6, %v17874_v42  ;;  %v6897_v26 = vmul.f32 %v17909_v37, %v17908_v50  ;;  %v6910_v63 = vmul.f32 %v17911_v24, %v17910_v10  ;;  %v17913_v49 = vld [vmem:[#allocation156_spill] sm:$0xff]  ;;  %v17915_v22 = vld [vmem:[#allocation153_spill] sm:$0xff]  ;;  %v17918_v45 = vld [vmem:[#allocation206_spill] sm:$0xff] }
 0x5fe   : > { %10577 = vmatpush3.msra.mxu0 %v17906_v21  ;;  %8693 = vmatpush1.msra.mxu1 %v17907_v41  ;;  %v8383_v27 = vmul.f32 %v7299_v17, %v17878_v33  ;;  %v17914_v31 = vld [vmem:[#allocation328_spill] sm:$0xff]  ;;  %v17916_v1 = vld [vmem:[#allocation329_spill] sm:$0xff]  ;;  %v8384_v2 = vmul.f32 %v7300_v54, %v17881_v36  ;;  %v16178_v61 = vmul.f32 %v7302_v46, %v17885_v23  ;;  %v17921_v21 = vld [vmem:[#allocation339_spill] sm:$0xff] }
 0x5ff   : > { %10578 = vmatprep.subr.mxu0 %v17912_v13  ;;  %8694 = vmatprep.subr.mxu1 %v17729_v32  ;;  %v6898_v60 = vmul.f32 %v17914_v31, %v17913_v49  ;;  %v6899_v42 = vmul.f32 %v17916_v1, %v17915_v22  ;;  %v17917_v6 = vld [vmem:[#allocation177_spill] sm:$0xff]  ;;  %v17920_v8 = vld [vmem:[#allocation140_spill] sm:$0xff]  ;;  %v17922_v30 = vld [vmem:[#allocation195_spill] sm:$0xff]  ;;  %v8385_v33 = vmul.f32 %v7301_v44, %v17883_v20 }
 0x600   : > { %10579 = vmatpush3.msra.mxu0 %v17917_v6  ;;  %8695 = vmatpush1.msra.mxu1 %v17918_v45  ;;  %17919 = vst [vmem:[#allocation230_spill] sm:$0xff] %v16178_v61  ;;  %v6909_v41 = vmul.f32 %v17921_v21, %v17920_v8  ;;  %v7103_v17 = vadd.f32 %v15813_v53, %v6896_v59  ;;  %v17923_v37 = vld [vmem:[#allocation152_spill] sm:$0xff]  ;;  %v17924_v24 = vld [vmem:[#allocation330_spill] sm:$0xff]  ;;  %v17926_v1 = vld [vmem:[#allocation331_spill] sm:$0xff] }
 0x601   : > { %10580 = vmatprep.subr.mxu0 %v17922_v30  ;;  %8696 = vmatprep.subr.mxu1 %v17729_v32  ;;  %v6900_v13 = vmul.f32 %v17924_v24, %v17923_v37  ;;  %v17925_v31 = vld [vmem:[#allocation150_spill] sm:$0xff]  ;;  %v17928_v23 = vld [vmem:[#allocation39_spill] sm:$0xff]  ;;  %v16193_v46 = vadd.f32 %v15813_v53, %v6897_v26  ;;  %v7117_v20 = vadd.f32 %v15813_v53, %v6910_v63  ;;  %v17932_v24 = vld [vmem:[#allocation149_spill] sm:$0xff] }
 0x602   : > { %v6901_v36 = vmul.f32 %v17926_v1, %v17925_v31  ;;  %v17927_v54 = vld [vmem:[#allocation54_spill] sm:$0xff]  ;;  %8697 = vmatpush1.msra.mxu1 %v17928_v23  ;;  %v17929_v6 = vld [vmem:[#allocation143_spill] sm:$0xff]  ;;  %v7105_v59 = vadd.f32 %v15813_v53, %v6898_v60  ;;  %v7106_v30 = vadd.f32 %v15813_v53, %v6899_v42  ;;  %v17933_v1 = vld [vmem:[#allocation332_spill] sm:$0xff] }
 0x603   : > { %10581 = vmatpush3.msra.mxu0 %v17927_v54  ;;  %v17930_v45 = vld [vmem:[#allocation338_spill] sm:$0xff]  ;;  %v17931_v44 = vld [vmem:[#allocation175_spill] sm:$0xff]  ;;  %8698 = vmatprep.subr.mxu1 %v17729_v32  ;;  %v6902_v54 = vmul.f32 %v17933_v1, %v17932_v24  ;;  %v17934_v23 = vld [vmem:[#allocation205_spill] sm:$0xff]  ;;  %v7107_v60 = vadd.f32 %v15813_v53, %v6900_v13  ;;  %v7317_v55 = vmax.f32 %v7117_v20, 0.0  ;;  %v7303_v13 = vmax.f32 %v7103_v17, 0.0 }
 0x604   : > { %v6908_v21 = vmul.f32 %v17930_v45, %v17929_v6  ;;  %8665 = vmatmul.mubr.f32.vlgmr.msra.gmra.mxu0 %v17931_v44  ;;  %10585 = vmatprep.subr.mxu0 %v8385_v33  ;;  %v17935_v26 = vld [vmem:[#allocation148_spill] sm:$0xff]  ;;  %v17936_v61 = vld [vmem:[#allocation333_spill] sm:$0xff]  ;;  %v7116_v44 = vadd.f32 %v15813_v53, %v6909_v41  ;;  %v7108_v42 = vadd.f32 %v15813_v53, %v6901_v36  ;;  %v17939_v1 = vld [vmem:[#allocation147_spill] sm:$0xff]  ;;  %v7305_v17 = vmax.f32 %v7105_v59, 0.0 }
 0x605   : > { %8699 = vmatpush1.msra.mxu1 %v17934_v23  ;;  %v6903_v48 = vmul.f32 %v17936_v61, %v17935_v26  ;;  %v17937_v45 = vld [vmem:[#allocation144_spill] sm:$0xff]  ;;  %10586 = vmatpush3.msra.mxu0 %v16034_v58  ;;  %v17940_v33 = vld [vmem:[#allocation334_spill] sm:$0xff]  ;;  %v7109_v36 = vadd.f32 %v15813_v53, %v6902_v54  ;;  %v7306_v54 = vmax.f32 %v7106_v30, 0.0 }
 0x606   : > { %v6907_v63 = vmul.f32 %v17938_v4, %v17937_v45  ;;  %8700 = vmatprep.subr.mxu1 %v17729_v32  ;;  %v6904_v39 = vmul.f32 %v17940_v33, %v17939_v1  ;;  %10587 = vmatprep.subr.mxu0 %v8384_v2  ;;  %v17941_v23 = vld [vmem:[#allocation40_spill] sm:$0xff]  ;;  %v17942_v61 = vld [vmem:[#allocation146_spill] sm:$0xff]  ;;  %v17944_v4 = vld [vmem:[#allocation145_spill] sm:$0xff]  ;;  %v7115_v58 = vadd.f32 %v15813_v53, %v6908_v21  ;;  %v7316_v20 = vmax.f32 %v7116_v44, 0.0 }
 0x607   : > { %8701 = vmatpush1.msra.mxu1 %v17941_v23  ;;  %v6905_v11 = vmul.f32 %v17943_v16, %v17942_v61  ;;  %v6906_v41 = vmul.f32 %v17945_v5, %v17944_v4  ;;  %10588 = vmatpush3.msra.mxu0 %v16025_v0  ;;  %v17946_v33 = vld [vmem:[#allocation164_spill] sm:$0xff]  ;;  %v17947_v2 = vld [vmem:[#allocation341_spill] sm:$0xff]  ;;  %v17948_v23 = vld [vmem:[#allocation163_spill] sm:$0xff]  ;;  %v7304_v5 = vmax.f32 %v16193_v46, 0.0  ;;  %v7110_v21 = vadd.f32 %v15813_v53, %v6903_v48 }
 0x608   : > { %8730 = vmatprep.subr.mxu1 %v17729_v32  ;;  %v6911_v34 = vmul.f32 %v17947_v2, %v17946_v33  ;;  %v17949_v19 = vld [vmem:[#allocation342_spill] sm:$0xff]  ;;  %10589 = vmatprep.subr.mxu0 %v8383_v27  ;;  %v17950_v16 = vld [vmem:[#allocation35_spill] sm:$0xff]  ;;  %v7114_v0 = vadd.f32 %v15813_v53, %v6907_v63  ;;  %v7307_v2 = vmax.f32 %v7107_v60, 0.0  ;;  %v7111_v28 = vadd.f32 %v15813_v53, %v6904_v39 }
 0x609   : > { %v6912_v25 = vmul.f32 %v17949_v19, %v17948_v23  ;;  %8731 = vmatpush2.msra.mxu1 %v17950_v16  ;;  %10590 = vmatpush3.msra.mxu0 %v16018_v62  ;;  %v17951_v19 = vld [vmem:[#allocation212_spill] sm:$0xff]  ;;  %v7112_v27 = vadd.f32 %v15813_v53, %v6905_v11  ;;  %v7113_v48 = vadd.f32 %v15813_v53, %v6906_v41  ;;  %v7315_v46 = vmax.f32 %v7115_v58, 0.0  ;;  %v17952_v62 = vld [vmem:[#allocation198_spill] sm:$0xff]  ;;  %v17956_v41 = vld [vmem:[#allocation343_spill] sm:$0xff] }
 0x60a   : > { %8732 = vmatprep.subr.mxu1 %v17729_v32  ;;  %10591 = vmatprep.subr.mxu0 %v16158_v3  ;;  %v8401_v63 = vmul.f32 %v7317_v55, %v17910_v10  ;;  %v7308_v59 = vmax.f32 %v7108_v42, 0.0  ;;  %v7309_v30 = vmax.f32 %v7109_v36, 0.0  ;;  %v7118_v44 = vadd.f32 %v15813_v53, %v6911_v34  ;;  %v17954_v42 = vld [vmem:[#allocation349_spill] sm:$0xff]  ;;  %v17958_v36 = vld [vmem:[#allocation344_spill] sm:$0xff] }
 0x60b   : > { %8733 = vmatpush2.msra.mxu1 %v17951_v19  ;;  %10592 = vmatpush3.msra.mxu0 %v16015_v7  ;;  %v7119_v39 = vadd.f32 %v15813_v53, %v6912_v25  ;;  %v16248_v11 = vmul.f32 %v7303_v13, %v17904_v15  ;;  %v7310_v3 = vmax.f32 %v7110_v21, 0.0  ;;  %v7314_v60 = vmax.f32 %v7114_v0, 0.0  ;;  %v17957_v13 = vld [vmem:[#allocation203_spill] sm:$0xff]  ;;  %v17959_v16 = vld [vmem:[#allocation201_spill] sm:$0xff] }
 0x60c   : > { %8735 = vmatmul.mubr.f32.vlgmr.msra.gmra.mxu1 %v17952_v62  ;;  %10593 = vmatprep.subr.mxu0 %v16161_v35  ;;  %v8400_v55 = vmul.f32 %v7316_v20, %v17920_v8  ;;  %v16253_v7 = vmul.f32 %v7304_v5, %v17908_v50  ;;  %v16256_v34 = vmul.f32 %v7305_v17, %v17913_v49  ;;  %v7311_v35 = vmax.f32 %v7111_v28, 0.0  ;;  %v17960_v5 = vld [vmem:[#allocation345_spill] sm:$0xff]  ;;  %v17971_v62 = vld [vmem:[#allocation348_spill] sm:$0xff] }
 0x60d   : > { %8813 = vmatprep.subr.mxu1 %v17729_v32  ;;  %10594 = vmatpush3.msra.mxu0 %v16010_v18  ;;  %v16259_v25 = vmul.f32 %v7306_v54, %v17915_v22  ;;  %v16264_v15 = vmul.f32 %v7307_v2, %v17923_v37  ;;  %v7312_v10 = vmax.f32 %v7112_v27, 0.0  ;;  %v7313_v18 = vmax.f32 %v7113_v48, 0.0  ;;  %v17961_v0 = vld [vmem:[#allocation193_spill] sm:$0xff]  ;;  %v17966_v2 = vld [vmem:[#allocation351_spill] sm:$0xff] }
 0x60e   : > { %8814 = vmatpush1.msra.mxu1 %v8401_v63  ;;  %10595 = vmatprep.subr.mxu0 %v16148_v12  ;;  %v8399_v8 = vmul.f32 %v7315_v46, %v17929_v6  ;;  %v16269_v50 = vmul.f32 %v7308_v59, %v17925_v31  ;;  %v16272_v49 = vmul.f32 %v7309_v30, %v17932_v24  ;;  %v7318_v28 = vmax.f32 %v7118_v44, 0.0  ;;  %v17953_v6 = vld [vmem:[#allocation194_spill] sm:$0xff]  ;;  %v17955_v24 = vld [vmem:[#allocation204_spill] sm:$0xff]  ;;  %v17968_v27 = vld [vmem:[#allocation347_spill] sm:$0xff] }
 0x60f   : > { %8815 = vmatprep.subr.mxu1 %v17729_v32  ;;  %10596 = vmatpush3.msra.mxu0 %v16007_v56  ;;  %v7319_v12 = vmax.f32 %v7119_v39, 0.0  ;;  %v8394_v22 = vmul.f32 %v7310_v3, %v17935_v26  ;;  %v8398_v37 = vmul.f32 %v7314_v60, %v17937_v45  ;;  %v6919_v56 = vmul.f32 %v17954_v42, %v17953_v6  ;;  %v17970_v63 = vld [vmem:[#allocation196_spill] sm:$0xff]  ;;  %v17972_v59 = vld [vmem:[#allocation207_spill] sm:$0xff]  ;;  %v17973_v30 = vld [vmem:[#allocation374_spill] sm:$0xff] }
 0x610   : > { %8816 = vmatpush1.msra.mxu1 %v8400_v55  ;;  %10597 = vmatprep.subr.mxu0 %v16151_v52  ;;  %v8395_v31 = vmul.f32 %v7311_v35, %v17939_v1  ;;  %v6913_v58 = vmul.f32 %v17956_v41, %v17955_v24  ;;  %v6914_v52 = vmul.f32 %v17958_v36, %v17957_v13  ;;  %v17974_v3 = vld [vmem:[#allocation189_spill] sm:$0xff]  ;;  %v17975_v60 = vld [vmem:[#allocation352_spill] sm:$0xff]  ;;  %v17977_v35 = vld [vmem:[#allocation358_spill] sm:$0xff] }
 0x611   : > { %8817 = vmatprep.subr.mxu1 %v17729_v32  ;;  %10598 = vmatpush3.msra.mxu0 %v16004_v51  ;;  %v8396_v26 = vmul.f32 %v7312_v10, %v17942_v61  ;;  %v8397_v45 = vmul.f32 %v7313_v18, %v17944_v4  ;;  %v6915_v51 = vmul.f32 %v17960_v5, %v17959_v16  ;;  %v17963_v61 = vld [vmem:[#allocation200_spill] sm:$0xff]  ;;  %v17964_v4 = vld [vmem:[#allocation346_spill] sm:$0xff]  ;;  %v17983_v36 = vld [vmem:[#allocation357_spill] sm:$0xff] }
 0x612   : > { %8818 = vmatpush1.msra.mxu1 %v8399_v8  ;;  %10599 = vmatprep.subr.mxu0 %v16137_v29  ;;  %v16294_v1 = vmul.f32 %v7318_v28, %v17946_v33  ;;  %v16297_v21 = vmul.f32 %v7319_v12, %v17948_v23  ;;  %v17962_v29 = vld [vmem:[#allocation350_spill] sm:$0xff]  ;;  %v6916_v17 = vmul.f32 %v17964_v4, %v17963_v61  ;;  %v17979_v12 = vld [vmem:[#allocation373_spill] sm:$0xff]  ;;  %v18002_v24 = vld [vmem:[#allocation223_spill] sm:$0xff] }
 0x613   : > { %8819 = vmatprep.subr.mxu1 %v17729_v32  ;;  %10600 = vmatpush3.msra.mxu0 %v15997_v47  ;;  %v6920_v20 = vmul.f32 %v17962_v29, %v17961_v0  ;;  %v7126_v54 = vadd.f32 %v15813_v53, %v6919_v56  ;;  %v17965_v47 = vld [vmem:[#allocation190_spill] sm:$0xff]  ;;  %v16310_v33 = vadd.f32 %v15813_v53, %v6913_v58  ;;  %v17982_v58 = vld [vmem:[#allocation180_spill] sm:$0xff] }
 0x614   : > { %8820 = vmatpush1.msra.mxu1 %v8398_v37  ;;  %10601 = vmatprep.subr.mxu0 %v16140_v43  ;;  %v6921_v19 = vmul.f32 %v17966_v2, %v17965_v47  ;;  %v16313_v23 = vadd.f32 %v15813_v53, %v6914_v52  ;;  %v17967_v43 = vld [vmem:[#allocation197_spill] sm:$0xff]  ;;  %v16320_v46 = vadd.f32 %v15813_v53, %v6915_v51  ;;  %v17980_v56 = vld [vmem:[#allocation186_spill] sm:$0xff]  ;;  %v17989_v2 = vld [vmem:[#allocation356_spill] sm:$0xff] }
 0x615   : > { %8821 = vmatprep.subr.mxu1 %v17729_v32  ;;  %10602 = vmatpush3.msra.mxu0 %v15994_v38  ;;  %v6917_v48 = vmul.f32 %v17968_v27, %v17967_v43  ;;  %v6918_v38 = vmul.f32 %v17971_v62, %v17970_v63  ;;  %v6944_v44 = vmul.f32 %v17973_v30, %v17972_v59  ;;  %v7326_v8 = vmax.f32 %v7126_v54, 0.0  ;;  %v17981_v41 = vld [vmem:[#allocation354_spill] sm:$0xff]  ;;  %v16364_v62 = vpop.f32.mrf.mxu1 }
 0x616   : > { %8822 = vmatpush1.msra.mxu1 %v8397_v45  ;;  %10603 = vmatprep.subr.mxu0 %v16143_v14  ;;  %17969 = vst [vmem:[#allocation19_spill] sm:$0xff] %v16320_v46  ;;  %v7127_v39 = vadd.f32 %v15813_v53, %v6920_v20  ;;  %v6922_v55 = vmul.f32 %v17975_v60, %v17974_v3  ;;  %v17976_v14 = vld [vmem:[#allocation179_spill] sm:$0xff]  ;;  %v17987_v20 = vld [vmem:[#allocation220_spill] sm:$0xff]  ;;  %v17988_v54 = vld [vmem:[#allocation182_spill] sm:$0xff] }
 0x617   : > { %8823 = vmatprep.subr.mxu1 %v17729_v32  ;;  %10604 = vmatpush3.msra.mxu0 %v15989_v40  ;;  %v6928_v10 = vmul.f32 %v17977_v35, %v17976_v14  ;;  %v16335_v18 = vadd.f32 %v15813_v53, %v6916_v17  ;;  %v7128_v28 = vadd.f32 %v15813_v53, %v6921_v19  ;;  %v17978_v40 = vld [vmem:[#allocation208_spill] sm:$0xff]  ;;  %v17993_v35 = vld [vmem:[#allocation30_spill] sm:$0xff] }
 0x618   : > { %8824 = vmatpush1.msra.mxu1 %v8396_v26  ;;  %10605 = vmatprep.subr.mxu0 %v16126_v57  ;;  %v6943_v37 = vmul.f32 %v17979_v12, %v17978_v40  ;;  %v16342_v42 = vadd.f32 %v15813_v53, %v6917_v48  ;;  %v6924_v57 = vmul.f32 %v17981_v41, %v17980_v56  ;;  %v17984_v26 = vld [vmem:[#allocation227_spill] sm:$0xff]  ;;  %v7327_v4 = vmax.f32 %v7127_v39, 0.0  ;;  %v17990_v48 = vld [vmem:[#allocation22_spill] sm:$0xff] }
 0x619   : > { %8825 = vmatprep.subr.mxu1 %v17729_v32  ;;  %10606 = vmatpush3.msra.mxu0 %v15986_v9  ;;  %v6927_v52 = vmul.f32 %v17983_v36, %v17982_v58  ;;  %v16352_v5 = vadd.f32 %v15813_v53, %v6918_v38  ;;  %v17985_v9 = vld [vmem:[#allocation210_spill] sm:$0xff]  ;;  %v7151_v29 = vadd.f32 %v15813_v53, %v6944_v44  ;;  %v16366_v38 = vpop.f32.mrf.mxu0  ;;  %v17991_v44 = vld [vmem:[#allocation211_spill] sm:$0xff] }
 0x61a   : > { %8826 = vmatpush1.msra.mxu1 %v8395_v31  ;;  %10607 = vmatprep.subr.mxu0 %v17984_v26  ;;  %v17986_v31 = vld [vmem:[#allocation372_spill] sm:$0xff]  ;;  %v7129_v17 = vadd.f32 %v15813_v53, %v6922_v55  ;;  %v6926_v19 = vmul.f32 %v17989_v2, %v17988_v54  ;;  %v7135_v27 = vadd.f32 %v15813_v53, %v6928_v10  ;;  %v17992_v39 = vld [vmem:[#allocation371_spill] sm:$0xff] }
 0x61b   : > { %8827 = vmatprep.subr.mxu1 %v17729_v32  ;;  %v6942_v51 = vmul.f32 %v17986_v31, %v17985_v9  ;;  %10608 = vmatpush3.msra.mxu0 %v17987_v20  ;;  %v16369_v30 = vmul.f32 %v7326_v8, %v17953_v6  ;;  %v6941_v60 = vmul.f32 %v17992_v39, %v17991_v44  ;;  %v17994_v41 = vld [vmem:[#allocation183_spill] sm:$0xff]  ;;  %v17997_v31 = vld [vmem:[#allocation214_spill] sm:$0xff]  ;;  %v18000_v39 = vld [vmem:[#allocation216_spill] sm:$0xff] }
 0x61c   : > { %8828 = vmatpush1.msra.mxu1 %v8394_v22  ;;  %10609 = vmatprep.subr.mxu0 %v17990_v48  ;;  %v7328_v22 = vmax.f32 %v7128_v28, 0.0  ;;  %v7150_v55 = vadd.f32 %v15813_v53, %v6943_v37  ;;  %v7131_v12 = vadd.f32 %v15813_v53, %v6924_v57  ;;  %v17995_v36 = vld [vmem:[#allocation355_spill] sm:$0xff]  ;;  %v7134_v6 = vadd.f32 %v15813_v53, %v6927_v52  ;;  %v16383_v28 = vpop.f32.mrf.mxu1  ;;  %v16385_v37 = vpop.f32.mrf.mxu0  ;;  %v17998_v20 = vld [vmem:[#allocation370_spill] sm:$0xff] }
 0x61d   : > { %8829 = vmatprep.subr.mxu1 %v17729_v32  ;;  %10610 = vmatpush3.msra.mxu0 %v17993_v35  ;;  %v6925_v26 = vmul.f32 %v17995_v36, %v17994_v41  ;;  %v17996_v8 = vld [vmem:[#allocation23_spill] sm:$0xff]  ;;  %v7149_v2 = vadd.f32 %v15813_v53, %v6942_v51  ;;  %v7351_v48 = vmax.f32 %v7151_v29, 0.0  ;;  %v17999_v57 = vld [vmem:[#allocation226_spill] sm:$0xff]  ;;  %v16395_v52 = vmul.f32 %v7327_v4, %v17961_v0 }
 0x61e   : > { %8830 = vmatpush1.msra.mxu1 %v16272_v49  ;;  %10611 = vmatprep.subr.mxu0 %v17996_v8  ;;  %v6940_v49 = vmul.f32 %v17998_v20, %v17997_v31  ;;  %v7948_v35 = vadd.f32 %v18000_v39, %v17999_v57  ;;  %v18001_v36 = vld [vmem:[#allocation219_spill] sm:$0xff]  ;;  %v7329_v8 = vmax.f32 %v7129_v17, 0.0  ;;  %v7133_v45 = vadd.f32 %v15813_v53, %v6926_v19  ;;  %v7990_v51 = vpop.f32.mrf.mxu1  ;;  %v8031_v29 = vpop.f32.mrf.mxu0  ;;  %v18004_v39 = vld [vmem:[#allocation369_spill] sm:$0xff] }
 0x61f   : > { %8831 = vmatprep.subr.mxu1 %v17729_v32  ;;  %10612 = vmatpush3.msra.mxu0 %v18001_v36  ;;  %v7335_v10 = vmax.f32 %v7135_v27, 0.0  ;;  %v16401_v20 = vmul.f32 %v7328_v22, %v17965_v47  ;;  %v18003_v57 = vld [vmem:[#allocation215_spill] sm:$0xff]  ;;  %v7350_v0 = vmax.f32 %v7150_v55, 0.0  ;;  %v18007_v19 = vld [vmem:[#allocation353_spill] sm:$0xff]  ;;  %v7334_v13 = vmax.f32 %v7134_v6, 0.0  ;;  %v18008_v51 = vld [vmem:[#allocation26_spill] sm:$0xff] }
 0x620   : > { %8832 = vmatpush1.msra.mxu1 %v16269_v50  ;;  %10613 = vmatprep.subr.mxu0 %v18002_v24  ;;  %v6939_v36 = vmul.f32 %v18004_v39, %v18003_v57  ;;  %v7148_v50 = vadd.f32 %v15813_v53, %v6941_v60  ;;  %v18005_v4 = vld [vmem:[#allocation31_spill] sm:$0xff]  ;;  %v7132_v24 = vadd.f32 %v15813_v53, %v6925_v26  ;;  %v18009_v29 = vld [vmem:[#allocation34_spill] sm:$0xff]  ;;  %v7991_v22 = vpop.f32.mrf.mxu1  ;;  %v8032_v39 = vpop.f32.mrf.mxu0  ;;  %v7331_v60 = vmax.f32 %v7131_v12, 0.0 }
 0x621   : > { %8833 = vmatprep.subr.mxu1 %v17729_v32  ;;  %10614 = vmatpush3.msra.mxu0 %v18005_v4  ;;  %v18006_v17 = vld [vmem:[#allocation187_spill] sm:$0xff]  ;;  %v7946_v46 = vadd.f32 %v18009_v29, %v18008_v51  ;;  %v7147_v55 = vadd.f32 %v15813_v53, %v6940_v49  ;;  %v7349_v4 = vmax.f32 %v7149_v2, 0.0  ;;  %v8435_v26 = vmul.f32 %v7351_v48, %v17972_v59  ;;  %v18012_v51 = vld [vmem:[#allocation217_spill] sm:$0xff]  ;;  %v18013_v29 = vld [vmem:[#allocation368_spill] sm:$0xff] }
 0x622   : > { %8807 = vmatprep.mubr.f32.mxu0 %v7948_v35  ;;  %v6923_v27 = vmul.f32 %v18007_v19, %v18006_v17  ;;  %8834 = vmatpush1.msra.mxu1 %v16264_v15  ;;  %v18010_v47 = vld [vmem:[#allocation27_spill] sm:$0xff]  ;;  %v18011_v35 = vld [vmem:[#allocation213_spill] sm:$0xff]  ;;  %v16419_v6 = vmul.f32 %v7329_v8, %v17974_v3  ;;  %v7333_v19 = vmax.f32 %v7133_v45, 0.0  ;;  %v8419_v15 = vmul.f32 %v7335_v10, %v17976_v14  ;;  %v18015_v22 = vld [vmem:[#allocation390_spill] sm:$0xff] }
 0x623   : > { %10615 = vmatprep.subr.mxu0 %v18010_v47  ;;  %8835 = vmatprep.subr.mxu1 %v17729_v32  ;;  %v6938_v47 = vmul.f32 %v18013_v29, %v18012_v51  ;;  %v7146_v12 = vadd.f32 %v15813_v53, %v6939_v36  ;;  %v7348_v49 = vmax.f32 %v7148_v50, 0.0  ;;  %v18014_v2 = vld [vmem:[#allocation231_spill] sm:$0xff]  ;;  %v8434_v59 = vmul.f32 %v7350_v0, %v17978_v40  ;;  %v18016_v10 = vld [vmem:[#allocation218_spill] sm:$0xff]  ;;  %v18018_v36 = vld [vmem:[#allocation232_spill] sm:$0xff] }
 0x624   : > { %10616 = vmatpush3.msra.mxu0 %v18011_v35  ;;  %8836 = vmatpush1.msra.mxu1 %v16259_v25  ;;  %v6960_v39 = vmul.f32 %v18015_v22, %v18014_v2  ;;  %v7130_v3 = vadd.f32 %v15813_v53, %v6923_v27  ;;  %v7332_v14 = vmax.f32 %v7132_v24, 0.0  ;;  %v8418_v45 = vmul.f32 %v7334_v13, %v17982_v58  ;;  %v18017_v48 = vld [vmem:[#allocation367_spill] sm:$0xff]  ;;  %v18019_v50 = vld [vmem:[#allocation389_spill] sm:$0xff]  ;;  %v18021_v27 = vld [vmem:[#allocation366_spill] sm:$0xff] }
 0x625   : > { %8808 = vmatmul.mubr.f32.vlgmr.msra.gmra.mxu0 %v7946_v46  ;;  %8837 = vmatprep.subr.mxu1 %v17729_v32  ;;  %v6937_v25 = vmul.f32 %v18017_v48, %v18016_v10  ;;  %v8415_v46 = vmul.f32 %v7331_v60, %v17980_v56  ;;  %v7347_v8 = vmax.f32 %v7147_v55, 0.0  ;;  %v6959_v35 = vmul.f32 %v18019_v50, %v18018_v36  ;;  %v18020_v58 = vld [vmem:[#allocation221_spill] sm:$0xff]  ;;  %v18023_v55 = vld [vmem:[#allocation388_spill] sm:$0xff]  ;;  %v16454_v22 = vld [vmem:[#allocation5] ss:$0 sm:$0xff] }
 0x626   : > { %10620 = vmatprep.subr.mxu0 %v8435_v26  ;;  %8838 = vmatpush1.msra.mxu1 %v16256_v34  ;;  %v8433_v40 = vmul.f32 %v7349_v4, %v17985_v9  ;;  %v7324_v0 = vmax.f32 %v16342_v42, 0.0  ;;  %v8417_v13 = vmul.f32 %v7333_v19, %v17988_v54  ;;  %v6936_v24 = vmul.f32 %v18021_v27, %v18020_v58  ;;  %v18022_v60 = vld [vmem:[#allocation237_spill] sm:$0xff]  ;;  %v18024_v19 = vld [vmem:[#allocation222_spill] sm:$0xff] }
 0x627   : > { %10621 = vmatpush3.msra.mxu0 %v8419_v15  ;;  %8839 = vmatprep.subr.mxu1 %v17729_v32  ;;  %v7145_v34 = vadd.f32 %v15813_v53, %v6938_v47  ;;  %v7346_v56 = vmax.f32 %v7146_v12, 0.0  ;;  %v6958_v26 = vmul.f32 %v18023_v55, %v18022_v60  ;;  %v7167_v15 = vadd.f32 %v15813_v53, %v6960_v39  ;;  %v18025_v29 = vld [vmem:[#allocation365_spill] sm:$0xff]  ;;  %v18026_v12 = vld [vmem:[#allocation238_spill] sm:$0xff]  ;;  %v18027_v39 = vld [vmem:[#allocation387_spill] sm:$0xff] }
 0x628   : > { %10622 = vmatprep.subr.mxu0 %v8434_v59  ;;  %8840 = vmatpush1.msra.mxu1 %v16253_v7  ;;  %v8432_v9 = vmul.f32 %v7348_v49, %v17991_v44  ;;  %v7330_v54 = vmax.f32 %v7130_v3, 0.0  ;;  %v8416_v4 = vmul.f32 %v7332_v14, %v17994_v41  ;;  %v6935_v47 = vmul.f32 %v18025_v29, %v18024_v19  ;;  %v18028_v49 = vld [vmem:[#allocation224_spill] sm:$0xff]  ;;  %v18031_v50 = vld [vmem:[#allocation241_spill] sm:$0xff] }
 0x629   : > { %10623 = vmatpush3.msra.mxu0 %v8418_v45  ;;  %8841 = vmatprep.subr.mxu1 %v17729_v32  ;;  %v7144_v7 = vadd.f32 %v16454_v22, %v6937_v25  ;;  %v7325_v53 = vmax.f32 %v16352_v5, 0.0  ;;  %v6957_v59 = vmul.f32 %v18027_v39, %v18026_v12  ;;  %v7166_v44 = vadd.f32 %v16454_v22, %v6959_v35  ;;  %v18029_v3 = vld [vmem:[#allocation364_spill] sm:$0xff] }
 0x62a   : > { %10624 = vmatprep.subr.mxu0 %v8433_v40  ;;  %8842 = vmatpush1.msra.mxu1 %v16248_v11  ;;  %v8431_v41 = vmul.f32 %v7347_v8, %v17997_v31  ;;  %v6934_v14 = vmul.f32 %v18029_v3, %v18028_v49  ;;  %v7143_v45 = vadd.f32 %v16454_v22, %v6936_v24  ;;  %v7345_v48 = vmax.f32 %v7145_v34, 0.0  ;;  %v18030_v11 = vld [vmem:[#allocation230_spill] sm:$0xff]  ;;  %v18033_v24 = vld [vmem:[#allocation225_spill] sm:$0xff]  ;;  %v18034_v34 = vld [vmem:[#allocation363_spill] sm:$0xff] }
 0x62b   : > { %10625 = vmatpush3.msra.mxu0 %v8417_v13  ;;  %8843 = vmatprep.subr.mxu1 %v17729_v32  ;;  %v8030_v25 = vadd.f32 %v16385_v37, %v16383_v28  ;;  %v18032_v40 = vld [vmem:[#allocation386_spill] sm:$0xff]  ;;  %v7165_v13 = vadd.f32 %v16454_v22, %v6958_v26  ;;  %v7367_v27 = vmax.f32 %v7167_v15, 0.0  ;;  %v8430_v31 = vmul.f32 %v7346_v56, %v18003_v57  ;;  %v18036_v37 = vld [vmem:[#allocation385_spill] sm:$0xff]  ;;  %v18040_v39 = vld [vmem:[#allocation384_spill] sm:$0xff] }
 0x62c   : > { %10626 = vmatprep.subr.mxu0 %v8432_v9  ;;  %8844 = vmatpush1.msra.mxu1 %v18030_v11  ;;  %v6956_v35 = vmul.f32 %v18032_v40, %v18031_v50  ;;  %v8414_v8 = vmul.f32 %v7330_v54, %v18006_v17  ;;  %v6933_v55 = vmul.f32 %v18034_v34, %v18033_v24  ;;  %v18035_v28 = vld [vmem:[#allocation242_spill] sm:$0xff]  ;;  %v7366_v29 = vmax.f32 %v7166_v44, 0.0  ;;  %v18037_v17 = vld [vmem:[#allocation228_spill] sm:$0xff]  ;;  %v18042_v3 = vld [vmem:[#allocation361_spill] sm:$0xff] }
 0x62d   : > { %10627 = vmatpush3.msra.mxu0 %v8416_v4  ;;  %8873 = vmatprep.subr.mxu1 %v17729_v32  ;;  %v7142_v9 = vadd.f32 %v16454_v22, %v6935_v47  ;;  %v7344_v4 = vmax.f32 %v7144_v7, 0.0  ;;  %v6955_v26 = vmul.f32 %v18036_v37, %v18035_v28  ;;  %v7164_v15 = vadd.f32 %v16454_v22, %v6957_v59  ;;  %v18038_v56 = vld [vmem:[#allocation362_spill] sm:$0xff]  ;;  %v18044_v11 = vld [vmem:[#allocation383_spill] sm:$0xff] }
 0x62e   : > { %10628 = vmatprep.subr.mxu0 %v8431_v41  ;;  %8874 = vmatpush2.msra.mxu1 %v16297_v21  ;;  %v8028_v57 = vadd.f32 %v16366_v38, %v16364_v62  ;;  %v6932_v54 = vmul.f32 %v18038_v56, %v18037_v17  ;;  %v7141_v47 = vadd.f32 %v16454_v22, %v6934_v14  ;;  %v7343_v7 = vmax.f32 %v7143_v45, 0.0  ;;  %v18041_v41 = vld [vmem:[#allocation229_spill] sm:$0xff] }
 0x62f   : > { %10629 = vmatpush3.msra.mxu0 %v8415_v46  ;;  %8875 = vmatprep.subr.mxu1 %v17729_v32  ;;  %v8429_v21 = vmul.f32 %v7345_v48, %v18012_v51  ;;  %v18039_v46 = vld [vmem:[#allocation244_spill] sm:$0xff]  ;;  %v7163_v62 = vadd.f32 %v16454_v22, %v6956_v35  ;;  %v7365_v38 = vmax.f32 %v7165_v13, 0.0  ;;  %v8451_v44 = vmul.f32 %v7367_v27, %v18014_v2  ;;  %v18043_v48 = vld [vmem:[#allocation245_spill] sm:$0xff]  ;;  %v18045_v13 = vld [vmem:[#allocation234_spill] sm:$0xff] }
 0x630   : > { %10630 = vmatprep.subr.mxu0 %v8430_v31  ;;  %8876 = vmatpush2.msra.mxu1 %v16294_v1  ;;  %v6954_v59 = vmul.f32 %v18040_v39, %v18039_v46  ;;  %v6931_v14 = vmul.f32 %v18042_v3, %v18041_v41  ;;  %v7140_v45 = vadd.f32 %v16454_v22, %v6933_v55  ;;  %v7342_v1 = vmax.f32 %v7142_v9, 0.0  ;;  %v18046_v27 = vld [vmem:[#allocation360_spill] sm:$0xff]  ;;  %v18047_v55 = vld [vmem:[#allocation247_spill] sm:$0xff]  ;;  %v18048_v9 = vld [vmem:[#allocation382_spill] sm:$0xff] }
 0x631   : > { %10004 = vmatprep.mubr.msk.f32.mxu1 %vm3173_vm0, %v8030_v25  ;;  %10631 = vmatpush3.msra.mxu0 %v8414_v8  ;;  %v8428_v51 = vmul.f32 %v7344_v4, %v18016_v10  ;;  %v6953_v25 = vmul.f32 %v18044_v11, %v18043_v48  ;;  %v7162_v40 = vadd.f32 %v16454_v22, %v6955_v26  ;;  %v7364_v35 = vmax.f32 %v7164_v15, 0.0  ;;  %v18049_v26 = vld [vmem:[#allocation235_spill] sm:$0xff] }
 0x632   : > { %8878 = vmatmul.mubr.f32.vlgmr.msra.gmra.mxu1 %v8028_v57  ;;  %10632 = vmatprep.subr.mxu0 %v8429_v21  ;;  %v8450_v2 = vmul.f32 %v7366_v29, %v18018_v36  ;;  %v6930_v31 = vmul.f32 %v18046_v27, %v18045_v13  ;;  %v7139_v8 = vadd.f32 %v16454_v22, %v6932_v54  ;;  %v7341_v34 = vmax.f32 %v7141_v47, 0.0  ;;  %v18050_v15 = vld [vmem:[#allocation359_spill] sm:$0xff]  ;;  %v18051_v54 = vld [vmem:[#allocation248_spill] sm:$0xff]  ;;  %v18052_v47 = vld [vmem:[#allocation381_spill] sm:$0xff] }
 0x633   : > { %8956 = vmatprep.subr.mxu1 %v17729_v32  ;;  %10633 = vmatpush3.msra.mxu0 %v16419_v6  ;;  %v8427_v10 = vmul.f32 %v7343_v7, %v18020_v58  ;;  %v6952_v4 = vmul.f32 %v18048_v9, %v18047_v55  ;;  %v7161_v37 = vadd.f32 %v16454_v22, %v6954_v59  ;;  %v7363_v36 = vmax.f32 %v7163_v62, 0.0  ;;  %v18063_v9 = vld [vmem:[#allocation377_spill] sm:$0xff] }
 0x634   : > { %8957 = vmatpush1.msra.mxu1 %v8451_v44  ;;  %10634 = vmatprep.subr.mxu0 %v8428_v51  ;;  %v8449_v6 = vmul.f32 %v7365_v38, %v18022_v60  ;;  %v6929_v29 = vmul.f32 %v18050_v15, %v18049_v26  ;;  %v7138_v57 = vadd.f32 %v16454_v22, %v6931_v14  ;;  %v7340_v56 = vmax.f32 %v7140_v45, 0.0  ;;  %v18053_v38 = vld [vmem:[#allocation249_spill] sm:$0xff]  ;;  %v18054_v44 = vld [vmem:[#allocation380_spill] sm:$0xff]  ;;  %v18055_v45 = vld [vmem:[#allocation250_spill] sm:$0xff] }
 0x635   : > { %8958 = vmatprep.subr.mxu1 %v17729_v32  ;;  %10635 = vmatpush3.msra.mxu0 %v16401_v20  ;;  %v8426_v58 = vmul.f32 %v7342_v1, %v18024_v19  ;;  %v6951_v7 = vmul.f32 %v18052_v47, %v18051_v54  ;;  %v7160_v21 = vadd.f32 %v16454_v22, %v6953_v25  ;;  %v7362_v60 = vmax.f32 %v7162_v40, 0.0  ;;  %v18056_v1 = vld [vmem:[#allocation379_spill] sm:$0xff] }
 0x636   : > { %8959 = vmatpush1.msra.mxu1 %v8450_v2  ;;  %10636 = vmatprep.subr.mxu0 %v8427_v10  ;;  %v8448_v20 = vmul.f32 %v7364_v35, %v18026_v12  ;;  %v8409_v39 = vmul.f32 %v7325_v53, %v17970_v63  ;;  %v7137_v59 = vadd.f32 %v16454_v22, %v6930_v31  ;;  %v7339_v62 = vmax.f32 %v7139_v8, 0.0  ;;  %v18058_v40 = vld [vmem:[#allocation251_spill] sm:$0xff]  ;;  %v18059_v35 = vld [vmem:[#allocation378_spill] sm:$0xff]  ;;  %v18062_v10 = vld [vmem:[#allocation252_spill] sm:$0xff] }
 0x637   : > { %8960 = vmatprep.subr.mxu1 %v17729_v32  ;;  %10637 = vmatpush3.msra.mxu0 %v16395_v52  ;;  %v8425_v19 = vmul.f32 %v7341_v34, %v18028_v49  ;;  %v6950_v3 = vmul.f32 %v18054_v44, %v18053_v38  ;;  %v7159_v12 = vadd.f32 %v16454_v22, %v6952_v4  ;;  %v7361_v14 = vmax.f32 %v7161_v37, 0.0  ;;  %v16570_v15 = vpop.f32.mrf.mxu1 }
 0x638   : > { %8961 = vmatpush1.msra.mxu1 %v8449_v6  ;;  %10638 = vmatprep.subr.mxu0 %v8426_v58  ;;  %v8447_v52 = vmul.f32 %v7363_v36, %v18031_v50  ;;  %v8408_v63 = vmul.f32 %v7324_v0, %v17967_v43  ;;  %v7136_v5 = vadd.f32 %v16454_v22, %v6929_v29  ;;  %v7338_v53 = vmax.f32 %v7138_v57, 0.0  ;;  %v18066_v29 = vld [vmem:[#allocation376_spill] sm:$0xff] }
 0x639   : > { %8962 = vmatprep.subr.mxu1 %v17729_v32  ;;  %10639 = vmatpush3.msra.mxu0 %v16369_v30  ;;  %v8424_v49 = vmul.f32 %v7340_v56, %v18033_v24  ;;  %v6949_v51 = vmul.f32 %v18056_v1, %v18055_v45  ;;  %v7158_v50 = vadd.f32 %v16454_v22, %v6951_v7  ;;  %v7360_v11 = vmax.f32 %v7160_v21, 0.0  ;;  %v18073_v1 = vld [vmem:[#allocation391_spill] sm:$0xff] }
 0x63a   : > { %8963 = vmatpush1.msra.mxu1 %v8448_v20  ;;  %10640 = vmatprep.subr.mxu0 %v8425_v19  ;;  %v8446_v30 = vmul.f32 %v7362_v60, %v18035_v28  ;;  %v7321_v43 = vmax.f32 %v16313_v23, 0.0  ;;  %v18057_v42 = vmax.f32 %v16335_v18, 0.0  ;;  %v7337_v25 = vmax.f32 %v7137_v59, 0.0  ;;  %v18068_v60 = vld [vmem:[#allocation254_spill] sm:$0xff]  ;;  %v18069_v20 = vld [vmem:[#allocation375_spill] sm:$0xff] }
 0x63b   : > { %8964 = vmatprep.subr.mxu1 %v17729_v32  ;;  %10641 = vmatpush3.msra.mxu0 %v8409_v39  ;;  %v8423_v24 = vmul.f32 %v7339_v62, %v18037_v17  ;;  %v6948_v2 = vmul.f32 %v18059_v35, %v18058_v40  ;;  %v7157_v27 = vadd.f32 %v16454_v22, %v6950_v3  ;;  %v7359_v28 = vmax.f32 %v7159_v12, 0.0  ;;  %v18070_v12 = vld [vmem:[#allocation255_spill] sm:$0xff] }
 0x63c   : > { %8965 = vmatpush1.msra.mxu1 %v8447_v52  ;;  %v8407_v0 = vmul.f32 %v18057_v42, %v17963_v61  ;;  %10642 = vmatprep.subr.mxu0 %v8424_v49  ;;  %v8445_v31 = vmul.f32 %v7361_v14, %v18039_v46  ;;  %v7320_v23 = vmax.f32 %v16310_v33, 0.0  ;;  %v18060_v61 = vld [vmem:[#allocation19_spill] sm:$0xff]  ;;  %v7336_v34 = vmax.f32 %v7136_v5, 0.0  ;;  %v18071_v14 = vld [vmem:[#allocation392_spill] sm:$0xff] }
 0x63d   : > { %8966 = vmatprep.subr.mxu1 %v17729_v32  ;;  %10643 = vmatpush3.msra.mxu0 %v8408_v63  ;;  %v18061_v18 = vmax.f32 %v18060_v61, 0.0  ;;  %v8422_v17 = vmul.f32 %v7338_v53, %v18041_v41  ;;  %v6947_v4 = vmul.f32 %v18063_v9, %v18062_v10  ;;  %v7156_v37 = vadd.f32 %v16454_v22, %v6949_v51  ;;  %v18064_v33 = vld [vmem:[#allocation203_spill] sm:$0xff]  ;;  %v18065_v41 = vld [vmem:[#allocation253_spill] sm:$0xff]  ;;  %v18072_v49 = vld [vmem:[#allocation256_spill] sm:$0xff] }
 0x63e   : > { %8967 = vmatpush1.msra.mxu1 %v8446_v30  ;;  %10644 = vmatprep.subr.mxu0 %v8423_v24  ;;  %v7358_v46 = vmax.f32 %v7158_v50, 0.0  ;;  %v8444_v36 = vmul.f32 %v7360_v11, %v18043_v48  ;;  %v8405_v6 = vmul.f32 %v7321_v43, %v18064_v33  ;;  %v6946_v57 = vmul.f32 %v18066_v29, %v18065_v41  ;;  %v18067_v48 = vld [vmem:[#allocation204_spill] sm:$0xff] }
 0x63f   : > { %v8406_v8 = vmul.f32 %v18061_v18, %v17959_v16  ;;  %8968 = vmatprep.subr.mxu1 %v17729_v32  ;;  %10645 = vmatpush3.msra.mxu0 %v8407_v0  ;;  %v8421_v16 = vmul.f32 %v7337_v25, %v18045_v13  ;;  %v7155_v56 = vadd.f32 %v16454_v22, %v6948_v2  ;;  %v7357_v58 = vmax.f32 %v7157_v27, 0.0  ;;  %v8167_v13 = vpop.f32.mrf.mxu1  ;;  %v9028_v18 = vld [vmem:[%s16709_s5 + $0x10] sm:$0xff] }
 0x640   : > { %8969 = vmatpush1.msra.mxu1 %v8445_v31  ;;  %10646 = vmatprep.subr.mxu0 %v8422_v17  ;;  %v8443_v47 = vmul.f32 %v7359_v28, %v18047_v55  ;;  %v8404_v7 = vmul.f32 %v7320_v23, %v18067_v48  ;;  %v8420_v21 = vmul.f32 %v7336_v34, %v18049_v26  ;;  %v7356_v62 = vmax.f32 %v7156_v37, 0.0  ;;  %v9029_v23 = vld [vmem:[%s16709_s5 + $0x18] sm:$0xff]  ;;  %v9026_v34 = vld [vmem:[%s16709_s5] sm:$0xff] }
 0x641   : > { %8970 = vmatprep.subr.mxu1 %v17729_v32  ;;  %10647 = vmatpush3.msra.mxu0 %v8406_v8  ;;  %v6945_v39 = vmul.f32 %v18069_v20, %v18068_v60  ;;  %v7154_v59 = vadd.f32 %v16454_v22, %v6947_v4  ;;  %v8442_v19 = vmul.f32 %v7358_v46, %v18051_v54  ;;  %v8169_v55 = vpop.f32.mrf.mxu1  ;;  %v7355_v3 = vmax.f32 %v7155_v56, 0.0  ;;  %v9027_v8 = vld [vmem:[%s16709_s5 + $0x8] sm:$0xff] }
 0x642   : > { %8971 = vmatpush1.msra.mxu1 %v8444_v36  ;;  %10648 = vmatprep.subr.mxu0 %v8421_v16  ;;  %v7153_v44 = vadd.f32 %v16454_v22, %v6946_v57  ;;  %v8441_v26 = vmul.f32 %v7357_v58, %v18053_v38  ;;  %v6962_v52 = vmul.f32 %v18071_v14, %v18070_v12 }
 0x643   : > { %8972 = vmatprep.subr.mxu1 %v17729_v32  ;;  %10649 = vmatpush3.msra.mxu0 %v8405_v6  ;;  %v8170_v63 = vpop.f32.mrf.mxu1  ;;  %v7152_v54 = vadd.f32 %v16454_v22, %v6945_v39  ;;  %v7354_v5 = vmax.f32 %v7154_v59, 0.0  ;;  %v8440_v53 = vmul.f32 %v7356_v62, %v18055_v45  ;;  %v6961_v51 = vmul.f32 %v18073_v1, %v18072_v49 }
 0x644   : > { %8973 = vmatpush1.msra.mxu1 %v8443_v47  ;;  %10650 = vmatprep.subr.mxu0 %v8420_v21  ;;  %v7353_v38 = vmax.f32 %v7153_v44, 0.0  ;;  %v8439_v50 = vmul.f32 %v7355_v3, %v18058_v40  ;;  %v7169_v11 = vadd.f32 %v16454_v22, %v6962_v52 }
 0x645   : > { %8974 = vmatprep.subr.mxu1 %v17729_v32  ;;  %10651 = vmatpush3.msra.mxu0 %v8404_v7  ;;  %v7352_v30 = vmax.f32 %v7152_v54, 0.0  ;;  %v8438_v43 = vmul.f32 %v7354_v5, %v18062_v10  ;;  %v7168_v42 = vadd.f32 %v16454_v22, %v6961_v51 }
 0x646   : > { %8975 = vmatpush1.msra.mxu1 %v8442_v19  ;;  %10675 = vmatprep.subr.mxu0 %v17729_v32  ;;  %v8437_v45 = vmul.f32 %v7353_v38, %v18065_v41  ;;  %v7369_v0 = vmax.f32 %v7169_v11, 0.0 }
 0x647   : > { %8976 = vmatprep.subr.mxu1 %v17729_v32  ;;  %v8436_v25 = vmul.f32 %v7352_v30, %v18068_v60  ;;  %v7368_v24 = vmax.f32 %v7168_v42, 0.0 }
 0x648   : > { %8977 = vmatpush1.msra.mxu1 %v8441_v26  ;;  %v8453_v40 = vmul.f32 %v7369_v0, %v18070_v12 }
 0x649   : > { %8978 = vmatprep.subr.mxu1 %v17729_v32  ;;  %v8452_v22 = vmul.f32 %v7368_v24, %v18072_v49 }
 0x64a   : > { %8979 = vmatpush1.msra.mxu1 %v8440_v53 }
 0x64b   : > { %8980 = vmatprep.subr.mxu1 %v17729_v32 }
 0x64c   : > { %8981 = vmatpush1.msra.mxu1 %v8439_v50 }
 0x64d   : > { %8982 = vmatprep.subr.mxu1 %v17729_v32 }
 0x64e   : > { %8983 = vmatpush1.msra.mxu1 %v8438_v43 }
 0x64f   : > { %8984 = vmatprep.subr.mxu1 %v17729_v32 }
 0x650   : > { %8985 = vmatpush1.msra.mxu1 %v8437_v45 }
 0x651   : > { %8986 = vmatprep.subr.mxu1 %v17729_v32 }
 0x652   : > { %8987 = vmatpush1.msra.mxu1 %v8436_v25 }
 0x653   : > { %9016 = vmatprep.subr.mxu1 %v17729_v32 }
 0x654   : > { %9017 = vmatpush2.msra.mxu1 %v8453_v40 }
 0x655   : > { %9018 = vmatprep.subr.mxu1 %v17729_v32 }
 0x656   : > { %9019 = vmatpush2.msra.mxu1 %v8452_v22 }
 0x657   : > { %10708 = vmatprep.subr.mxu1 %v17729_v32 }
 0x658   : > { %v8124_v35 = vpop.f32.mrf.mxu0 }
 0x659   : > { %v8166_v28 = vadd.f32 %v16570_v15, %v8124_v35 }
 0x65a   : > { %v8126_v2 = vpop.f32.mrf.mxu0 }
 0x65b   : > { %v8168_v27 = vadd.f32 %v8167_v13, %v8126_v2 }
 0x65c   : > { %v8128_v31 = vpop.f32.mrf.mxu0 }
 0x65d   : > { %8950 = vmatprep.mubr.f32.mxu0 %v8168_v27 }
 0x65e   : > { %v8129_v61 = vpop.f32.mrf.mxu0  ;;  %8951 = vmatmul.mubr.f32.vlgmr.msra.gmra.mxu0 %v8166_v28 }
 0x65f   : > { %10676 = vmatpush3.msra.mxu0 %v9029_v23  ;;  %10683 = vmatprep.mubr.msk.f32.mxu0 %vm11961_vm1, %v17729_v32 }
 0x660   : > { %10677 = vmatprep.subr.mxu0 %v17729_v32 }
 0x661   : > { %10678 = vmatpush3.msra.mxu0 %v9028_v18 }
 0x662   : > { %10679 = vmatprep.subr.mxu0 %v17729_v32 }
 0x663   : > { %10680 = vmatpush3.msra.mxu0 %v9027_v8 }
 0x664   : > { %10681 = vmatprep.subr.mxu0 %v17729_v32 }
 0x665   : > { %10682 = vmatpush3.msra.mxu0 %v9026_v34 }
 0x666   : > { %10686 = vmatprep.subr.mxu0 %v17729_v32 }
 0x67e   : > { %v8206_v17 = vpop.f32.mrf.mxu1 }
 0x67f   : > { %v8247_v10 = vpop.f32.mrf.mxu0 }
 0x680   : > { %v8208_v9 = vpop.f32.mrf.mxu1  ;;  %v8248_v46 = vadd.f32 %v8247_v10, %v8206_v17 }
 0x681   : > { %v8249_v4 = vpop.f32.mrf.mxu0 }
 0x682   : > { %v8250_v37 = vadd.f32 %v8249_v4, %v8208_v9  ;;  %v8210_v33 = vpop.f32.mrf.mxu1 }
 0x683   : > { %v8251_v36 = vpop.f32.mrf.mxu0 }
 0x684   : > { %10005 = vmatprep.mubr.msk.f32.mxu1 %vm3173_vm0, %v8250_v37  ;;  %v8211_v16 = vpop.f32.mrf.mxu1 }
 0x685   : > { %9021 = vmatmul.mubr.f32.vlgmr.msra.gmra.mxu1 %v8248_v46  ;;  %v8252_v6 = vpop.f32.mrf.mxu0 }
 0x686   : > { %10709 = vmatpush3.msra.mxu1 %v9029_v23  ;;  %10716 = vmatprep.mubr.msk.f32.mxu1 %vm11961_vm1, %v17729_v32 }
 0x687   : > { %10710 = vmatprep.subr.mxu1 %v17729_v32 }
 0x688   : > { %10711 = vmatpush3.msra.mxu1 %v9028_v18 }
 0x689   : > { %10712 = vmatprep.subr.mxu1 %v17729_v32 }
 0x68a   : > { %10713 = vmatpush3.msra.mxu1 %v9027_v8 }
 0x68b   : > { %10714 = vmatprep.subr.mxu1 %v17729_v32 }
 0x68c   : > { %10715 = vmatpush3.msra.mxu1 %v9026_v34 }
 0x6a1   : > { %v10547_v15 = vpop.f32.mrf.mxu0 }
 0x6a3   : > { %v10548_v41 = vpop.f32.mrf.mxu0 }
 0x6a4   : > { %v10549_v29 = vadd.f32 %v10548_v41, %v10547_v15 }
 0x6a6   : > { %v8593_v57 = vpop.f32.mrf.mxu1 }
 0x6a7   : > { %v8594_v56 = vadd.f32 %v10549_v29, %v8593_v57 }
 0x6a8   : > { %v8595_v58 = vpop.f32.mrf.mxu1 }
 0x6a9   : > { %10684 = vmatmul.mubr.msk.f32.vlgmr.msra.gmra.mxu0 %vm9031_vm2, %v8594_v56 }
 0x6aa   : > { %10687 = vmatpush3.msra.mxu0 %v9029_v23  ;;  %10694 = vmatprep.mubr.msk.f32.mxu0 %vm11961_vm1, %v17729_v32 }
 0x6ab   : > { %10688 = vmatprep.subr.mxu0 %v17729_v32 }
 0x6ac   : > { %10689 = vmatpush3.msra.mxu0 %v9028_v18 }
 0x6ad   : > { %10690 = vmatprep.subr.mxu0 %v17729_v32 }
 0x6ae   : > { %10691 = vmatpush3.msra.mxu0 %v9027_v8 }
 0x6af   : > { %10692 = vmatprep.subr.mxu0 %v17729_v32 }
 0x6b0   : > { %10693 = vmatpush3.msra.mxu0 %v9026_v34 }
 0x6b1   : > { %10697 = vmatprep.subr.mxu0 %v17729_v32 }
 0x6c4   : > { %v10582_v47 = vpop.f32.mrf.mxu0 }
 0x6c6   : > { %v10583_v48 = vpop.f32.mrf.mxu0 }
 0x6c7   : > { %v10584_v7 = vadd.f32 %v10583_v48, %v10582_v47 }
 0x6cc   : > { %v8736_v21 = vpop.f32.mrf.mxu1 }
 0x6cd   : > { %v8737_v13 = vadd.f32 %v10584_v7, %v8736_v21 }
 0x6ce   : > { %v8738_v60 = vpop.f32.mrf.mxu1 }
 0x6cf   : > { %10695 = vmatmul.mubr.msk.f32.vlgmr.msra.gmra.mxu0 %vm9031_vm2, %v8737_v13 }
 0x6d0   : > { %10698 = vmatpush3.msra.mxu0 %v9029_v23  ;;  %10705 = vmatprep.mubr.msk.f32.mxu0 %vm11961_vm1, %v17729_v32 }
 0x6d1   : > { %10699 = vmatprep.subr.mxu0 %v17729_v32 }
 0x6d2   : > { %10700 = vmatpush3.msra.mxu0 %v9028_v18 }
 0x6d3   : > { %10701 = vmatprep.subr.mxu0 %v17729_v32 }
 0x6d4   : > { %10702 = vmatpush3.msra.mxu0 %v9027_v8 }
 0x6d5   : > { %10703 = vmatprep.subr.mxu0 %v17729_v32  ;;  %v9030_v32 = vld [vmem:[#allocation7] sm:$0x1] }
 0x6d6   : > { %10704 = vmatpush3.msra.mxu0 %v9026_v34 }
 0x6e5   : > { %v10617_v20 = vpop.f32.mrf.mxu0 }
 0x6e7   : > { %v10618_v39 = vpop.f32.mrf.mxu0 }
 0x6e8   : > { %v10619_v59 = vadd.f32 %v10618_v39, %v10617_v20 }
 0x6f2   : > { %v8879_v62 = vpop.f32.mrf.mxu1 }
 0x6f3   : > { %v8880_v19 = vadd.f32 %v10619_v59, %v8879_v62 }
 0x6f4   : > { %v8881_v55 = vpop.f32.mrf.mxu1 }
 0x6f5   : > { %10706 = vmatmul.mubr.msk.f32.vlgmr.msra.gmra.mxu0 %vm9031_vm2, %v8880_v19 }
 0x71e   : > { %v10652_v44 = vpop.f32.mrf.mxu0 }
 0x720   : > { %v10653_v3 = vpop.f32.mrf.mxu0 }
 0x721   : > { %v10654_v26 = vadd.f32 %v10653_v3, %v10652_v44 }
 0x745   : > { %v9022_v12 = vpop.f32.mrf.mxu1 }
 0x746   : > { %v9023_v14 = vadd.f32 %v10654_v26, %v9022_v12 }
 0x747   : > { %v9024_v52 = vpop.f32.mrf.mxu1 }
 0x748   : > { %10717 = vmatmul.mubr.msk.f32.vlgmr.msra.gmra.mxu1 %vm9031_vm2, %v9023_v14 }
 0x769   : > { %v9101_v63 = vpop.f32.mrf.mxu0 }
 0x76a   : > { %v9102_v54 = vadd.f32 %v9101_v63, %v9030_v32 }
 0x76b   : > { %v10685_v5 = vpop.f32.mrf.mxu0 }
 0x76c   : > { %9325 = vst.msk [vmem:[%s374_s21] sm:$0x1] %vm9324_vm3, %v9102_v54 }
 0x78f   : > { %v9174_v53 = vpop.f32.mrf.mxu0 }
 0x790   : > { %v9175_v49 = vadd.f32 %v9174_v53, %v9030_v32 }
 0x791   : > { %v10696_v1 = vpop.f32.mrf.mxu0 }
 0x792   : > { %9326 = vst.msk [vmem:[%s374_s21 + $0x1] sm:$0x1] %vm9324_vm3, %v9175_v49 }
 0x7b5   : > { %v9247_v51 = vpop.f32.mrf.mxu0 }
 0x7b6   : > { %v9248_v38 = vadd.f32 %v9247_v51, %v9030_v32 }
 0x7b7   : > { %v10707_v50 = vpop.f32.mrf.mxu0 }
 0x7b8   : > { %9327 = vst.msk [vmem:[%s374_s21 + $0x2] sm:$0x1] %vm9324_vm3, %v9248_v38 }
 0x808   : > { %v9320_v11 = vpop.f32.mrf.mxu1 }
 0x809   : > { %v9321_v30 = vadd.f32 %v9320_v11, %v9030_v32 }
 0x80a   : > { %v10718_v43 = vpop.f32.mrf.mxu1 }
 0x80b   : > { %9328 = vst.msk [vmem:[%s374_s21 + $0x3] sm:$0x1] %vm9324_vm3, %v9321_v30 }
 0x80c   : > { %11896 = shalt.err (!%p11893_p8)
}
 0x80d   : > { %s11897_s16 = scalar_lea.hbm %s16660_s9, 64  ;;  %s11901_s11 = scalar_lea.hbm %s16711_s7, 128 }
 0x80e   : > { %p11898_p2 = scmp.ne.s32.totalorder %s16660_s9, %s11897_s16  ;;  %p11902_p13 = scmp.lt.s32.totalorder %s16660_s9, %s16711_s7 }
 0x80f   : > { %p11903_p3 = scmp.lt.s32.totalorder %s11901_s11, %s11897_s16 }
 0x810   : > { %p11899_p7 = pnand %p11898_p2, %p18074_p5 }
 0x811   : > { %p11904_p0 = por %p11903_p3, %p11902_p13 }
 0x812   : > { %p11900_p6 = pneg %p11899_p7 }
 0x814   : > { %p11905_p4 = pnand %p11904_p0, %p11900_p6 }
 0x816   : > { %11908 = shalt.err (!%p11905_p4)
}
 0x817   : > { %s11963_s29 = smov 16   ;;  %s11964_s8 = smov 1  }
 0x818   : > { %10734 = dma.vmem_to_hbm [thread:$0]  (%p18074_p5), %s16655_s20, 64, %s16660_s9, %s9330_s4, %s11963_s29, %s11963_s29, %s11964_s8  }
 0x819 PF: > { %s9358_s12 = sand.u32 1, %s11939_s24   ;;  %p18075_p9 = scmp.ne.s32.totalorder %s17120_s14, 0 }
 0x81a   : > { %p18076_p10 = scmp.ge.s32.totalorder %s11951_s27, 2  ;;  %s9359_s28 = scalar_lea.sflag [#allocation4], %s9358_s12 }
 0x81c   : > { %p10748_p1 = pnand %p18076_p10, %p18075_p9 }
 0x81e   : > { %p10749_p12 = pneg %p10748_p1 }
 0x820   : > { %11934 = dma.done.wait (%p10749_p12), %s9359_s28, 64  }
 0x821   : > { %11936 = vsyncadd (%p10749_p12), %s9359_s28, 4294967232  ;;  %p21_p11 = scmp.ge.s32.totalorder %s12030_s30, 4   ;;  %s18077_s24 = smov %s11943_s25 }
 0x822   : > { %s18078_s25 = smov %s11947_s26  ;;  %s18079_s26 = smov %s12042_s10 }
 0x823   : > { %s18080_s27 = smov %s12030_s30  ;;  %23 = sbr.rel (!%p21_p11) target bundleno = 8 (0x8), region = 110 }
 0x828   :  { %9364 = vsyncpa [#allocation3], 1 }
 0x829   :  { %9366 = vsyncpa [#allocation3 + $0x1], 1 }
 0x82a   :  { %9367 = vsyncpa [#allocation6], 1 }
 0x82b   :  { %9368 = vsyncpa [#allocation4], 1 }
 0x82c   :  { %9370 = vsyncpa [#allocation4 + $0x1], 1 }

</bundles_post_ra>
